<compile_context>
chip_gen: v5e
topology: v5e:2x2
jax: 0.10.0
libtpu: 0.0.40
codegen_flags: <defaults>
</compile_context>

<pallas_src>
import functools

import jax
import jax.numpy as jnp
from jax.experimental import pallas as pl
from jax.experimental.pallas import tpu as pltpu


_COMPILER_PARAMS = pltpu.CompilerParams(
    dimension_semantics=("arbitrary",),
    vmem_limit_bytes=32 * 1024 * 1024,   # well above actual ~2.5 MiB peak, below all chip defaults
)


# ----------------------------- Pallas kernels --------------------------------

def _se_down_cf_kernel(pt_ref, wt_ref, sc_ref, bi_ref, w1t_ref, w2t_ref, o_ref,
                       *, batch, hw):
    """Channels-first fused DownShape + SELayer (lane dim = spatial = B*hw).

      pt_ref : (K, B*hw)  bf16  im2col patches, transposed (K = 16*C_in)
      wt_ref : (C, K)     bf16  conv weight (HWIO flatten), transposed
      sc_ref / bi_ref : (C, 1) f32  folded BatchNorm2d scale / bias
      w1t_ref: (Cr, C), w2t_ref: (C, Cr)  f32  SE excitation weights (transposed)
      o_ref  : (C, B*hw)  f32
    """
    h = jnp.dot(wt_ref[...], pt_ref[...], preferred_element_type=jnp.float32)
    h = jnp.maximum(h * sc_ref[...] + bi_ref[...], 0.0)          # BN(eval) + ReLU
    # SE squeeze: per-batch global average pool over that batch's hw columns.
    s = jnp.concatenate(
        [jnp.mean(h[:, b * hw:(b + 1) * hw], axis=1, keepdims=True)
         for b in range(batch)], axis=1)                          # (C, B)
    # SE excite (batched over B): FC -> ReLU -> FC -> Sigmoid.
    s = jnp.maximum(jnp.dot(w1t_ref[...], s,
                            preferred_element_type=jnp.float32), 0.0)   # (Cr, B)
    s = jax.nn.sigmoid(jnp.dot(w2t_ref[...], s,
                               preferred_element_type=jnp.float32))     # (C, B)
    for b in range(batch):                                        # SE rescale
        o_ref[:, b * hw:(b + 1) * hw] = h[:, b * hw:(b + 1) * hw] * s[:, b:b + 1]


def _se_down_cl_kernel(p_ref, w_ref, sc_ref, bi_ref, w1_ref, w2_ref, o_ref,
                       *, batch, hw):
    """Channels-last fused DownShape + SELayer (lane dim = C_out >= 128).

      p_ref : (B*hw, K) bf16,  w_ref : (K, C) bf16
      sc_ref / bi_ref : (1, C) f32
      w1_ref: (C, Cr), w2_ref: (Cr, C) f32
      o_ref : (B*hw, C) f32
    """
    h = jnp.dot(p_ref[...], w_ref[...], preferred_element_type=jnp.float32)
    h = jnp.maximum(h * sc_ref[...] + bi_ref[...], 0.0)          # BN(eval) + ReLU
    s = jnp.concatenate(
        [jnp.mean(h[b * hw:(b + 1) * hw, :], axis=0, keepdims=True)
         for b in range(batch)], axis=0)                          # (B, C)
    s = jnp.maximum(jnp.dot(s, w1_ref[...],
                            preferred_element_type=jnp.float32), 0.0)   # (B, Cr)
    s = jax.nn.sigmoid(jnp.dot(s, w2_ref[...],
                               preferred_element_type=jnp.float32))     # (B, C)
    for b in range(batch):
        o_ref[b * hw:(b + 1) * hw, :] = h[b * hw:(b + 1) * hw, :] * s[b:b + 1, :]


def _se_down_head_kernel(x_ref, w_ref, sc_ref, bi_ref, w1_ref, w2_ref,
                         wcat_ref, bl_ref, n_ref, z_ref, m_ref, lv_ref,
                         *, latent):
    """l6 DownShape (centre-cropped conv == matmul) + SELayer + VAE head.

      x_ref : (B, 4*C5) bf16  flattened l5 output (channels-last (i,j,c) order)
      w_ref : (4*C5, F) bf16  l6 conv weight cropped to the centre 2x2 taps
      sc/bi : (1, F) f32      folded BatchNorm2d
      w1_ref: (F, F//16), w2_ref: (F//16, F) f32  SE excitation
      wcat_ref : (F, 2*latent) = [w_mean | w_logvar] f32,  bl_ref : (1, latent)
      n_ref : (B, latent) f32 standard-normal noise
    """
    h = jnp.dot(x_ref[...], w_ref[...], preferred_element_type=jnp.float32)
    h = jnp.maximum(h * sc_ref[...] + bi_ref[...], 0.0)          # BN(eval) + ReLU
    # l6 spatial is 1x1 -> SE squeeze is h itself.
    s = jnp.maximum(jnp.dot(h, w1_ref[...],
                            preferred_element_type=jnp.float32), 0.0)
    s = jax.nn.sigmoid(jnp.dot(s, w2_ref[...],
                               preferred_element_type=jnp.float32))
    feat = h * s                                  # == torch.flatten(l6_out, 1)
    # Head: one matmul for both mean and logvar, then split.
    ml = jnp.dot(feat, wcat_ref[...], preferred_element_type=jnp.float32)  # (B, 2L)
    mean = jnp.maximum(ml[:, :latent], 0.0)       # Linear(bias=False) + ReLU
    logvar = ml[:, latent:2 * latent] + bl_ref[...]   # Linear(bias=True)
    z_ref[...] = mean + n_ref[...] * jnp.exp(0.5 * logvar)
    m_ref[...] = mean
    lv_ref[...] = logvar


# ----------------------------- pallas_call wrappers ---------------------------

def _full_spec(shape):
    shape = tuple(int(d) for d in shape)
    return pl.BlockSpec(shape, lambda i, _n=len(shape): (0,) * _n)


def se_down_cf(pt, wt, sc, bi, w1t, w2t, *, batch, hw):
    K, M = pt.shape
    C = wt.shape[0]
    kern = functools.partial(_se_down_cf_kernel, batch=batch, hw=hw)
    return pl.pallas_call(
        kern,
        out_shape=jax.ShapeDtypeStruct((C, M), jnp.float32),
        grid=(1,),
        in_specs=[_full_spec(pt.shape), _full_spec(wt.shape), _full_spec(sc.shape),
                  _full_spec(bi.shape), _full_spec(w1t.shape), _full_spec(w2t.shape)],
        out_specs=_full_spec((C, M)),
        compiler_params=_COMPILER_PARAMS,
    )(pt, wt, sc, bi, w1t, w2t)


def se_down_cl(p, w, sc, bi, w1, w2, *, batch, hw):
    M, K = p.shape
    C = w.shape[1]
    kern = functools.partial(_se_down_cl_kernel, batch=batch, hw=hw)
    return pl.pallas_call(
        kern,
        out_shape=jax.ShapeDtypeStruct((M, C), jnp.float32),
        grid=(1,),
        in_specs=[_full_spec(p.shape), _full_spec(w.shape), _full_spec(sc.shape),
                  _full_spec(bi.shape), _full_spec(w1.shape), _full_spec(w2.shape)],
        out_specs=_full_spec((M, C)),
        compiler_params=_COMPILER_PARAMS,
    )(p, w, sc, bi, w1, w2)


def se_down_head(x, w, sc, bi, w1, w2, wcat, b_logvar, noise, *, latent):
    B = x.shape[0]
    kern = functools.partial(_se_down_head_kernel, latent=latent)
    out_shapes = tuple(jax.ShapeDtypeStruct((B, latent), jnp.float32)
                       for _ in range(3))
    return pl.pallas_call(
        kern,
        out_shape=out_shapes,
        grid=(1,),
        in_specs=[_full_spec(x.shape), _full_spec(w.shape), _full_spec(sc.shape),
                  _full_spec(bi.shape), _full_spec(w1.shape), _full_spec(w2.shape),
                  _full_spec(wcat.shape), _full_spec(b_logvar.shape),
                  _full_spec(noise.shape)],
        out_specs=tuple(_full_spec((B, latent)) for _ in range(3)),
        compiler_params=_COMPILER_PARAMS,
    )(x, w, sc, bi, w1, w2, wcat, b_logvar, noise)


# ----------------------------- plain-JAX glue ---------------------------------

def _im2col_cf(x_cbhw):
    """4x4 / s=2 / p=1 patches from (C, B, H, W) -> (16*C, B*Ho*Wo).

    Feature (K) order is (kh, kw, c) with c minor — matches the HWIO weight flatten.
    """
    C, B, H, W = x_cbhw.shape
    k, s, p = 4, 2, 1
    Ho = (H + 2 * p - k) // s + 1
    Wo = (W + 2 * p - k) // s + 1
    xp = jnp.pad(x_cbhw, ((0, 0), (0, 0), (p, p), (p, p)))
    cols = [xp[:, :, ih:ih + s * Ho:s, iw:iw + s * Wo:s]
            for ih in range(k) for iw in range(k)]                # 16 x (C,B,Ho,Wo)
    pat = jnp.stack(cols, axis=0)                                 # (16,C,B,Ho,Wo)
    return pat.reshape(k * k * C, B * Ho * Wo), Ho, Wo


def _im2col_cl(x_nhwc):
    """4x4 / s=2 / p=1 patches from (B, H, W, C) -> (B*Ho*Wo, 16*C), K=(kh,kw,c)."""
    B, H, W, C = x_nhwc.shape
    k, s, p = 4, 2, 1
    Ho = (H + 2 * p - k) // s + 1
    Wo = (W + 2 * p - k) // s + 1
    xp = jnp.pad(x_nhwc, ((0, 0), (p, p), (p, p), (0, 0)))
    cols = [xp[:, ih:ih + s * Ho:s, iw:iw + s * Wo:s, :]
            for ih in range(k) for iw in range(k)]                # 16 x (B,Ho,Wo,C)
    pat = jnp.stack(cols, axis=3)                                 # (B,Ho,Wo,16,C)
    return pat.reshape(B * Ho * Wo, k * k * C), Ho, Wo


def init_params(key, in_ch, base, latent):
    """Deterministic synthetic parameters (torch module shapes), pre-laid-out
    for the kernels: bf16 conv weights, transposed layouts for the
    channels-first layers, folded BatchNorm affine, centre-cropped l6 weight,
    concatenated head weight."""
    chans = [in_ch] + [base * (2 ** i) for i in range(6)]
    cf_layers, cl_layers = [], []
    last_layer = None
    for i in range(6):
        cin, cout = chans[i], chans[i + 1]
        key, k1, k2, k3, k4, k5, k6, k7 = jax.random.split(key, 8)
        # Conv2d(cin, cout, 4, 2, 1) weight in HWIO layout.
        w_hwio = jax.random.normal(k1, (4, 4, cin, cout), jnp.float32) / jnp.sqrt(16.0 * cin)
        # BatchNorm2d(cout): folded running-stat affine (eval mode).
        gamma = 1.0 + 0.1 * jax.random.normal(k2, (cout,), jnp.float32)
        beta = 0.1 * jax.random.normal(k3, (cout,), jnp.float32)
        rmean = 0.1 * jax.random.normal(k4, (cout,), jnp.float32)
        rvar = jnp.abs(1.0 + 0.1 * jax.random.normal(k5, (cout,), jnp.float32))
        scale = gamma / jnp.sqrt(rvar + 1e-5)
        bias = beta - rmean * scale
        # SELayer(cout, reduction=16) FC weights (bias=False).
        cr = max(cout // 16, 1)
        w1 = jax.random.normal(k6, (cout, cr), jnp.float32) / jnp.sqrt(float(cout))
        w2 = jax.random.normal(k7, (cr, cout), jnp.float32) / jnp.sqrt(float(cr))
        if i == 5:
            # l6 input is 2x2 padded to 4x4 -> only the centre 2x2 kernel taps
            # multiply real data.  Crop them so the conv becomes a plain matmul
            # on the flattened l5 output (no zero-padded im2col, 4x less K).
            wc = w_hwio[1:3, 1:3, :, :].reshape(4 * cin, cout)
            last_layer = (jnp.asarray(wc, jnp.bfloat16), scale.reshape(1, cout),
                          bias.reshape(1, cout), w1, w2)
        else:
            w = w_hwio.reshape(16 * cin, cout)
            if cout < 128:   # channels-first layers: lane dim = spatial
                cf_layers.append((jnp.asarray(w.T, jnp.bfloat16),
                                  scale.reshape(cout, 1), bias.reshape(cout, 1),
                                  w1.T, w2.T))
            else:            # channels-last layers: lane dim = C_out
                cl_layers.append((jnp.asarray(w, jnp.bfloat16),
                                  scale.reshape(1, cout), bias.reshape(1, cout),
                                  w1, w2))
    F = base * 32
    key, km, kl, kb = jax.random.split(key, 4)
    w_mean = jax.random.normal(km, (F, latent), jnp.float32) / jnp.sqrt(float(F))
    w_logvar = jax.random.normal(kl, (F, latent), jnp.float32) / jnp.sqrt(float(F))
    b_logvar = 0.01 * jax.random.normal(kb, (1, latent), jnp.float32)
    wcat = jnp.concatenate([w_mean, w_logvar], axis=1)            # (F, 2*latent)
    return dict(cf_layers=cf_layers, cl_layers=cl_layers, last_layer=last_layer,
                wcat=wcat, b_logvar=b_logvar)


def variational_se_encoder(x_nchw, params, noise):
    B = x_nchw.shape[0]
    latent = noise.shape[1]
    # --- l1..l3: channels-first (lane = spatial) -------------------------------
    h_cf = jnp.transpose(x_nchw, (1, 0, 2, 3))                    # NCHW -> CBHW
    for (wt, sc, bi, w1t, w2t) in params["cf_layers"]:
        pt, Ho, Wo = _im2col_cf(h_cf)
        out = se_down_cf(pt.astype(jnp.bfloat16), wt, sc, bi, w1t, w2t,
                         batch=B, hw=Ho * Wo)                     # (C, B*Ho*Wo)
        h_cf = out.reshape(out.shape[0], B, Ho, Wo)
    # --- l4..l5: channels-last (lane = C_out >= 128) ---------------------------
    h_cl = jnp.transpose(h_cf, (1, 2, 3, 0))                      # CBHW -> NHWC
    for (w, sc, bi, w1, w2) in params["cl_layers"]:
        p, Ho, Wo = _im2col_cl(h_cl)
        out = se_down_cl(p.astype(jnp.bfloat16), w, sc, bi, w1, w2,
                         batch=B, hw=Ho * Wo)                     # (B*Ho*Wo, C)
        h_cl = out.reshape(B, Ho, Wo, out.shape[-1])
    # --- l6 + SE + VAE head fused (centre-cropped conv == matmul) --------------
    assert h_cl.shape[1] == 2 and h_cl.shape[2] == 2, "l6 expects a 2x2 input"
    w, sc, bi, w1, w2 = params["last_layer"]
    x6 = h_cl.reshape(B, -1)                                      # (B, 4*C5)
    z, mean, logvar = se_down_head(x6.astype(jnp.bfloat16), w, sc, bi, w1, w2,
                                   params["wcat"], params["b_logvar"], noise,
                                   latent=latent)
    return z, mean, logvar


# ----------------------------- main --------------------------------------------

if __name__ == "__main__":
    key = jax.random.PRNGKey(0)
    kx, kp, kn = jax.random.split(key, 3)

    # Small but shape-consistent config: 6 stride-2 downshapes require 64x64 input.
    B, CIN, HW_IN = 2, 1, 64
    BASE, LATENT = 16, 10                                          # encoder_base_channels=16

    x = jax.random.normal(kx, (B, CIN, HW_IN, HW_IN), jnp.float32)
    params = init_params(kp, CIN, BASE, LATENT)
    # torch.randn_like(logvar) -> standard-normal noise generated in JAX.
    noise = jax.random.normal(kn, (B, LATENT), jnp.float32)

    fwd = jax.jit(variational_se_encoder)
    z, mean, logvar = fwd(x, params, noise)
    jax.block_until_ready((z, mean, logvar))

    assert z.shape == (B, LATENT)
    assert mean.shape == (B, LATENT)
    assert logvar.shape == (B, LATENT)
    assert bool(jnp.all(jnp.isfinite(z)))
    assert bool(jnp.all(mean >= 0.0))          # relu output activation on mean
    print("KERNEL_OK")
</pallas_src>

<mosaic_0001>
module attributes {stable_mosaic.version = 11 : i64} {
  func.func @_se_down_cf_kernel(%arg0: i32, %arg1: memref<16x2048xbf16, #tpu.memory_space<vmem>>, %arg2: memref<16x16xbf16, #tpu.memory_space<vmem>>, %arg3: memref<16x1xf32, #tpu.memory_space<vmem>>, %arg4: memref<16x1xf32, #tpu.memory_space<vmem>>, %arg5: memref<1x16xf32, #tpu.memory_space<vmem>>, %arg6: memref<16x1xf32, #tpu.memory_space<vmem>>, %arg7: memref<16x2048xf32, #tpu.memory_space<vmem>>) attributes {dimension_semantics = [#tpu.dimension_semantics<arbitrary>], iteration_bounds = array<i64: 1>, scalar_prefetch = 0 : i64, scratch_operands = 0 : i64, tpu.core_type = #tpu.core_type<tc>, window_params = [{pipeline_mode = #tpu.pipeline_mode<synchronous>, transform_indices = @transform_0, window_bounds = array<i64: 16, 2048>}, {pipeline_mode = #tpu.pipeline_mode<synchronous>, transform_indices = @transform_1, window_bounds = array<i64: 16, 16>}, {pipeline_mode = #tpu.pipeline_mode<synchronous>, transform_indices = @transform_2, window_bounds = array<i64: 16, 1>}, {pipeline_mode = #tpu.pipeline_mode<synchronous>, transform_indices = @transform_3, window_bounds = array<i64: 16, 1>}, {pipeline_mode = #tpu.pipeline_mode<synchronous>, transform_indices = @transform_4, window_bounds = array<i64: 1, 16>}, {pipeline_mode = #tpu.pipeline_mode<synchronous>, transform_indices = @transform_5, window_bounds = array<i64: 16, 1>}, {pipeline_mode = #tpu.pipeline_mode<synchronous>, transform_indices = @transform_6, window_bounds = array<i64: 16, 2048>}]} {
    %c0 = arith.constant 0 : index
    %c0_0 = arith.constant 0 : index
    %0 = vector.load %arg2[%c0, %c0_0] : memref<16x16xbf16, #tpu.memory_space<vmem>>, vector<16x16xbf16>
    %c0_1 = arith.constant 0 : index
    %c0_2 = arith.constant 0 : index
    %1 = vector.load %arg1[%c0_1, %c0_2] : memref<16x2048xbf16, #tpu.memory_space<vmem>>, vector<16x2048xbf16>
    %cst = arith.constant dense<0.000000e+00> : vector<16x2048xf32>
    %2 = tpu.matmul %0, %1, %cst {dimension_numbers = #tpu.dot_dimension_numbers<[1], [0], [0], [1], [0, 0, 1, 1], [], []>} : vector<16x16xbf16>, vector<16x2048xbf16>, vector<16x2048xf32> -> vector<16x2048xf32>
    %c0_3 = arith.constant 0 : index
    %c0_4 = arith.constant 0 : index
    %3 = vector.load %arg3[%c0_3, %c0_4] : memref<16x1xf32, #tpu.memory_space<vmem>>, vector<16x1xf32>
    %4 = vector.broadcast %3 : vector<16x1xf32> to vector<16x2048xf32>
    %5 = arith.mulf %2, %4 : vector<16x2048xf32>
    %c0_5 = arith.constant 0 : index
    %c0_6 = arith.constant 0 : index
    %6 = vector.load %arg4[%c0_5, %c0_6] : memref<16x1xf32, #tpu.memory_space<vmem>>, vector<16x1xf32>
    %7 = vector.broadcast %6 : vector<16x1xf32> to vector<16x2048xf32>
    %8 = arith.addf %5, %7 : vector<16x2048xf32>
    %cst_7 = arith.constant 0.000000e+00 : f32
    %9 = vector.broadcast %cst_7 : f32 to vector<16x2048xf32>
    %10 = arith.maximumf %8, %9 : vector<16x2048xf32>
    %11 = vector.extract_strided_slice %10 {offsets = [0, 0], sizes = [16, 1024], strides = [1, 1]} : vector<16x2048xf32> to vector<16x1024xf32>
    %cst_8 = arith.constant dense<0.000000e+00> : vector<16xf32>
    %12 = vector.multi_reduction <add>, %11, %cst_8 [1] : vector<16x1024xf32> to vector<16xf32>
    %13 = vector.shape_cast %12 : vector<16xf32> to vector<16x1xf32>
    %cst_9 = arith.constant 1.024000e+03 : f32
    %14 = vector.broadcast %cst_9 : f32 to vector<16x1xf32>
    %15 = arith.divf %13, %14 : vector<16x1xf32>
    %16 = vector.extract_strided_slice %10 {offsets = [0, 1024], sizes = [16, 1024], strides = [1, 1]} : vector<16x2048xf32> to vector<16x1024xf32>
    %cst_10 = arith.constant dense<0.000000e+00> : vector<16xf32>
    %17 = vector.multi_reduction <add>, %16, %cst_10 [1] : vector<16x1024xf32> to vector<16xf32>
    %18 = vector.shape_cast %17 : vector<16xf32> to vector<16x1xf32>
    %cst_11 = arith.constant 1.024000e+03 : f32
    %19 = vector.broadcast %cst_11 : f32 to vector<16x1xf32>
    %20 = arith.divf %18, %19 : vector<16x1xf32>
    %21 = tpu.concatenate %15, %20 in 1 : vector<16x1xf32>, vector<16x1xf32> -> vector<16x2xf32>
    %c0_12 = arith.constant 0 : index
    %c0_13 = arith.constant 0 : index
    %22 = vector.load %arg5[%c0_12, %c0_13] : memref<1x16xf32, #tpu.memory_space<vmem>>, vector<1x16xf32>
    %cst_14 = arith.constant dense<0.000000e+00> : vector<1x2xf32>
    %23 = tpu.matmul %22, %21, %cst_14 {dimension_numbers = #tpu.dot_dimension_numbers<[1], [0], [0], [1], [0, 0, 1, 1], [], []>} : vector<1x16xf32>, vector<16x2xf32>, vector<1x2xf32> -> vector<1x2xf32>
    %cst_15 = arith.constant 0.000000e+00 : f32
    %24 = vector.broadcast %cst_15 : f32 to vector<1x2xf32>
    %25 = arith.maximumf %23, %24 : vector<1x2xf32>
    %c0_16 = arith.constant 0 : index
    %c0_17 = arith.constant 0 : index
    %26 = vector.load %arg6[%c0_16, %c0_17] : memref<16x1xf32, #tpu.memory_space<vmem>>, vector<16x1xf32>
    %cst_18 = arith.constant dense<0.000000e+00> : vector<16x2xf32>
    %27 = tpu.matmul %26, %25, %cst_18 {dimension_numbers = #tpu.dot_dimension_numbers<[1], [0], [0], [1], [0, 0, 1, 1], [], []>} : vector<16x1xf32>, vector<1x2xf32>, vector<16x2xf32> -> vector<16x2xf32>
    %28 = arith.negf %27 : vector<16x2xf32>
    %29 = math.exp %28 : vector<16x2xf32>
    %cst_19 = arith.constant 1.000000e+00 : f32
    %30 = vector.broadcast %cst_19 : f32 to vector<16x2xf32>
    %31 = arith.addf %30, %29 : vector<16x2xf32>
    %32 = arith.divf %30, %31 : vector<16x2xf32>
    %33 = vector.extract_strided_slice %10 {offsets = [0, 0], sizes = [16, 1024], strides = [1, 1]} : vector<16x2048xf32> to vector<16x1024xf32>
    %34 = vector.extract_strided_slice %32 {offsets = [0, 0], sizes = [16, 1], strides = [1, 1]} : vector<16x2xf32> to vector<16x1xf32>
    %35 = vector.broadcast %34 : vector<16x1xf32> to vector<16x1024xf32>
    %36 = arith.mulf %33, %35 : vector<16x1024xf32>
    %c0_20 = arith.constant 0 : index
    %c0_21 = arith.constant 0 : index
    %37 = vector.load %arg7[%c0_20, %c0_21] : memref<16x2048xf32, #tpu.memory_space<vmem>>, vector<16x1024xf32>
    tpu.vector_store %arg7[%c0_20, %c0_21], %36 {strides = array<i32>} : memref<16x2048xf32, #tpu.memory_space<vmem>>, vector<16x1024xf32>,
    %38 = vector.extract_strided_slice %10 {offsets = [0, 1024], sizes = [16, 1024], strides = [1, 1]} : vector<16x2048xf32> to vector<16x1024xf32>
    %39 = vector.extract_strided_slice %32 {offsets = [0, 1], sizes = [16, 1], strides = [1, 1]} : vector<16x2xf32> to vector<16x1xf32>
    %40 = vector.broadcast %39 : vector<16x1xf32> to vector<16x1024xf32>
    %41 = arith.mulf %38, %40 : vector<16x1024xf32>
    %c0_22 = arith.constant 0 : index
    %c1024 = arith.constant 1024 : index
    %42 = vector.load %arg7[%c0_22, %c1024] : memref<16x2048xf32, #tpu.memory_space<vmem>>, vector<16x1024xf32>
    tpu.vector_store %arg7[%c0_22, %c1024], %41 {strides = array<i32>} : memref<16x2048xf32, #tpu.memory_space<vmem>>, vector<16x1024xf32>,
    return
  }
  func.func @transform_0(%arg0: i32) -> (i32, i32) {
    %c0_i32 = arith.constant 0 : i32
    %c0_i32_0 = arith.constant 0 : i32
    %c0_i32_1 = arith.constant 0 : i32
    return %c0_i32, %c0_i32_0 : i32, i32
  }
  func.func @transform_1(%arg0: i32) -> (i32, i32) {
    %c0_i32 = arith.constant 0 : i32
    %c0_i32_0 = arith.constant 0 : i32
    %c0_i32_1 = arith.constant 0 : i32
    return %c0_i32, %c0_i32_0 : i32, i32
  }
  func.func @transform_2(%arg0: i32) -> (i32, i32) {
    %c0_i32 = arith.constant 0 : i32
    %c0_i32_0 = arith.constant 0 : i32
    %c0_i32_1 = arith.constant 0 : i32
    return %c0_i32, %c0_i32_0 : i32, i32
  }
  func.func @transform_3(%arg0: i32) -> (i32, i32) {
    %c0_i32 = arith.constant 0 : i32
    %c0_i32_0 = arith.constant 0 : i32
    %c0_i32_1 = arith.constant 0 : i32
    return %c0_i32, %c0_i32_0 : i32, i32
  }
  func.func @transform_4(%arg0: i32) -> (i32, i32) {
    %c0_i32 = arith.constant 0 : i32
    %c0_i32_0 = arith.constant 0 : i32
    %c0_i32_1 = arith.constant 0 : i32
    return %c0_i32, %c0_i32_0 : i32, i32
  }
  func.func @transform_5(%arg0: i32) -> (i32, i32) {
    %c0_i32 = arith.constant 0 : i32
    %c0_i32_0 = arith.constant 0 : i32
    %c0_i32_1 = arith.constant 0 : i32
    return %c0_i32, %c0_i32_0 : i32, i32
  }
  func.func @transform_6(%arg0: i32) -> (i32, i32) {
    %c0_i32 = arith.constant 0 : i32
    %c0_i32_0 = arith.constant 0 : i32
    %c0_i32_1 = arith.constant 0 : i32
    return %c0_i32, %c0_i32_0 : i32, i32
  }
}

module attributes {stable_mosaic.version = 11 : i64} {
  func.func @_se_down_cf_kernel(%arg0: i32, %arg1: memref<256x512xbf16, #tpu.memory_space<vmem>>, %arg2: memref<32x256xbf16, #tpu.memory_space<vmem>>, %arg3: memref<32x1xf32, #tpu.memory_space<vmem>>, %arg4: memref<32x1xf32, #tpu.memory_space<vmem>>, %arg5: memref<2x32xf32, #tpu.memory_space<vmem>>, %arg6: memref<32x2xf32, #tpu.memory_space<vmem>>, %arg7: memref<32x512xf32, #tpu.memory_space<vmem>>) attributes {dimension_semantics = [#tpu.dimension_semantics<arbitrary>], iteration_bounds = array<i64: 1>, scalar_prefetch = 0 : i64, scratch_operands = 0 : i64, tpu.core_type = #tpu.core_type<tc>, window_params = [{pipeline_mode = #tpu.pipeline_mode<synchronous>, transform_indices = @transform_0, window_bounds = array<i64: 256, 512>}, {pipeline_mode = #tpu.pipeline_mode<synchronous>, transform_indices = @transform_1, window_bounds = array<i64: 32, 256>}, {pipeline_mode = #tpu.pipeline_mode<synchronous>, transform_indices = @transform_2, window_bounds = array<i64: 32, 1>}, {pipeline_mode = #tpu.pipeline_mode<synchronous>, transform_indices = @transform_3, window_bounds = array<i64: 32, 1>}, {pipeline_mode = #tpu.pipeline_mode<synchronous>, transform_indices = @transform_4, window_bounds = array<i64: 2, 32>}, {pipeline_mode = #tpu.pipeline_mode<synchronous>, transform_indices = @transform_5, window_bounds = array<i64: 32, 2>}, {pipeline_mode = #tpu.pipeline_mode<synchronous>, transform_indices = @transform_6, window_bounds = array<i64: 32, 512>}]} {
    %c0 = arith.constant 0 : index
    %c0_0 = arith.constant 0 : index
    %0 = vector.load %arg2[%c0, %c0_0] : memref<32x256xbf16, #tpu.memory_space<vmem>>, vector<32x256xbf16>
    %c0_1 = arith.constant 0 : index
    %c0_2 = arith.constant 0 : index
    %1 = vector.load %arg1[%c0_1, %c0_2] : memref<256x512xbf16, #tpu.memory_space<vmem>>, vector<256x512xbf16>
    %cst = arith.constant dense<0.000000e+00> : vector<32x512xf32>
    %2 = tpu.matmul %0, %1, %cst {dimension_numbers = #tpu.dot_dimension_numbers<[1], [0], [0], [1], [0, 0, 1, 1], [], []>} : vector<32x256xbf16>, vector<256x512xbf16>, vector<32x512xf32> -> vector<32x512xf32>
    %c0_3 = arith.constant 0 : index
    %c0_4 = arith.constant 0 : index
    %3 = vector.load %arg3[%c0_3, %c0_4] : memref<32x1xf32, #tpu.memory_space<vmem>>, vector<32x1xf32>
    %4 = vector.broadcast %3 : vector<32x1xf32> to vector<32x512xf32>
    %5 = arith.mulf %2, %4 : vector<32x512xf32>
    %c0_5 = arith.constant 0 : index
    %c0_6 = arith.constant 0 : index
    %6 = vector.load %arg4[%c0_5, %c0_6] : memref<32x1xf32, #tpu.memory_space<vmem>>, vector<32x1xf32>
    %7 = vector.broadcast %6 : vector<32x1xf32> to vector<32x512xf32>
    %8 = arith.addf %5, %7 : vector<32x512xf32>
    %cst_7 = arith.constant 0.000000e+00 : f32
    %9 = vector.broadcast %cst_7 : f32 to vector<32x512xf32>
    %10 = arith.maximumf %8, %9 : vector<32x512xf32>
    %11 = vector.extract_strided_slice %10 {offsets = [0, 0], sizes = [32, 256], strides = [1, 1]} : vector<32x512xf32> to vector<32x256xf32>
    %cst_8 = arith.constant dense<0.000000e+00> : vector<32xf32>
    %12 = vector.multi_reduction <add>, %11, %cst_8 [1] : vector<32x256xf32> to vector<32xf32>
    %13 = vector.shape_cast %12 : vector<32xf32> to vector<32x1xf32>
    %cst_9 = arith.constant 2.560000e+02 : f32
    %14 = vector.broadcast %cst_9 : f32 to vector<32x1xf32>
    %15 = arith.divf %13, %14 : vector<32x1xf32>
    %16 = vector.extract_strided_slice %10 {offsets = [0, 256], sizes = [32, 256], strides = [1, 1]} : vector<32x512xf32> to vector<32x256xf32>
    %cst_10 = arith.constant dense<0.000000e+00> : vector<32xf32>
    %17 = vector.multi_reduction <add>, %16, %cst_10 [1] : vector<32x256xf32> to vector<32xf32>
    %18 = vector.shape_cast %17 : vector<32xf32> to vector<32x1xf32>
    %cst_11 = arith.constant 2.560000e+02 : f32
    %19 = vector.broadcast %cst_11 : f32 to vector<32x1xf32>
    %20 = arith.divf %18, %19 : vector<32x1xf32>
    %21 = tpu.concatenate %15, %20 in 1 : vector<32x1xf32>, vector<32x1xf32> -> vector<32x2xf32>
    %c0_12 = arith.constant 0 : index
    %c0_13 = arith.constant 0 : index
    %22 = vector.load %arg5[%c0_12, %c0_13] : memref<2x32xf32, #tpu.memory_space<vmem>>, vector<2x32xf32>
    %cst_14 = arith.constant dense<0.000000e+00> : vector<2x2xf32>
    %23 = tpu.matmul %22, %21, %cst_14 {dimension_numbers = #tpu.dot_dimension_numbers<[1], [0], [0], [1], [0, 0, 1, 1], [], []>} : vector<2x32xf32>, vector<32x2xf32>, vector<2x2xf32> -> vector<2x2xf32>
    %cst_15 = arith.constant 0.000000e+00 : f32
    %24 = vector.broadcast %cst_15 : f32 to vector<2x2xf32>
    %25 = arith.maximumf %23, %24 : vector<2x2xf32>
    %c0_16 = arith.constant 0 : index
    %c0_17 = arith.constant 0 : index
    %26 = vector.load %arg6[%c0_16, %c0_17] : memref<32x2xf32, #tpu.memory_space<vmem>>, vector<32x2xf32>
    %cst_18 = arith.constant dense<0.000000e+00> : vector<32x2xf32>
    %27 = tpu.matmul %26, %25, %cst_18 {dimension_numbers = #tpu.dot_dimension_numbers<[1], [0], [0], [1], [0, 0, 1, 1], [], []>} : vector<32x2xf32>, vector<2x2xf32>, vector<32x2xf32> -> vector<32x2xf32>
    %28 = arith.negf %27 : vector<32x2xf32>
    %29 = math.exp %28 : vector<32x2xf32>
    %cst_19 = arith.constant 1.000000e+00 : f32
    %30 = vector.broadcast %cst_19 : f32 to vector<32x2xf32>
    %31 = arith.addf %30, %29 : vector<32x2xf32>
    %32 = arith.divf %30, %31 : vector<32x2xf32>
    %33 = vector.extract_strided_slice %10 {offsets = [0, 0], sizes = [32, 256], strides = [1, 1]} : vector<32x512xf32> to vector<32x256xf32>
    %34 = vector.extract_strided_slice %32 {offsets = [0, 0], sizes = [32, 1], strides = [1, 1]} : vector<32x2xf32> to vector<32x1xf32>
    %35 = vector.broadcast %34 : vector<32x1xf32> to vector<32x256xf32>
    %36 = arith.mulf %33, %35 : vector<32x256xf32>
    %c0_20 = arith.constant 0 : index
    %c0_21 = arith.constant 0 : index
    %37 = vector.load %arg7[%c0_20, %c0_21] : memref<32x512xf32, #tpu.memory_space<vmem>>, vector<32x256xf32>
    tpu.vector_store %arg7[%c0_20, %c0_21], %36 {strides = array<i32>} : memref<32x512xf32, #tpu.memory_space<vmem>>, vector<32x256xf32>,
    %38 = vector.extract_strided_slice %10 {offsets = [0, 256], sizes = [32, 256], strides = [1, 1]} : vector<32x512xf32> to vector<32x256xf32>
    %39 = vector.extract_strided_slice %32 {offsets = [0, 1], sizes = [32, 1], strides = [1, 1]} : vector<32x2xf32> to vector<32x1xf32>
    %40 = vector.broadcast %39 : vector<32x1xf32> to vector<32x256xf32>
    %41 = arith.mulf %38, %40 : vector<32x256xf32>
    %c0_22 = arith.constant 0 : index
    %c256 = arith.constant 256 : index
    %42 = vector.load %arg7[%c0_22, %c256] : memref<32x512xf32, #tpu.memory_space<vmem>>, vector<32x256xf32>
    tpu.vector_store %arg7[%c0_22, %c256], %41 {strides = array<i32>} : memref<32x512xf32, #tpu.memory_space<vmem>>, vector<32x256xf32>,
    return
  }
  func.func @transform_0(%arg0: i32) -> (i32, i32) {
    %c0_i32 = arith.constant 0 : i32
    %c0_i32_0 = arith.constant 0 : i32
    %c0_i32_1 = arith.constant 0 : i32
    return %c0_i32, %c0_i32_0 : i32, i32
  }
  func.func @transform_1(%arg0: i32) -> (i32, i32) {
    %c0_i32 = arith.constant 0 : i32
    %c0_i32_0 = arith.constant 0 : i32
    %c0_i32_1 = arith.constant 0 : i32
    return %c0_i32, %c0_i32_0 : i32, i32
  }
  func.func @transform_2(%arg0: i32) -> (i32, i32) {
    %c0_i32 = arith.constant 0 : i32
    %c0_i32_0 = arith.constant 0 : i32
    %c0_i32_1 = arith.constant 0 : i32
    return %c0_i32, %c0_i32_0 : i32, i32
  }
  func.func @transform_3(%arg0: i32) -> (i32, i32) {
    %c0_i32 = arith.constant 0 : i32
    %c0_i32_0 = arith.constant 0 : i32
    %c0_i32_1 = arith.constant 0 : i32
    return %c0_i32, %c0_i32_0 : i32, i32
  }
  func.func @transform_4(%arg0: i32) -> (i32, i32) {
    %c0_i32 = arith.constant 0 : i32
    %c0_i32_0 = arith.constant 0 : i32
    %c0_i32_1 = arith.constant 0 : i32
    return %c0_i32, %c0_i32_0 : i32, i32
  }
  func.func @transform_5(%arg0: i32) -> (i32, i32) {
    %c0_i32 = arith.constant 0 : i32
    %c0_i32_0 = arith.constant 0 : i32
    %c0_i32_1 = arith.constant 0 : i32
    return %c0_i32, %c0_i32_0 : i32, i32
  }
  func.func @transform_6(%arg0: i32) -> (i32, i32) {
    %c0_i32 = arith.constant 0 : i32
    %c0_i32_0 = arith.constant 0 : i32
    %c0_i32_1 = arith.constant 0 : i32
    return %c0_i32, %c0_i32_0 : i32, i32
  }
}

module attributes {stable_mosaic.version = 11 : i64} {
  func.func @_se_down_cf_kernel(%arg0: i32, %arg1: memref<512x128xbf16, #tpu.memory_space<vmem>>, %arg2: memref<64x512xbf16, #tpu.memory_space<vmem>>, %arg3: memref<64x1xf32, #tpu.memory_space<vmem>>, %arg4: memref<64x1xf32, #tpu.memory_space<vmem>>, %arg5: memref<4x64xf32, #tpu.memory_space<vmem>>, %arg6: memref<64x4xf32, #tpu.memory_space<vmem>>, %arg7: memref<64x128xf32, #tpu.memory_space<vmem>>) attributes {dimension_semantics = [#tpu.dimension_semantics<arbitrary>], iteration_bounds = array<i64: 1>, scalar_prefetch = 0 : i64, scratch_operands = 0 : i64, tpu.core_type = #tpu.core_type<tc>, window_params = [{pipeline_mode = #tpu.pipeline_mode<synchronous>, transform_indices = @transform_0, window_bounds = array<i64: 512, 128>}, {pipeline_mode = #tpu.pipeline_mode<synchronous>, transform_indices = @transform_1, window_bounds = array<i64: 64, 512>}, {pipeline_mode = #tpu.pipeline_mode<synchronous>, transform_indices = @transform_2, window_bounds = array<i64: 64, 1>}, {pipeline_mode = #tpu.pipeline_mode<synchronous>, transform_indices = @transform_3, window_bounds = array<i64: 64, 1>}, {pipeline_mode = #tpu.pipeline_mode<synchronous>, transform_indices = @transform_4, window_bounds = array<i64: 4, 64>}, {pipeline_mode = #tpu.pipeline_mode<synchronous>, transform_indices = @transform_5, window_bounds = array<i64: 64, 4>}, {pipeline_mode = #tpu.pipeline_mode<synchronous>, transform_indices = @transform_6, window_bounds = array<i64: 64, 128>}]} {
    %c0 = arith.constant 0 : index
    %c0_0 = arith.constant 0 : index
    %0 = vector.load %arg2[%c0, %c0_0] : memref<64x512xbf16, #tpu.memory_space<vmem>>, vector<64x512xbf16>
    %c0_1 = arith.constant 0 : index
    %c0_2 = arith.constant 0 : index
    %1 = vector.load %arg1[%c0_1, %c0_2] : memref<512x128xbf16, #tpu.memory_space<vmem>>, vector<512x128xbf16>
    %cst = arith.constant dense<0.000000e+00> : vector<64x128xf32>
    %2 = tpu.matmul %0, %1, %cst {dimension_numbers = #tpu.dot_dimension_numbers<[1], [0], [0], [1], [0, 0, 1, 1], [], []>} : vector<64x512xbf16>, vector<512x128xbf16>, vector<64x128xf32> -> vector<64x128xf32>
    %c0_3 = arith.constant 0 : index
    %c0_4 = arith.constant 0 : index
    %3 = vector.load %arg3[%c0_3, %c0_4] : memref<64x1xf32, #tpu.memory_space<vmem>>, vector<64x1xf32>
    %4 = vector.broadcast %3 : vector<64x1xf32> to vector<64x128xf32>
    %5 = arith.mulf %2, %4 : vector<64x128xf32>
    %c0_5 = arith.constant 0 : index
    %c0_6 = arith.constant 0 : index
    %6 = vector.load %arg4[%c0_5, %c0_6] : memref<64x1xf32, #tpu.memory_space<vmem>>, vector<64x1xf32>
    %7 = vector.broadcast %6 : vector<64x1xf32> to vector<64x128xf32>
    %8 = arith.addf %5, %7 : vector<64x128xf32>
    %cst_7 = arith.constant 0.000000e+00 : f32
    %9 = vector.broadcast %cst_7 : f32 to vector<64x128xf32>
    %10 = arith.maximumf %8, %9 : vector<64x128xf32>
    %11 = vector.extract_strided_slice %10 {offsets = [0, 0], sizes = [64, 64], strides = [1, 1]} : vector<64x128xf32> to vector<64x64xf32>
    %cst_8 = arith.constant dense<0.000000e+00> : vector<64xf32>
    %12 = vector.multi_reduction <add>, %11, %cst_8 [1] : vector<64x64xf32> to vector<64xf32>
    %13 = vector.shape_cast %12 : vector<64xf32> to vector<64x1xf32>
    %cst_9 = arith.constant 6.400000e+01 : f32
    %14 = vector.broadcast %cst_9 : f32 to vector<64x1xf32>
    %15 = arith.divf %13, %14 : vector<64x1xf32>
    %16 = vector.extract_strided_slice %10 {offsets = [0, 64], sizes = [64, 64], strides = [1, 1]} : vector<64x128xf32> to vector<64x64xf32>
    %cst_10 = arith.constant dense<0.000000e+00> : vector<64xf32>
    %17 = vector.multi_reduction <add>, %16, %cst_10 [1] : vector<64x64xf32> to vector<64xf32>
    %18 = vector.shape_cast %17 : vector<64xf32> to vector<64x1xf32>
    %cst_11 = arith.constant 6.400000e+01 : f32
    %19 = vector.broadcast %cst_11 : f32 to vector<64x1xf32>
    %20 = arith.divf %18, %19 : vector<64x1xf32>
    %21 = tpu.concatenate %15, %20 in 1 : vector<64x1xf32>, vector<64x1xf32> -> vector<64x2xf32>
    %c0_12 = arith.constant 0 : index
    %c0_13 = arith.constant 0 : index
    %22 = vector.load %arg5[%c0_12, %c0_13] : memref<4x64xf32, #tpu.memory_space<vmem>>, vector<4x64xf32>
    %cst_14 = arith.constant dense<0.000000e+00> : vector<4x2xf32>
    %23 = tpu.matmul %22, %21, %cst_14 {dimension_numbers = #tpu.dot_dimension_numbers<[1], [0], [0], [1], [0, 0, 1, 1], [], []>} : vector<4x64xf32>, vector<64x2xf32>, vector<4x2xf32> -> vector<4x2xf32>
    %cst_15 = arith.constant 0.000000e+00 : f32
    %24 = vector.broadcast %cst_15 : f32 to vector<4x2xf32>
    %25 = arith.maximumf %23, %24 : vector<4x2xf32>
    %c0_16 = arith.constant 0 : index
    %c0_17 = arith.constant 0 : index
    %26 = vector.load %arg6[%c0_16, %c0_17] : memref<64x4xf32, #tpu.memory_space<vmem>>, vector<64x4xf32>
    %cst_18 = arith.constant dense<0.000000e+00> : vector<64x2xf32>
    %27 = tpu.matmul %26, %25, %cst_18 {dimension_numbers = #tpu.dot_dimension_numbers<[1], [0], [0], [1], [0, 0, 1, 1], [], []>} : vector<64x4xf32>, vector<4x2xf32>, vector<64x2xf32> -> vector<64x2xf32>
    %28 = arith.negf %27 : vector<64x2xf32>
    %29 = math.exp %28 : vector<64x2xf32>
    %cst_19 = arith.constant 1.000000e+00 : f32
    %30 = vector.broadcast %cst_19 : f32 to vector<64x2xf32>
    %31 = arith.addf %30, %29 : vector<64x2xf32>
    %32 = arith.divf %30, %31 : vector<64x2xf32>
    %33 = vector.extract_strided_slice %10 {offsets = [0, 0], sizes = [64, 64], strides = [1, 1]} : vector<64x128xf32> to vector<64x64xf32>
    %34 = vector.extract_strided_slice %32 {offsets = [0, 0], sizes = [64, 1], strides = [1, 1]} : vector<64x2xf32> to vector<64x1xf32>
    %35 = vector.broadcast %34 : vector<64x1xf32> to vector<64x64xf32>
    %36 = arith.mulf %33, %35 : vector<64x64xf32>
    %c0_20 = arith.constant 0 : index
    %c0_21 = arith.constant 0 : index
    %37 = vector.load %arg7[%c0_20, %c0_21] : memref<64x128xf32, #tpu.memory_space<vmem>>, vector<64x64xf32>
    tpu.vector_store %arg7[%c0_20, %c0_21], %36 {strides = array<i32>} : memref<64x128xf32, #tpu.memory_space<vmem>>, vector<64x64xf32>,
    %38 = vector.extract_strided_slice %10 {offsets = [0, 64], sizes = [64, 64], strides = [1, 1]} : vector<64x128xf32> to vector<64x64xf32>
    %39 = vector.extract_strided_slice %32 {offsets = [0, 1], sizes = [64, 1], strides = [1, 1]} : vector<64x2xf32> to vector<64x1xf32>
    %40 = vector.broadcast %39 : vector<64x1xf32> to vector<64x64xf32>
    %41 = arith.mulf %38, %40 : vector<64x64xf32>
    %c0_22 = arith.constant 0 : index
    %c64 = arith.constant 64 : index
    %42 = vector.load %arg7[%c0_22, %c64] : memref<64x128xf32, #tpu.memory_space<vmem>>, vector<64x64xf32>
    tpu.vector_store %arg7[%c0_22, %c64], %41 {strides = array<i32>} : memref<64x128xf32, #tpu.memory_space<vmem>>, vector<64x64xf32>,
    return
  }
  func.func @transform_0(%arg0: i32) -> (i32, i32) {
    %c0_i32 = arith.constant 0 : i32
    %c0_i32_0 = arith.constant 0 : i32
    %c0_i32_1 = arith.constant 0 : i32
    return %c0_i32, %c0_i32_0 : i32, i32
  }
  func.func @transform_1(%arg0: i32) -> (i32, i32) {
    %c0_i32 = arith.constant 0 : i32
    %c0_i32_0 = arith.constant 0 : i32
    %c0_i32_1 = arith.constant 0 : i32
    return %c0_i32, %c0_i32_0 : i32, i32
  }
  func.func @transform_2(%arg0: i32) -> (i32, i32) {
    %c0_i32 = arith.constant 0 : i32
    %c0_i32_0 = arith.constant 0 : i32
    %c0_i32_1 = arith.constant 0 : i32
    return %c0_i32, %c0_i32_0 : i32, i32
  }
  func.func @transform_3(%arg0: i32) -> (i32, i32) {
    %c0_i32 = arith.constant 0 : i32
    %c0_i32_0 = arith.constant 0 : i32
    %c0_i32_1 = arith.constant 0 : i32
    return %c0_i32, %c0_i32_0 : i32, i32
  }
  func.func @transform_4(%arg0: i32) -> (i32, i32) {
    %c0_i32 = arith.constant 0 : i32
    %c0_i32_0 = arith.constant 0 : i32
    %c0_i32_1 = arith.constant 0 : i32
    return %c0_i32, %c0_i32_0 : i32, i32
  }
  func.func @transform_5(%arg0: i32) -> (i32, i32) {
    %c0_i32 = arith.constant 0 : i32
    %c0_i32_0 = arith.constant 0 : i32
    %c0_i32_1 = arith.constant 0 : i32
    return %c0_i32, %c0_i32_0 : i32, i32
  }
  func.func @transform_6(%arg0: i32) -> (i32, i32) {
    %c0_i32 = arith.constant 0 : i32
    %c0_i32_0 = arith.constant 0 : i32
    %c0_i32_1 = arith.constant 0 : i32
    return %c0_i32, %c0_i32_0 : i32, i32
  }
}

module attributes {stable_mosaic.version = 11 : i64} {
  func.func @_se_down_cl_kernel(%arg0: i32, %arg1: memref<32x1024xbf16, #tpu.memory_space<vmem>>, %arg2: memref<1024x128xbf16, #tpu.memory_space<vmem>>, %arg3: memref<1x128xf32, #tpu.memory_space<vmem>>, %arg4: memref<1x128xf32, #tpu.memory_space<vmem>>, %arg5: memref<128x8xf32, #tpu.memory_space<vmem>>, %arg6: memref<8x128xf32, #tpu.memory_space<vmem>>, %arg7: memref<32x128xf32, #tpu.memory_space<vmem>>) attributes {dimension_semantics = [#tpu.dimension_semantics<arbitrary>], iteration_bounds = array<i64: 1>, scalar_prefetch = 0 : i64, scratch_operands = 0 : i64, tpu.core_type = #tpu.core_type<tc>, window_params = [{pipeline_mode = #tpu.pipeline_mode<synchronous>, transform_indices = @transform_0, window_bounds = array<i64: 32, 1024>}, {pipeline_mode = #tpu.pipeline_mode<synchronous>, transform_indices = @transform_1, window_bounds = array<i64: 1024, 128>}, {pipeline_mode = #tpu.pipeline_mode<synchronous>, transform_indices = @transform_2, window_bounds = array<i64: 1, 128>}, {pipeline_mode = #tpu.pipeline_mode<synchronous>, transform_indices = @transform_3, window_bounds = array<i64: 1, 128>}, {pipeline_mode = #tpu.pipeline_mode<synchronous>, transform_indices = @transform_4, window_bounds = array<i64: 128, 8>}, {pipeline_mode = #tpu.pipeline_mode<synchronous>, transform_indices = @transform_5, window_bounds = array<i64: 8, 128>}, {pipeline_mode = #tpu.pipeline_mode<synchronous>, transform_indices = @transform_6, window_bounds = array<i64: 32, 128>}]} {
    %c0 = arith.constant 0 : index
    %c0_0 = arith.constant 0 : index
    %0 = vector.load %arg1[%c0, %c0_0] : memref<32x1024xbf16, #tpu.memory_space<vmem>>, vector<32x1024xbf16>
    %c0_1 = arith.constant 0 : index
    %c0_2 = arith.constant 0 : index
    %1 = vector.load %arg2[%c0_1, %c0_2] : memref<1024x128xbf16, #tpu.memory_space<vmem>>, vector<1024x128xbf16>
    %cst = arith.constant dense<0.000000e+00> : vector<32x128xf32>
    %2 = tpu.matmul %0, %1, %cst {dimension_numbers = #tpu.dot_dimension_numbers<[1], [0], [0], [1], [0, 0, 1, 1], [], []>} : vector<32x1024xbf16>, vector<1024x128xbf16>, vector<32x128xf32> -> vector<32x128xf32>
    %c0_3 = arith.constant 0 : index
    %c0_4 = arith.constant 0 : index
    %3 = vector.load %arg3[%c0_3, %c0_4] : memref<1x128xf32, #tpu.memory_space<vmem>>, vector<1x128xf32>
    %4 = vector.broadcast %3 : vector<1x128xf32> to vector<32x128xf32>
    %5 = arith.mulf %2, %4 : vector<32x128xf32>
    %c0_5 = arith.constant 0 : index
    %c0_6 = arith.constant 0 : index
    %6 = vector.load %arg4[%c0_5, %c0_6] : memref<1x128xf32, #tpu.memory_space<vmem>>, vector<1x128xf32>
    %7 = vector.broadcast %6 : vector<1x128xf32> to vector<32x128xf32>
    %8 = arith.addf %5, %7 : vector<32x128xf32>
    %cst_7 = arith.constant 0.000000e+00 : f32
    %9 = vector.broadcast %cst_7 : f32 to vector<32x128xf32>
    %10 = arith.maximumf %8, %9 : vector<32x128xf32>
    %11 = vector.extract_strided_slice %10 {offsets = [0, 0], sizes = [16, 128], strides = [1, 1]} : vector<32x128xf32> to vector<16x128xf32>
    %cst_8 = arith.constant dense<0.000000e+00> : vector<128xf32>
    %12 = vector.multi_reduction <add>, %11, %cst_8 [0] : vector<16x128xf32> to vector<128xf32>
    %13 = vector.shape_cast %12 : vector<128xf32> to vector<1x128xf32>
    %cst_9 = arith.constant 1.600000e+01 : f32
    %14 = vector.broadcast %cst_9 : f32 to vector<1x128xf32>
    %15 = arith.divf %13, %14 : vector<1x128xf32>
    %16 = vector.extract_strided_slice %10 {offsets = [16, 0], sizes = [16, 128], strides = [1, 1]} : vector<32x128xf32> to vector<16x128xf32>
    %cst_10 = arith.constant dense<0.000000e+00> : vector<128xf32>
    %17 = vector.multi_reduction <add>, %16, %cst_10 [0] : vector<16x128xf32> to vector<128xf32>
    %18 = vector.shape_cast %17 : vector<128xf32> to vector<1x128xf32>
    %cst_11 = arith.constant 1.600000e+01 : f32
    %19 = vector.broadcast %cst_11 : f32 to vector<1x128xf32>
    %20 = arith.divf %18, %19 : vector<1x128xf32>
    %21 = tpu.concatenate %15, %20 in 0 : vector<1x128xf32>, vector<1x128xf32> -> vector<2x128xf32>
    %c0_12 = arith.constant 0 : index
    %c0_13 = arith.constant 0 : index
    %22 = vector.load %arg5[%c0_12, %c0_13] : memref<128x8xf32, #tpu.memory_space<vmem>>, vector<128x8xf32>
    %cst_14 = arith.constant dense<0.000000e+00> : vector<2x8xf32>
    %23 = tpu.matmul %21, %22, %cst_14 {dimension_numbers = #tpu.dot_dimension_numbers<[1], [0], [0], [1], [0, 0, 1, 1], [], []>} : vector<2x128xf32>, vector<128x8xf32>, vector<2x8xf32> -> vector<2x8xf32>
    %cst_15 = arith.constant 0.000000e+00 : f32
    %24 = vector.broadcast %cst_15 : f32 to vector<2x8xf32>
    %25 = arith.maximumf %23, %24 : vector<2x8xf32>
    %c0_16 = arith.constant 0 : index
    %c0_17 = arith.constant 0 : index
    %26 = vector.load %arg6[%c0_16, %c0_17] : memref<8x128xf32, #tpu.memory_space<vmem>>, vector<8x128xf32>
    %cst_18 = arith.constant dense<0.000000e+00> : vector<2x128xf32>
    %27 = tpu.matmul %25, %26, %cst_18 {dimension_numbers = #tpu.dot_dimension_numbers<[1], [0], [0], [1], [0, 0, 1, 1], [], []>} : vector<2x8xf32>, vector<8x128xf32>, vector<2x128xf32> -> vector<2x128xf32>
    %28 = arith.negf %27 : vector<2x128xf32>
    %29 = math.exp %28 : vector<2x128xf32>
    %cst_19 = arith.constant 1.000000e+00 : f32
    %30 = vector.broadcast %cst_19 : f32 to vector<2x128xf32>
    %31 = arith.addf %30, %29 : vector<2x128xf32>
    %32 = arith.divf %30, %31 : vector<2x128xf32>
    %33 = vector.extract_strided_slice %10 {offsets = [0, 0], sizes = [16, 128], strides = [1, 1]} : vector<32x128xf32> to vector<16x128xf32>
    %34 = vector.extract_strided_slice %32 {offsets = [0, 0], sizes = [1, 128], strides = [1, 1]} : vector<2x128xf32> to vector<1x128xf32>
    %35 = vector.broadcast %34 : vector<1x128xf32> to vector<16x128xf32>
    %36 = arith.mulf %33, %35 : vector<16x128xf32>
    %c0_20 = arith.constant 0 : index
    %c0_21 = arith.constant 0 : index
    %37 = vector.load %arg7[%c0_20, %c0_21] : memref<32x128xf32, #tpu.memory_space<vmem>>, vector<16x128xf32>
    tpu.vector_store %arg7[%c0_20, %c0_21], %36 {strides = array<i32>} : memref<32x128xf32, #tpu.memory_space<vmem>>, vector<16x128xf32>,
    %38 = vector.extract_strided_slice %10 {offsets = [16, 0], sizes = [16, 128], strides = [1, 1]} : vector<32x128xf32> to vector<16x128xf32>
    %39 = vector.extract_strided_slice %32 {offsets = [1, 0], sizes = [1, 128], strides = [1, 1]} : vector<2x128xf32> to vector<1x128xf32>
    %40 = vector.broadcast %39 : vector<1x128xf32> to vector<16x128xf32>
    %41 = arith.mulf %38, %40 : vector<16x128xf32>
    %c16 = arith.constant 16 : index
    %c0_22 = arith.constant 0 : index
    %42 = vector.load %arg7[%c16, %c0_22] : memref<32x128xf32, #tpu.memory_space<vmem>>, vector<16x128xf32>
    tpu.vector_store %arg7[%c16, %c0_22], %41 {strides = array<i32>} : memref<32x128xf32, #tpu.memory_space<vmem>>, vector<16x128xf32>,
    return
  }
  func.func @transform_0(%arg0: i32) -> (i32, i32) {
    %c0_i32 = arith.constant 0 : i32
    %c0_i32_0 = arith.constant 0 : i32
    %c0_i32_1 = arith.constant 0 : i32
    return %c0_i32, %c0_i32_0 : i32, i32
  }
  func.func @transform_1(%arg0: i32) -> (i32, i32) {
    %c0_i32 = arith.constant 0 : i32
    %c0_i32_0 = arith.constant 0 : i32
    %c0_i32_1 = arith.constant 0 : i32
    return %c0_i32, %c0_i32_0 : i32, i32
  }
  func.func @transform_2(%arg0: i32) -> (i32, i32) {
    %c0_i32 = arith.constant 0 : i32
    %c0_i32_0 = arith.constant 0 : i32
    %c0_i32_1 = arith.constant 0 : i32
    return %c0_i32, %c0_i32_0 : i32, i32
  }
  func.func @transform_3(%arg0: i32) -> (i32, i32) {
    %c0_i32 = arith.constant 0 : i32
    %c0_i32_0 = arith.constant 0 : i32
    %c0_i32_1 = arith.constant 0 : i32
    return %c0_i32, %c0_i32_0 : i32, i32
  }
  func.func @transform_4(%arg0: i32) -> (i32, i32) {
    %c0_i32 = arith.constant 0 : i32
    %c0_i32_0 = arith.constant 0 : i32
    %c0_i32_1 = arith.constant 0 : i32
    return %c0_i32, %c0_i32_0 : i32, i32
  }
  func.func @transform_5(%arg0: i32) -> (i32, i32) {
    %c0_i32 = arith.constant 0 : i32
    %c0_i32_0 = arith.constant 0 : i32
    %c0_i32_1 = arith.constant 0 : i32
    return %c0_i32, %c0_i32_0 : i32, i32
  }
  func.func @transform_6(%arg0: i32) -> (i32, i32) {
    %c0_i32 = arith.constant 0 : i32
    %c0_i32_0 = arith.constant 0 : i32
    %c0_i32_1 = arith.constant 0 : i32
    return %c0_i32, %c0_i32_0 : i32, i32
  }
}

module attributes {stable_mosaic.version = 11 : i64} {
  func.func @_se_down_head_kernel(%arg0: i32, %arg1: memref<2x1024xbf16, #tpu.memory_space<vmem>>, %arg2: memref<1024x512xbf16, #tpu.memory_space<vmem>>, %arg3: memref<1x512xf32, #tpu.memory_space<vmem>>, %arg4: memref<1x512xf32, #tpu.memory_space<vmem>>, %arg5: memref<512x32xf32, #tpu.memory_space<vmem>>, %arg6: memref<32x512xf32, #tpu.memory_space<vmem>>, %arg7: memref<512x20xf32, #tpu.memory_space<vmem>>, %arg8: memref<1x10xf32, #tpu.memory_space<vmem>>, %arg9: memref<2x10xf32, #tpu.memory_space<vmem>>, %arg10: memref<2x10xf32, #tpu.memory_space<vmem>>, %arg11: memref<2x10xf32, #tpu.memory_space<vmem>>, %arg12: memref<2x10xf32, #tpu.memory_space<vmem>>) attributes {dimension_semantics = [#tpu.dimension_semantics<arbitrary>], iteration_bounds = array<i64: 1>, scalar_prefetch = 0 : i64, scratch_operands = 0 : i64, tpu.core_type = #tpu.core_type<tc>, window_params = [{pipeline_mode = #tpu.pipeline_mode<synchronous>, transform_indices = @transform_0, window_bounds = array<i64: 2, 1024>}, {pipeline_mode = #tpu.pipeline_mode<synchronous>, transform_indices = @transform_1, window_bounds = array<i64: 1024, 512>}, {pipeline_mode = #tpu.pipeline_mode<synchronous>, transform_indices = @transform_2, window_bounds = array<i64: 1, 512>}, {pipeline_mode = #tpu.pipeline_mode<synchronous>, transform_indices = @transform_3, window_bounds = array<i64: 1, 512>}, {pipeline_mode = #tpu.pipeline_mode<synchronous>, transform_indices = @transform_4, window_bounds = array<i64: 512, 32>}, {pipeline_mode = #tpu.pipeline_mode<synchronous>, transform_indices = @transform_5, window_bounds = array<i64: 32, 512>}, {pipeline_mode = #tpu.pipeline_mode<synchronous>, transform_indices = @transform_6, window_bounds = array<i64: 512, 20>}, {pipeline_mode = #tpu.pipeline_mode<synchronous>, transform_indices = @transform_7, window_bounds = array<i64: 1, 10>}, {pipeline_mode = #tpu.pipeline_mode<synchronous>, transform_indices = @transform_8, window_bounds = array<i64: 2, 10>}, {pipeline_mode = #tpu.pipeline_mode<synchronous>, transform_indices = @transform_9, window_bounds = array<i64: 2, 10>}, {pipeline_mode = #tpu.pipeline_mode<synchronous>, transform_indices = @transform_10, window_bounds = array<i64: 2, 10>}, {pipeline_mode = #tpu.pipeline_mode<synchronous>, transform_indices = @transform_11, window_bounds = array<i64: 2, 10>}]} {
    %c0 = arith.constant 0 : index
    %c0_0 = arith.constant 0 : index
    %0 = vector.load %arg1[%c0, %c0_0] : memref<2x1024xbf16, #tpu.memory_space<vmem>>, vector<2x1024xbf16>
    %c0_1 = arith.constant 0 : index
    %c0_2 = arith.constant 0 : index
    %1 = vector.load %arg2[%c0_1, %c0_2] : memref<1024x512xbf16, #tpu.memory_space<vmem>>, vector<1024x512xbf16>
    %cst = arith.constant dense<0.000000e+00> : vector<2x512xf32>
    %2 = tpu.matmul %0, %1, %cst {dimension_numbers = #tpu.dot_dimension_numbers<[1], [0], [0], [1], [0, 0, 1, 1], [], []>} : vector<2x1024xbf16>, vector<1024x512xbf16>, vector<2x512xf32> -> vector<2x512xf32>
    %c0_3 = arith.constant 0 : index
    %c0_4 = arith.constant 0 : index
    %3 = vector.load %arg3[%c0_3, %c0_4] : memref<1x512xf32, #tpu.memory_space<vmem>>, vector<1x512xf32>
    %4 = vector.broadcast %3 : vector<1x512xf32> to vector<2x512xf32>
    %5 = arith.mulf %2, %4 : vector<2x512xf32>
    %c0_5 = arith.constant 0 : index
    %c0_6 = arith.constant 0 : index
    %6 = vector.load %arg4[%c0_5, %c0_6] : memref<1x512xf32, #tpu.memory_space<vmem>>, vector<1x512xf32>
    %7 = vector.broadcast %6 : vector<1x512xf32> to vector<2x512xf32>
    %8 = arith.addf %5, %7 : vector<2x512xf32>
    %cst_7 = arith.constant 0.000000e+00 : f32
    %9 = vector.broadcast %cst_7 : f32 to vector<2x512xf32>
    %10 = arith.maximumf %8, %9 : vector<2x512xf32>
    %c0_8 = arith.constant 0 : index
    %c0_9 = arith.constant 0 : index
    %11 = vector.load %arg5[%c0_8, %c0_9] : memref<512x32xf32, #tpu.memory_space<vmem>>, vector<512x32xf32>
    %cst_10 = arith.constant dense<0.000000e+00> : vector<2x32xf32>
    %12 = tpu.matmul %10, %11, %cst_10 {dimension_numbers = #tpu.dot_dimension_numbers<[1], [0], [0], [1], [0, 0, 1, 1], [], []>} : vector<2x512xf32>, vector<512x32xf32>, vector<2x32xf32> -> vector<2x32xf32>
    %cst_11 = arith.constant 0.000000e+00 : f32
    %13 = vector.broadcast %cst_11 : f32 to vector<2x32xf32>
    %14 = arith.maximumf %12, %13 : vector<2x32xf32>
    %c0_12 = arith.constant 0 : index
    %c0_13 = arith.constant 0 : index
    %15 = vector.load %arg6[%c0_12, %c0_13] : memref<32x512xf32, #tpu.memory_space<vmem>>, vector<32x512xf32>
    %cst_14 = arith.constant dense<0.000000e+00> : vector<2x512xf32>
    %16 = tpu.matmul %14, %15, %cst_14 {dimension_numbers = #tpu.dot_dimension_numbers<[1], [0], [0], [1], [0, 0, 1, 1], [], []>} : vector<2x32xf32>, vector<32x512xf32>, vector<2x512xf32> -> vector<2x512xf32>
    %17 = arith.negf %16 : vector<2x512xf32>
    %18 = math.exp %17 : vector<2x512xf32>
    %cst_15 = arith.constant 1.000000e+00 : f32
    %19 = vector.broadcast %cst_15 : f32 to vector<2x512xf32>
    %20 = arith.addf %19, %18 : vector<2x512xf32>
    %21 = arith.divf %19, %20 : vector<2x512xf32>
    %22 = arith.mulf %10, %21 : vector<2x512xf32>
    %c0_16 = arith.constant 0 : index
    %c0_17 = arith.constant 0 : index
    %23 = vector.load %arg7[%c0_16, %c0_17] : memref<512x20xf32, #tpu.memory_space<vmem>>, vector<512x20xf32>
    %cst_18 = arith.constant dense<0.000000e+00> : vector<2x20xf32>
    %24 = tpu.matmul %22, %23, %cst_18 {dimension_numbers = #tpu.dot_dimension_numbers<[1], [0], [0], [1], [0, 0, 1, 1], [], []>} : vector<2x512xf32>, vector<512x20xf32>, vector<2x20xf32> -> vector<2x20xf32>
    %25 = vector.extract_strided_slice %24 {offsets = [0, 0], sizes = [2, 10], strides = [1, 1]} : vector<2x20xf32> to vector<2x10xf32>
    %cst_19 = arith.constant 0.000000e+00 : f32
    %26 = vector.broadcast %cst_19 : f32 to vector<2x10xf32>
    %27 = arith.maximumf %25, %26 : vector<2x10xf32>
    %28 = vector.extract_strided_slice %24 {offsets = [0, 10], sizes = [2, 10], strides = [1, 1]} : vector<2x20xf32> to vector<2x10xf32>
    %c0_20 = arith.constant 0 : index
    %c0_21 = arith.constant 0 : index
    %29 = vector.load %arg8[%c0_20, %c0_21] : memref<1x10xf32, #tpu.memory_space<vmem>>, vector<1x10xf32>
    %30 = vector.broadcast %29 : vector<1x10xf32> to vector<2x10xf32>
    %31 = arith.addf %28, %30 : vector<2x10xf32>
    %c0_22 = arith.constant 0 : index
    %c0_23 = arith.constant 0 : index
    %32 = vector.load %arg9[%c0_22, %c0_23] : memref<2x10xf32, #tpu.memory_space<vmem>>, vector<2x10xf32>
    %cst_24 = arith.constant 5.000000e-01 : f32
    %33 = vector.broadcast %cst_24 : f32 to vector<2x10xf32>
    %34 = arith.mulf %33, %31 : vector<2x10xf32>
    %35 = math.exp %34 : vector<2x10xf32>
    %36 = arith.mulf %32, %35 : vector<2x10xf32>
    %37 = arith.addf %27, %36 : vector<2x10xf32>
    %c0_25 = arith.constant 0 : index
    %c0_26 = arith.constant 0 : index
    %38 = vector.load %arg10[%c0_25, %c0_26] : memref<2x10xf32, #tpu.memory_space<vmem>>, vector<2x10xf32>
    tpu.vector_store %arg10[%c0_25, %c0_26], %37 {strides = array<i32>} : memref<2x10xf32, #tpu.memory_space<vmem>>, vector<2x10xf32>,
    %c0_27 = arith.constant 0 : index
    %c0_28 = arith.constant 0 : index
    %39 = vector.load %arg11[%c0_27, %c0_28] : memref<2x10xf32, #tpu.memory_space<vmem>>, vector<2x10xf32>
    tpu.vector_store %arg11[%c0_27, %c0_28], %27 {strides = array<i32>} : memref<2x10xf32, #tpu.memory_space<vmem>>, vector<2x10xf32>,
    %c0_29 = arith.constant 0 : index
    %c0_30 = arith.constant 0 : index
    %40 = vector.load %arg12[%c0_29, %c0_30] : memref<2x10xf32, #tpu.memory_space<vmem>>, vector<2x10xf32>
    tpu.vector_store %arg12[%c0_29, %c0_30], %31 {strides = array<i32>} : memref<2x10xf32, #tpu.memory_space<vmem>>, vector<2x10xf32>,
    return
  }
  func.func @transform_0(%arg0: i32) -> (i32, i32) {
    %c0_i32 = arith.constant 0 : i32
    %c0_i32_0 = arith.constant 0 : i32
    %c0_i32_1 = arith.constant 0 : i32
    return %c0_i32, %c0_i32_0 : i32, i32
  }
  func.func @transform_1(%arg0: i32) -> (i32, i32) {
    %c0_i32 = arith.constant 0 : i32
    %c0_i32_0 = arith.constant 0 : i32
    %c0_i32_1 = arith.constant 0 : i32
    return %c0_i32, %c0_i32_0 : i32, i32
  }
  func.func @transform_2(%arg0: i32) -> (i32, i32) {
    %c0_i32 = arith.constant 0 : i32
    %c0_i32_0 = arith.constant 0 : i32
    %c0_i32_1 = arith.constant 0 : i32
    return %c0_i32, %c0_i32_0 : i32, i32
  }
  func.func @transform_3(%arg0: i32) -> (i32, i32) {
    %c0_i32 = arith.constant 0 : i32
    %c0_i32_0 = arith.constant 0 : i32
    %c0_i32_1 = arith.constant 0 : i32
    return %c0_i32, %c0_i32_0 : i32, i32
  }
  func.func @transform_4(%arg0: i32) -> (i32, i32) {
    %c0_i32 = arith.constant 0 : i32
    %c0_i32_0 = arith.constant 0 : i32
    %c0_i32_1 = arith.constant 0 : i32
    return %c0_i32, %c0_i32_0 : i32, i32
  }
  func.func @transform_5(%arg0: i32) -> (i32, i32) {
    %c0_i32 = arith.constant 0 : i32
    %c0_i32_0 = arith.constant 0 : i32
    %c0_i32_1 = arith.constant 0 : i32
    return %c0_i32, %c0_i32_0 : i32, i32
  }
  func.func @transform_6(%arg0: i32) -> (i32, i32) {
    %c0_i32 = arith.constant 0 : i32
    %c0_i32_0 = arith.constant 0 : i32
    %c0_i32_1 = arith.constant 0 : i32
    return %c0_i32, %c0_i32_0 : i32, i32
  }
  func.func @transform_7(%arg0: i32) -> (i32, i32) {
    %c0_i32 = arith.constant 0 : i32
    %c0_i32_0 = arith.constant 0 : i32
    %c0_i32_1 = arith.constant 0 : i32
    return %c0_i32, %c0_i32_0 : i32, i32
  }
  func.func @transform_8(%arg0: i32) -> (i32, i32) {
    %c0_i32 = arith.constant 0 : i32
    %c0_i32_0 = arith.constant 0 : i32
    %c0_i32_1 = arith.constant 0 : i32
    return %c0_i32, %c0_i32_0 : i32, i32
  }
  func.func @transform_9(%arg0: i32) -> (i32, i32) {
    %c0_i32 = arith.constant 0 : i32
    %c0_i32_0 = arith.constant 0 : i32
    %c0_i32_1 = arith.constant 0 : i32
    return %c0_i32, %c0_i32_0 : i32, i32
  }
  func.func @transform_10(%arg0: i32) -> (i32, i32) {
    %c0_i32 = arith.constant 0 : i32
    %c0_i32_0 = arith.constant 0 : i32
    %c0_i32_1 = arith.constant 0 : i32
    return %c0_i32, %c0_i32_0 : i32, i32
  }
  func.func @transform_11(%arg0: i32) -> (i32, i32) {
    %c0_i32 = arith.constant 0 : i32
    %c0_i32_0 = arith.constant 0 : i32
    %c0_i32_1 = arith.constant 0 : i32
    return %c0_i32, %c0_i32_0 : i32, i32
  }
}

module attributes {stable_mosaic.version = 11 : i64} {
  func.func @_se_down_cl_kernel(%arg0: i32, %arg1: memref<8x2048xbf16, #tpu.memory_space<vmem>>, %arg2: memref<2048x256xbf16, #tpu.memory_space<vmem>>, %arg3: memref<1x256xf32, #tpu.memory_space<vmem>>, %arg4: memref<1x256xf32, #tpu.memory_space<vmem>>, %arg5: memref<256x16xf32, #tpu.memory_space<vmem>>, %arg6: memref<16x256xf32, #tpu.memory_space<vmem>>, %arg7: memref<8x256xf32, #tpu.memory_space<vmem>>) attributes {dimension_semantics = [#tpu.dimension_semantics<arbitrary>], iteration_bounds = array<i64: 1>, scalar_prefetch = 0 : i64, scratch_operands = 0 : i64, tpu.core_type = #tpu.core_type<tc>, window_params = [{pipeline_mode = #tpu.pipeline_mode<synchronous>, transform_indices = @transform_0, window_bounds = array<i64: 8, 2048>}, {pipeline_mode = #tpu.pipeline_mode<synchronous>, transform_indices = @transform_1, window_bounds = array<i64: 2048, 256>}, {pipeline_mode = #tpu.pipeline_mode<synchronous>, transform_indices = @transform_2, window_bounds = array<i64: 1, 256>}, {pipeline_mode = #tpu.pipeline_mode<synchronous>, transform_indices = @transform_3, window_bounds = array<i64: 1, 256>}, {pipeline_mode = #tpu.pipeline_mode<synchronous>, transform_indices = @transform_4, window_bounds = array<i64: 256, 16>}, {pipeline_mode = #tpu.pipeline_mode<synchronous>, transform_indices = @transform_5, window_bounds = array<i64: 16, 256>}, {pipeline_mode = #tpu.pipeline_mode<synchronous>, transform_indices = @transform_6, window_bounds = array<i64: 8, 256>}]} {
    %c0 = arith.constant 0 : index
    %c0_0 = arith.constant 0 : index
    %0 = vector.load %arg1[%c0, %c0_0] : memref<8x2048xbf16, #tpu.memory_space<vmem>>, vector<8x2048xbf16>
    %c0_1 = arith.constant 0 : index
    %c0_2 = arith.constant 0 : index
    %1 = vector.load %arg2[%c0_1, %c0_2] : memref<2048x256xbf16, #tpu.memory_space<vmem>>, vector<2048x256xbf16>
    %cst = arith.constant dense<0.000000e+00> : vector<8x256xf32>
    %2 = tpu.matmul %0, %1, %cst {dimension_numbers = #tpu.dot_dimension_numbers<[1], [0], [0], [1], [0, 0, 1, 1], [], []>} : vector<8x2048xbf16>, vector<2048x256xbf16>, vector<8x256xf32> -> vector<8x256xf32>
    %c0_3 = arith.constant 0 : index
    %c0_4 = arith.constant 0 : index
    %3 = vector.load %arg3[%c0_3, %c0_4] : memref<1x256xf32, #tpu.memory_space<vmem>>, vector<1x256xf32>
    %4 = vector.broadcast %3 : vector<1x256xf32> to vector<8x256xf32>
    %5 = arith.mulf %2, %4 : vector<8x256xf32>
    %c0_5 = arith.constant 0 : index
    %c0_6 = arith.constant 0 : index
    %6 = vector.load %arg4[%c0_5, %c0_6] : memref<1x256xf32, #tpu.memory_space<vmem>>, vector<1x256xf32>
    %7 = vector.broadcast %6 : vector<1x256xf32> to vector<8x256xf32>
    %8 = arith.addf %5, %7 : vector<8x256xf32>
    %cst_7 = arith.constant 0.000000e+00 : f32
    %9 = vector.broadcast %cst_7 : f32 to vector<8x256xf32>
    %10 = arith.maximumf %8, %9 : vector<8x256xf32>
    %11 = vector.extract_strided_slice %10 {offsets = [0, 0], sizes = [4, 256], strides = [1, 1]} : vector<8x256xf32> to vector<4x256xf32>
    %cst_8 = arith.constant dense<0.000000e+00> : vector<256xf32>
    %12 = vector.multi_reduction <add>, %11, %cst_8 [0] : vector<4x256xf32> to vector<256xf32>
    %13 = vector.shape_cast %12 : vector<256xf32> to vector<1x256xf32>
    %cst_9 = arith.constant 4.000000e+00 : f32
    %14 = vector.broadcast %cst_9 : f32 to vector<1x256xf32>
    %15 = arith.divf %13, %14 : vector<1x256xf32>
    %16 = vector.extract_strided_slice %10 {offsets = [4, 0], sizes = [4, 256], strides = [1, 1]} : vector<8x256xf32> to vector<4x256xf32>
    %cst_10 = arith.constant dense<0.000000e+00> : vector<256xf32>
    %17 = vector.multi_reduction <add>, %16, %cst_10 [0] : vector<4x256xf32> to vector<256xf32>
    %18 = vector.shape_cast %17 : vector<256xf32> to vector<1x256xf32>
    %cst_11 = arith.constant 4.000000e+00 : f32
    %19 = vector.broadcast %cst_11 : f32 to vector<1x256xf32>
    %20 = arith.divf %18, %19 : vector<1x256xf32>
    %21 = tpu.concatenate %15, %20 in 0 : vector<1x256xf32>, vector<1x256xf32> -> vector<2x256xf32>
    %c0_12 = arith.constant 0 : index
    %c0_13 = arith.constant 0 : index
    %22 = vector.load %arg5[%c0_12, %c0_13] : memref<256x16xf32, #tpu.memory_space<vmem>>, vector<256x16xf32>
    %cst_14 = arith.constant dense<0.000000e+00> : vector<2x16xf32>
    %23 = tpu.matmul %21, %22, %cst_14 {dimension_numbers = #tpu.dot_dimension_numbers<[1], [0], [0], [1], [0, 0, 1, 1], [], []>} : vector<2x256xf32>, vector<256x16xf32>, vector<2x16xf32> -> vector<2x16xf32>
    %cst_15 = arith.constant 0.000000e+00 : f32
    %24 = vector.broadcast %cst_15 : f32 to vector<2x16xf32>
    %25 = arith.maximumf %23, %24 : vector<2x16xf32>
    %c0_16 = arith.constant 0 : index
    %c0_17 = arith.constant 0 : index
    %26 = vector.load %arg6[%c0_16, %c0_17] : memref<16x256xf32, #tpu.memory_space<vmem>>, vector<16x256xf32>
    %cst_18 = arith.constant dense<0.000000e+00> : vector<2x256xf32>
    %27 = tpu.matmul %25, %26, %cst_18 {dimension_numbers = #tpu.dot_dimension_numbers<[1], [0], [0], [1], [0, 0, 1, 1], [], []>} : vector<2x16xf32>, vector<16x256xf32>, vector<2x256xf32> -> vector<2x256xf32>
    %28 = arith.negf %27 : vector<2x256xf32>
    %29 = math.exp %28 : vector<2x256xf32>
    %cst_19 = arith.constant 1.000000e+00 : f32
    %30 = vector.broadcast %cst_19 : f32 to vector<2x256xf32>
    %31 = arith.addf %30, %29 : vector<2x256xf32>
    %32 = arith.divf %30, %31 : vector<2x256xf32>
    %33 = vector.extract_strided_slice %10 {offsets = [0, 0], sizes = [4, 256], strides = [1, 1]} : vector<8x256xf32> to vector<4x256xf32>
    %34 = vector.extract_strided_slice %32 {offsets = [0, 0], sizes = [1, 256], strides = [1, 1]} : vector<2x256xf32> to vector<1x256xf32>
    %35 = vector.broadcast %34 : vector<1x256xf32> to vector<4x256xf32>
    %36 = arith.mulf %33, %35 : vector<4x256xf32>
    %c0_20 = arith.constant 0 : index
    %c0_21 = arith.constant 0 : index
    %37 = vector.load %arg7[%c0_20, %c0_21] : memref<8x256xf32, #tpu.memory_space<vmem>>, vector<4x256xf32>
    tpu.vector_store %arg7[%c0_20, %c0_21], %36 {strides = array<i32>} : memref<8x256xf32, #tpu.memory_space<vmem>>, vector<4x256xf32>,
    %38 = vector.extract_strided_slice %10 {offsets = [4, 0], sizes = [4, 256], strides = [1, 1]} : vector<8x256xf32> to vector<4x256xf32>
    %39 = vector.extract_strided_slice %32 {offsets = [1, 0], sizes = [1, 256], strides = [1, 1]} : vector<2x256xf32> to vector<1x256xf32>
    %40 = vector.broadcast %39 : vector<1x256xf32> to vector<4x256xf32>
    %41 = arith.mulf %38, %40 : vector<4x256xf32>
    %c4 = arith.constant 4 : index
    %c0_22 = arith.constant 0 : index
    %42 = vector.load %arg7[%c4, %c0_22] : memref<8x256xf32, #tpu.memory_space<vmem>>, vector<4x256xf32>
    tpu.vector_store %arg7[%c4, %c0_22], %41 {strides = array<i32>} : memref<8x256xf32, #tpu.memory_space<vmem>>, vector<4x256xf32>,
    return
  }
  func.func @transform_0(%arg0: i32) -> (i32, i32) {
    %c0_i32 = arith.constant 0 : i32
    %c0_i32_0 = arith.constant 0 : i32
    %c0_i32_1 = arith.constant 0 : i32
    return %c0_i32, %c0_i32_0 : i32, i32
  }
  func.func @transform_1(%arg0: i32) -> (i32, i32) {
    %c0_i32 = arith.constant 0 : i32
    %c0_i32_0 = arith.constant 0 : i32
    %c0_i32_1 = arith.constant 0 : i32
    return %c0_i32, %c0_i32_0 : i32, i32
  }
  func.func @transform_2(%arg0: i32) -> (i32, i32) {
    %c0_i32 = arith.constant 0 : i32
    %c0_i32_0 = arith.constant 0 : i32
    %c0_i32_1 = arith.constant 0 : i32
    return %c0_i32, %c0_i32_0 : i32, i32
  }
  func.func @transform_3(%arg0: i32) -> (i32, i32) {
    %c0_i32 = arith.constant 0 : i32
    %c0_i32_0 = arith.constant 0 : i32
    %c0_i32_1 = arith.constant 0 : i32
    return %c0_i32, %c0_i32_0 : i32, i32
  }
  func.func @transform_4(%arg0: i32) -> (i32, i32) {
    %c0_i32 = arith.constant 0 : i32
    %c0_i32_0 = arith.constant 0 : i32
    %c0_i32_1 = arith.constant 0 : i32
    return %c0_i32, %c0_i32_0 : i32, i32
  }
  func.func @transform_5(%arg0: i32) -> (i32, i32) {
    %c0_i32 = arith.constant 0 : i32
    %c0_i32_0 = arith.constant 0 : i32
    %c0_i32_1 = arith.constant 0 : i32
    return %c0_i32, %c0_i32_0 : i32, i32
  }
  func.func @transform_6(%arg0: i32) -> (i32, i32) {
    %c0_i32 = arith.constant 0 : i32
    %c0_i32_0 = arith.constant 0 : i32
    %c0_i32_1 = arith.constant 0 : i32
    return %c0_i32, %c0_i32_0 : i32, i32
  }
}

</mosaic_0001>

<bundles_post_ra>
// kernel: variational_se_encoder.6
= control target key start
LH: loop header
LB: loop body
LE: loop exit
PB: predicated region body
PF: predicated region fallthrough
CT: control target
= control target key end

     0   :  { %11 = vsyncpa [#allocation3], 0  ;;  %s1522_s0 = inlined_call_operand.vmem [shape: bf16[16,2048], index: 0, kind: input, shape index: {}]   ;;  %s1523_s1 = inlined_call_operand.hbm [shape: bf16[16,16], index: 1, kind: input, shape index: {}]   ;;  %s1524_s2 = inlined_call_operand.vmem [shape: f32[16,1], index: 2, kind: input, shape index: {}]   ;;  %s1525_s3 = inlined_call_operand.vmem [shape: f32[16,1], index: 3, kind: input, shape index: {}]   ;;  %s1526_s4 = inlined_call_operand.hbm [shape: f32[1,16], index: 4, kind: input, shape index: {}]   ;;  %s1527_s5 = inlined_call_operand.vmem [shape: f32[16,1], index: 5, kind: input, shape index: {}]   ;;  %s1528_s6 = inlined_call_operand.vmem [shape: f32[16,2048], index: 6, kind: output, shape index: {}]  }
   0x1   :  { %s19_s23 = sshll.u32 %s1523_s1, 4  ;;  %s20_s23 = int_to_ptr.hbm [resolvable:$true] %s19_s23 }
   0x2   :  { %12 = vsyncpa [#allocation5], 0  ;;  %s925_s24 = smov [#allocation2]   ;;  %s37_s28 = sshll.u32 %s1526_s4, 4  ;;  %s38_s28 = int_to_ptr.hbm [resolvable:$true] %s37_s28 }
   0x3   :  { %s21_s25 = sshll.u32 %s925_s24, 4  ;;  %s926_s29 = smov 64   ;;  %s22_s25 = int_to_ptr.vmem [resolvable:$true] %s21_s25 }
   0x4   :  { %s927_s30 = smov 4   ;;  %s928_s7 = smov [#allocation4]  }
   0x5   :  { %27 = dma.hbm_to_vmem [thread:$0]  %s20_s23, 128, %s22_s25, [#allocation3], %s926_s29, %s926_s29, %s927_s30  }
   0x6   :  { %s39_s8 = sshll.u32 %s928_s7, 4  ;;  %s40_s8 = int_to_ptr.vmem [resolvable:$true] %s39_s8 }
   0x7   :  { %42 = dma.hbm_to_vmem [thread:$0]  %s38_s28, 16, %s40_s8, [#allocation5]  }
   0x8   :  { %921 = dma.done.wait [#allocation3], 128  }
   0x9   :  { %922 = vsyncadd [#allocation3], 4294967168 }
   0xa   :  { %923 = dma.done.wait [#allocation5], 16  }
   0xb   :  { %924 = vsyncadd [#allocation5], 4294967280  ;;  %v929_v0 = vmov 0   ;;  %v747_v1 = vld [vmem:[%s1522_s0] sm:$0xf]  ;;  %vm157_vm0 = vcmask 130048  }
   0xc   :  { %856 = vset.pattern.permute.xlu0 %v929_v0  ;;  %857 = vset.pattern.permute.xlu1 %v929_v0  ;;  %v840_v2 = vld [vmem:[%s1522_s0 + $0x3c] sm:$0xf0]  ;;  %v832_v3 = vld [vmem:[%s1522_s0 + $0x4] sm:$0xf]  ;;  %v755_v6 = vld [vmem:[%s1522_s0 + $0x8] sm:$0xf] }
   0xd   :  { %858 = vset.pattern.permute.xlu2 %v929_v0  ;;  %v748_v4 = vor.u32 %v840_v2, %v747_v1  ;;  %v749_v5 = vld [vmem:[%s1522_s0 + $0x40] sm:$0xf0]  ;;  %v841_v7 = vld [vmem:[%s1522_s0 + $0x44] sm:$0xf0]  ;;  %v833_v10 = vld [vmem:[%s1522_s0 + $0xc] sm:$0xf] }
   0xe   :  { %v752_v8 = vor.u32 %v832_v3, %v749_v5  ;;  %v756_v9 = vor.u32 %v841_v7, %v755_v6  ;;  %v757_v11 = vld [vmem:[%s1522_s0 + $0x48] sm:$0xf0]  ;;  %v1000_v12 = vld [vmem:[#allocation2] sm:$0xff]  ;;  %v763_v16 = vld [vmem:[%s1522_s0 + $0x10] sm:$0xf]  ;;  %vm552_vm2 = vcmask 7168  }
   0xf   :  { %168 = vmatpush.bf16.msra.mxu0 %v748_v4  ;;  %v760_v13 = vor.u32 %v833_v10, %v757_v11  ;;  %v386_v14 = vld [vmem:[%s1524_s2 + $0x8] sm:$0xff]  ;;  %v842_v17 = vld [vmem:[%s1522_s0 + $0x4c] sm:$0xf0]  ;;  %v834_v18 = vld [vmem:[%s1522_s0 + $0x14] sm:$0xf]  ;;  %vm588_vm3 = vcmask 1040384  }
  0x10   :  { %v430_v15 = vld [vmem:[%s1525_s3 + $0x8] sm:$0xff]  ;;  %182 = vmatpush.bf16.msra.mxu1 %v752_v8  ;;  %196 = vmatpush.bf16.msra.mxu2 %v756_v9  ;;  %v764_v19 = vor.u32 %v842_v17, %v763_v16  ;;  %v765_v20 = vld [vmem:[%s1522_s0 + $0x50] sm:$0xf0]  ;;  %v771_v21 = vld [vmem:[%s1522_s0 + $0x18] sm:$0xf] }
  0x11   :  { %210 = vmatpush.bf16.msra.mxu3 %v760_v13  ;;  %394 = vperm.xlu0 %856, %v386_v14   ;;  %v843_v22 = vld [vmem:[%s1522_s0 + $0x54] sm:$0xf0]  ;;  %v768_v23 = vor.u32 %v834_v18, %v765_v20  ;;  %v835_v25 = vld [vmem:[%s1522_s0 + $0x1c] sm:$0xf]  ;;  %v779_v28 = vld [vmem:[%s1522_s0 + $0x20] sm:$0xf] }
  0x12   :  { %809 = vmatmul.msk.bf16.vlgmr.msra.gmra.mxu0 %vm157_vm0, %v1000_v12  ;;  %438 = vperm.xlu1 %857, %v430_v15   ;;  %v772_v24 = vor.u32 %v843_v22, %v771_v21  ;;  %v773_v26 = vld [vmem:[%s1522_s0 + $0x58] sm:$0xf0]  ;;  %v844_v29 = vld [vmem:[%s1522_s0 + $0x5c] sm:$0xf0]  ;;  %v836_v30 = vld [vmem:[%s1522_s0 + $0x24] sm:$0xf] }
  0x13   :  { %810 = vmatmul.msk.bf16.vlgmr.msra.gmra.mxu1 %vm157_vm0, %v1000_v12  ;;  %811 = vmatmul.msk.bf16.vlgmr.msra.gmra.mxu2 %vm157_vm0, %v1000_v12  ;;  %v776_v27 = vor.u32 %v835_v25, %v773_v26  ;;  %v780_v31 = vor.u32 %v844_v29, %v779_v28  ;;  %v781_v32 = vld [vmem:[%s1522_s0 + $0x60] sm:$0xf0]  ;;  %v787_v33 = vld [vmem:[%s1522_s0 + $0x28] sm:$0xf]  ;;  %v837_v37 = vld [vmem:[%s1522_s0 + $0x2c] sm:$0xf] }
  0x14   :  { %812 = vmatmul.msk.bf16.vlgmr.msra.gmra.mxu3 %vm157_vm0, %v1000_v12  ;;  %224 = vmatpush.bf16.msrb.mxu0 %v764_v19  ;;  %v845_v34 = vld [vmem:[%s1522_s0 + $0x64] sm:$0xf0]  ;;  %v784_v35 = vor.u32 %v836_v30, %v781_v32  ;;  %v789_v38 = vld [vmem:[%s1522_s0 + $0x68] sm:$0xf0]  ;;  %v385_v39 = vld [vmem:[%s1524_s2] sm:$0xff] }
  0x15   :  { %238 = vmatpush.bf16.msrb.mxu1 %v768_v23  ;;  %252 = vmatpush.bf16.msrb.mxu2 %v772_v24  ;;  %v788_v36 = vor.u32 %v845_v34, %v787_v33  ;;  %v792_v40 = vor.u32 %v837_v37, %v789_v38  ;;  %v429_v41 = vld [vmem:[%s1525_s3] sm:$0xff]  ;;  %v795_v42 = vld [vmem:[%s1522_s0 + $0x30] sm:$0xf]  ;;  %v838_v44 = vld [vmem:[%s1522_s0 + $0x34] sm:$0xf] }
  0x16   :  { %266 = vmatpush.bf16.msrb.mxu3 %v776_v27  ;;  %v846_v43 = vld [vmem:[%s1522_s0 + $0x6c] sm:$0xf0]  ;;  %v797_v45 = vld [vmem:[%s1522_s0 + $0x70] sm:$0xf0]  ;;  %v803_v46 = vld [vmem:[%s1522_s0 + $0x38] sm:$0xf] }
  0x17   :  { %v847_v47 = vld [vmem:[%s1522_s0 + $0x74] sm:$0xf0]  ;;  %v839_v48 = vld [vmem:[%s1522_s0 + $0x3c] sm:$0xf]  ;;  %v796_v50 = vor.u32 %v846_v43, %v795_v42  ;;  %v800_v51 = vor.u32 %v838_v44, %v797_v45 }
  0x18   :  { %280 = vmatpush.bf16.msra.mxu0 %v780_v31  ;;  %v805_v49 = vld [vmem:[%s1522_s0 + $0x78] sm:$0xf0]  ;;  %v804_v52 = vor.u32 %v847_v47, %v803_v46 }
  0x19   :  { %294 = vmatpush.bf16.msra.mxu1 %v784_v35  ;;  %308 = vmatpush.bf16.msra.mxu2 %v788_v36  ;;  %v808_v53 = vor.u32 %v839_v48, %v805_v49 }
  0x1a   :  { %322 = vmatpush.bf16.msra.mxu3 %v792_v40  ;;  %389 = vperm.xlu0 %856, %v385_v39  }
  0x1b   :  { %433 = vperm.xlu1 %857, %v429_v41  }
  0x22   :  { %813 = vmatmul.msk.bf16.vlgmr.msrb.gmra.mxu0 %vm157_vm0, %v1000_v12 }
  0x23   :  { %814 = vmatmul.msk.bf16.vlgmr.msrb.gmra.mxu1 %vm157_vm0, %v1000_v12  ;;  %815 = vmatmul.msk.bf16.vlgmr.msrb.gmra.mxu2 %vm157_vm0, %v1000_v12 }
  0x24   :  { %816 = vmatmul.msk.bf16.vlgmr.msrb.gmra.mxu3 %vm157_vm0, %v1000_v12  ;;  %336 = vmatpush.bf16.msrb.mxu0 %v796_v50 }
  0x25   :  { %350 = vmatpush.bf16.msrb.mxu1 %v800_v51  ;;  %364 = vmatpush.bf16.msrb.mxu2 %v804_v52 }
  0x26   :  { %378 = vmatpush.bf16.msrb.mxu3 %v808_v53 }
  0x32   :  { %817 = vmatmul.msk.bf16.vlgmr.msra.gmra.mxu0 %vm157_vm0, %v1000_v12 }
  0x33   :  { %818 = vmatmul.msk.bf16.vlgmr.msra.gmra.mxu1 %vm157_vm0, %v1000_v12  ;;  %819 = vmatmul.msk.bf16.vlgmr.msra.gmra.mxu2 %vm157_vm0, %v1000_v12 }
  0x34   :  { %820 = vmatmul.msk.bf16.vlgmr.msra.gmra.mxu3 %vm157_vm0, %v1000_v12 }
  0x42   :  { %821 = vmatmul.msk.bf16.vlgmr.msrb.gmra.mxu0 %vm157_vm0, %v1000_v12 }
  0x43   :  { %822 = vmatmul.msk.bf16.vlgmr.msrb.gmra.mxu1 %vm157_vm0, %v1000_v12  ;;  %823 = vmatmul.msk.bf16.vlgmr.msrb.gmra.mxu2 %vm157_vm0, %v1000_v12 }
  0x44   :  { %824 = vmatmul.msk.bf16.vlgmr.msrb.gmra.mxu3 %vm157_vm0, %v1000_v12 }
  0x83   :  { %v1118_v54 = vpop.permute.xlu0 %394 }
  0x84   :  { %v1120_v55 = vpop.permute.xlu1 %438 }
  0x8c   :  { %v1122_v58 = vpop.permute.xlu0 %389 }
  0x8d   :  { %v1126_v61 = vpop.permute.xlu1 %433 }
  0x8f   :  { %v170_v56 = vpop.f32.mrf.mxu0 }
  0x90   :  { %v184_v57 = vpop.f32.mrf.mxu1  ;;  %v397_v59 = vmul.f32 %v1122_v58, %v170_v56 }
  0x91   :  { %v398_v60 = vmul.f32 %v1122_v58, %v184_v57 }
  0x92   :  { %v1130_v1 = vadd.f32 %v1126_v61, %v397_v59 }
  0x93   :  { %v1133_v2 = vadd.f32 %v1126_v61, %v398_v60 }
  0x94   :  { %v473_v10 = vmax.f32 %v1130_v1, 0.0 }
  0x95   :  { %v474_v11 = vmax.f32 %v1133_v2, 0.0 }
  0x96   :  { %v198_v62 = vpop.f32.mrf.mxu2 }
  0x97   :  { %v399_v63 = vmul.f32 %v1122_v58, %v198_v62  ;;  %v212_v3 = vpop.f32.mrf.mxu3  ;;  %v172_v4 = vpop.f32.mrf.mxu0  ;;  %v505_v17 = vadd.f32 %v474_v11, %v473_v10 }
  0x98   :  { %v186_v5 = vpop.f32.mrf.mxu1  ;;  %v400_v7 = vmul.f32 %v1122_v58, %v212_v3  ;;  %v413_v8 = vmul.f32 %v1118_v54, %v172_v4 }
  0x99   :  { %v1136_v6 = vadd.f32 %v1126_v61, %v399_v63  ;;  %v414_v9 = vmul.f32 %v1118_v54, %v186_v5 }
  0x9a   :  { %v1145_v13 = vadd.f32 %v1126_v61, %v400_v7  ;;  %v1148_v14 = vadd.f32 %v1120_v55, %v413_v8 }
  0x9b   :  { %v475_v12 = vmax.f32 %v1136_v6, 0.0  ;;  %v1151_v15 = vadd.f32 %v1120_v55, %v414_v9 }
  0x9c   :  { %v476_v24 = vmax.f32 %v1145_v13, 0.0  ;;  %v1542_v27 = vmax.f32 %v1148_v14, 0.0 }
  0x9d   :  { %v506_v23 = vadd.f32 %v505_v17, %v475_v12  ;;  %v1540_v28 = vmax.f32 %v1151_v15, 0.0 }
  0x9e   :  { %v200_v16 = vpop.f32.mrf.mxu2 }
  0x9f   :  { %v415_v18 = vmul.f32 %v1118_v54, %v200_v16  ;;  %v214_v19 = vpop.f32.mrf.mxu3  ;;  %v226_v20 = vpop.f32.mrf.mxu0  ;;  %v507_v33 = vadd.f32 %v506_v23, %v476_v24  ;;  %v514_v35 = vadd.f32 %v1540_v28, %v1542_v27 }
  0xa0   :  { %v401_v21 = vmul.f32 %v1122_v58, %v226_v20  ;;  %v240_v22 = vpop.f32.mrf.mxu1  ;;  %v416_v30 = vmul.f32 %v1118_v54, %v214_v19 }
  0xa1   :  { %v1163_v25 = vadd.f32 %v1120_v55, %v415_v18  ;;  %v402_v26 = vmul.f32 %v1122_v58, %v240_v22 }
  0xa2   :  { %v1169_v29 = vadd.f32 %v1126_v61, %v401_v21  ;;  %v1184_v37 = vadd.f32 %v1120_v55, %v416_v30 }
  0xa3   :  { %v1173_v31 = vadd.f32 %v1126_v61, %v402_v26  ;;  %v1539_v34 = vmax.f32 %v1163_v25, 0.0 }
  0xa4   :  { %v477_v32 = vmax.f32 %v1169_v29, 0.0  ;;  %v1536_v51 = vmax.f32 %v1184_v37, 0.0 }
  0xa5   :  { %v478_v39 = vmax.f32 %v1173_v31, 0.0  ;;  %v515_v46 = vadd.f32 %v514_v35, %v1539_v34 }
  0xa6   :  { %v254_v36 = vpop.f32.mrf.mxu2  ;;  %v508_v38 = vadd.f32 %v507_v33, %v477_v32 }
  0xa7   :  { %v403_v40 = vmul.f32 %v1122_v58, %v254_v36  ;;  %v268_v41 = vpop.f32.mrf.mxu3  ;;  %v228_v42 = vpop.f32.mrf.mxu0  ;;  %v516_v59 = vadd.f32 %v515_v46, %v1536_v51 }
  0xa8   :  { %v404_v43 = vmul.f32 %v1122_v58, %v268_v41  ;;  %v417_v44 = vmul.f32 %v1118_v54, %v228_v42  ;;  %v242_v45 = vpop.f32.mrf.mxu1  ;;  %v509_v52 = vadd.f32 %v508_v38, %v478_v39 }
  0xa9   :  { %v1195_v47 = vadd.f32 %v1126_v61, %v403_v40  ;;  %v418_v48 = vmul.f32 %v1118_v54, %v242_v45 }
  0xaa   :  { %v1199_v49 = vadd.f32 %v1126_v61, %v404_v43  ;;  %v1202_v50 = vadd.f32 %v1120_v55, %v417_v44 }
  0xab   :  { %v479_v53 = vmax.f32 %v1195_v47, 0.0  ;;  %v1213_v60 = vadd.f32 %v1120_v55, %v418_v48 }
  0xac   :  { %v480_v56 = vmax.f32 %v1199_v49, 0.0  ;;  %v1535_v57 = vmax.f32 %v1202_v50, 0.0 }
  0xad   :  { %v510_v62 = vadd.f32 %v509_v52, %v479_v53  ;;  %v1531_v17 = vmax.f32 %v1213_v60, 0.0 }
  0xae   :  { %v256_v63 = vpop.f32.mrf.mxu2  ;;  %v517_v3 = vadd.f32 %v516_v59, %v1535_v57 }
  0xaf   :  { %v419_v4 = vmul.f32 %v1118_v54, %v256_v63  ;;  %v270_v5 = vpop.f32.mrf.mxu3  ;;  %v282_v7 = vpop.f32.mrf.mxu0  ;;  %v511_v8 = vadd.f32 %v510_v62, %v480_v56 }
  0xb0   :  { %v420_v9 = vmul.f32 %v1118_v54, %v270_v5  ;;  %v296_v16 = vpop.f32.mrf.mxu1  ;;  %v405_v21 = vmul.f32 %v1122_v58, %v282_v7  ;;  %v518_v23 = vadd.f32 %v517_v3, %v1531_v17 }
  0xb1   :  { %v1225_v18 = vadd.f32 %v1120_v55, %v419_v4  ;;  %512 = vadd.xlane.f32.xlu0 %v511_v8  ;;  %v406_v22 = vmul.f32 %v1122_v58, %v296_v16 }
  0xb2   :  { %v1228_v19 = vadd.f32 %v1120_v55, %v420_v9  ;;  %v1239_v35 = vadd.f32 %v1126_v61, %v405_v21 }
  0xb3   :  { %v1530_v20 = vmax.f32 %v1225_v18, 0.0  ;;  %v1242_v36 = vadd.f32 %v1126_v61, %v406_v22 }
  0xb4   :  { %v1529_v26 = vmax.f32 %v1228_v19, 0.0  ;;  %v481_v46 = vmax.f32 %v1239_v35, 0.0 }
  0xb5   :  { %v519_v30 = vadd.f32 %v518_v23, %v1530_v20  ;;  %v482_v48 = vmax.f32 %v1242_v36, 0.0  ;;  %v1553_v36 = vmax.f32 %v1148_v14, 0.0 }
  0xb6   :  { %v310_v33 = vpop.f32.mrf.mxu2 }
  0xb7   :  { %v407_v38 = vmul.f32 %v1122_v58, %v310_v33  ;;  %v324_v40 = vpop.f32.mrf.mxu3  ;;  %v284_v41 = vpop.f32.mrf.mxu0  ;;  %v520_v42 = vadd.f32 %v519_v30, %v1529_v26  ;;  %v532_v4 = vadd.f32 %v482_v48, %v481_v46 }
  0xb8   :  { %v298_v43 = vpop.f32.mrf.mxu1  ;;  %v408_v45 = vmul.f32 %v1122_v58, %v324_v40  ;;  %v421_v52 = vmul.f32 %v1118_v54, %v284_v41 }
  0xb9   :  { %v1248_v44 = vadd.f32 %v1126_v61, %v407_v38  ;;  %521 = vadd.xlane.f32.xlu2 %v520_v42  ;;  %v422_v59 = vmul.f32 %v1118_v54, %v298_v43 }
  0xba   :  { %v1257_v63 = vadd.f32 %v1126_v61, %v408_v45  ;;  %v1264_v5 = vadd.f32 %v1120_v55, %v421_v52 }
  0xbb   :  { %v483_v62 = vmax.f32 %v1248_v44, 0.0  ;;  %v1267_v7 = vadd.f32 %v1120_v55, %v422_v59 }
  0xbc   :  { %v484_v30 = vmax.f32 %v1257_v63, 0.0  ;;  %v1533_v41 = vmax.f32 %v1264_v5, 0.0 }
  0xbd   :  { %v533_v23 = vadd.f32 %v532_v4, %v483_v62  ;;  %v1532_v42 = vmax.f32 %v1267_v7, 0.0 }
  0xbe   :  { %v312_v3 = vpop.f32.mrf.mxu2 }
  0xbf   :  { %v423_v8 = vmul.f32 %v1118_v54, %v312_v3  ;;  %v326_v9 = vpop.f32.mrf.mxu3  ;;  %v338_v16 = vpop.f32.mrf.mxu0  ;;  %v534_v52 = vadd.f32 %v533_v23, %v484_v30 }
  0xc0   :  { %v409_v21 = vmul.f32 %v1122_v58, %v338_v16  ;;  %v352_v22 = vpop.f32.mrf.mxu1  ;;  %v424_v43 = vmul.f32 %v1118_v54, %v326_v9 }
  0xc1   :  { %v1275_v33 = vadd.f32 %v1120_v55, %v423_v8  ;;  %v410_v38 = vmul.f32 %v1122_v58, %v352_v22  ;;  %v541_v8 = vadd.f32 %v1532_v42, %v1533_v41 }
  0xc2   :  { %v1279_v40 = vadd.f32 %v1126_v61, %v409_v21  ;;  %v1296_v16 = vadd.f32 %v1120_v55, %v424_v43 }
  0xc3   :  { %v1534_v59 = vmax.f32 %v1275_v33, 0.0  ;;  %v1289_v3 = vadd.f32 %v1126_v61, %v410_v38 }
  0xc4   :  { %v1548_v45 = vmax.f32 %v1279_v40, 0.0  ;;  %v1549_v29 = vmax.f32 %v1279_v40, 0.0 }
  0xc5   :  { %v542_v17 = vadd.f32 %v541_v8, %v1534_v59  ;;  %v1545_v42 = vmax.f32 %v1289_v3, 0.0 }
  0xc6   :  { %v366_v4 = vpop.f32.mrf.mxu2  ;;  %v535_v9 = vadd.f32 %v534_v52, %v1548_v45 }
  0xc7   :  { %v411_v21 = vmul.f32 %v1122_v58, %v366_v4  ;;  %v380_v22 = vpop.f32.mrf.mxu3  ;;  %v340_v23 = vpop.f32.mrf.mxu0 }
  0xc8   :  { %v412_v26 = vmul.f32 %v1122_v58, %v380_v22  ;;  %v425_v38 = vmul.f32 %v1118_v54, %v340_v23  ;;  %v354_v20 = vpop.f32.mrf.mxu1  ;;  %v1537_v58 = vmax.f32 %v1296_v16, 0.0  ;;  %v536_v22 = vadd.f32 %v535_v9, %v1545_v42 }
  0xc9   :  { %v1307_v43 = vadd.f32 %v1126_v61, %v411_v21  ;;  %v426_v41 = vmul.f32 %v1118_v54, %v354_v20 }
  0xca   :  { %v1311_v52 = vadd.f32 %v1126_v61, %v412_v26  ;;  %v1314_v4 = vadd.f32 %v1120_v55, %v425_v38  ;;  %v543_v21 = vadd.f32 %v542_v17, %v1537_v58 }
  0xcb   :  { %v1544_v8 = vmax.f32 %v1307_v43, 0.0  ;;  %v1325_v61 = vadd.f32 %v1120_v55, %v426_v41  ;;  %v1551_v47 = vmax.f32 %v1307_v43, 0.0  ;;  %v1558_v43 = vmax.f32 %v1213_v60, 0.0 }
  0xcc   :  { %v1538_v23 = vmax.f32 %v1314_v4, 0.0  ;;  %v1543_v20 = vmax.f32 %v1311_v52, 0.0 }
  0xcd   :  { %v537_v26 = vadd.f32 %v536_v22, %v1544_v8  ;;  %v1541_v58 = vmax.f32 %v1325_v61, 0.0 }
  0xce   :  { %v368_v38 = vpop.f32.mrf.mxu2  ;;  %v544_v59 = vadd.f32 %v543_v21, %v1538_v23 }
  0xcf   :  { %v427_v9 = vmul.f32 %v1118_v54, %v368_v38  ;;  %v382_v57 = vpop.f32.mrf.mxu3  ;;  %v538_v51 = vadd.f32 %v537_v26, %v1543_v20 }
  0xd0   :  { %v428_v17 = vmul.f32 %v1118_v54, %v382_v57  ;;  %v545_v21 = vadd.f32 %v544_v59, %v1541_v58  ;;  %v930_v57 = vmov 1024.0  }
  0xd1   :  { %v1337_v41 = vadd.f32 %v1120_v55, %v427_v9  ;;  %539 = vadd.xlane.f32.xlu1 %v538_v51  ;;  %863 = vrcp.f32 %v930_v57 }
  0xd2   :  { %v1340_v22 = vadd.f32 %v1120_v55, %v428_v17 }
  0xd3   :  { %v1546_v38 = vmax.f32 %v1337_v41, 0.0 }
  0xd4   :  { %v1547_v23 = vmax.f32 %v1340_v22, 0.0 }
  0xd5   :  { %v546_v26 = vadd.f32 %v545_v21, %v1546_v38 }
  0xd7   :  { %v547_v54 = vadd.f32 %v546_v26, %v1547_v23  ;;  %v864_v51 = vpop.eup %863 }
  0xd8   :  { %v524_v9 = vmul.f32 1024.0, %v864_v51  ;;  %vm528_vm1 = vweird.f32 %v864_v51 }
  0xd9   :  { %548 = vadd.xlane.f32.xlu2 %v547_v54  ;;  %v555_v54 = vld [vmem:[#allocation4] sm:$0x1] }
  0xda   :  { %v525_v55 = vsub.f32 1.0, %v524_v9 }
  0xdc   :  { %v526_v17 = vmul.f32 %v864_v51, %v525_v55 }
  0xde   :  { %v527_v28 = vadd.f32 %v864_v51, %v526_v17 }
  0xe0   :  { %v529_v58 = vsel %vm528_vm1, %v864_v51, %v527_v28  ;;  %v580_v28 = vld [vmem:[%s1527_s5] sm:$0xff] }
 0x124   :  { %v513_v27 = vpop.xlane.xlu0 %512 }
 0x125   :  { %v530_v38 = vmul.f32 %v529_v58, %v513_v27  ;;  %v581_v27 = vld [vmem:[%s1527_s5 + $0x8] sm:$0xff] }
 0x12c   :  { %v522_v34 = vpop.xlane.xlu2 %521 }
 0x12d   :  { %v531_v8 = vmul.f32 %v529_v58, %v522_v34  ;;  %v931_v34 = vmov 1  }
 0x12e   :  { %862 = vset.pattern.permute.xlu0 %v931_v34 }
 0x144   :  { %v540_v59 = vpop.xlane.xlu1 %539 }
 0x145   :  { %v550_v42 = vmul.f32 %v540_v59, %v529_v58 }
 0x147   :  { %v553_v57 = vsel %vm552_vm2, %v530_v38, %v550_v42 }
 0x14c   :  { %v549_v20 = vpop.xlane.xlu2 %548 }
 0x14d   :  { %v551_v21 = vmul.f32 %v549_v20, %v529_v58 }
 0x14f   :  { %v554_v26 = vsel %vm552_vm2, %v531_v8, %v551_v21 }
 0x150   :  { %573 = vmatpush.msra.mxu0 %v554_v26 }
 0x152   :  { %574 = vmatpush.msra.mxu0 %v553_v57 }
 0x153   :  { %825 = vmatmul.msk.f32.vlgmr.msra.gmra.mxu0 %vm157_vm0, %v555_v54 }
 0x1d0   :  { %v576_v9 = vpop.f32.mrf.mxu0 }
 0x1d1   :  { %v579_v55 = vmax.f32 %v576_v9, 0.0 }
 0x1d3   :  { %826 = vmatpush.msk.msra.mxu1 %vm588_vm3, %v579_v55  ;;  %848 = vmatpush.msk.msra.mxu2 %vm588_vm3, %v579_v55 }
 0x1d4   :  { %827 = vmatmul.msk.f32.vlgmr.msra.gmra.mxu1 %vm552_vm2, %v580_v28  ;;  %828 = vmatmul.msk.f32.vlgmr.msra.gmra.mxu2 %vm552_vm2, %v581_v27 }
 0x251   :  { %v609_v42 = vpop.f32.mrf.mxu1 }
 0x252   :  { %v829_v58 = vmul.f32 -1.442695, %v609_v42 }
 0x254   :  { %865 = vpow2.f32 %v829_v58 }
 0x257   :  { %v612_v8 = vpop.f32.mrf.mxu2 }
 0x258   :  { %v830_v20 = vmul.f32 -1.442695, %v612_v8 }
 0x25a   :  { %v866_v38 = vpop.eup %865  ;;  %867 = vpow2.f32 %v830_v20 }
 0x25b   :  { %v621_v51 = vadd.f32 1.0, %v866_v38 }
 0x25d   :  { %869 = vrcp.f32 %v621_v51  ;;  %v634_v57 = vand.u32 2147483648, %v621_v51  ;;  %v632_v55 = vand.u32 2147483647, %v621_v51  ;;  %vm628_vm5 = vweird.f32 %v621_v51 }
 0x25f   :  { %v635_v42 = vor.u32 1.1754944e-38, %v634_v57  ;;  %vm633_vm7 = vcmp.eq.f32.partialorder %v632_v55, 8.507059e+37 }
 0x260   :  { %v868_v17 = vpop.eup %867 }
 0x261   :  { %v622_v59 = vadd.f32 1.0, %v868_v17 }
 0x263   :  { %v870_v21 = vpop.eup %869  ;;  %871 = vrcp.f32 %v622_v59  ;;  %vm643_vm8 = vweird.f32 %v622_v59  ;;  %v647_v23 = vand.u32 2147483647, %v622_v59 }
 0x264   :  { %v624_v26 = vmul.f32 %v870_v21, %v621_v51  ;;  %vm629_vm4 = vweird.f32 %v870_v21 }
 0x265   :  { %vm630_vm6 = vmor %vm628_vm5, %vm629_vm4  ;;  %vm648_vm11 = vcmp.eq.f32.partialorder %v647_v23, 8.507059e+37 }
 0x266   :  { %v625_v54 = vsub.f32 1.0, %v624_v26  ;;  %v649_v26 = vand.u32 2147483648, %v622_v59 }
 0x268   :  { %v626_v9 = vmul.f32 %v870_v21, %v625_v54  ;;  %v650_v45 = vor.u32 1.1754944e-38, %v649_v26 }
 0x269   :  { %v872_v28 = vpop.eup %871 }
 0x26a   :  { %v627_v27 = vadd.f32 %v870_v21, %v626_v9  ;;  %v639_v8 = vmul.f32 %v872_v28, %v622_v59  ;;  %vm644_vm9 = vweird.f32 %v872_v28 }
 0x26b   :  { %vm645_vm10 = vmor %vm643_vm8, %vm644_vm9 }
 0x26c   :  { %v631_v58 = vsel %vm630_vm6, %v870_v21, %v627_v27  ;;  %v640_v38 = vsub.f32 1.0, %v639_v8  ;;  %v1565_v8 = vmax.f32 %v1314_v4, 0.0 }
 0x26d   :  { %v636_v20 = vsel %vm633_vm7, %v635_v42, %v631_v58  ;;  %v1564_v42 = vmax.f32 %v1296_v16, 0.0  ;;  %v1568_v16 = vmax.f32 %v1340_v22, 0.0 }
 0x26e   :  { %655 = vperm.xlu2 %858, %v636_v20   ;;  %v641_v17 = vmul.f32 %v872_v28, %v640_v38  ;;  %v1566_v38 = vmax.f32 %v1325_v61, 0.0 }
 0x270   :  { %v642_v54 = vadd.f32 %v872_v28, %v641_v17 }
 0x272   :  { %v646_v9 = vsel %vm645_vm10, %v872_v28, %v642_v54 }
 0x273   :  { %v651_v51 = vsel %vm648_vm11, %v650_v45, %v646_v9  ;;  %v1557_v45 = vmax.f32 %v1202_v50, 0.0 }
 0x276   :  { %859 = vset.pattern.permute.xlu2 %v931_v34 }
 0x277   :  { %696 = vperm.xlu2 %859, %v636_v20  }
 0x27f   :  { %860 = vset.pattern.permute.xlu2 %v929_v0 }
 0x280   :  { %660 = vperm.xlu2 %860, %v651_v51  }
 0x288   :  { %861 = vset.pattern.permute.xlu2 %v931_v34  ;;  %v1563_v34 = vmax.f32 %v1275_v33, 0.0 }
 0x289   :  { %700 = vperm.xlu2 %861, %v651_v51  }
 0x2c8   :  { %v656_v21 = vpop.permute.xlu2 %655 }
 0x2c9   :  { %v663_v57 = vmul.f32 %v656_v21, %v473_v10  ;;  %v664_v55 = vmul.f32 %v656_v21, %v474_v11  ;;  %v665_v59 = vmul.f32 %v656_v21, %v475_v12  ;;  %v666_v28 = vmul.f32 %v656_v21, %v476_v24 }
 0x2ca   :  { %v667_v0 = vmul.f32 %v656_v21, %v477_v32  ;;  %v668_v1 = vmul.f32 %v656_v21, %v478_v39  ;;  %v669_v2 = vmul.f32 %v656_v21, %v479_v53  ;;  %v670_v6 = vmul.f32 %v656_v21, %v480_v56 }
 0x2cb   :  { %679 = vst [vmem:[%s1528_s6] sm:$0xff] %v663_v57  ;;  %v1550_v32 = vmax.f32 %v1289_v3, 0.0  ;;  %v1552_v53 = vmax.f32 %v1311_v52, 0.0  ;;  %v1562_v52 = vmax.f32 %v1267_v7, 0.0  ;;  %v1567_v7 = vmax.f32 %v1337_v41, 0.0 }
 0x2cc   :  { %680 = vst [vmem:[%s1528_s6 + $0x8] sm:$0xff] %v664_v55 }
 0x2cd   :  { %681 = vst [vmem:[%s1528_s6 + $0x10] sm:$0xff] %v665_v59 }
 0x2ce   :  { %682 = vst [vmem:[%s1528_s6 + $0x18] sm:$0xff] %v666_v28 }
 0x2cf   :  { %683 = vst [vmem:[%s1528_s6 + $0x20] sm:$0xff] %v667_v0 }
 0x2d0   :  { %684 = vst [vmem:[%s1528_s6 + $0x28] sm:$0xff] %v668_v1 }
 0x2d1   :  { %685 = vst [vmem:[%s1528_s6 + $0x30] sm:$0xff] %v669_v2  ;;  %v697_v10 = vpop.permute.xlu2 %696 }
 0x2d2   :  { %686 = vst [vmem:[%s1528_s6 + $0x38] sm:$0xff] %v670_v6  ;;  %v703_v11 = vmul.f32 %v697_v10, %v481_v46  ;;  %v704_v12 = vmul.f32 %v697_v10, %v482_v48  ;;  %v705_v13 = vmul.f32 %v697_v10, %v483_v62  ;;  %v706_v24 = vmul.f32 %v697_v10, %v484_v30 }
 0x2d3   :  { %v707_v31 = vmul.f32 %v697_v10, %v1549_v29  ;;  %v708_v39 = vmul.f32 %v697_v10, %v1550_v32  ;;  %v709_v49 = vmul.f32 %v697_v10, %v1551_v47  ;;  %v710_v56 = vmul.f32 %v697_v10, %v1552_v53 }
 0x2d4   :  { %719 = vst [vmem:[%s1528_s6 + $0x40] sm:$0xff] %v703_v11  ;;  %v1554_v46 = vmax.f32 %v1151_v15, 0.0  ;;  %v1555_v62 = vmax.f32 %v1163_v25, 0.0  ;;  %v1556_v30 = vmax.f32 %v1184_v37, 0.0  ;;  %v1559_v15 = vmax.f32 %v1225_v18, 0.0 }
 0x2d5   :  { %720 = vst [vmem:[%s1528_s6 + $0x48] sm:$0xff] %v704_v12  ;;  %v1560_v37 = vmax.f32 %v1228_v19, 0.0  ;;  %v1561_v18 = vmax.f32 %v1264_v5, 0.0 }
 0x2d6   :  { %721 = vst [vmem:[%s1528_s6 + $0x50] sm:$0xff] %v705_v13 }
 0x2d7   :  { %722 = vst [vmem:[%s1528_s6 + $0x58] sm:$0xff] %v706_v24 }
 0x2d8   :  { %723 = vst [vmem:[%s1528_s6 + $0x60] sm:$0xff] %v707_v31 }
 0x2d9   :  { %724 = vst [vmem:[%s1528_s6 + $0x68] sm:$0xff] %v708_v39 }
 0x2da   :  { %725 = vst [vmem:[%s1528_s6 + $0x70] sm:$0xff] %v709_v49  ;;  %v661_v35 = vpop.permute.xlu2 %660 }
 0x2db   :  { %726 = vst [vmem:[%s1528_s6 + $0x78] sm:$0xff] %v710_v56  ;;  %v671_v44 = vmul.f32 %v661_v35, %v1553_v36  ;;  %v672_v48 = vmul.f32 %v661_v35, %v1554_v46  ;;  %v673_v63 = vmul.f32 %v661_v35, %v1555_v62  ;;  %v674_v40 = vmul.f32 %v661_v35, %v1556_v30 }
 0x2dc   :  { %v675_v3 = vmul.f32 %v661_v35, %v1557_v45  ;;  %v676_v14 = vmul.f32 %v661_v35, %v1558_v43  ;;  %v677_v25 = vmul.f32 %v661_v35, %v1559_v15  ;;  %v678_v50 = vmul.f32 %v661_v35, %v1560_v37 }
 0x2dd   :  { %687 = vst [vmem:[%s1528_s6 + $0x80] sm:$0xff] %v671_v44 }
 0x2de   :  { %688 = vst [vmem:[%s1528_s6 + $0x88] sm:$0xff] %v672_v48 }
 0x2df   :  { %689 = vst [vmem:[%s1528_s6 + $0x90] sm:$0xff] %v673_v63 }
 0x2e0   :  { %690 = vst [vmem:[%s1528_s6 + $0x98] sm:$0xff] %v674_v40 }
 0x2e1   :  { %691 = vst [vmem:[%s1528_s6 + $0xa0] sm:$0xff] %v675_v3 }
 0x2e2   :  { %692 = vst [vmem:[%s1528_s6 + $0xa8] sm:$0xff] %v676_v14 }
 0x2e3   :  { %693 = vst [vmem:[%s1528_s6 + $0xb0] sm:$0xff] %v677_v25  ;;  %v701_v60 = vpop.permute.xlu2 %700 }
 0x2e4   :  { %694 = vst [vmem:[%s1528_s6 + $0xb8] sm:$0xff] %v678_v50  ;;  %v711_v19 = vmul.f32 %v701_v60, %v1561_v18  ;;  %v712_v23 = vmul.f32 %v701_v60, %v1562_v52  ;;  %v713_v27 = vmul.f32 %v701_v60, %v1563_v34  ;;  %v714_v58 = vmul.f32 %v701_v60, %v1564_v42 }
 0x2e5   :  { %v715_v20 = vmul.f32 %v701_v60, %v1565_v8  ;;  %v716_v5 = vmul.f32 %v701_v60, %v1566_v38  ;;  %v717_v33 = vmul.f32 %v701_v60, %v1567_v7  ;;  %v718_v4 = vmul.f32 %v701_v60, %v1568_v16 }
 0x2e6   :  { %727 = vst [vmem:[%s1528_s6 + $0xc0] sm:$0xff] %v711_v19 }
 0x2e7   :  { %728 = vst [vmem:[%s1528_s6 + $0xc8] sm:$0xff] %v712_v23 }
 0x2e8   :  { %729 = vst [vmem:[%s1528_s6 + $0xd0] sm:$0xff] %v713_v27 }
 0x2e9   :  { %730 = vst [vmem:[%s1528_s6 + $0xd8] sm:$0xff] %v714_v58 }
 0x2ea   :  { %731 = vst [vmem:[%s1528_s6 + $0xe0] sm:$0xff] %v715_v20 }
 0x2eb   :  { %732 = vst [vmem:[%s1528_s6 + $0xe8] sm:$0xff] %v716_v5 }
 0x2ec   :  { %733 = vst [vmem:[%s1528_s6 + $0xf0] sm:$0xff] %v717_v33 }
 0x2ed   :  { %734 = vst [vmem:[%s1528_s6 + $0xf8] sm:$0xff] %v718_v4 }
 0x2ee   :  { %739 = vsyncpa [#allocation3], 1 }
 0x2ef   :  { %740 = vsyncpa [#allocation5], 1 }

// kernel: variational_se_encoder.7
= control target key start
LH: loop header
LB: loop body
LE: loop exit
PB: predicated region body
PF: predicated region fallthrough
CT: control target
= control target key end

     0   :  { %vm718_vm1 = vcmask 7168   ;;  %vm724_vm2 = vcmask 261120   ;;  %vm766_vm3 = vcmask 1041408   ;;  %vm753_vm4 = vcmask 15360   ;;  %s2051_s0 = inlined_call_operand.vmem [shape: bf16[256,512], index: 0, kind: input, shape index: {}]   ;;  %s2052_s3 = inlined_call_operand.vmem [shape: f32[32,1], index: 3, kind: input, shape index: {}]   ;;  %s2053_s1 = inlined_call_operand.vmem [shape: bf16[32,256], index: 1, kind: input, shape index: {}]   ;;  %s2054_s2 = inlined_call_operand.vmem [shape: f32[32,1], index: 2, kind: input, shape index: {}]   ;;  %s2055_s4 = inlined_call_operand.vmem [shape: f32[2,32], index: 4, kind: input, shape index: {}]   ;;  %s2056_s5 = inlined_call_operand.vmem [shape: f32[32,2], index: 5, kind: input, shape index: {}]   ;;  %s2057_s6 = inlined_call_operand.vmem [shape: f32[32,512], index: 6, kind: output, shape index: {}]  }
   0x1   :  { %v1077_v0 = vld [vmem:[%s2051_s0 + $0xe0] sm:$0xf]  ;;  %v1263_v1 = vld [vmem:[%s2051_s0 + $0xec] sm:$0xf0]  ;;  %v1261_v5 = vld [vmem:[%s2051_s0 + $0xe4] sm:$0xf] }
   0x2   :  { %v1205_v2 = vld [vmem:[%s2051_s0 + $0x1e0] sm:$0xf]  ;;  %v1078_v3 = vor.u32 %v1263_v1, %v1077_v0  ;;  %v1295_v4 = vld [vmem:[%s2051_s0 + $0x1ec] sm:$0xf0]  ;;  %v1079_v6 = vld [vmem:[%s2051_s0 + $0xf0] sm:$0xf0] }
   0x3   :  { %v1206_v7 = vor.u32 %v1295_v4, %v1205_v2  ;;  %v1082_v8 = vor.u32 %v1261_v5, %v1079_v6  ;;  %v1293_v9 = vld [vmem:[%s2051_s0 + $0x1e4] sm:$0xf]  ;;  %v1207_v10 = vld [vmem:[%s2051_s0 + $0x1f0] sm:$0xf0]  ;;  %v1061_v11 = vld [vmem:[%s2051_s0 + $0xc0] sm:$0xf] }
   0x4   :  { %431 = vmatpush.bf16.msra.mxu0 %v1078_v3  ;;  %v1210_v12 = vor.u32 %v1293_v9, %v1207_v10  ;;  %v1259_v13 = vld [vmem:[%s2051_s0 + $0xcc] sm:$0xf0]  ;;  %v1189_v14 = vld [vmem:[%s2051_s0 + $0x1c0] sm:$0xf]  ;;  %v1257_v18 = vld [vmem:[%s2051_s0 + $0xc4] sm:$0xf] }
   0x5   :  { %v1291_v15 = vld [vmem:[%s2051_s0 + $0x1cc] sm:$0xf0]  ;;  %450 = vmatpush.bf16.msra.mxu1 %v1206_v7  ;;  %469 = vmatpush.bf16.msra.mxu2 %v1082_v8  ;;  %v1062_v16 = vor.u32 %v1259_v13, %v1061_v11  ;;  %v1063_v19 = vld [vmem:[%s2051_s0 + $0xd0] sm:$0xf0]  ;;  %v1289_v20 = vld [vmem:[%s2051_s0 + $0x1c4] sm:$0xf] }
   0x6   :  { %v1190_v17 = vor.u32 %v1291_v15, %v1189_v14  ;;  %488 = vmatpush.bf16.msra.mxu3 %v1210_v12  ;;  %v1066_v21 = vor.u32 %v1257_v18, %v1063_v19  ;;  %v1191_v22 = vld [vmem:[%s2051_s0 + $0x1d0] sm:$0xf0]  ;;  %v1045_v23 = vld [vmem:[%s2051_s0 + $0xa0] sm:$0xf]  ;;  %v1255_v24 = vld [vmem:[%s2051_s0 + $0xac] sm:$0xf0] }
   0x7   :  { %v1194_v25 = vor.u32 %v1289_v20, %v1191_v22  ;;  %v1173_v26 = vld [vmem:[%s2051_s0 + $0x1a0] sm:$0xf]  ;;  %v1287_v27 = vld [vmem:[%s2051_s0 + $0x1ac] sm:$0xf0]  ;;  %v1253_v28 = vld [vmem:[%s2051_s0 + $0xa4] sm:$0xf]  ;;  %v1046_v29 = vor.u32 %v1255_v24, %v1045_v23 }
   0x8   :  { %432 = vmatpush.bf16.msra.mxu0 %v1062_v16  ;;  %v1047_v30 = vld [vmem:[%s2051_s0 + $0xb0] sm:$0xf0]  ;;  %v1285_v31 = vld [vmem:[%s2051_s0 + $0x1a4] sm:$0xf]  ;;  %v1174_v33 = vor.u32 %v1287_v27, %v1173_v26  ;;  %v1029_v35 = vld [vmem:[%s2051_s0 + $0x80] sm:$0xf] }
   0x9   :  { %v1175_v32 = vld [vmem:[%s2051_s0 + $0x1b0] sm:$0xf0]  ;;  %451 = vmatpush.bf16.msra.mxu1 %v1190_v17  ;;  %470 = vmatpush.bf16.msra.mxu2 %v1066_v21  ;;  %v1050_v34 = vor.u32 %v1253_v28, %v1047_v30  ;;  %v1251_v36 = vld [vmem:[%s2051_s0 + $0x8c] sm:$0xf0]  ;;  %v1157_v37 = vld [vmem:[%s2051_s0 + $0x180] sm:$0xf] }
   0xa   :  { %489 = vmatpush.bf16.msra.mxu3 %v1194_v25  ;;  %v1178_v38 = vor.u32 %v1285_v31, %v1175_v32  ;;  %v1283_v39 = vld [vmem:[%s2051_s0 + $0x18c] sm:$0xf0]  ;;  %v1249_v40 = vld [vmem:[%s2051_s0 + $0x84] sm:$0xf]  ;;  %v1031_v41 = vld [vmem:[%s2051_s0 + $0x90] sm:$0xf0]  ;;  %v1030_v44 = vor.u32 %v1251_v36, %v1029_v35 }
   0xb   :  { %v1281_v42 = vld [vmem:[%s2051_s0 + $0x184] sm:$0xf]  ;;  %v1159_v43 = vld [vmem:[%s2051_s0 + $0x190] sm:$0xf0]  ;;  %v1158_v45 = vor.u32 %v1283_v39, %v1157_v37  ;;  %v1034_v46 = vor.u32 %v1249_v40, %v1031_v41  ;;  %v1013_v47 = vld [vmem:[%s2051_s0 + $0x60] sm:$0xf] }
   0xc   :  { %433 = vmatpush.bf16.msra.mxu0 %v1046_v29  ;;  %v1247_v48 = vld [vmem:[%s2051_s0 + $0x6c] sm:$0xf0]  ;;  %v1141_v49 = vld [vmem:[%s2051_s0 + $0x160] sm:$0xf]  ;;  %v1162_v50 = vor.u32 %v1281_v42, %v1159_v43  ;;  %v1245_v52 = vld [vmem:[%s2051_s0 + $0x64] sm:$0xf] }
   0xd   :  { %452 = vmatpush.bf16.msra.mxu1 %v1174_v33  ;;  %471 = vmatpush.bf16.msra.mxu2 %v1050_v34  ;;  %v1279_v51 = vld [vmem:[%s2051_s0 + $0x16c] sm:$0xf0]  ;;  %v1015_v53 = vld [vmem:[%s2051_s0 + $0x70] sm:$0xf0]  ;;  %v1277_v54 = vld [vmem:[%s2051_s0 + $0x164] sm:$0xf]  ;;  %v1014_v56 = vor.u32 %v1247_v48, %v1013_v47 }
   0xe   :  { %490 = vmatpush.bf16.msra.mxu3 %v1178_v38  ;;  %v1143_v55 = vld [vmem:[%s2051_s0 + $0x170] sm:$0xf0]  ;;  %v1142_v57 = vor.u32 %v1279_v51, %v1141_v49  ;;  %v1018_v58 = vor.u32 %v1245_v52, %v1015_v53  ;;  %v997_v59 = vld [vmem:[%s2051_s0 + $0x40] sm:$0xf]  ;;  %v1243_v60 = vld [vmem:[%s2051_s0 + $0x4c] sm:$0xf0] }
   0xf   :  { %v1125_v61 = vld [vmem:[%s2051_s0 + $0x140] sm:$0xf]  ;;  %v1146_v62 = vor.u32 %v1277_v54, %v1143_v55  ;;  %v1275_v63 = vld [vmem:[%s2051_s0 + $0x14c] sm:$0xf0]  ;;  %v1241_v0 = vld [vmem:[%s2051_s0 + $0x44] sm:$0xf]  ;;  %v998_v4 = vor.u32 %v1243_v60, %v997_v59 }
  0x10   :  { %434 = vmatpush.bf16.msra.mxu0 %v1030_v44  ;;  %v999_v1 = vld [vmem:[%s2051_s0 + $0x50] sm:$0xf0]  ;;  %v1273_v2 = vld [vmem:[%s2051_s0 + $0x144] sm:$0xf]  ;;  %v1126_v5 = vor.u32 %v1275_v63, %v1125_v61  ;;  %v981_v7 = vld [vmem:[%s2051_s0 + $0x20] sm:$0xf] }
  0x11   :  { %453 = vmatpush.bf16.msra.mxu1 %v1158_v45  ;;  %472 = vmatpush.bf16.msra.mxu2 %v1034_v46  ;;  %v1127_v3 = vld [vmem:[%s2051_s0 + $0x150] sm:$0xf0]  ;;  %v1002_v6 = vor.u32 %v1241_v0, %v999_v1  ;;  %v1239_v8 = vld [vmem:[%s2051_s0 + $0x2c] sm:$0xf0]  ;;  %v1109_v9 = vld [vmem:[%s2051_s0 + $0x120] sm:$0xf] }
  0x12   :  { %491 = vmatpush.bf16.msra.mxu3 %v1162_v50  ;;  %v1130_v10 = vor.u32 %v1273_v2, %v1127_v3  ;;  %v1271_v11 = vld [vmem:[%s2051_s0 + $0x12c] sm:$0xf0]  ;;  %v1237_v12 = vld [vmem:[%s2051_s0 + $0x24] sm:$0xf]  ;;  %v983_v13 = vld [vmem:[%s2051_s0 + $0x30] sm:$0xf0]  ;;  %v982_v16 = vor.u32 %v1239_v8, %v981_v7 }
  0x13   :  { %v1269_v14 = vld [vmem:[%s2051_s0 + $0x124] sm:$0xf]  ;;  %v1111_v15 = vld [vmem:[%s2051_s0 + $0x130] sm:$0xf0]  ;;  %v965_v17 = vld [vmem:[%s2051_s0] sm:$0xf]  ;;  %v1110_v20 = vor.u32 %v1271_v11, %v1109_v9  ;;  %v986_v21 = vor.u32 %v1237_v12, %v983_v13 }
  0x14   :  { %435 = vmatpush.bf16.msra.mxu0 %v1014_v56  ;;  %v1235_v18 = vld [vmem:[%s2051_s0 + $0xc] sm:$0xf0]  ;;  %v1093_v19 = vld [vmem:[%s2051_s0 + $0x100] sm:$0xf]  ;;  %v1233_v23 = vld [vmem:[%s2051_s0 + $0x4] sm:$0xf]  ;;  %v1114_v25 = vor.u32 %v1269_v14, %v1111_v15 }
  0x15   :  { %454 = vmatpush.bf16.msra.mxu1 %v1142_v57  ;;  %473 = vmatpush.bf16.msra.mxu2 %v1018_v58  ;;  %v1267_v22 = vld [vmem:[%s2051_s0 + $0x10c] sm:$0xf0]  ;;  %v967_v24 = vld [vmem:[%s2051_s0 + $0x10] sm:$0xf0]  ;;  %v1265_v26 = vld [vmem:[%s2051_s0 + $0x104] sm:$0xf]  ;;  %v966_v33 = vor.u32 %v1235_v18, %v965_v17 }
  0x16   :  { %492 = vmatpush.bf16.msra.mxu3 %v1146_v62  ;;  %v1095_v27 = vld [vmem:[%s2051_s0 + $0x110] sm:$0xf0]  ;;  %v626_v28 = vld [vmem:[%s2052_s3 + $0x18] sm:$0xff]  ;;  %v949_v29 = vld [vmem:[%s2053_s1] sm:$0xf]  ;;  %v1328_v32 = vmov 0   ;;  %v1094_v37 = vor.u32 %v1267_v22, %v1093_v19  ;;  %v970_v38 = vor.u32 %v1233_v23, %v967_v24 }
  0x17   :  { %v1085_v30 = vld [vmem:[%s2051_s0 + $0xe8] sm:$0xf]  ;;  %v1264_v31 = vld [vmem:[%s2051_s0 + $0xf4] sm:$0xf0]  ;;  %1303 = vset.pattern.permute.xlu1 %v1328_v32  ;;  %1302 = vset.pattern.permute.xlu0 %v1328_v32  ;;  %v1229_v39 = vld [vmem:[%s2053_s1 + $0x4] sm:$0xf]  ;;  %v1098_v42 = vor.u32 %v1265_v26, %v1095_v27 }
  0x18   :  { %436 = vmatpush.bf16.msra.mxu0 %v998_v4  ;;  %v1230_v34 = vld [vmem:[%s2053_s1 + $0x4] sm:$0xf0]  ;;  %v1296_v36 = vld [vmem:[%s2051_s0 + $0x1f4] sm:$0xf0]  ;;  %644 = vperm.xlu1 %1303, %v626_v28   ;;  %v951_v40 = vld [vmem:[%s2053_s1 + $0x8] sm:$0xf0]  ;;  %v1086_v43 = vor.u32 %v1264_v31, %v1085_v30 }
  0x19   :  { %455 = vmatpush.bf16.msra.mxu1 %v1126_v5  ;;  %474 = vmatpush.bf16.msra.mxu2 %v1002_v6  ;;  %v1213_v35 = vld [vmem:[%s2051_s0 + $0x1e8] sm:$0xf]  ;;  %v586_v41 = vld [vmem:[%s2054_s2 + $0x18] sm:$0xff]  ;;  %v1262_v44 = vld [vmem:[%s2051_s0 + $0xec] sm:$0xf]  ;;  %v1599_v47 = vor.u32 %v1230_v34, %v949_v29  ;;  %v1611_v52 = vor.u32 %v1229_v39, %v951_v40 }
  0x1a   :  { %493 = vmatpush.bf16.msra.mxu3 %v1130_v10  ;;  %v1087_v45 = vld [vmem:[%s2051_s0 + $0xf8] sm:$0xf0]  ;;  %v1294_v46 = vld [vmem:[%s2051_s0 + $0x1ec] sm:$0xf]  ;;  %604 = vperm.xlu0 %1302, %v586_v41   ;;  %v1214_v48 = vor.u32 %v1296_v36, %v1213_v35  ;;  %v1069_v50 = vld [vmem:[%s2051_s0 + $0xc8] sm:$0xf] }
  0x1b   :  { %v1215_v49 = vld [vmem:[%s2051_s0 + $0x1f8] sm:$0xf0]  ;;  %v1260_v51 = vld [vmem:[%s2051_s0 + $0xd4] sm:$0xf0]  ;;  %1304 = vset.pattern.permute.xlu2 %v1328_v32  ;;  %v1197_v53 = vld [vmem:[%s2051_s0 + $0x1c8] sm:$0xf]  ;;  %v1090_v55 = vor.u32 %v1262_v44, %v1087_v45 }
  0x1c   :  { %437 = vmatpush.bf16.msra.mxu0 %v982_v16  ;;  %v1292_v54 = vld [vmem:[%s2051_s0 + $0x1d4] sm:$0xf0]  ;;  %v1218_v56 = vor.u32 %v1294_v46, %v1215_v49  ;;  %v1070_v57 = vor.u32 %v1260_v51, %v1069_v50  ;;  %v1258_v58 = vld [vmem:[%s2051_s0 + $0xcc] sm:$0xf]  ;;  %v1071_v59 = vld [vmem:[%s2051_s0 + $0xd8] sm:$0xf0] }
  0x1d   :  { %456 = vmatpush.bf16.msra.mxu1 %v1110_v20  ;;  %475 = vmatpush.bf16.msra.mxu2 %v986_v21  ;;  %v1290_v60 = vld [vmem:[%s2051_s0 + $0x1cc] sm:$0xf]  ;;  %v1198_v61 = vor.u32 %v1292_v54, %v1197_v53  ;;  %v1199_v62 = vld [vmem:[%s2051_s0 + $0x1d8] sm:$0xf0]  ;;  %v1053_v63 = vld [vmem:[%s2051_s0 + $0xa8] sm:$0xf]  ;;  %v1074_v4 = vor.u32 %v1258_v58, %v1071_v59 }
  0x1e   :  { %494 = vmatpush.bf16.msra.mxu3 %v1114_v25  ;;  %v1256_v0 = vld [vmem:[%s2051_s0 + $0xb4] sm:$0xf0]  ;;  %v1181_v1 = vld [vmem:[%s2051_s0 + $0x1a8] sm:$0xf]  ;;  %v585_v5 = vld [vmem:[%s2054_s2 + $0x10] sm:$0xff]  ;;  %v1202_v6 = vor.u32 %v1290_v60, %v1199_v62 }
  0x1f   :  { %v1288_v2 = vld [vmem:[%s2051_s0 + $0x1b4] sm:$0xf0]  ;;  %v584_v3 = vld [vmem:[%s2054_s2 + $0x8] sm:$0xff]  ;;  %v1054_v7 = vor.u32 %v1256_v0, %v1053_v63  ;;  %v1055_v9 = vld [vmem:[%s2051_s0 + $0xb8] sm:$0xf0] }
  0x20   :  { %438 = vmatpush.bf16.msra.mxu0 %v966_v33  ;;  %v1254_v8 = vld [vmem:[%s2051_s0 + $0xac] sm:$0xf]  ;;  %v1182_v11 = vor.u32 %v1288_v2, %v1181_v1  ;;  %v1183_v12 = vld [vmem:[%s2051_s0 + $0x1b8] sm:$0xf0]  ;;  %594 = vperm.xlu1 %1303, %v584_v3   ;;  %v1037_v13 = vld [vmem:[%s2051_s0 + $0x88] sm:$0xf] }
  0x21   :  { %457 = vmatpush.bf16.msra.mxu1 %v1094_v37  ;;  %476 = vmatpush.bf16.msra.mxu2 %v970_v38  ;;  %v1286_v10 = vld [vmem:[%s2051_s0 + $0x1ac] sm:$0xf]  ;;  %v1252_v14 = vld [vmem:[%s2051_s0 + $0x94] sm:$0xf0]  ;;  %v1165_v15 = vld [vmem:[%s2051_s0 + $0x188] sm:$0xf]  ;;  %v1058_v17 = vor.u32 %v1254_v8, %v1055_v9 }
  0x22   :  { %495 = vmatpush.bf16.msra.mxu3 %v1098_v42  ;;  %v1284_v16 = vld [vmem:[%s2051_s0 + $0x194] sm:$0xf0]  ;;  %599 = vperm.xlu0 %1302, %v585_v5   ;;  %v1250_v18 = vld [vmem:[%s2051_s0 + $0x8c] sm:$0xf]  ;;  %v1039_v19 = vld [vmem:[%s2051_s0 + $0x98] sm:$0xf0]  ;;  %v1186_v20 = vor.u32 %v1286_v10, %v1183_v12  ;;  %v1038_v21 = vor.u32 %v1252_v14, %v1037_v13 }
  0x23   :  { %439 = vmatmul.bf16.vlgmr.msra.gmra.mxu0 %v1599_v47  ;;  %v1282_v22 = vld [vmem:[%s2051_s0 + $0x18c] sm:$0xf]  ;;  %v1167_v23 = vld [vmem:[%s2051_s0 + $0x198] sm:$0xf0]  ;;  %v957_v24 = vld [vmem:[%s2053_s1 + $0x10] sm:$0xf]  ;;  %v1166_v25 = vor.u32 %v1284_v16, %v1165_v15  ;;  %v1042_v33 = vor.u32 %v1250_v18, %v1039_v19 }
  0x24   :  { %507 = vmatpush.bf16.msrb.mxu0 %v1086_v43  ;;  %458 = vmatmul.bf16.vlgmr.msra.gmra.mxu1 %v1611_v52  ;;  %v1232_v26 = vld [vmem:[%s2053_s1 + $0x14] sm:$0xf0]  ;;  %v1021_v27 = vld [vmem:[%s2051_s0 + $0x68] sm:$0xf]  ;;  %v623_v31 = vld [vmem:[%s2052_s3] sm:$0xff]  ;;  %v1170_v37 = vor.u32 %v1282_v22, %v1167_v23 }
  0x25   :  { %526 = vmatpush.bf16.msrb.mxu1 %v1214_v48  ;;  %477 = vmatmul.bf16.vlgmr.msra.gmra.mxu2 %v1599_v47  ;;  %v1248_v28 = vld [vmem:[%s2051_s0 + $0x74] sm:$0xf0]  ;;  %v1149_v29 = vld [vmem:[%s2051_s0 + $0x168] sm:$0xf]  ;;  %v1231_v34 = vld [vmem:[%s2053_s1 + $0x14] sm:$0xf]  ;;  %v1728_v42 = vor.u32 %v1232_v26, %v957_v24 }
  0x26   :  { %496 = vmatmul.bf16.vlgmr.msra.gmra.mxu3 %v1611_v52  ;;  %545 = vmatpush.bf16.msrb.mxu2 %v1090_v55  ;;  %v1280_v30 = vld [vmem:[%s2051_s0 + $0x174] sm:$0xf0]  ;;  %v959_v35 = vld [vmem:[%s2053_s1 + $0x18] sm:$0xf0]  ;;  %v624_v36 = vld [vmem:[%s2052_s3 + $0x8] sm:$0xff]  ;;  %v1022_v38 = vor.u32 %v1248_v28, %v1021_v27 }
  0x27   :  { %564 = vmatpush.bf16.msrb.mxu3 %v1218_v56  ;;  %v1246_v39 = vld [vmem:[%s2051_s0 + $0x6c] sm:$0xf]  ;;  %v1023_v40 = vld [vmem:[%s2051_s0 + $0x78] sm:$0xf0]  ;;  %v1150_v43 = vor.u32 %v1280_v30, %v1149_v29  ;;  %v1005_v45 = vld [vmem:[%s2051_s0 + $0x48] sm:$0xf]  ;;  %v1739_v48 = vor.u32 %v1231_v34, %v959_v35 }
  0x28   :  { %508 = vmatpush.bf16.msrb.mxu0 %v1070_v57  ;;  %v1278_v41 = vld [vmem:[%s2051_s0 + $0x16c] sm:$0xf]  ;;  %v1151_v44 = vld [vmem:[%s2051_s0 + $0x178] sm:$0xf0]  ;;  %629 = vperm.xlu1 %1303, %v623_v31   ;;  %v1244_v46 = vld [vmem:[%s2051_s0 + $0x54] sm:$0xf0]  ;;  %v1026_v53 = vor.u32 %v1246_v39, %v1023_v40 }
  0x29   :  { %527 = vmatpush.bf16.msrb.mxu1 %v1198_v61  ;;  %v1133_v49 = vld [vmem:[%s2051_s0 + $0x148] sm:$0xf]  ;;  %v1276_v50 = vld [vmem:[%s2051_s0 + $0x154] sm:$0xf0]  ;;  %v625_v51 = vld [vmem:[%s2052_s3 + $0x10] sm:$0xff]  ;;  %v1154_v54 = vor.u32 %v1278_v41, %v1151_v44  ;;  %v1006_v55 = vor.u32 %v1244_v46, %v1005_v45 }
  0x2a   :  { %546 = vmatpush.bf16.msrb.mxu2 %v1074_v4  ;;  %634 = vperm.xlu0 %1302, %v624_v36   ;;  %v1242_v56 = vld [vmem:[%s2051_s0 + $0x4c] sm:$0xf]  ;;  %v1007_v57 = vld [vmem:[%s2051_s0 + $0x58] sm:$0xf0]  ;;  %v1134_v59 = vor.u32 %v1276_v50, %v1133_v49  ;;  %v989_v61 = vld [vmem:[%s2051_s0 + $0x28] sm:$0xf] }
  0x2b   :  { %565 = vmatpush.bf16.msrb.mxu3 %v1202_v6  ;;  %639 = vperm.xlu2 %1304, %v625_v51   ;;  %v1274_v58 = vld [vmem:[%s2051_s0 + $0x14c] sm:$0xf]  ;;  %v1135_v60 = vld [vmem:[%s2051_s0 + $0x158] sm:$0xf0]  ;;  %v1240_v62 = vld [vmem:[%s2051_s0 + $0x34] sm:$0xf0]  ;;  %v1010_v1 = vor.u32 %v1242_v56, %v1007_v57 }
  0x2c   :  { %509 = vmatpush.bf16.msrb.mxu0 %v1054_v7  ;;  %v1117_v63 = vld [vmem:[%s2051_s0 + $0x128] sm:$0xf]  ;;  %v1272_v0 = vld [vmem:[%s2051_s0 + $0x134] sm:$0xf0]  ;;  %v1238_v2 = vld [vmem:[%s2051_s0 + $0x2c] sm:$0xf]  ;;  %v1138_v3 = vor.u32 %v1274_v58, %v1135_v60  ;;  %v990_v4 = vor.u32 %v1240_v62, %v989_v61 }
  0x2d   :  { %528 = vmatpush.bf16.msrb.mxu1 %v1182_v11  ;;  %v991_v5 = vld [vmem:[%s2051_s0 + $0x38] sm:$0xf0]  ;;  %v1270_v6 = vld [vmem:[%s2051_s0 + $0x12c] sm:$0xf]  ;;  %v583_v7 = vld [vmem:[%s2054_s2] sm:$0xff]  ;;  %v1118_v8 = vor.u32 %v1272_v0, %v1117_v63 }
  0x2e   :  { %547 = vmatpush.bf16.msrb.mxu2 %v1058_v17  ;;  %v1119_v9 = vld [vmem:[%s2051_s0 + $0x138] sm:$0xf0]  ;;  %v973_v10 = vld [vmem:[%s2051_s0 + $0x8] sm:$0xf]  ;;  %v1236_v11 = vld [vmem:[%s2051_s0 + $0x14] sm:$0xf0]  ;;  %v994_v14 = vor.u32 %v1238_v2, %v991_v5 }
  0x2f   :  { %566 = vmatpush.bf16.msrb.mxu3 %v1186_v20  ;;  %v1101_v12 = vld [vmem:[%s2051_s0 + $0x108] sm:$0xf]  ;;  %v1268_v13 = vld [vmem:[%s2051_s0 + $0x114] sm:$0xf0]  ;;  %v1122_v15 = vor.u32 %v1270_v6, %v1119_v9  ;;  %v974_v16 = vor.u32 %v1236_v11, %v973_v10  ;;  %v1234_v17 = vld [vmem:[%s2051_s0 + $0xc] sm:$0xf] }
  0x30   :  { %510 = vmatpush.bf16.msrb.mxu0 %v1038_v21  ;;  %v975_v18 = vld [vmem:[%s2051_s0 + $0x18] sm:$0xf0]  ;;  %v1102_v19 = vor.u32 %v1268_v13, %v1101_v12  ;;  %v1266_v20 = vld [vmem:[%s2051_s0 + $0x10c] sm:$0xf] }
  0x31   :  { %529 = vmatpush.bf16.msrb.mxu1 %v1166_v25  ;;  %v1103_v21 = vld [vmem:[%s2051_s0 + $0x118] sm:$0xf0]  ;;  %v978_v22 = vor.u32 %v1234_v17, %v975_v18 }
  0x32   :  { %548 = vmatpush.bf16.msrb.mxu2 %v1042_v33  ;;  %v1106_v23 = vor.u32 %v1266_v20, %v1103_v21 }
  0x33   :  { %567 = vmatpush.bf16.msrb.mxu3 %v1170_v37  ;;  %444 = vmatmul.bf16.gmra.mxu0 %v1728_v42 }
  0x34   :  { %511 = vmatpush.bf16.msrb.mxu0 %v1022_v38  ;;  %463 = vmatmul.bf16.gmra.mxu1 %v1739_v48 }
  0x35   :  { %530 = vmatpush.bf16.msrb.mxu1 %v1150_v43  ;;  %482 = vmatmul.bf16.gmra.mxu2 %v1728_v42 }
  0x36   :  { %501 = vmatmul.bf16.gmra.mxu3 %v1739_v48  ;;  %549 = vmatpush.bf16.msrb.mxu2 %v1026_v53 }
  0x37   :  { %568 = vmatpush.bf16.msrb.mxu3 %v1154_v54  ;;  %589 = vperm.xlu2 %1304, %v583_v7  }
  0x38   :  { %512 = vmatpush.bf16.msrb.mxu0 %v1006_v55 }
  0x39   :  { %531 = vmatpush.bf16.msrb.mxu1 %v1134_v59 }
  0x3a   :  { %550 = vmatpush.bf16.msrb.mxu2 %v1010_v1 }
  0x3b   :  { %569 = vmatpush.bf16.msrb.mxu3 %v1138_v3 }
  0x3c   :  { %513 = vmatpush.bf16.msrb.mxu0 %v990_v4 }
  0x3d   :  { %532 = vmatpush.bf16.msrb.mxu1 %v1118_v8 }
  0x3e   :  { %551 = vmatpush.bf16.msrb.mxu2 %v994_v14 }
  0x3f   :  { %570 = vmatpush.bf16.msrb.mxu3 %v1122_v15 }
  0x40   :  { %514 = vmatpush.bf16.msrb.mxu0 %v974_v16 }
  0x41   :  { %533 = vmatpush.bf16.msrb.mxu1 %v1102_v19 }
  0x42   :  { %552 = vmatpush.bf16.msrb.mxu2 %v978_v22 }
  0x43   :  { %571 = vmatpush.bf16.msrb.mxu3 %v1106_v23  ;;  %515 = vmatmul.bf16.vlgmr.msrb.gmra.mxu0 %v1599_v47 }
  0x44   :  { %534 = vmatmul.bf16.vlgmr.msrb.gmra.mxu1 %v1611_v52 }
  0x45   :  { %553 = vmatmul.bf16.vlgmr.msrb.gmra.mxu2 %v1599_v47 }
  0x46   :  { %572 = vmatmul.bf16.vlgmr.msrb.gmra.mxu3 %v1611_v52 }
  0x53   :  { %520 = vmatmul.bf16.gmra.mxu0 %v1728_v42 }
  0x54   :  { %539 = vmatmul.bf16.gmra.mxu1 %v1739_v48 }
  0x55   :  { %558 = vmatmul.bf16.gmra.mxu2 %v1728_v42 }
  0x56   :  { %577 = vmatmul.bf16.gmra.mxu3 %v1739_v48 }
  0x85   :  { %v1831_v33 = vpop.permute.xlu2 %639 }
  0x8a   :  { %v1827_v27 = vpop.permute.xlu1 %644 }
  0x8c   :  { %v1825_v24 = vpop.permute.xlu0 %604 }
  0x91   :  { %v590_v60 = vpop.permute.xlu2 %589 }
  0x92   :  { %v1833_v34 = vpop.permute.xlu1 %594 }
  0x94   :  { %v1829_v28 = vpop.permute.xlu0 %599 }
  0x9a   :  { %v630_v3 = vpop.permute.xlu1 %629 }
  0x9c   :  { %v1836_v36 = vpop.permute.xlu0 %634 }
  0xa0   :  { %v440_v25 = vpop.f32.mrf.mxu0 }
  0xa1   :  { %v459_v26 = vpop.f32.mrf.mxu1 }
  0xa2   :  { %v460_v51 = vadd.f32 %v459_v26, %v440_v25 }
  0xa4   :  { %v607_v63 = vmul.f32 %v590_v60, %v460_v51 }
  0xa6   :  { %v1866_v12 = vadd.f32 %v630_v3, %v607_v63 }
  0xa8   :  { %v478_v29 = vpop.f32.mrf.mxu2  ;;  %v442_v30 = vpop.f32.mrf.mxu0  ;;  %v663_v16 = vmax.f32 %v1866_v12, 0.0 }
  0xa9   :  { %v497_v47 = vpop.f32.mrf.mxu3  ;;  %v461_v52 = vpop.f32.mrf.mxu1 }
  0xaa   :  { %v462_v31 = vadd.f32 %v461_v52, %v442_v30  ;;  %v498_v55 = vadd.f32 %v497_v47, %v478_v29 }
  0xac   :  { %v611_v35 = vmul.f32 %v1833_v34, %v462_v31  ;;  %v608_v0 = vmul.f32 %v590_v60, %v498_v55 }
  0xae   :  { %v1840_v44 = vadd.f32 %v1836_v36, %v611_v35  ;;  %v1868_v13 = vadd.f32 %v630_v3, %v608_v0 }
  0xb0   :  { %v480_v37 = vpop.f32.mrf.mxu2  ;;  %v445_v39 = vpop.f32.mrf.mxu0  ;;  %v667_v49 = vmax.f32 %v1840_v44, 0.0  ;;  %v664_v17 = vmax.f32 %v1868_v13, 0.0 }
  0xb1   :  { %v499_v38 = vpop.f32.mrf.mxu3  ;;  %v464_v41 = vpop.f32.mrf.mxu1 }
  0xb2   :  { %v500_v40 = vadd.f32 %v499_v38, %v480_v37  ;;  %v465_v42 = vadd.f32 %v464_v41, %v445_v39  ;;  %v679_v26 = vadd.f32 %v664_v17, %v663_v16 }
  0xb4   :  { %v612_v43 = vmul.f32 %v1833_v34, %v500_v40  ;;  %v615_v45 = vmul.f32 %v1829_v28, %v465_v42 }
  0xb6   :  { %v1844_v46 = vadd.f32 %v1836_v36, %v612_v43  ;;  %v1853_v59 = vadd.f32 %v1831_v33, %v615_v45 }
  0xb8   :  { %v483_v48 = vpop.f32.mrf.mxu2  ;;  %v668_v50 = vmax.f32 %v1844_v46, 0.0  ;;  %v447_v54 = vpop.f32.mrf.mxu0  ;;  %v671_v2 = vmax.f32 %v1853_v59, 0.0 }
  0xb9   :  { %v502_v53 = vpop.f32.mrf.mxu3  ;;  %v466_v57 = vpop.f32.mrf.mxu1 }
  0xba   :  { %v503_v56 = vadd.f32 %v502_v53, %v483_v48  ;;  %v682_v58 = vadd.f32 %v668_v50, %v667_v49  ;;  %v467_v62 = vadd.f32 %v466_v57, %v447_v54 }
  0xbc   :  { %v616_v61 = vmul.f32 %v1829_v28, %v503_v56  ;;  %683 = vadd.xlane.f32.xlu2 %v682_v58  ;;  %v619_v4 = vmul.f32 %v1825_v24, %v467_v62 }
  0xbe   :  { %v1857_v1 = vadd.f32 %v1831_v33, %v616_v61  ;;  %v1872_v15 = vadd.f32 %v1827_v27, %v619_v4 }
  0xc0   :  { %v485_v5 = vpop.f32.mrf.mxu2  ;;  %v672_v6 = vmax.f32 %v1857_v1, 0.0  ;;  %v516_v8 = vpop.f32.mrf.mxu0  ;;  %v675_v20 = vmax.f32 %v1872_v15, 0.0 }
  0xc1   :  { %v504_v7 = vpop.f32.mrf.mxu3  ;;  %v535_v10 = vpop.f32.mrf.mxu1 }
  0xc2   :  { %v505_v9 = vadd.f32 %v504_v7, %v485_v5  ;;  %v685_v11 = vadd.f32 %v672_v6, %v671_v2  ;;  %v536_v39 = vadd.f32 %v535_v10, %v516_v8 }
  0xc4   :  { %v620_v14 = vmul.f32 %v1825_v24, %v505_v9  ;;  %686 = vadd.xlane.f32.xlu1 %v685_v11  ;;  %v609_v54 = vmul.f32 %v590_v60, %v536_v39 }
  0xc6   :  { %v1877_v18 = vadd.f32 %v1827_v27, %v620_v14  ;;  %v1900_v0 = vadd.f32 %v630_v3, %v609_v54 }
  0xc8   :  { %v554_v19 = vpop.f32.mrf.mxu2  ;;  %v676_v21 = vmax.f32 %v1877_v18, 0.0  ;;  %v518_v23 = vpop.f32.mrf.mxu0  ;;  %v665_v11 = vmax.f32 %v1900_v0, 0.0 }
  0xc9   :  { %v573_v22 = vpop.f32.mrf.mxu3  ;;  %v537_v25 = vpop.f32.mrf.mxu1 }
  0xca   :  { %v688_v29 = vadd.f32 %v676_v21, %v675_v20  ;;  %v574_v42 = vadd.f32 %v573_v22, %v554_v19 }
  0xcc   :  { %680 = vadd.xlane.f32.xlu1 %v679_v26  ;;  %689 = vadd.xlane.f32.xlu2 %v688_v29  ;;  %v610_v55 = vmul.f32 %v590_v60, %v574_v42 }
  0xce   :  { %v1906_v5 = vadd.f32 %v630_v3, %v610_v55 }
  0xd0   :  { %v556_v47 = vpop.f32.mrf.mxu2  ;;  %v521_v52 = vpop.f32.mrf.mxu0  ;;  %v666_v14 = vmax.f32 %v1906_v5, 0.0 }
  0xd1   :  { %v575_v30 = vpop.f32.mrf.mxu3  ;;  %v540_v31 = vpop.f32.mrf.mxu1 }
  0xd2   :  { %v541_v35 = vadd.f32 %v540_v31, %v521_v52 }
  0xd4   :  { %v617_v37 = vmul.f32 %v1829_v28, %v541_v35 }
  0xd6   :  { %v1892_v53 = vadd.f32 %v1831_v33, %v617_v37 }
  0xd8   :  { %v559_v38 = vpop.f32.mrf.mxu2  ;;  %v523_v41 = vpop.f32.mrf.mxu0  ;;  %v673_v61 = vmax.f32 %v1892_v53, 0.0 }
  0xd9   :  { %v578_v40 = vpop.f32.mrf.mxu3  ;;  %v542_v45 = vpop.f32.mrf.mxu1 }
  0xda   :  { %v579_v43 = vadd.f32 %v578_v40, %v559_v38  ;;  %v543_v51 = vadd.f32 %v542_v45, %v523_v41 }
  0xdc   :  { %v618_v48 = vmul.f32 %v1829_v28, %v579_v43  ;;  %v621_v57 = vmul.f32 %v1825_v24, %v543_v51  ;;  %v576_v28 = vadd.f32 %v575_v30, %v556_v47  ;;  %v1329_v47 = vmov 256.0  }
  0xdd   :  { %1310 = vrcp.f32 %v1329_v47  ;;  %v750_v47 = vld [vmem:[%s2056_s5 + $0x8] sm:$0xff] }
  0xde   :  { %v1895_v56 = vadd.f32 %v1831_v33, %v618_v48  ;;  %v538_v33 = vadd.f32 %v537_v25, %v518_v23  ;;  %v1910_v8 = vadd.f32 %v1827_v27, %v621_v57  ;;  %v614_v9 = vmul.f32 %v1833_v34, %v576_v28 }
  0xe0   :  { %v561_v58 = vpop.f32.mrf.mxu2  ;;  %v674_v62 = vmax.f32 %v1895_v56, 0.0  ;;  %v613_v19 = vmul.f32 %v1833_v34, %v538_v33  ;;  %v677_v3 = vmax.f32 %v1910_v8, 0.0  ;;  %v1930_v23 = vadd.f32 %v1836_v36, %v614_v9  ;;  %v723_v9 = vld [vmem:[%s2055_s4] sm:$0x3] }
  0xe1   :  { %v580_v63 = vpop.f32.mrf.mxu3 }
  0xe2   :  { %v581_v4 = vadd.f32 %v580_v63, %v561_v58  ;;  %v708_v60 = vadd.f32 %v674_v62, %v673_v61  ;;  %v1933_v34 = vadd.f32 %v1836_v36, %v613_v19  ;;  %v670_v25 = vmax.f32 %v1930_v23, 0.0 }
  0xe3   :  { %v1311_v52 = vpop.eup %1310 }
  0xe4   :  { %v622_v7 = vmul.f32 %v1825_v24, %v581_v4  ;;  %709 = vadd.xlane.f32.xlu2 %v708_v60  ;;  %v669_v26 = vmax.f32 %v1933_v34, 0.0  ;;  %v692_v31 = vmul.f32 256.0, %v1311_v52  ;;  %vm696_vm0 = vweird.f32 %v1311_v52 }
  0xe6   :  { %v1914_v10 = vadd.f32 %v1827_v27, %v622_v7  ;;  %v702_v27 = vadd.f32 %v666_v14, %v665_v11  ;;  %v705_v29 = vadd.f32 %v670_v25, %v669_v26  ;;  %v693_v35 = vsub.f32 1.0, %v692_v31 }
  0xe7   :  { %v1330_v31 = vmov 1  }
  0xe8   :  { %v678_v22 = vmax.f32 %v1914_v10, 0.0  ;;  %v694_v38 = vmul.f32 %v1311_v52, %v693_v35  ;;  %1305 = vset.pattern.permute.xlu1 %v1330_v31 }
  0xea   :  { %v711_v24 = vadd.f32 %v678_v22, %v677_v3  ;;  %v695_v36 = vadd.f32 %v1311_v52, %v694_v38 }
  0xec   :  { %712 = vadd.xlane.f32.xlu0 %v711_v24  ;;  %703 = vadd.xlane.f32.xlu2 %v702_v27  ;;  %v697_v41 = vsel %vm696_vm0, %v1311_v52, %v695_v36  ;;  %v751_v52 = vld [vmem:[%s2056_s5 + $0x10] sm:$0xff] }
  0xf4   :  { %706 = vadd.xlane.f32.xlu0 %v705_v29  ;;  %v749_v29 = vld [vmem:[%s2056_s5] sm:$0xff] }
 0x12f   :  { %v684_v30 = vpop.xlane.xlu2 %683 }
 0x130   :  { %v699_v28 = vmul.f32 %v697_v41, %v684_v30  ;;  %v752_v30 = vld [vmem:[%s2056_s5 + $0x18] sm:$0xff] }
 0x137   :  { %v687_v40 = vpop.xlane.xlu1 %686 }
 0x138   :  { %v700_v51 = vmul.f32 %v697_v41, %v687_v40 }
 0x13f   :  { %v690_v37 = vpop.xlane.xlu2 %689  ;;  %v681_v58 = vpop.xlane.xlu1 %680 }
 0x140   :  { %v701_v43 = vmul.f32 %v697_v41, %v690_v37  ;;  %v698_v33 = vmul.f32 %v697_v41, %v681_v58 }
 0x157   :  { %v710_v39 = vpop.xlane.xlu2 %709 }
 0x158   :  { %v716_v45 = vmul.f32 %v710_v39, %v697_v41 }
 0x15a   :  { %v721_v55 = vsel %vm718_vm1, %v700_v51, %v716_v45 }
 0x15f   :  { %v713_v42 = vpop.xlane.xlu0 %712  ;;  %v704_v57 = vpop.xlane.xlu2 %703 }
 0x160   :  { %v717_v48 = vmul.f32 %v713_v42, %v697_v41  ;;  %v714_v4 = vmul.f32 %v704_v57, %v697_v41 }
 0x162   :  { %v722_v54 = vsel %vm718_vm1, %v701_v43, %v717_v48  ;;  %v719_v19 = vsel %vm718_vm1, %v698_v33, %v714_v4 }
 0x163   :  { %740 = vmatpush.msra.mxu0 %v722_v54 }
 0x165   :  { %741 = vmatpush.msra.mxu0 %v721_v55 }
 0x167   :  { %v707_v63 = vpop.xlane.xlu0 %706 }
 0x168   :  { %v715_v60 = vmul.f32 %v707_v63, %v697_v41 }
 0x16a   :  { %v720_v7 = vsel %vm718_vm1, %v699_v28, %v715_v60 }
 0x16b   :  { %742 = vmatpush.msra.mxu0 %v720_v7 }
 0x16d   :  { %743 = vmatpush.msra.mxu0 %v719_v19 }
 0x16e   :  { %1219 = vmatmul.msk.f32.vlgmr.msra.gmra.mxu0 %vm724_vm2, %v723_v9 }
 0x1eb   :  { %v745_v24 = vpop.f32.mrf.mxu0 }
 0x1ec   :  { %v748_v27 = vmax.f32 %v745_v24, 0.0 }
 0x1ee   :  { %1220 = vmatpush.msk.msra.mxu1 %vm766_vm3, %v748_v27  ;;  %1297 = vmatpush.msk.msra.mxu2 %vm766_vm3, %v748_v27 }
 0x1ef   :  { %1298 = vmatpush.msk.msra.mxu3 %vm766_vm3, %v748_v27  ;;  %1221 = vmatmul.msk.f32.vlgmr.msra.gmra.mxu1 %vm753_vm4, %v749_v29 }
 0x1f0   :  { %1222 = vmatmul.msk.f32.vlgmr.msra.gmra.mxu2 %vm753_vm4, %v750_v47  ;;  %1224 = vmatmul.msk.f32.vlgmr.msra.gmra.mxu3 %vm753_vm4, %v752_v30 }
 0x1f8   :  { %1223 = vmatmul.msk.f32.gmra.mxu2 %vm753_vm4, %v751_v52 }
 0x26c   :  { %v787_v35 = vpop.f32.mrf.mxu1 }
 0x26d   :  { %v1225_v37 = vmul.f32 -1.442695, %v787_v35 }
 0x26f   :  { %1312 = vpow2.f32 %v1225_v37 }
 0x273   :  { %v790_v38 = vpop.f32.mrf.mxu2  ;;  %v796_v36 = vpop.f32.mrf.mxu3 }
 0x274   :  { %v1226_v39 = vmul.f32 -1.442695, %v790_v38  ;;  %v1228_v40 = vmul.f32 -1.442695, %v796_v36 }
 0x275   :  { %v1313_v41 = vpop.eup %1312 }
 0x276   :  { %v811_v42 = vadd.f32 1.0, %v1313_v41  ;;  %1314 = vpow2.f32 %v1226_v39 }
 0x277   :  { %1316 = vpow2.f32 %v1228_v40 }
 0x278   :  { %1318 = vrcp.f32 %v811_v42  ;;  %v826_v28 = vand.u32 2147483648, %v811_v42  ;;  %v824_v60 = vand.u32 2147483647, %v811_v42  ;;  %vm820_vm6 = vweird.f32 %v811_v42 }
 0x27a   :  { %v827_v27 = vor.u32 1.1754944e-38, %v826_v28  ;;  %vm825_vm8 = vcmp.eq.f32.partialorder %v824_v60, 8.507059e+37 }
 0x27b   :  { %v793_v43 = vpop.f32.mrf.mxu2 }
 0x27c   :  { %v1315_v45 = vpop.eup %1314  ;;  %v1227_v48 = vmul.f32 -1.442695, %v793_v43 }
 0x27d   :  { %v1317_v51 = vpop.eup %1316  ;;  %v812_v54 = vadd.f32 1.0, %v1315_v45 }
 0x27e   :  { %v1319_v55 = vpop.eup %1318  ;;  %v814_v57 = vadd.f32 1.0, %v1317_v51  ;;  %1320 = vpow2.f32 %v1227_v48 }
 0x27f   :  { %1322 = vrcp.f32 %v812_v54  ;;  %v816_v58 = vmul.f32 %v1319_v55, %v811_v42  ;;  %vm821_vm5 = vweird.f32 %v1319_v55  ;;  %v839_v40 = vand.u32 2147483647, %v812_v54 }
 0x280   :  { %1324 = vrcp.f32 %v814_v57  ;;  %vm822_vm7 = vmor %vm820_vm6, %vm821_vm5  ;;  %v869_v38 = vand.u32 2147483647, %v814_v57  ;;  %v871_v36 = vand.u32 2147483648, %v814_v57  ;;  %v841_v42 = vand.u32 2147483648, %v812_v54 }
 0x281   :  { %v817_v63 = vsub.f32 1.0, %v816_v58  ;;  %vm835_vm11 = vweird.f32 %v812_v54  ;;  %vm865_vm12 = vweird.f32 %v814_v57  ;;  %vm840_vm0 = vcmp.eq.f32.partialorder %v839_v40, 8.507059e+37 }
 0x282   :  { %vm870_vm13 = vcmp.eq.f32.partialorder %v869_v38, 8.507059e+37 }
 0x283   :  { %v818_v4 = vmul.f32 %v1319_v55, %v817_v63 }
 0x284   :  { %v1321_v33 = vpop.eup %1320 }
 0x285   :  { %v1323_v7 = vpop.eup %1322  ;;  %v813_v9 = vadd.f32 1.0, %v1321_v33  ;;  %v819_v19 = vadd.f32 %v1319_v55, %v818_v4  ;;  %v842_v4 = vor.u32 1.1754944e-38, %v841_v42 }
 0x286   :  { %v1325_v24 = vpop.eup %1324  ;;  %v831_v29 = vmul.f32 %v1323_v7, %v812_v54  ;;  %vm836_vm9 = vweird.f32 %v1323_v7 }
 0x287   :  { %1326 = vrcp.f32 %v813_v9  ;;  %v823_v47 = vsel %vm822_vm7, %v1319_v55, %v819_v19  ;;  %v861_v30 = vmul.f32 %v1325_v24, %v814_v57  ;;  %vm866_vm10 = vweird.f32 %v1325_v24  ;;  %vm1961_vm14 = vmor %vm835_vm11, %vm836_vm9 }
 0x288   :  { %v828_v52 = vsel %vm825_vm8, %v827_v27, %v823_v47  ;;  %v832_v35 = vsub.f32 1.0, %v831_v29  ;;  %vm867_vm15 = vmor %vm865_vm12, %vm866_vm10  ;;  %v872_v55 = vor.u32 1.1754944e-38, %v871_v36  ;;  %vm850_vm1 = vweird.f32 %v813_v9 }
 0x289   :  { %912 = vperm.xlu1 %1305, %v828_v52   ;;  %877 = vperm.xlu0 %1302, %v828_v52   ;;  %v862_v37 = vsub.f32 1.0, %v861_v30  ;;  %v856_v60 = vand.u32 2147483648, %v813_v9  ;;  %v854_v57 = vand.u32 2147483647, %v813_v9 }
 0x28a   :  { %v833_v39 = vmul.f32 %v1323_v7, %v832_v35 }
 0x28b   :  { %v863_v41 = vmul.f32 %v1325_v24, %v862_v37  ;;  %v857_v29 = vor.u32 1.1754944e-38, %v856_v60  ;;  %vm855_vm4 = vcmp.eq.f32.partialorder %v854_v57, 8.507059e+37 }
 0x28c   :  { %v834_v43 = vadd.f32 %v1323_v7, %v833_v39 }
 0x28d   :  { %v1327_v45 = vpop.eup %1326  ;;  %v864_v48 = vadd.f32 %v1325_v24, %v863_v41 }
 0x28e   :  { %v838_v58 = vsel %vm1961_vm14, %v1323_v7, %v834_v43  ;;  %v846_v63 = vmul.f32 %v1327_v45, %v813_v9  ;;  %vm851_vm2 = vweird.f32 %v1327_v45 }
 0x28f   :  { %v868_v28 = vsel %vm867_vm15, %v1325_v24, %v864_v48  ;;  %v843_v19 = vsel %vm840_vm0, %v842_v4, %v838_v58  ;;  %vm852_vm3 = vmor %vm850_vm1, %vm851_vm2 }
 0x290   :  { %v873_v54 = vsel %vm870_vm13, %v872_v55, %v868_v28  ;;  %v847_v33 = vsub.f32 1.0, %v846_v63 }
 0x291   :  { %1306 = vset.pattern.permute.xlu1 %v1328_v32  ;;  %892 = vperm.xlu0 %1302, %v873_v54  }
 0x292   :  { %882 = vperm.xlu1 %1306, %v843_v19   ;;  %v848_v27 = vmul.f32 %v1327_v45, %v847_v33 }
 0x294   :  { %v849_v47 = vadd.f32 %v1327_v45, %v848_v27 }
 0x296   :  { %v853_v7 = vsel %vm852_vm3, %v1327_v45, %v849_v47 }
 0x297   :  { %v858_v30 = vsel %vm855_vm4, %v857_v29, %v853_v7 }
 0x298   :  { %887 = vperm.xlu2 %1304, %v858_v30  }
 0x299   :  { %1307 = vset.pattern.permute.xlu0 %v1330_v31 }
 0x29a   :  { %1309 = vset.pattern.permute.xlu1 %v1330_v31  ;;  %916 = vperm.xlu0 %1307, %v843_v19  }
 0x29b   :  { %924 = vperm.xlu1 %1309, %v873_v54  }
 0x2a0   :  { %1308 = vset.pattern.permute.xlu2 %v1330_v31 }
 0x2a1   :  { %920 = vperm.xlu2 %1308, %v858_v30  }
 0x2f2   :  { %v888_v32 = vpop.permute.xlu2 %887 }
 0x2f3   :  { %v899_v9 = vmul.f32 %v888_v32, %v671_v2  ;;  %v900_v24 = vmul.f32 %v888_v32, %v672_v6 }
 0x2f5   :  { %907 = vst [vmem:[%s2057_s6 + $0x40] sm:$0xff] %v899_v9 }
 0x2f6   :  { %908 = vst [vmem:[%s2057_s6 + $0x48] sm:$0xff] %v900_v24 }
 0x2fb   :  { %v921_v52 = vpop.permute.xlu2 %920  ;;  %v913_v35 = vpop.permute.xlu1 %912 }
 0x2fc   :  { %v931_v31 = vmul.f32 %v921_v52, %v673_v61  ;;  %v932_v59 = vmul.f32 %v921_v52, %v674_v62  ;;  %v927_v1 = vmul.f32 %v913_v35, %v665_v11  ;;  %v878_v2 = vpop.permute.xlu0 %877  ;;  %v928_v6 = vmul.f32 %v913_v35, %v666_v14 }
 0x2fd   :  { %v895_v37 = vmul.f32 %v878_v2, %v663_v16  ;;  %v896_v53 = vmul.f32 %v878_v2, %v664_v17 }
 0x2fe   :  { %939 = vst [vmem:[%s2057_s6 + $0x50] sm:$0xff] %v931_v31 }
 0x2ff   :  { %940 = vst [vmem:[%s2057_s6 + $0x58] sm:$0xff] %v932_v59 }
 0x300   :  { %935 = vst [vmem:[%s2057_s6 + $0x10] sm:$0xff] %v927_v1 }
 0x301   :  { %936 = vst [vmem:[%s2057_s6 + $0x18] sm:$0xff] %v928_v6 }
 0x302   :  { %903 = vst [vmem:[%s2057_s6] sm:$0xff] %v895_v37 }
 0x303   :  { %904 = vst [vmem:[%s2057_s6 + $0x8] sm:$0xff] %v896_v53 }
 0x304   :  { %v893_v12 = vpop.permute.xlu0 %892  ;;  %v883_v16 = vpop.permute.xlu1 %882 }
 0x305   :  { %v901_v13 = vmul.f32 %v893_v12, %v675_v20  ;;  %v902_v17 = vmul.f32 %v893_v12, %v676_v21  ;;  %v897_v56 = vmul.f32 %v883_v16, %v667_v49  ;;  %v898_v61 = vmul.f32 %v883_v16, %v668_v50 }
 0x307   :  { %909 = vst [vmem:[%s2057_s6 + $0x60] sm:$0xff] %v901_v13 }
 0x308   :  { %910 = vst [vmem:[%s2057_s6 + $0x68] sm:$0xff] %v902_v17 }
 0x309   :  { %905 = vst [vmem:[%s2057_s6 + $0x20] sm:$0xff] %v897_v56 }
 0x30a   :  { %906 = vst [vmem:[%s2057_s6 + $0x28] sm:$0xff] %v898_v61 }
 0x30c   :  { %v917_v44 = vpop.permute.xlu0 %916 }
 0x30d   :  { %v929_v46 = vmul.f32 %v917_v44, %v669_v26  ;;  %v930_v49 = vmul.f32 %v917_v44, %v670_v25  ;;  %v925_v50 = vpop.permute.xlu1 %924 }
 0x30e   :  { %v933_v15 = vmul.f32 %v925_v50, %v677_v3  ;;  %v934_v18 = vmul.f32 %v925_v50, %v678_v22 }
 0x30f   :  { %937 = vst [vmem:[%s2057_s6 + $0x30] sm:$0xff] %v929_v46 }
 0x310   :  { %938 = vst [vmem:[%s2057_s6 + $0x38] sm:$0xff] %v930_v49 }
 0x311   :  { %941 = vst [vmem:[%s2057_s6 + $0x70] sm:$0xff] %v933_v15 }
 0x312   :  { %942 = vst [vmem:[%s2057_s6 + $0x78] sm:$0xff] %v934_v18 }

// kernel: variational_se_encoder.8
= control target key start
LH: loop header
LB: loop body
LE: loop exit
PB: predicated region body
PF: predicated region fallthrough
CT: control target
= control target key end

     0   :  { %v1407_v2 = vmov 0   ;;  %vm611_vm0 = vcmask 523264   ;;  %vm715_vm2 = vcmask 7168   ;;  %vm782_vm3 = vcmask 1043456   ;;  %s1921_s0 = inlined_call_operand.vmem [shape: bf16[512,128], index: 0, kind: input, shape index: {}]   ;;  %s1922_s2 = inlined_call_operand.vmem [shape: f32[64,1], index: 2, kind: input, shape index: {}]   ;;  %s1923_s3 = inlined_call_operand.vmem [shape: f32[64,1], index: 3, kind: input, shape index: {}]   ;;  %s1924_s1 = inlined_call_operand.vmem [shape: bf16[64,512], index: 1, kind: input, shape index: {}]   ;;  %s1925_s4 = inlined_call_operand.vmem [shape: f32[4,64], index: 4, kind: input, shape index: {}]   ;;  %s1926_s5 = inlined_call_operand.vmem [shape: f32[64,4], index: 5, kind: input, shape index: {}]   ;;  %s1927_s6 = inlined_call_operand.vmem [shape: f32[64,128], index: 6, kind: output, shape index: {}]  }
   0x1   :  { %v1321_v0 = vld [vmem:[%s1921_s0 + $0x38] sm:$0xff]  ;;  %1359 = vset.pattern.permute.xlu0 %v1407_v2  ;;  %1360 = vset.pattern.permute.xlu1 %v1407_v2  ;;  %v1320_v3 = vld [vmem:[%s1921_s0 + $0x30] sm:$0xff]  ;;  %v1319_v7 = vld [vmem:[%s1921_s0 + $0x28] sm:$0xff]  ;;  %vm757_vm4 = vcmask 31744  }
   0x2   :  { %v1329_v1 = vld [vmem:[%s1921_s0 + $0x78] sm:$0xff]  ;;  %1361 = vset.pattern.permute.xlu2 %v1407_v2  ;;  %375 = vmatpush.bf16.msra.mxu0 %v1321_v0  ;;  %v1328_v4 = vld [vmem:[%s1921_s0 + $0x70] sm:$0xff]  ;;  %v1327_v8 = vld [vmem:[%s1921_s0 + $0x68] sm:$0xff] }
   0x3   :  { %1346 = vmatpush.bf16.msra.mxu2 %v1329_v1  ;;  %404 = vmatpush.bf16.msra.mxu1 %v1329_v1  ;;  %v498_v5 = vld [vmem:[%s1922_s2 + $0x38] sm:$0xff]  ;;  %v1344_v9 = vld [vmem:[%s1921_s0 + $0xf0] sm:$0xff]  ;;  %v1318_v11 = vld [vmem:[%s1921_s0 + $0x20] sm:$0xff] }
   0x4   :  { %536 = vperm.xlu0 %1359, %v498_v5   ;;  %v1345_v6 = vld [vmem:[%s1921_s0 + $0xf8] sm:$0xff]  ;;  %v1326_v12 = vld [vmem:[%s1921_s0 + $0x60] sm:$0xff]  ;;  %v497_v13 = vld [vmem:[%s1922_s2 + $0x30] sm:$0xff] }
   0x5   :  { %462 = vmatpush.bf16.msra.mxu3 %v1345_v6  ;;  %v554_v10 = vld [vmem:[%s1923_s3 + $0x38] sm:$0xff]  ;;  %v1343_v14 = vld [vmem:[%s1921_s0 + $0xe8] sm:$0xff]  ;;  %v1342_v18 = vld [vmem:[%s1921_s0 + $0xe0] sm:$0xff] }
   0x6   :  { %376 = vmatpush.bf16.msra.mxu0 %v1320_v3  ;;  %592 = vperm.xlu1 %1360, %v554_v10   ;;  %v1317_v15 = vld [vmem:[%s1921_s0 + $0x18] sm:$0xff]  ;;  %v496_v17 = vld [vmem:[%s1922_s2 + $0x28] sm:$0xff]  ;;  %v1316_v19 = vld [vmem:[%s1921_s0 + $0x10] sm:$0xff] }
   0x7   :  { %1347 = vmatpush.bf16.msra.mxu2 %v1328_v4  ;;  %405 = vmatpush.bf16.msra.mxu1 %v1328_v4  ;;  %v1325_v16 = vld [vmem:[%s1921_s0 + $0x58] sm:$0xff]  ;;  %v1324_v20 = vld [vmem:[%s1921_s0 + $0x50] sm:$0xff]  ;;  %v552_v21 = vld [vmem:[%s1923_s3 + $0x28] sm:$0xff] }
   0x8   :  { %v1341_v22 = vld [vmem:[%s1921_s0 + $0xd8] sm:$0xff]  ;;  %v1315_v23 = vld [vmem:[%s1921_s0 + $0x8] sm:$0xff]  ;;  %v1340_v26 = vld [vmem:[%s1921_s0 + $0xd0] sm:$0xff] }
   0x9   :  { %463 = vmatpush.bf16.msra.mxu3 %v1344_v9  ;;  %v1323_v24 = vld [vmem:[%s1921_s0 + $0x48] sm:$0xff]  ;;  %v494_v25 = vld [vmem:[%s1922_s2 + $0x18] sm:$0xff]  ;;  %v1314_v27 = vld [vmem:[%s1921_s0] sm:$0xff] }
   0xa   :  { %377 = vmatpush.bf16.msra.mxu0 %v1319_v7  ;;  %v1322_v28 = vld [vmem:[%s1921_s0 + $0x40] sm:$0xff]  ;;  %v1300_v30 = vld [vmem:[%s1924_s1 + $0xc] sm:$0xf0]  ;;  %v1124_v32 = vld [vmem:[%s1924_s1 + $0x50] sm:$0xf0] }
   0xb   :  { %1348 = vmatpush.bf16.msra.mxu2 %v1327_v8  ;;  %406 = vmatpush.bf16.msra.mxu1 %v1327_v8  ;;  %v1090_v29 = vld [vmem:[%s1924_s1] sm:$0xf]  ;;  %v1306_v31 = vld [vmem:[%s1924_s1 + $0x44] sm:$0xf]  ;;  %v493_v33 = vld [vmem:[%s1922_s2 + $0x10] sm:$0xff] }
   0xc   :  { %531 = vperm.xlu0 %1359, %v497_v13   ;;  %v1337_v34 = vld [vmem:[%s1921_s0 + $0xb8] sm:$0xff]  ;;  %v1339_v35 = vld [vmem:[%s1921_s0 + $0xc8] sm:$0xff]  ;;  %v1091_v36 = vor.u32 %v1300_v30, %v1090_v29  ;;  %v1127_v37 = vor.u32 %v1306_v31, %v1124_v32  ;;  %v1298_v38 = vld [vmem:[%s1924_s1 + $0x4] sm:$0xf] }
   0xd   :  { %464 = vmatpush.bf16.msra.mxu3 %v1343_v14  ;;  %v1092_v39 = vld [vmem:[%s1924_s1 + $0x10] sm:$0xf0]  ;;  %v1338_v41 = vld [vmem:[%s1921_s0 + $0xc0] sm:$0xff]  ;;  %v1299_v42 = vld [vmem:[%s1924_s1 + $0xc] sm:$0xf] }
   0xe   :  { %378 = vmatpush.bf16.msra.mxu0 %v1318_v11  ;;  %526 = vperm.xlu1 %1360, %v496_v17   ;;  %v1336_v40 = vld [vmem:[%s1921_s0 + $0xb0] sm:$0xff]  ;;  %v1100_v43 = vld [vmem:[%s1924_s1 + $0x18] sm:$0xf0]  ;;  %v1095_v45 = vor.u32 %v1298_v38, %v1092_v39  ;;  %v1335_v48 = vld [vmem:[%s1921_s0 + $0xa8] sm:$0xff] }
   0xf   :  { %1349 = vmatpush.bf16.msra.mxu2 %v1326_v12  ;;  %407 = vmatpush.bf16.msra.mxu1 %v1326_v12  ;;  %v550_v44 = vld [vmem:[%s1923_s3 + $0x18] sm:$0xff]  ;;  %v549_v46 = vld [vmem:[%s1923_s3 + $0x10] sm:$0xff]  ;;  %v1103_v47 = vor.u32 %v1299_v42, %v1100_v43  ;;  %v1334_v49 = vld [vmem:[%s1921_s0 + $0xa0] sm:$0xff] }
  0x10   :  { %v491_v50 = vld [vmem:[%s1922_s2] sm:$0xff]  ;;  %v1304_v52 = vld [vmem:[%s1924_s1 + $0x2c] sm:$0xf0]  ;;  %v1140_v54 = vld [vmem:[%s1924_s1 + $0x70] sm:$0xf0] }
  0x11   :  { %465 = vmatpush.bf16.msra.mxu3 %v1342_v18  ;;  %v1106_v51 = vld [vmem:[%s1924_s1 + $0x20] sm:$0xf]  ;;  %v1310_v53 = vld [vmem:[%s1924_s1 + $0x64] sm:$0xf]  ;;  %v1333_v56 = vld [vmem:[%s1921_s0 + $0x98] sm:$0xff] }
  0x12   :  { %379 = vmatpush.bf16.msra.mxu0 %v1317_v15  ;;  %v547_v55 = vld [vmem:[%s1923_s3] sm:$0xff]  ;;  %v1107_v57 = vor.u32 %v1304_v52, %v1106_v51  ;;  %v1143_v58 = vor.u32 %v1310_v53, %v1140_v54  ;;  %v1108_v60 = vld [vmem:[%s1924_s1 + $0x30] sm:$0xf0]  ;;  %v1303_v62 = vld [vmem:[%s1924_s1 + $0x2c] sm:$0xf] }
  0x13   :  { %1350 = vmatpush.bf16.msra.mxu2 %v1325_v16  ;;  %408 = vmatpush.bf16.msra.mxu1 %v1325_v16  ;;  %v1302_v59 = vld [vmem:[%s1924_s1 + $0x24] sm:$0xf]  ;;  %v1332_v61 = vld [vmem:[%s1921_s0 + $0x90] sm:$0xff]  ;;  %v1116_v63 = vld [vmem:[%s1924_s1 + $0x38] sm:$0xf0] }
  0x14   :  { %582 = vperm.xlu0 %1359, %v552_v21   ;;  %v1111_v0 = vor.u32 %v1302_v59, %v1108_v60  ;;  %v553_v1 = vld [vmem:[%s1923_s3 + $0x30] sm:$0xff]  ;;  %v1119_v3 = vor.u32 %v1303_v62, %v1116_v63  ;;  %v1331_v4 = vld [vmem:[%s1921_s0 + $0x88] sm:$0xff]  ;;  %v1330_v5 = vld [vmem:[%s1921_s0 + $0x80] sm:$0xff] }
  0x15   :  { %466 = vmatpush.bf16.msra.mxu3 %v1341_v22  ;;  %587 = vperm.xlu2 %1361, %v553_v1   ;;  %v495_v6 = vld [vmem:[%s1922_s2 + $0x20] sm:$0xff]  ;;  %v1308_v8 = vld [vmem:[%s1924_s1 + $0x4c] sm:$0xf0]  ;;  %v1098_v9 = vld [vmem:[%s1924_s1 + $0x8] sm:$0xf] }
  0x16   :  { %380 = vmatpush.bf16.msra.mxu0 %v1316_v19  ;;  %516 = vperm.xlu1 %1360, %v494_v25   ;;  %v1122_v7 = vld [vmem:[%s1924_s1 + $0x40] sm:$0xf]  ;;  %v1301_v10 = vld [vmem:[%s1924_s1 + $0x14] sm:$0xf0]  ;;  %v1307_v13 = vld [vmem:[%s1924_s1 + $0x4c] sm:$0xf] }
  0x17   :  { %1351 = vmatpush.bf16.msra.mxu2 %v1324_v20  ;;  %409 = vmatpush.bf16.msra.mxu1 %v1324_v20  ;;  %v1123_v11 = vor.u32 %v1308_v8, %v1122_v7  ;;  %v1099_v12 = vor.u32 %v1301_v10, %v1098_v9  ;;  %v1132_v14 = vld [vmem:[%s1924_s1 + $0x58] sm:$0xf0]  ;;  %v551_v15 = vld [vmem:[%s1923_s3 + $0x20] sm:$0xff]  ;;  %v492_v17 = vld [vmem:[%s1922_s2 + $0x8] sm:$0xff] }
  0x18   :  { %v1135_v16 = vor.u32 %v1307_v13, %v1132_v14  ;;  %v1138_v18 = vld [vmem:[%s1924_s1 + $0x60] sm:$0xf]  ;;  %v1312_v19 = vld [vmem:[%s1924_s1 + $0x6c] sm:$0xf0]  ;;  %v1114_v20 = vld [vmem:[%s1924_s1 + $0x28] sm:$0xf] }
  0x19   :  { %467 = vmatpush.bf16.msra.mxu3 %v1340_v26  ;;  %v1305_v21 = vld [vmem:[%s1924_s1 + $0x34] sm:$0xf0]  ;;  %v1139_v22 = vor.u32 %v1312_v19, %v1138_v18  ;;  %v1148_v25 = vld [vmem:[%s1924_s1 + $0x78] sm:$0xf0]  ;;  %v548_v26 = vld [vmem:[%s1923_s3 + $0x8] sm:$0xff] }
  0x1a   :  { %381 = vmatpush.bf16.msra.mxu0 %v1315_v23  ;;  %v1115_v23 = vor.u32 %v1305_v21, %v1114_v20  ;;  %v1309_v29 = vld [vmem:[%s1924_s1 + $0x54] sm:$0xf0]  ;;  %v1146_v31 = vld [vmem:[%s1924_s1 + $0x68] sm:$0xf] }
  0x1b   :  { %1352 = vmatpush.bf16.msra.mxu2 %v1323_v24  ;;  %410 = vmatpush.bf16.msra.mxu1 %v1323_v24  ;;  %v1311_v24 = vld [vmem:[%s1924_s1 + $0x6c] sm:$0xf]  ;;  %v1313_v32 = vld [vmem:[%s1924_s1 + $0x74] sm:$0xf0] }
  0x1c   :  { %511 = vperm.xlu0 %1359, %v493_v33   ;;  %v1147_v33 = vor.u32 %v1313_v32, %v1146_v31 }
  0x1d   :  { %468 = vmatpush.bf16.msra.mxu3 %v1339_v35  ;;  %521 = vperm.xlu2 %1361, %v495_v6  }
  0x1e   :  { %382 = vmatpush.bf16.msra.mxu0 %v1314_v27  ;;  %572 = vperm.xlu1 %1360, %v550_v44   ;;  %v1151_v27 = vor.u32 %v1311_v24, %v1148_v25 }
  0x1f   :  { %1353 = vmatpush.bf16.msra.mxu2 %v1322_v28  ;;  %411 = vmatpush.bf16.msra.mxu1 %v1322_v28  ;;  %v1130_v28 = vld [vmem:[%s1924_s1 + $0x48] sm:$0xf]  ;;  %s1408_s1 = smov 64  }
  0x20   :  { %v1131_v30 = vor.u32 %v1309_v29, %v1130_v28 }
  0x21   :  { %383 = vmatmul.bf16.vlgmr.msra.gmra.mxu0 %v1091_v36  ;;  %469 = vmatpush.bf16.msra.mxu3 %v1338_v41 }
  0x22   :  { %422 = vmatmul.bf16.vlgmr.msra.gmra.mxu2 %v1127_v37  ;;  %412 = vmatmul.bf16.vlgmr.msra.gmra.mxu1 %v1095_v45 }
  0x23   :  { %433 = vmatpush.bf16.msrb.mxu2 %v1337_v34 }
  0x24   :  { %567 = vperm.xlu0 %1359, %v549_v46   ;;  %470 = vmatmul.bf16.vlgmr.msra.gmra.mxu3 %v1103_v47 }
  0x25   :  { %577 = vperm.xlu2 %1361, %v551_v15  }
  0x26   :  { %501 = vperm.xlu1 %1360, %v491_v50  }
  0x27   :  { %434 = vmatpush.bf16.msrb.mxu2 %v1336_v40 }
  0x2b   :  { %435 = vmatpush.bf16.msrb.mxu2 %v1335_v48 }
  0x2c   :  { %557 = vperm.xlu0 %1359, %v547_v55  }
  0x2d   :  { %506 = vperm.xlu2 %1361, %v492_v17  }
  0x2f   :  { %436 = vmatpush.bf16.msrb.mxu2 %v1334_v49 }
  0x31   :  { %388 = vmatmul.bf16.gmra.mxu0 %v1107_v57 }
  0x32   :  { %427 = vmatmul.bf16.gmra.mxu2 %v1143_v58  ;;  %417 = vmatmul.bf16.gmra.mxu1 %v1111_v0 }
  0x33   :  { %437 = vmatpush.bf16.msrb.mxu2 %v1333_v56 }
  0x34   :  { %475 = vmatmul.bf16.gmra.mxu3 %v1119_v3 }
  0x35   :  { %562 = vperm.xlu2 %1361, %v548_v26  }
  0x37   :  { %438 = vmatpush.bf16.msrb.mxu2 %v1332_v61 }
  0x3b   :  { %439 = vmatpush.bf16.msrb.mxu2 %v1331_v4 }
  0x3f   :  { %440 = vmatpush.bf16.msrb.mxu2 %v1330_v5 }
  0x41   :  { %393 = vmatmul.bf16.gmra.mxu0 %v1123_v11 }
  0x42   :  { %441 = vmatmul.bf16.vlgmr.msrb.gmra.mxu2 %v1099_v12 }
  0x44   :  { %480 = vmatmul.bf16.gmra.mxu3 %v1135_v16 }
  0x51   :  { %398 = vmatmul.bf16.gmra.mxu0 %v1139_v22 }
  0x52   :  { %446 = vmatmul.bf16.gmra.mxu2 %v1115_v23 }
  0x54   :  { %485 = vmatmul.bf16.gmra.mxu3 %v1151_v27 }
  0x62   :  { %451 = vmatmul.bf16.gmra.mxu2 %v1131_v30 }
  0x6f   :  { %v1695_v38 = vpop.permute.xlu2 %587 }
  0x72   :  { %456 = vmatmul.bf16.gmra.mxu2 %v1147_v33 }
  0x76   :  { %v1689_v34 = vpop.permute.xlu0 %536 }
  0x77   :  { %v1703_v42 = vpop.permute.xlu2 %521 }
  0x78   :  { %v1691_v35 = vpop.permute.xlu1 %592 }
  0x7e   :  { %v1693_v36 = vpop.permute.xlu0 %531 }
  0x7f   :  { %v578_v49 = vpop.permute.xlu2 %577 }
  0x80   :  { %v1697_v39 = vpop.permute.xlu1 %526 }
  0x86   :  { %v1699_v40 = vpop.permute.xlu0 %582 }
  0x87   :  { %v507_v60 = vpop.permute.xlu2 %506 }
  0x88   :  { %v517_v44 = vpop.permute.xlu1 %516 }
  0x8e   :  { %v512_v46 = vpop.permute.xlu0 %511 }
  0x8f   :  { %v563_v11 = vpop.permute.xlu2 %562 }
  0x90   :  { %v573_v52 = vpop.permute.xlu1 %572 }
  0x96   :  { %v568_v53 = vpop.permute.xlu0 %567 }
  0x98   :  { %v502_v62 = vpop.permute.xlu1 %501 }
  0x9e   :  { %v384_v43 = vpop.f32.mrf.mxu0  ;;  %v558_v0 = vpop.permute.xlu0 %557 }
  0x9f   :  { %v413_v48 = vpop.f32.mrf.mxu1 }
  0xa0   :  { %v414_v54 = vadd.f32 %v413_v48, %v384_v43 }
  0xa5   :  { %v423_v37 = vpop.f32.mrf.mxu2 }
  0xa6   :  { %v386_v50 = vpop.f32.mrf.mxu0 }
  0xa7   :  { %v471_v47 = vpop.f32.mrf.mxu3  ;;  %v415_v56 = vpop.f32.mrf.mxu1 }
  0xa8   :  { %v416_v1 = vadd.f32 %v415_v56, %v386_v50 }
  0xad   :  { %v1701_v41 = vpop.f32.mrf.mxu2 }
  0xae   :  { %v389_v59 = vpop.f32.mrf.mxu0 }
  0xaf   :  { %v473_v55 = vpop.f32.mrf.mxu3  ;;  %v418_v8 = vpop.f32.mrf.mxu1 }
  0xb0   :  { %v419_v12 = vadd.f32 %v418_v8, %v389_v59 }
  0xb5   :  { %v1705_v45 = vpop.f32.mrf.mxu2 }
  0xb6   :  { %v391_v10 = vpop.f32.mrf.mxu0 }
  0xb7   :  { %v476_v5 = vpop.f32.mrf.mxu3  ;;  %v420_v20 = vpop.f32.mrf.mxu1 }
  0xb8   :  { %v421_v23 = vadd.f32 %v420_v20, %v391_v10 }
  0xbd   :  { %v1707_v51 = vpop.f32.mrf.mxu2 }
  0xbe   :  { %v394_v22 = vpop.f32.mrf.mxu0 }
  0xbf   :  { %v478_v18 = vpop.f32.mrf.mxu3  ;;  %v424_v31 = vadd.f32 %v423_v37, %v394_v22 }
  0xc5   :  { %v442_v57 = vpop.f32.mrf.mxu2 }
  0xc6   :  { %v443_v58 = vadd.f32 %v442_v57, %v414_v54  ;;  %v396_v33 = vpop.f32.mrf.mxu0 }
  0xc7   :  { %v481_v28 = vpop.f32.mrf.mxu3  ;;  %v426_v54 = vadd.f32 %v1701_v41, %v396_v33 }
  0xc8   :  { %v472_v61 = vadd.f32 %v471_v47, %v443_v58 }
  0xca   :  { %v539_v63 = vmul.f32 %v502_v62, %v472_v61 }
  0xcc   :  { %v595_v3 = vadd.f32 %v558_v0, %v539_v63 }
  0xcd   :  { %v444_v4 = vpop.f32.mrf.mxu2 }
  0xce   :  { %v1709_v6 = vmax.f32 %v595_v3, 0.0  ;;  %v445_v7 = vadd.f32 %v444_v4, %v416_v1 }
  0xcf   :  { %v483_v50 = vpop.f32.mrf.mxu3 }
  0xd0   :  { %v474_v9 = vadd.f32 %v473_v55, %v445_v7  ;;  %659 = vrot.lane.b32.xlu2 %v1709_v6, %s1408_s1 }
  0xd2   :  { %v540_v13 = vmul.f32 %v507_v60, %v474_v9 }
  0xd4   :  { %v596_v14 = vadd.f32 %v563_v11, %v540_v13 }
  0xd5   :  { %v447_v15 = vpop.f32.mrf.mxu2 }
  0xd6   :  { %v1713_v16 = vmax.f32 %v596_v14, 0.0  ;;  %v448_v17 = vadd.f32 %v447_v15, %v419_v12 }
  0xd7   :  { %v486_v59 = vpop.f32.mrf.mxu3 }
  0xd8   :  { %v477_v19 = vadd.f32 %v476_v5, %v448_v17  ;;  %661 = vrot.lane.b32.xlu1 %v1713_v16, %s1408_s1 }
  0xda   :  { %v541_v21 = vmul.f32 %v512_v46, %v477_v19 }
  0xdc   :  { %v597_v24 = vadd.f32 %v568_v53, %v541_v21 }
  0xdd   :  { %v449_v25 = vpop.f32.mrf.mxu2 }
  0xde   :  { %v1717_v26 = vmax.f32 %v597_v24, 0.0  ;;  %v450_v27 = vadd.f32 %v449_v25, %v421_v23 }
  0xdf   :  { %v488_v63 = vpop.f32.mrf.mxu3 }
  0xe0   :  { %v479_v29 = vadd.f32 %v478_v18, %v450_v27  ;;  %663 = vrot.lane.b32.xlu0 %v1717_v26, %s1408_s1  ;;  %v618_v10 = vsel %vm611_vm0, %v1717_v26, 0.0  ;;  %v612_v27 = vsel %vm611_vm0, %v1709_v6, 0.0 }
  0xe2   :  { %v542_v30 = vmul.f32 %v517_v44, %v479_v29  ;;  %v399_v44 = vpop.f32.mrf.mxu0 }
  0xe4   :  { %v598_v32 = vadd.f32 %v573_v52, %v542_v30  ;;  %v615_v30 = vsel %vm611_vm0, %v1713_v16, 0.0 }
  0xe5   :  { %v452_v43 = vpop.f32.mrf.mxu2 }
  0xe6   :  { %v1721_v47 = vmax.f32 %v598_v32, 0.0  ;;  %v453_v46 = vadd.f32 %v452_v43, %v424_v31  ;;  %v1409_v32 = vmov 64.0  }
  0xe7   :  { %1373 = vrcp.f32 %v1409_v32  ;;  %v754_v32 = vld [vmem:[%s1926_s5 + $0x28] sm:$0xff] }
  0xe8   :  { %v482_v48 = vadd.f32 %v481_v28, %v453_v46  ;;  %665 = vrot.lane.b32.xlu2 %v1721_v47, %s1408_s1 }
  0xea   :  { %v543_v53 = vmul.f32 %v1703_v42, %v482_v48  ;;  %v401_v41 = vpop.f32.mrf.mxu0 }
  0xeb   :  { %v431_v42 = vadd.f32 %v1707_v51, %v401_v41  ;;  %v429_v51 = vadd.f32 %v1705_v45, %v399_v44  ;;  %v621_v45 = vsel %vm611_vm0, %v1721_v47, 0.0 }
  0xec   :  { %v599_v55 = vadd.f32 %v578_v49, %v543_v53 }
  0xed   :  { %v454_v56 = vpop.f32.mrf.mxu2  ;;  %v1374_v43 = vpop.eup %1373 }
  0xee   :  { %v1727_v57 = vmax.f32 %v599_v55, 0.0  ;;  %v455_v37 = vadd.f32 %v454_v56, %v426_v54  ;;  %v637_v46 = vmul.f32 64.0, %v1374_v43  ;;  %vm641_vm1 = vweird.f32 %v1374_v43 }
  0xf0   :  { %v484_v52 = vadd.f32 %v483_v50, %v455_v37  ;;  %667 = vrot.lane.b32.xlu1 %v1727_v57, %s1408_s1  ;;  %v638_v50 = vsub.f32 1.0, %v637_v46 }
  0xf2   :  { %v544_v58 = vmul.f32 %v1697_v39, %v484_v52  ;;  %v639_v54 = vmul.f32 %v1374_v43, %v638_v50 }
  0xf4   :  { %v600_v60 = vadd.f32 %v1699_v40, %v544_v58  ;;  %v624_v40 = vsel %vm611_vm0, %v1727_v57, 0.0  ;;  %v640_v56 = vadd.f32 %v1374_v43, %v639_v54 }
  0xf5   :  { %v457_v61 = vpop.f32.mrf.mxu2 }
  0xf6   :  { %v1733_v62 = vmax.f32 %v600_v60, 0.0  ;;  %v458_v5 = vadd.f32 %v457_v61, %v429_v51  ;;  %v642_v44 = vsel %vm641_vm1, %v1374_v43, %v640_v56 }
  0xf8   :  { %669 = vrot.lane.b32.xlu0 %v1733_v62, %s1408_s1  ;;  %v487_v7 = vadd.f32 %v486_v59, %v458_v5 }
  0xfa   :  { %v545_v8 = vmul.f32 %v1693_v36, %v487_v7 }
  0xfd   :  { %v459_v49 = vpop.f32.mrf.mxu2 }
  0xfe   :  { %v460_v0 = vadd.f32 %v459_v49, %v431_v42 }
 0x100   :  { %v489_v1 = vadd.f32 %v488_v63, %v460_v0 }
 0x102   :  { %v546_v3 = vmul.f32 %v1689_v34, %v489_v1  ;;  %v627_v34 = vsel %vm611_vm0, %v1733_v62, 0.0 }
 0x104   :  { %v602_v39 = vadd.f32 %v1691_v35, %v546_v3  ;;  %v601_v35 = vadd.f32 %v1695_v38, %v545_v8 }
 0x106   :  { %v1740_v4 = vmax.f32 %v602_v39, 0.0  ;;  %v1751_v9 = vmax.f32 %v601_v35, 0.0 }
 0x108   :  { %673 = vrot.lane.b32.xlu1 %v1740_v4, %s1408_s1  ;;  %v633_v36 = vsel %vm611_vm0, %v1740_v4, 0.0  ;;  %v630_v38 = vsel %vm611_vm0, %v1751_v9, 0.0 }
 0x111   :  { %625 = vadd.xlane.f32.xlu2 %v624_v40 }
 0x122   :  { %628 = vadd.xlane.f32.xlu0 %v627_v34 }
 0x129   :  { %671 = vrot.lane.b32.xlu2 %v1751_v9, %s1408_s1 }
 0x12a   :  { %619 = vadd.xlane.f32.xlu0 %v618_v10  ;;  %v660_v11 = vpop.permute.xlu2 %659 }
 0x12b   :  { %v683_v31 = vsel %vm611_vm0, %v660_v11, 0.0 }
 0x132   :  { %622 = vadd.xlane.f32.xlu1 %v621_v45  ;;  %634 = vadd.xlane.f32.xlu0 %v633_v36 }
 0x142   :  { %v666_v12 = vpop.permute.xlu2 %665 }
 0x143   :  { %v692_v13 = vsel %vm611_vm0, %v666_v12, 0.0 }
 0x14a   :  { %v662_v14 = vpop.permute.xlu1 %661 }
 0x14b   :  { %v686_v21 = vsel %vm611_vm0, %v662_v14, 0.0 }
 0x152   :  { %631 = vadd.xlane.f32.xlu2 %v630_v38  ;;  %v664_v15 = vpop.permute.xlu0 %663 }
 0x153   :  { %v689_v24 = vsel %vm611_vm0, %v664_v15, 0.0 }
 0x15a   :  { %693 = vadd.xlane.f32.xlu2 %v692_v13 }
 0x162   :  { %v668_v17 = vpop.permute.xlu1 %667 }
 0x163   :  { %v695_v18 = vsel %vm611_vm0, %v668_v17, 0.0 }
 0x164   :  { %696 = vadd.xlane.f32.xlu0 %v695_v18 }
 0x16a   :  { %v670_v19 = vpop.permute.xlu0 %669 }
 0x16b   :  { %v698_v20 = vsel %vm611_vm0, %v670_v19, 0.0 }
 0x16c   :  { %699 = vadd.xlane.f32.xlu1 %v698_v20  ;;  %687 = vadd.xlane.f32.xlu0 %v686_v21  ;;  %v724_v21 = vld [vmem:[%s1925_s4] sm:$0xf] }
 0x17a   :  { %v674_v22 = vpop.permute.xlu1 %673 }
 0x17b   :  { %v704_v23 = vsel %vm611_vm0, %v674_v22, 0.0 }
 0x17c   :  { %705 = vadd.xlane.f32.xlu1 %v704_v23 }
 0x184   :  { %v626_v25 = vpop.xlane.xlu2 %625  ;;  %690 = vadd.xlane.f32.xlu1 %v689_v24 }
 0x185   :  { %v647_v5 = vmul.f32 %v642_v44, %v626_v25  ;;  %v749_v25 = vld [vmem:[%s1926_s5] sm:$0xff] }
 0x18c   :  { %v672_v28 = vpop.permute.xlu2 %671  ;;  %613 = vadd.xlane.f32.xlu1 %v612_v27  ;;  %v756_v27 = vld [vmem:[%s1926_s5 + $0x38] sm:$0xff] }
 0x18d   :  { %v701_v29 = vsel %vm611_vm0, %v672_v28, 0.0  ;;  %v750_v28 = vld [vmem:[%s1926_s5 + $0x8] sm:$0xff] }
 0x18e   :  { %702 = vadd.xlane.f32.xlu2 %v701_v29  ;;  %v751_v29 = vld [vmem:[%s1926_s5 + $0x10] sm:$0xff] }
 0x195   :  { %v629_v33 = vpop.xlane.xlu0 %628 }
 0x196   :  { %616 = vadd.xlane.f32.xlu2 %v615_v30  ;;  %v648_v3 = vmul.f32 %v642_v44, %v629_v33  ;;  %v752_v30 = vld [vmem:[%s1926_s5 + $0x18] sm:$0xff]  ;;  %v755_v33 = vld [vmem:[%s1926_s5 + $0x30] sm:$0xff] }
 0x19d   :  { %v620_v53 = vpop.xlane.xlu0 %619 }
 0x19e   :  { %684 = vadd.xlane.f32.xlu2 %v683_v31  ;;  %v645_v11 = vmul.f32 %v642_v44, %v620_v53  ;;  %v753_v31 = vld [vmem:[%s1926_s5 + $0x20] sm:$0xff] }
 0x1a5   :  { %v623_v48 = vpop.xlane.xlu1 %622  ;;  %v635_v37 = vpop.xlane.xlu0 %634 }
 0x1a6   :  { %v650_v59 = vmul.f32 %v642_v44, %v635_v37  ;;  %v646_v34 = vmul.f32 %v642_v44, %v623_v48  ;;  %v1410_v48 = vmov 1  }
 0x1a7   :  { %1363 = vset.pattern.permute.xlu2 %v1410_v48 }
 0x1c5   :  { %v632_v52 = vpop.xlane.xlu2 %631 }
 0x1c6   :  { %v649_v63 = vmul.f32 %v642_v44, %v632_v52 }
 0x1cd   :  { %v694_v41 = vpop.xlane.xlu2 %693 }
 0x1ce   :  { %v710_v7 = vmul.f32 %v694_v41, %v642_v44 }
 0x1d0   :  { %v719_v12 = vsel %vm715_vm2, %v646_v34, %v710_v7 }
 0x1d7   :  { %v697_v42 = vpop.xlane.xlu0 %696 }
 0x1d8   :  { %v711_v39 = vmul.f32 %v697_v42, %v642_v44 }
 0x1da   :  { %v720_v10 = vsel %vm715_vm2, %v647_v5, %v711_v39 }
 0x1df   :  { %v700_v55 = vpop.xlane.xlu1 %699  ;;  %v688_v45 = vpop.xlane.xlu0 %687 }
 0x1e0   :  { %v712_v0 = vmul.f32 %v700_v55, %v642_v44  ;;  %v708_v13 = vmul.f32 %v688_v45, %v642_v44 }
 0x1e2   :  { %v721_v8 = vsel %vm715_vm2, %v648_v3, %v712_v0 }
 0x1ef   :  { %v706_v58 = vpop.xlane.xlu1 %705 }
 0x1f0   :  { %v714_v60 = vmul.f32 %v706_v58, %v642_v44 }
 0x1f2   :  { %v723_v61 = vsel %vm715_vm2, %v650_v59, %v714_v60 }
 0x1f3   :  { %736 = vmatpush.msrb.mxu0 %v723_v61 }
 0x1f7   :  { %v691_v51 = vpop.xlane.xlu1 %690 }
 0x1f8   :  { %v709_v35 = vmul.f32 %v691_v51, %v642_v44 }
 0x1fa   :  { %v718_v14 = vsel %vm715_vm2, %v645_v11, %v709_v35 }
 0x1ff   :  { %v614_v17 = vpop.xlane.xlu1 %613 }
 0x200   :  { %v643_v19 = vmul.f32 %v642_v44, %v614_v17 }
 0x201   :  { %v703_v49 = vpop.xlane.xlu2 %702 }
 0x202   :  { %v713_v1 = vmul.f32 %v703_v49, %v642_v44 }
 0x204   :  { %v722_v40 = vsel %vm715_vm2, %v649_v63, %v713_v1 }
 0x205   :  { %737 = vmatpush.msrb.mxu0 %v722_v40 }
 0x207   :  { %738 = vmatpush.msrb.mxu0 %v721_v8 }
 0x209   :  { %v617_v36 = vpop.xlane.xlu2 %616  ;;  %739 = vmatpush.msrb.mxu0 %v720_v10 }
 0x20a   :  { %v644_v38 = vmul.f32 %v642_v44, %v617_v36 }
 0x20b   :  { %740 = vmatpush.msrb.mxu0 %v719_v12 }
 0x20c   :  { %v717_v15 = vsel %vm715_vm2, %v644_v38, %v708_v13 }
 0x20d   :  { %741 = vmatpush.msrb.mxu0 %v718_v14 }
 0x20f   :  { %742 = vmatpush.msrb.mxu0 %v717_v15 }
 0x211   :  { %v685_v18 = vpop.xlane.xlu2 %684 }
 0x212   :  { %v707_v20 = vmul.f32 %v685_v18, %v642_v44 }
 0x214   :  { %v716_v22 = vsel %vm715_vm2, %v643_v19, %v707_v20 }
 0x215   :  { %743 = vmatpush.msrb.mxu0 %v716_v22 }
 0x216   :  { %1280 = vmatmul.msk.f32.vlgmr.msrb.gmra.mxu0 %vm611_vm0, %v724_v21 }
 0x293   :  { %v745_v23 = vpop.f32.mrf.mxu0 }
 0x294   :  { %v748_v24 = vmax.f32 %v745_v23, 0.0 }
 0x296   :  { %1281 = vmatpush.msk.msrb.mxu1 %vm782_vm3, %v748_v24  ;;  %1354 = vmatpush.msk.msrb.mxu3 %vm782_vm3, %v748_v24 }
 0x297   :  { %1282 = vmatmul.msk.f32.vlgmr.msrb.gmra.mxu1 %vm757_vm4, %v749_v25  ;;  %1289 = vmatmul.msk.f32.vlgmr.msrb.gmra.mxu3 %vm757_vm4, %v756_v27 }
 0x29f   :  { %1283 = vmatmul.msk.f32.gmra.mxu1 %vm757_vm4, %v750_v28 }
 0x2a7   :  { %1284 = vmatmul.msk.f32.gmra.mxu1 %vm757_vm4, %v751_v29 }
 0x2af   :  { %1285 = vmatmul.msk.f32.gmra.mxu1 %vm757_vm4, %v752_v30 }
 0x2b7   :  { %1286 = vmatmul.msk.f32.gmra.mxu1 %vm757_vm4, %v753_v31 }
 0x2bf   :  { %1287 = vmatmul.msk.f32.gmra.mxu1 %vm757_vm4, %v754_v32 }
 0x2c7   :  { %1288 = vmatmul.msk.f32.gmra.mxu1 %vm757_vm4, %v755_v33 }
 0x314   :  { %v803_v43 = vpop.f32.mrf.mxu1 }
 0x315   :  { %v1290_v46 = vmul.f32 -1.442695, %v803_v43 }
 0x317   :  { %1375 = vpow2.f32 %v1290_v46 }
 0x31a   :  { %v824_v50 = vpop.f32.mrf.mxu3 }
 0x31b   :  { %v1297_v53 = vmul.f32 -1.442695, %v824_v50 }
 0x31c   :  { %v806_v54 = vpop.f32.mrf.mxu1 }
 0x31d   :  { %v1376_v55 = vpop.eup %1375  ;;  %1377 = vpow2.f32 %v1297_v53  ;;  %v1291_v56 = vmul.f32 -1.442695, %v806_v54 }
 0x31e   :  { %v851_v37 = vadd.f32 1.0, %v1376_v55 }
 0x31f   :  { %1379 = vpow2.f32 %v1291_v56 }
 0x320   :  { %1381 = vrcp.f32 %v851_v37  ;;  %v868_v63 = vand.u32 2147483647, %v851_v37  ;;  %v870_v0 = vand.u32 2147483648, %v851_v37  ;;  %vm864_vm6 = vweird.f32 %v851_v37 }
 0x322   :  { %vm869_vm8 = vcmp.eq.f32.partialorder %v868_v63, 8.507059e+37  ;;  %v871_v35 = vor.u32 1.1754944e-38, %v870_v0 }
 0x323   :  { %v1378_v44 = vpop.eup %1377 }
 0x324   :  { %v858_v52 = vadd.f32 1.0, %v1378_v44  ;;  %v809_v58 = vpop.f32.mrf.mxu1 }
 0x325   :  { %v1380_v59 = vpop.eup %1379  ;;  %v1292_v60 = vmul.f32 -1.442695, %v809_v58 }
 0x326   :  { %v1382_v61 = vpop.eup %1381  ;;  %1383 = vrcp.f32 %v858_v52  ;;  %v852_v41 = vadd.f32 1.0, %v1380_v59  ;;  %v973_v38 = vand.u32 2147483647, %v858_v52  ;;  %v975_v12 = vand.u32 2147483648, %v858_v52 }
 0x327   :  { %1385 = vpow2.f32 %v1292_v60  ;;  %v860_v42 = vmul.f32 %v1382_v61, %v851_v37  ;;  %vm865_vm5 = vweird.f32 %v1382_v61  ;;  %vm969_vm10 = vweird.f32 %v858_v52 }
 0x328   :  { %1387 = vrcp.f32 %v852_v41  ;;  %vm866_vm7 = vmor %vm864_vm6, %vm865_vm5  ;;  %v885_v15 = vand.u32 2147483648, %v852_v41  ;;  %v883_v19 = vand.u32 2147483647, %v852_v41  ;;  %vm974_vm13 = vcmp.eq.f32.partialorder %v973_v38, 8.507059e+37 }
 0x329   :  { %v861_v49 = vsub.f32 1.0, %v860_v42  ;;  %v976_v21 = vor.u32 1.1754944e-38, %v975_v12  ;;  %vm879_vm14 = vweird.f32 %v852_v41 }
 0x32a   :  { %v886_v30 = vor.u32 1.1754944e-38, %v885_v15  ;;  %vm884_vm1 = vcmp.eq.f32.partialorder %v883_v19, 8.507059e+37 }
 0x32b   :  { %v862_v1 = vmul.f32 %v1382_v61, %v861_v49 }
 0x32c   :  { %v1384_v3 = vpop.eup %1383  ;;  %v812_v39 = vpop.f32.mrf.mxu1 }
 0x32d   :  { %v1386_v40 = vpop.eup %1385  ;;  %v1293_v51 = vmul.f32 -1.442695, %v812_v39  ;;  %v863_v5 = vadd.f32 %v1382_v61, %v862_v1  ;;  %v965_v7 = vmul.f32 %v1384_v3, %v858_v52  ;;  %vm970_vm9 = vweird.f32 %v1384_v3 }
 0x32e   :  { %v1388_v8 = vpop.eup %1387  ;;  %v1820_v34 = vadd.f32 1.0, %v1386_v40  ;;  %vm971_vm12 = vmor %vm969_vm10, %vm970_vm9 }
 0x32f   :  { %1389 = vpow2.f32 %v1293_v51  ;;  %v867_v10 = vsel %vm866_vm7, %v1382_v61, %v863_v5  ;;  %v966_v45 = vsub.f32 1.0, %v965_v7  ;;  %v875_v36 = vmul.f32 %v1388_v8, %v852_v41 }
 0x330   :  { %1391 = vrcp.f32 %v1820_v34  ;;  %v872_v11 = vsel %vm869_vm8, %v871_v35, %v867_v10  ;;  %vm880_vm11 = vweird.f32 %v1388_v8  ;;  %v900_v46 = vand.u32 2147483648, %v1820_v34 }
 0x331   :  { %981 = vperm.xlu0 %1359, %v872_v11   ;;  %v967_v13 = vmul.f32 %v1384_v3, %v966_v45  ;;  %v876_v14 = vsub.f32 1.0, %v875_v36  ;;  %vm881_vm15 = vmor %vm879_vm14, %vm880_vm11  ;;  %v898_v53 = vand.u32 2147483647, %v1820_v34  ;;  %vm894_vm3 = vweird.f32 %v1820_v34 }
 0x332   :  { %v901_v58 = vor.u32 1.1754944e-38, %v900_v46 }
 0x333   :  { %v968_v17 = vadd.f32 %v1384_v3, %v967_v13  ;;  %v877_v18 = vmul.f32 %v1388_v8, %v876_v14  ;;  %vm899_vm5 = vcmp.eq.f32.partialorder %v898_v53, 8.507059e+37 }
 0x334   :  { %v815_v20 = vpop.f32.mrf.mxu1 }
 0x335   :  { %v1390_v22 = vpop.eup %1389  ;;  %v1294_v23 = vmul.f32 -1.442695, %v815_v20  ;;  %v972_v24 = vsel %vm971_vm12, %v1384_v3, %v968_v17  ;;  %v878_v25 = vadd.f32 %v1388_v8, %v877_v18 }
 0x336   :  { %v1392_v27 = vpop.eup %1391  ;;  %v854_v28 = vadd.f32 1.0, %v1390_v22  ;;  %v1823_v29 = vsel %vm974_vm13, %v976_v21, %v972_v24 }
 0x337   :  { %1393 = vpow2.f32 %v1294_v23  ;;  %1016 = vperm.xlu1 %1360, %v1823_v29   ;;  %v882_v31 = vsel %vm881_vm15, %v1388_v8, %v878_v25  ;;  %v890_v32 = vmul.f32 %v1392_v27, %v1820_v34  ;;  %vm895_vm2 = vweird.f32 %v1392_v27 }
 0x338   :  { %1395 = vrcp.f32 %v854_v28  ;;  %v887_v33 = vsel %vm884_vm1, %v886_v30, %v882_v31  ;;  %vm896_vm4 = vmor %vm894_vm3, %vm895_vm2  ;;  %v915_v42 = vand.u32 2147483648, %v854_v28  ;;  %v913_v63 = vand.u32 2147483647, %v854_v28 }
 0x339   :  { %1362 = vset.pattern.permute.xlu0 %v1410_v48  ;;  %1040 = vperm.xlu2 %1363, %v887_v33   ;;  %v891_v43 = vsub.f32 1.0, %v890_v32  ;;  %vm909_vm7 = vweird.f32 %v854_v28 }
 0x33a   :  { %1036 = vperm.xlu0 %1362, %v872_v11   ;;  %v916_v5 = vor.u32 1.1754944e-38, %v915_v42  ;;  %vm914_vm9 = vcmp.eq.f32.partialorder %v913_v63, 8.507059e+37 }
 0x33b   :  { %v892_v50 = vmul.f32 %v1392_v27, %v891_v43 }
 0x33c   :  { %v818_v54 = vpop.f32.mrf.mxu1 }
 0x33d   :  { %v1394_v55 = vpop.eup %1393  ;;  %v1295_v56 = vmul.f32 -1.442695, %v818_v54  ;;  %v893_v37 = vadd.f32 %v1392_v27, %v892_v50 }
 0x33e   :  { %v1396_v44 = vpop.eup %1395  ;;  %v855_v52 = vadd.f32 1.0, %v1394_v55 }
 0x33f   :  { %1397 = vpow2.f32 %v1295_v56  ;;  %986 = vperm.xlu1 %1360, %v887_v33   ;;  %v897_v59 = vsel %vm896_vm4, %v1392_v27, %v893_v37  ;;  %v905_v60 = vmul.f32 %v1396_v44, %v854_v28  ;;  %vm910_vm6 = vweird.f32 %v1396_v44 }
 0x340   :  { %1399 = vrcp.f32 %v855_v52  ;;  %v902_v61 = vsel %vm899_vm5, %v901_v58, %v897_v59  ;;  %vm911_vm8 = vmor %vm909_vm7, %vm910_vm6  ;;  %v930_v10 = vand.u32 2147483648, %v855_v52  ;;  %v928_v36 = vand.u32 2147483647, %v855_v52 }
 0x341   :  { %1364 = vset.pattern.permute.xlu2 %v1407_v2  ;;  %v906_v41 = vsub.f32 1.0, %v905_v60  ;;  %vm924_vm11 = vweird.f32 %v855_v52  ;;  %vm1075_vm7 = vcmask 1048064  }
 0x342   :  { %991 = vperm.xlu2 %1364, %v902_v61   ;;  %1366 = vset.pattern.permute.xlu0 %v1407_v2  ;;  %v931_v14 = vor.u32 1.1754944e-38, %v930_v10  ;;  %vm929_vm13 = vcmp.eq.f32.partialorder %v928_v36, 8.507059e+37 }
 0x343   :  { %v907_v49 = vmul.f32 %v1396_v44, %v906_v41 }
 0x344   :  { %v821_v0 = vpop.f32.mrf.mxu1 }
 0x345   :  { %v1398_v1 = vpop.eup %1397  ;;  %v1296_v3 = vmul.f32 -1.442695, %v821_v0  ;;  %v908_v39 = vadd.f32 %v1396_v44, %v907_v49 }
 0x346   :  { %v1400_v40 = vpop.eup %1399  ;;  %v856_v51 = vadd.f32 1.0, %v1398_v1 }
 0x347   :  { %1401 = vpow2.f32 %v1296_v3  ;;  %1365 = vset.pattern.permute.xlu1 %v1410_v48  ;;  %v912_v7 = vsel %vm911_vm8, %v1396_v44, %v908_v39  ;;  %v920_v8 = vmul.f32 %v1400_v40, %v855_v52  ;;  %vm925_vm10 = vweird.f32 %v1400_v40 }
 0x348   :  { %1403 = vrcp.f32 %v856_v51  ;;  %1044 = vperm.xlu1 %1365, %v902_v61   ;;  %v917_v34 = vsel %vm914_vm9, %v916_v5, %v912_v7  ;;  %vm926_vm12 = vmor %vm924_vm11, %vm925_vm10  ;;  %v945_v20 = vand.u32 2147483648, %v856_v51  ;;  %v943_v22 = vand.u32 2147483647, %v856_v51 }
 0x349   :  { %996 = vperm.xlu0 %1366, %v917_v34   ;;  %v921_v35 = vsub.f32 1.0, %v920_v8  ;;  %vm939_vm15 = vweird.f32 %v856_v51 }
 0x34a   :  { %1367 = vset.pattern.permute.xlu2 %v1410_v48  ;;  %v946_v25 = vor.u32 1.1754944e-38, %v945_v20  ;;  %vm944_vm2 = vcmp.eq.f32.partialorder %v943_v22, 8.507059e+37 }
 0x34b   :  { %1048 = vperm.xlu2 %1367, %v917_v34   ;;  %v922_v45 = vmul.f32 %v1400_v40, %v921_v35 }
 0x34d   :  { %v1402_v11 = vpop.eup %1401  ;;  %v923_v38 = vadd.f32 %v1400_v40, %v922_v45 }
 0x34e   :  { %v1404_v12 = vpop.eup %1403  ;;  %v857_v13 = vadd.f32 1.0, %v1402_v11 }
 0x34f   :  { %v927_v15 = vsel %vm926_vm12, %v1400_v40, %v923_v38  ;;  %v935_v17 = vmul.f32 %v1404_v12, %v856_v51  ;;  %vm940_vm14 = vweird.f32 %v1404_v12 }
 0x350   :  { %1405 = vrcp.f32 %v857_v13  ;;  %1368 = vset.pattern.permute.xlu1 %v1407_v2  ;;  %v932_v18 = vsel %vm929_vm13, %v931_v14, %v927_v15  ;;  %vm941_vm1 = vmor %vm939_vm15, %vm940_vm14  ;;  %v960_v31 = vand.u32 2147483648, %v857_v13  ;;  %vm954_vm3 = vweird.f32 %v857_v13 }
 0x351   :  { %1001 = vperm.xlu1 %1368, %v932_v18   ;;  %v936_v19 = vsub.f32 1.0, %v935_v17  ;;  %v958_v33 = vand.u32 2147483647, %v857_v13 }
 0x353   :  { %v937_v21 = vmul.f32 %v1404_v12, %v936_v19  ;;  %1370 = vset.pattern.permute.xlu2 %v1407_v2  ;;  %v961_v2 = vor.u32 1.1754944e-38, %v960_v31  ;;  %vm959_vm6 = vcmp.eq.f32.partialorder %v958_v33, 8.507059e+37 }
 0x355   :  { %v938_v23 = vadd.f32 %v1404_v12, %v937_v21 }
 0x356   :  { %v1406_v24 = vpop.eup %1405 }
 0x357   :  { %v942_v27 = vsel %vm941_vm1, %v1404_v12, %v938_v23  ;;  %v950_v28 = vmul.f32 %v1406_v24, %v857_v13  ;;  %vm955_vm4 = vweird.f32 %v1406_v24 }
 0x358   :  { %v947_v30 = vsel %vm944_vm2, %v946_v25, %v942_v27  ;;  %vm956_vm5 = vmor %vm954_vm3, %vm955_vm4 }
 0x359   :  { %1369 = vset.pattern.permute.xlu1 %v1410_v48  ;;  %1006 = vperm.xlu0 %1366, %v947_v30   ;;  %v951_v32 = vsub.f32 1.0, %v950_v28 }
 0x35a   :  { %1052 = vperm.xlu1 %1369, %v932_v18  }
 0x35b   :  { %v952_v43 = vmul.f32 %v1406_v24, %v951_v32 }
 0x35d   :  { %v953_v46 = vadd.f32 %v1406_v24, %v952_v43 }
 0x35f   :  { %v957_v50 = vsel %vm956_vm5, %v1406_v24, %v953_v46 }
 0x360   :  { %v962_v53 = vsel %vm959_vm6, %v961_v2, %v957_v50 }
 0x361   :  { %1371 = vset.pattern.permute.xlu0 %v1410_v48  ;;  %1011 = vperm.xlu2 %1370, %v962_v53  }
 0x362   :  { %1064 = vperm.xlu1 %1369, %v1823_v29   ;;  %1056 = vperm.xlu0 %1371, %v947_v30  }
 0x369   :  { %1372 = vset.pattern.permute.xlu2 %v1410_v48 }
 0x36a   :  { %1060 = vperm.xlu2 %1372, %v962_v53  }
 0x393   :  { %v1041_v54 = vpop.permute.xlu2 %1040 }
 0x394   :  { %v1068_v61 = vmul.f32 %v1041_v54, %v1713_v16 }
 0x39c   :  { %v992_v55 = vpop.permute.xlu2 %991 }
 0x39d   :  { %v1021_v56 = vmul.f32 %v992_v55, %v1717_v26 }
 0x39f   :  { %1029 = vst.msk [vmem:[%s1927_s6 + $0x10] sm:$0xff] %vm611_vm0, %v1021_v56 }
 0x3a3   :  { %v982_v37 = vpop.permute.xlu0 %981 }
 0x3a4   :  { %v1019_v44 = vmul.f32 %v982_v37, %v1709_v6 }
 0x3a5   :  { %v1049_v41 = vpop.permute.xlu2 %1048 }
 0x3a6   :  { %1027 = vst.msk [vmem:[%s1927_s6] sm:$0xff] %vm611_vm0, %v1019_v44  ;;  %v1070_v1 = vmul.f32 %v1049_v41, %v1721_v47 }
 0x3a9   :  { %v1017_v29 = vpop.permute.xlu1 %1016 }
 0x3aa   :  { %v1026_v48 = vmul.f32 %v1017_v29, %v1740_v4 }
 0x3ac   :  { %1034 = vst.msk [vmem:[%s1927_s6 + $0x38] sm:$0xff] %vm611_vm0, %v1026_v48  ;;  %v1037_v52 = vpop.permute.xlu0 %1036 }
 0x3ad   :  { %v1067_v58 = vmul.f32 %v1037_v52, %v1709_v6 }
 0x3af   :  { %1076 = vst.msk [vmem:[%s1927_s6] sm:$0xff] %vm1075_vm7, %v1067_v58 }
 0x3b1   :  { %v987_v59 = vpop.permute.xlu1 %986 }
 0x3b2   :  { %v1020_v60 = vmul.f32 %v987_v59, %v1713_v16 }
 0x3b4   :  { %1028 = vst.msk [vmem:[%s1927_s6 + $0x8] sm:$0xff] %vm611_vm0, %v1020_v60 }
 0x3b5   :  { %1077 = vst.msk [vmem:[%s1927_s6 + $0x8] sm:$0xff] %vm1075_vm7, %v1068_v61 }
 0x3ba   :  { %v1045_v6 = vpop.permute.xlu1 %1044 }
 0x3bb   :  { %v1069_v42 = vmul.f32 %v1045_v6, %v1717_v26  ;;  %v997_v49 = vpop.permute.xlu0 %996  ;;  %v1012_v63 = vpop.permute.xlu2 %1011 }
 0x3bc   :  { %v1022_v0 = vmul.f32 %v997_v49, %v1721_v47  ;;  %v1025_v16 = vmul.f32 %v1012_v63, %v1751_v9 }
 0x3bd   :  { %1078 = vst.msk [vmem:[%s1927_s6 + $0x10] sm:$0xff] %vm1075_vm7, %v1069_v42 }
 0x3be   :  { %1030 = vst.msk [vmem:[%s1927_s6 + $0x18] sm:$0xff] %vm611_vm0, %v1022_v0 }
 0x3bf   :  { %1079 = vst.msk [vmem:[%s1927_s6 + $0x18] sm:$0xff] %vm1075_vm7, %v1070_v1 }
 0x3c0   :  { %1033 = vst.msk [vmem:[%s1927_s6 + $0x30] sm:$0xff] %vm611_vm0, %v1025_v16 }
 0x3c3   :  { %v1002_v26 = vpop.permute.xlu1 %1001 }
 0x3c4   :  { %v1023_v47 = vmul.f32 %v1002_v26, %v1727_v57  ;;  %v1061_v3 = vpop.permute.xlu2 %1060 }
 0x3c5   :  { %v1073_v39 = vmul.f32 %v1061_v3, %v1751_v9 }
 0x3c6   :  { %1031 = vst.msk [vmem:[%s1927_s6 + $0x20] sm:$0xff] %vm611_vm0, %v1023_v47 }
 0x3c7   :  { %1082 = vst.msk [vmem:[%s1927_s6 + $0x30] sm:$0xff] %vm1075_vm7, %v1073_v39 }
 0x3cb   :  { %v1007_v40 = vpop.permute.xlu0 %1006 }
 0x3cc   :  { %v1024_v51 = vmul.f32 %v1007_v40, %v1733_v62  ;;  %v1053_v5 = vpop.permute.xlu1 %1052 }
 0x3cd   :  { %v1071_v7 = vmul.f32 %v1053_v5, %v1727_v57 }
 0x3ce   :  { %1032 = vst.msk [vmem:[%s1927_s6 + $0x28] sm:$0xff] %vm611_vm0, %v1024_v51 }
 0x3cf   :  { %1080 = vst.msk [vmem:[%s1927_s6 + $0x20] sm:$0xff] %vm1075_vm7, %v1071_v7 }
 0x3d4   :  { %v1065_v9 = vpop.permute.xlu1 %1064  ;;  %v1057_v8 = vpop.permute.xlu0 %1056 }
 0x3d5   :  { %v1074_v34 = vmul.f32 %v1065_v9, %v1740_v4  ;;  %v1072_v35 = vmul.f32 %v1057_v8, %v1733_v62 }
 0x3d7   :  { %1083 = vst.msk [vmem:[%s1927_s6 + $0x38] sm:$0xff] %vm1075_vm7, %v1074_v34 }
 0x3d8   :  { %1081 = vst.msk [vmem:[%s1927_s6 + $0x28] sm:$0xff] %vm1075_vm7, %v1072_v35 }

// kernel: variational_se_encoder.9
= control target key start
LH: loop header
LB: loop body
LE: loop exit
PB: predicated region body
PF: predicated region fallthrough
CT: control target
= control target key end

     0   :  { %vm826_vm1 = vcmask 1040384   ;;  %vm866_vm2 = vcmask 64512   ;;  %s1744_s1 = inlined_call_operand.vmem [shape: bf16[1024,128], index: 1, kind: input, shape index: {}]   ;;  %s1745_s0 = inlined_call_operand.vmem [shape: bf16[32,1024], index: 0, kind: input, shape index: {}]   ;;  %s1746_s2 = inlined_call_operand.vmem [shape: f32[1,128], index: 2, kind: input, shape index: {}]   ;;  %s1747_s3 = inlined_call_operand.vmem [shape: f32[1,128], index: 3, kind: input, shape index: {}]   ;;  %s1748_s4 = inlined_call_operand.vmem [shape: f32[128,8], index: 4, kind: input, shape index: {}]   ;;  %s1749_s5 = inlined_call_operand.vmem [shape: f32[8,128], index: 5, kind: input, shape index: {}]   ;;  %s1750_s6 = inlined_call_operand.vmem [shape: f32[32,128], index: 6, kind: output, shape index: {}]  }
   0x1   :  { %v1268_v0 = vld [vmem:[%s1744_s1 + $0x38] sm:$0xff]  ;;  %v1267_v4 = vld [vmem:[%s1744_s1 + $0x30] sm:$0xff]  ;;  %v1266_v8 = vld [vmem:[%s1744_s1 + $0x28] sm:$0xff] }
   0x2   :  { %v1276_v1 = vld [vmem:[%s1744_s1 + $0x78] sm:$0xff]  ;;  %631 = vmatpush.bf16.msra.mxu0 %v1268_v0  ;;  %v1275_v5 = vld [vmem:[%s1744_s1 + $0x70] sm:$0xff]  ;;  %v1274_v9 = vld [vmem:[%s1744_s1 + $0x68] sm:$0xff] }
   0x3   :  { %v1284_v2 = vld [vmem:[%s1744_s1 + $0xb8] sm:$0xff]  ;;  %650 = vmatpush.bf16.msra.mxu1 %v1276_v1  ;;  %v1283_v6 = vld [vmem:[%s1744_s1 + $0xb0] sm:$0xff]  ;;  %v1282_v10 = vld [vmem:[%s1744_s1 + $0xa8] sm:$0xff] }
   0x4   :  { %v1292_v3 = vld [vmem:[%s1744_s1 + $0xf8] sm:$0xff]  ;;  %669 = vmatpush.bf16.msra.mxu2 %v1284_v2  ;;  %v1291_v7 = vld [vmem:[%s1744_s1 + $0xf0] sm:$0xff]  ;;  %v1290_v11 = vld [vmem:[%s1744_s1 + $0xe8] sm:$0xff] }
   0x5   :  { %688 = vmatpush.bf16.msra.mxu3 %v1292_v3  ;;  %v1265_v12 = vld [vmem:[%s1744_s1 + $0x20] sm:$0xff]  ;;  %v1264_v16 = vld [vmem:[%s1744_s1 + $0x18] sm:$0xff]  ;;  %v1263_v20 = vld [vmem:[%s1744_s1 + $0x10] sm:$0xff] }
   0x6   :  { %632 = vmatpush.bf16.msra.mxu0 %v1267_v4  ;;  %v1273_v13 = vld [vmem:[%s1744_s1 + $0x60] sm:$0xff]  ;;  %v1272_v17 = vld [vmem:[%s1744_s1 + $0x58] sm:$0xff]  ;;  %v1271_v21 = vld [vmem:[%s1744_s1 + $0x50] sm:$0xff] }
   0x7   :  { %651 = vmatpush.bf16.msra.mxu1 %v1275_v5  ;;  %v1281_v14 = vld [vmem:[%s1744_s1 + $0xa0] sm:$0xff]  ;;  %v1280_v18 = vld [vmem:[%s1744_s1 + $0x98] sm:$0xff]  ;;  %v1279_v22 = vld [vmem:[%s1744_s1 + $0x90] sm:$0xff] }
   0x8   :  { %670 = vmatpush.bf16.msra.mxu2 %v1283_v6  ;;  %v1289_v15 = vld [vmem:[%s1744_s1 + $0xe0] sm:$0xff]  ;;  %v1288_v19 = vld [vmem:[%s1744_s1 + $0xd8] sm:$0xff]  ;;  %v1287_v23 = vld [vmem:[%s1744_s1 + $0xd0] sm:$0xff] }
   0x9   :  { %689 = vmatpush.bf16.msra.mxu3 %v1291_v7  ;;  %v1262_v24 = vld [vmem:[%s1744_s1 + $0x8] sm:$0xff]  ;;  %v1261_v28 = vld [vmem:[%s1744_s1] sm:$0xff]  ;;  %v1316_v40 = vld [vmem:[%s1744_s1 + $0x1b8] sm:$0xff] }
   0xa   :  { %633 = vmatpush.bf16.msra.mxu0 %v1266_v8  ;;  %v1270_v25 = vld [vmem:[%s1744_s1 + $0x48] sm:$0xff]  ;;  %v1269_v29 = vld [vmem:[%s1744_s1 + $0x40] sm:$0xff]  ;;  %v1300_v41 = vld [vmem:[%s1744_s1 + $0x138] sm:$0xff] }
   0xb   :  { %652 = vmatpush.bf16.msra.mxu1 %v1274_v9  ;;  %v1278_v26 = vld [vmem:[%s1744_s1 + $0x88] sm:$0xff]  ;;  %v1277_v30 = vld [vmem:[%s1744_s1 + $0x80] sm:$0xff]  ;;  %v1308_v46 = vld [vmem:[%s1744_s1 + $0x178] sm:$0xff] }
   0xc   :  { %671 = vmatpush.bf16.msra.mxu2 %v1282_v10  ;;  %v1286_v27 = vld [vmem:[%s1744_s1 + $0xc8] sm:$0xff]  ;;  %v1285_v31 = vld [vmem:[%s1744_s1 + $0xc0] sm:$0xff]  ;;  %v1324_v47 = vld [vmem:[%s1744_s1 + $0x1f8] sm:$0xff] }
   0xd   :  { %690 = vmatpush.bf16.msra.mxu3 %v1290_v11  ;;  %v925_v32 = vld [vmem:[%s1745_s0] sm:$0xf]  ;;  %v1245_v34 = vld [vmem:[%s1745_s0 + $0x4] sm:$0xf]  ;;  %v933_v36 = vld [vmem:[%s1745_s0 + $0x8] sm:$0xf] }
   0xe   :  { %634 = vmatpush.bf16.msra.mxu0 %v1265_v12  ;;  %v1249_v33 = vld [vmem:[%s1745_s0 + $0x1c] sm:$0xf0]  ;;  %v927_v35 = vld [vmem:[%s1745_s0 + $0x20] sm:$0xf0]  ;;  %v1250_v37 = vld [vmem:[%s1745_s0 + $0x24] sm:$0xf0] }
   0xf   :  { %653 = vmatpush.bf16.msra.mxu1 %v1273_v13  ;;  %v1246_v38 = vld [vmem:[%s1745_s0 + $0xc] sm:$0xf]  ;;  %v926_v42 = vor.u32 %v1249_v33, %v925_v32  ;;  %v930_v43 = vor.u32 %v1245_v34, %v927_v35  ;;  %v934_v44 = vor.u32 %v1250_v37, %v933_v36  ;;  %v1315_v48 = vld [vmem:[%s1744_s1 + $0x1b0] sm:$0xff]  ;;  %v1313_v56 = vld [vmem:[%s1744_s1 + $0x1a0] sm:$0xff] }
  0x10   :  { %672 = vmatpush.bf16.msra.mxu2 %v1281_v14  ;;  %v935_v39 = vld [vmem:[%s1745_s0 + $0x28] sm:$0xf0]  ;;  %v1299_v49 = vld [vmem:[%s1744_s1 + $0x130] sm:$0xff]  ;;  %v1297_v57 = vld [vmem:[%s1744_s1 + $0x120] sm:$0xff] }
  0x11   :  { %691 = vmatpush.bf16.msra.mxu3 %v1289_v15  ;;  %v938_v45 = vor.u32 %v1246_v38, %v935_v39  ;;  %v1307_v50 = vld [vmem:[%s1744_s1 + $0x170] sm:$0xff]  ;;  %v1314_v52 = vld [vmem:[%s1744_s1 + $0x1a8] sm:$0xff]  ;;  %v1305_v58 = vld [vmem:[%s1744_s1 + $0x160] sm:$0xff] }
  0x12   :  { %635 = vmatpush.bf16.msra.mxu0 %v1264_v16  ;;  %v1323_v51 = vld [vmem:[%s1744_s1 + $0x1f0] sm:$0xff]  ;;  %v1298_v53 = vld [vmem:[%s1744_s1 + $0x128] sm:$0xff]  ;;  %v1321_v59 = vld [vmem:[%s1744_s1 + $0x1e0] sm:$0xff] }
  0x13   :  { %654 = vmatpush.bf16.msra.mxu1 %v1272_v17  ;;  %v1306_v54 = vld [vmem:[%s1744_s1 + $0x168] sm:$0xff]  ;;  %v957_v60 = vld [vmem:[%s1745_s0 + $0x40] sm:$0xf]  ;;  %v1253_v62 = vld [vmem:[%s1745_s0 + $0x44] sm:$0xf] }
  0x14   :  { %673 = vmatpush.bf16.msra.mxu2 %v1280_v18  ;;  %v1322_v55 = vld [vmem:[%s1744_s1 + $0x1e8] sm:$0xff]  ;;  %v1257_v61 = vld [vmem:[%s1745_s0 + $0x5c] sm:$0xf0]  ;;  %v959_v63 = vld [vmem:[%s1745_s0 + $0x60] sm:$0xf0] }
  0x15   :  { %692 = vmatpush.bf16.msra.mxu3 %v1288_v19  ;;  %v965_v0 = vld [vmem:[%s1745_s0 + $0x48] sm:$0xf]  ;;  %v1254_v2 = vld [vmem:[%s1745_s0 + $0x4c] sm:$0xf]  ;;  %v1312_v4 = vld [vmem:[%s1744_s1 + $0x198] sm:$0xff]  ;;  %v958_v6 = vor.u32 %v1257_v61, %v957_v60  ;;  %v962_v7 = vor.u32 %v1253_v62, %v959_v63 }
  0x16   :  { %636 = vmatpush.bf16.msra.mxu0 %v1263_v20  ;;  %v1258_v1 = vld [vmem:[%s1745_s0 + $0x64] sm:$0xf0]  ;;  %v967_v3 = vld [vmem:[%s1745_s0 + $0x68] sm:$0xf0]  ;;  %v1296_v5 = vld [vmem:[%s1744_s1 + $0x118] sm:$0xff] }
  0x17   :  { %655 = vmatpush.bf16.msra.mxu1 %v1271_v21  ;;  %v966_v8 = vor.u32 %v1258_v1, %v965_v0  ;;  %v970_v9 = vor.u32 %v1254_v2, %v967_v3  ;;  %v1304_v10 = vld [vmem:[%s1744_s1 + $0x158] sm:$0xff]  ;;  %v1311_v12 = vld [vmem:[%s1744_s1 + $0x190] sm:$0xff]  ;;  %v1310_v16 = vld [vmem:[%s1744_s1 + $0x188] sm:$0xff] }
  0x18   :  { %674 = vmatpush.bf16.msra.mxu2 %v1279_v22  ;;  %v1320_v11 = vld [vmem:[%s1744_s1 + $0x1d8] sm:$0xff]  ;;  %v1295_v13 = vld [vmem:[%s1744_s1 + $0x110] sm:$0xff]  ;;  %v1294_v17 = vld [vmem:[%s1744_s1 + $0x108] sm:$0xff] }
  0x19   :  { %693 = vmatpush.bf16.msra.mxu3 %v1287_v23  ;;  %v1303_v14 = vld [vmem:[%s1744_s1 + $0x150] sm:$0xff]  ;;  %v1302_v18 = vld [vmem:[%s1744_s1 + $0x148] sm:$0xff]  ;;  %v1309_v20 = vld [vmem:[%s1744_s1 + $0x180] sm:$0xff] }
  0x1a   :  { %637 = vmatpush.bf16.msra.mxu0 %v1262_v24  ;;  %v1319_v15 = vld [vmem:[%s1744_s1 + $0x1d0] sm:$0xff]  ;;  %v1318_v19 = vld [vmem:[%s1744_s1 + $0x1c8] sm:$0xff]  ;;  %v1293_v21 = vld [vmem:[%s1744_s1 + $0x100] sm:$0xff] }
  0x1b   :  { %656 = vmatpush.bf16.msra.mxu1 %v1270_v25  ;;  %v1301_v22 = vld [vmem:[%s1744_s1 + $0x140] sm:$0xff]  ;;  %v941_v24 = vld [vmem:[%s1745_s0 + $0x10] sm:$0xf]  ;;  %v1255_v38 = vld [vmem:[%s1745_s0 + $0x54] sm:$0xf] }
  0x1c   :  { %675 = vmatpush.bf16.msra.mxu2 %v1278_v26  ;;  %v1317_v23 = vld [vmem:[%s1744_s1 + $0x1c0] sm:$0xff]  ;;  %v1251_v25 = vld [vmem:[%s1745_s0 + $0x2c] sm:$0xf0]  ;;  %v1247_v26 = vld [vmem:[%s1745_s0 + $0x14] sm:$0xf] }
  0x1d   :  { %694 = vmatpush.bf16.msra.mxu3 %v1286_v27  ;;  %v943_v27 = vld [vmem:[%s1745_s0 + $0x30] sm:$0xf0]  ;;  %v942_v32 = vor.u32 %v1251_v25, %v941_v24  ;;  %v973_v36 = vld [vmem:[%s1745_s0 + $0x50] sm:$0xf]  ;;  %v843_v63 = vld [vmem:[%s1748_s4 + $0x78] sm:$0xff] }
  0x1e   :  { %638 = vmatpush.bf16.msra.mxu0 %v1261_v28  ;;  %v949_v28 = vld [vmem:[%s1745_s0 + $0x18] sm:$0xf]  ;;  %v946_v33 = vor.u32 %v1247_v26, %v943_v27  ;;  %v1259_v37 = vld [vmem:[%s1745_s0 + $0x6c] sm:$0xf0]  ;;  %v975_v39 = vld [vmem:[%s1745_s0 + $0x70] sm:$0xf0] }
  0x1f   :  { %657 = vmatpush.bf16.msra.mxu1 %v1269_v29  ;;  %v1252_v29 = vld [vmem:[%s1745_s0 + $0x34] sm:$0xf0]  ;;  %v842_v1 = vld [vmem:[%s1748_s4 + $0x70] sm:$0xff]  ;;  %v836_v24 = vld [vmem:[%s1748_s4 + $0x40] sm:$0xff] }
  0x20   :  { %676 = vmatpush.bf16.msra.mxu2 %v1277_v30  ;;  %v1248_v30 = vld [vmem:[%s1745_s0 + $0x1c] sm:$0xf]  ;;  %v950_v34 = vor.u32 %v1252_v29, %v949_v28  ;;  %v1326_v28 = vld [vmem:[%s1746_s2] ss:$0 sm:$0xff] }
  0x21   :  { %695 = vmatpush.bf16.msra.mxu3 %v1285_v31  ;;  %639 = vmatmul.bf16.vlgmr.msra.gmra.mxu0 %v926_v42  ;;  %v951_v31 = vld [vmem:[%s1745_s0 + $0x38] sm:$0xf0] }
  0x22   :  { %707 = vmatpush.bf16.msrb.mxu0 %v1300_v41  ;;  %658 = vmatmul.bf16.vlgmr.msra.gmra.mxu1 %v930_v43  ;;  %v954_v35 = vor.u32 %v1248_v30, %v951_v31  ;;  %v1260_v41 = vld [vmem:[%s1745_s0 + $0x74] sm:$0xf0]  ;;  %v1256_v42 = vld [vmem:[%s1745_s0 + $0x5c] sm:$0xf]  ;;  %v834_v30 = vld [vmem:[%s1748_s4 + $0x30] sm:$0xff] }
  0x23   :  { %677 = vmatmul.bf16.vlgmr.msra.gmra.mxu2 %v934_v44  ;;  %726 = vmatpush.bf16.msrb.mxu1 %v1308_v46  ;;  %v983_v43 = vld [vmem:[%s1745_s0 + $0x78] sm:$0xf0]  ;;  %v974_v44 = vor.u32 %v1259_v37, %v973_v36  ;;  %v833_v36 = vld [vmem:[%s1748_s4 + $0x28] sm:$0xff] }
  0x24   :  { %745 = vmatpush.bf16.msrb.mxu2 %v1316_v40  ;;  %696 = vmatmul.bf16.vlgmr.msra.gmra.mxu3 %v938_v45  ;;  %v981_v40 = vld [vmem:[%s1745_s0 + $0x58] sm:$0xf]  ;;  %v978_v45 = vor.u32 %v1255_v38, %v975_v39  ;;  %v1327_v39 = vld [vmem:[%s1747_s3] ss:$0 sm:$0xff] }
  0x25   :  { %764 = vmatpush.bf16.msrb.mxu3 %v1324_v47  ;;  %v982_v46 = vor.u32 %v1260_v41, %v981_v40  ;;  %v986_v47 = vor.u32 %v1256_v42, %v983_v43  ;;  %v835_v26 = vld [vmem:[%s1748_s4 + $0x38] sm:$0xff]  ;;  %v832_v42 = vld [vmem:[%s1748_s4 + $0x20] sm:$0xff] }
  0x26   :  { %708 = vmatpush.bf16.msrb.mxu0 %v1299_v49  ;;  %v831_v43 = vld [vmem:[%s1748_s4 + $0x18] sm:$0xff] }
  0x27   :  { %727 = vmatpush.bf16.msrb.mxu1 %v1307_v50 }
  0x28   :  { %746 = vmatpush.bf16.msrb.mxu2 %v1315_v48 }
  0x29   :  { %765 = vmatpush.bf16.msrb.mxu3 %v1323_v51 }
  0x2a   :  { %709 = vmatpush.bf16.msrb.mxu0 %v1298_v53 }
  0x2b   :  { %728 = vmatpush.bf16.msrb.mxu1 %v1306_v54 }
  0x2c   :  { %747 = vmatpush.bf16.msrb.mxu2 %v1314_v52 }
  0x2d   :  { %766 = vmatpush.bf16.msrb.mxu3 %v1322_v55 }
  0x2e   :  { %710 = vmatpush.bf16.msrb.mxu0 %v1297_v57 }
  0x2f   :  { %729 = vmatpush.bf16.msrb.mxu1 %v1305_v58 }
  0x30   :  { %748 = vmatpush.bf16.msrb.mxu2 %v1313_v56 }
  0x31   :  { %767 = vmatpush.bf16.msrb.mxu3 %v1321_v59  ;;  %644 = vmatmul.bf16.gmra.mxu0 %v958_v6 }
  0x32   :  { %711 = vmatpush.bf16.msrb.mxu0 %v1296_v5  ;;  %663 = vmatmul.bf16.gmra.mxu1 %v962_v7  ;;  %v841_v5 = vld [vmem:[%s1748_s4 + $0x68] sm:$0xff] }
  0x33   :  { %682 = vmatmul.bf16.gmra.mxu2 %v966_v8  ;;  %730 = vmatpush.bf16.msrb.mxu1 %v1304_v10 }
  0x34   :  { %749 = vmatpush.bf16.msrb.mxu2 %v1312_v4  ;;  %701 = vmatmul.bf16.gmra.mxu3 %v970_v9  ;;  %v840_v9 = vld [vmem:[%s1748_s4 + $0x60] sm:$0xff] }
  0x35   :  { %768 = vmatpush.bf16.msrb.mxu3 %v1320_v11 }
  0x36   :  { %712 = vmatpush.bf16.msrb.mxu0 %v1295_v13  ;;  %v838_v13 = vld [vmem:[%s1748_s4 + $0x50] sm:$0xff] }
  0x37   :  { %731 = vmatpush.bf16.msrb.mxu1 %v1303_v14 }
  0x38   :  { %750 = vmatpush.bf16.msrb.mxu2 %v1311_v12  ;;  %v839_v12 = vld [vmem:[%s1748_s4 + $0x58] sm:$0xff] }
  0x39   :  { %769 = vmatpush.bf16.msrb.mxu3 %v1319_v15 }
  0x3a   :  { %713 = vmatpush.bf16.msrb.mxu0 %v1294_v17 }
  0x3b   :  { %732 = vmatpush.bf16.msrb.mxu1 %v1302_v18 }
  0x3c   :  { %751 = vmatpush.bf16.msrb.mxu2 %v1310_v16 }
  0x3d   :  { %770 = vmatpush.bf16.msrb.mxu3 %v1318_v19  ;;  %v837_v19 = vld [vmem:[%s1748_s4 + $0x48] sm:$0xff] }
  0x3e   :  { %714 = vmatpush.bf16.msrb.mxu0 %v1293_v21 }
  0x3f   :  { %733 = vmatpush.bf16.msrb.mxu1 %v1301_v22 }
  0x40   :  { %752 = vmatpush.bf16.msrb.mxu2 %v1309_v20 }
  0x41   :  { %771 = vmatpush.bf16.msrb.mxu3 %v1317_v23  ;;  %715 = vmatmul.bf16.vlgmr.msrb.gmra.mxu0 %v942_v32 }
  0x42   :  { %734 = vmatmul.bf16.vlgmr.msrb.gmra.mxu1 %v946_v33  ;;  %844 = vmatpush.msra.mxu0 %v843_v63 }
  0x43   :  { %753 = vmatmul.bf16.vlgmr.msrb.gmra.mxu2 %v950_v34 }
  0x44   :  { %772 = vmatmul.bf16.vlgmr.msrb.gmra.mxu3 %v954_v35  ;;  %845 = vmatpush.msra.mxu0 %v842_v1 }
  0x46   :  { %846 = vmatpush.msra.mxu0 %v841_v5 }
  0x48   :  { %847 = vmatpush.msra.mxu0 %v840_v9 }
  0x4a   :  { %848 = vmatpush.msra.mxu0 %v839_v12 }
  0x4c   :  { %849 = vmatpush.msra.mxu0 %v838_v13 }
  0x4e   :  { %850 = vmatpush.msra.mxu0 %v837_v19 }
  0x50   :  { %851 = vmatpush.msra.mxu0 %v836_v24 }
  0x51   :  { %720 = vmatmul.bf16.gmra.mxu0 %v974_v44 }
  0x52   :  { %739 = vmatmul.bf16.gmra.mxu1 %v978_v45  ;;  %852 = vmatpush.msra.mxu0 %v835_v26 }
  0x53   :  { %758 = vmatmul.bf16.gmra.mxu2 %v982_v46 }
  0x54   :  { %777 = vmatmul.bf16.gmra.mxu3 %v986_v47  ;;  %853 = vmatpush.msra.mxu0 %v834_v30  ;;  %v830_v47 = vld [vmem:[%s1748_s4 + $0x10] sm:$0xff] }
  0x56   :  { %854 = vmatpush.msra.mxu0 %v833_v36 }
  0x58   :  { %855 = vmatpush.msra.mxu0 %v832_v42 }
  0x5a   :  { %856 = vmatpush.msra.mxu0 %v831_v43 }
  0x5c   :  { %857 = vmatpush.msra.mxu0 %v830_v47 }
  0x9e   :  { %v640_v48 = vpop.f32.mrf.mxu0 }
  0x9f   :  { %v659_v49 = vpop.f32.mrf.mxu1 }
  0xa0   :  { %v660_v62 = vadd.f32 %v659_v49, %v640_v48 }
  0xa6   :  { %v678_v50 = vpop.f32.mrf.mxu2  ;;  %v642_v52 = vpop.f32.mrf.mxu0 }
  0xa7   :  { %v697_v51 = vpop.f32.mrf.mxu3  ;;  %v661_v53 = vpop.f32.mrf.mxu1  ;;  %v679_v0 = vadd.f32 %v678_v50, %v660_v62 }
  0xa8   :  { %v662_v8 = vadd.f32 %v661_v53, %v642_v52 }
  0xa9   :  { %v698_v7 = vadd.f32 %v697_v51, %v679_v0  ;;  %v829_v51 = vld [vmem:[%s1748_s4 + $0x8] sm:$0xff]  ;;  %v1334_v0 = vmov 16.0  }
  0xaa   :  { %858 = vmatpush.msra.mxu0 %v829_v51  ;;  %1328 = vrcp.f32 %v1334_v0 }
  0xae   :  { %v680_v54 = vpop.f32.mrf.mxu2  ;;  %v645_v56 = vpop.f32.mrf.mxu0 }
  0xaf   :  { %v699_v55 = vpop.f32.mrf.mxu3  ;;  %v664_v57 = vpop.f32.mrf.mxu1  ;;  %v681_v10 = vadd.f32 %v680_v54, %v662_v8 }
  0xb0   :  { %v665_v21 = vadd.f32 %v664_v57, %v645_v56  ;;  %v1329_v8 = vpop.eup %1328 }
  0xb1   :  { %v700_v15 = vadd.f32 %v699_v55, %v681_v10  ;;  %v811_v13 = vmul.f32 16.0, %v1329_v8  ;;  %vm815_vm0 = vweird.f32 %v1329_v8 }
  0xb6   :  { %v683_v58 = vpop.f32.mrf.mxu2  ;;  %v647_v60 = vpop.f32.mrf.mxu0 }
  0xb7   :  { %v702_v59 = vpop.f32.mrf.mxu3  ;;  %v666_v61 = vpop.f32.mrf.mxu1  ;;  %v684_v25 = vadd.f32 %v683_v58, %v665_v21  ;;  %v828_v58 = vld [vmem:[%s1748_s4] sm:$0xff] }
  0xb8   :  { %v667_v37 = vadd.f32 %v666_v61, %v647_v60  ;;  %859 = vmatpush.msra.mxu0 %v828_v58  ;;  %v865_v61 = vld [vmem:[%s1749_s5] sm:$0xff] }
  0xb9   :  { %v703_v32 = vadd.f32 %v702_v59, %v684_v25  ;;  %885 = vmatpush.msra.mxu1 %v865_v61 }
  0xbe   :  { %v685_v2 = vpop.f32.mrf.mxu2  ;;  %v716_v4 = vpop.f32.mrf.mxu0 }
  0xbf   :  { %v1664_v3 = vpop.f32.mrf.mxu3  ;;  %v735_v6 = vpop.f32.mrf.mxu1  ;;  %v717_v11 = vadd.f32 %v716_v4, %v698_v7  ;;  %v686_v45 = vadd.f32 %v685_v2, %v667_v37 }
  0xc1   :  { %v736_v16 = vadd.f32 %v735_v6, %v717_v11  ;;  %v705_v53 = vadd.f32 %v1664_v3, %v686_v45 }
  0xc6   :  { %v754_v14 = vpop.f32.mrf.mxu2  ;;  %v718_v18 = vpop.f32.mrf.mxu0 }
  0xc7   :  { %v773_v17 = vpop.f32.mrf.mxu3  ;;  %v737_v20 = vpop.f32.mrf.mxu1  ;;  %v755_v22 = vadd.f32 %v754_v14, %v736_v16  ;;  %v719_v23 = vadd.f32 %v718_v18, %v700_v15  ;;  %v812_v18 = vsub.f32 1.0, %v811_v13 }
  0xc9   :  { %v774_v27 = vadd.f32 %v773_v17, %v755_v22  ;;  %v738_v29 = vadd.f32 %v737_v20, %v719_v23  ;;  %v813_v22 = vmul.f32 %v1329_v8, %v812_v18 }
  0xcb   :  { %v787_v38 = vmul.f32 %v1326_v28, %v774_v27  ;;  %v814_v26 = vadd.f32 %v1329_v8, %v813_v22 }
  0xcd   :  { %v1708_v48 = vadd.f32 %v1327_v39, %v787_v38 }
  0xce   :  { %v756_v31 = vpop.f32.mrf.mxu2  ;;  %v721_v35 = vpop.f32.mrf.mxu0 }
  0xcf   :  { %v757_v33 = vadd.f32 %v756_v31, %v738_v29  ;;  %v775_v34 = vpop.f32.mrf.mxu3  ;;  %v722_v41 = vadd.f32 %v721_v35, %v703_v32  ;;  %v740_v44 = vpop.f32.mrf.mxu1  ;;  %v799_v59 = vmax.f32 %v1708_v48, 0.0  ;;  %v816_v31 = vsel %vm815_vm0, %v1329_v8, %v814_v26 }
  0xd1   :  { %v776_v40 = vadd.f32 %v775_v34, %v757_v33  ;;  %v741_v50 = vadd.f32 %v740_v44, %v722_v41 }
  0xd3   :  { %v788_v46 = vmul.f32 %v1326_v28, %v776_v40 }
  0xd5   :  { %v1710_v49 = vadd.f32 %v1327_v39, %v788_v46 }
  0xd6   :  { %v759_v52 = vpop.f32.mrf.mxu2  ;;  %v723_v57 = vpop.f32.mrf.mxu0 }
  0xd7   :  { %v800_v54 = vmax.f32 %v1710_v49, 0.0  ;;  %v760_v55 = vadd.f32 %v759_v52, %v741_v50  ;;  %v778_v56 = vpop.f32.mrf.mxu3  ;;  %v724_v60 = vadd.f32 %v723_v57, %v705_v53  ;;  %v742_v1 = vpop.f32.mrf.mxu1 }
  0xd9   :  { %v803_v62 = vadd.f32 %v800_v54, %v799_v59  ;;  %v779_v63 = vadd.f32 %v778_v56, %v760_v55  ;;  %v743_v2 = vadd.f32 %v742_v1, %v724_v60 }
  0xdb   :  { %v804_v4 = vrot.slane %v803_v62, 4  ;;  %v789_v5 = vmul.f32 %v1326_v28, %v779_v63 }
  0xdd   :  { %v805_v10 = vadd.f32 %v804_v4, %v803_v62  ;;  %v797_v11 = vadd.f32 %v1327_v39, %v789_v5 }
  0xde   :  { %v761_v3 = vpop.f32.mrf.mxu2 }
  0xdf   :  { %v762_v6 = vadd.f32 %v761_v3, %v743_v2  ;;  %v780_v7 = vpop.f32.mrf.mxu3  ;;  %v806_v15 = vrot.slane %v805_v10, 2  ;;  %v801_v16 = vmax.f32 %v797_v11, 0.0 }
  0xe1   :  { %v781_v9 = vadd.f32 %v780_v7, %v762_v6  ;;  %v807_v20 = vadd.f32 %v806_v15, %v805_v10 }
  0xe3   :  { %v790_v12 = vmul.f32 %v1326_v28, %v781_v9  ;;  %v808_v25 = vrot.slane %v807_v20, 1 }
  0xe5   :  { %v798_v14 = vadd.f32 %v1327_v39, %v790_v12  ;;  %v809_v29 = vadd.f32 %v808_v25, %v807_v20 }
  0xe7   :  { %v802_v17 = vmax.f32 %v798_v14, 0.0  ;;  %v817_v32 = vmul.f32 %v816_v31, %v809_v29 }
  0xe9   :  { %v818_v19 = vadd.f32 %v802_v17, %v801_v16 }
  0xeb   :  { %v819_v21 = vrot.slane %v818_v19, 4 }
  0xed   :  { %v820_v23 = vadd.f32 %v819_v21, %v818_v19 }
  0xef   :  { %v821_v24 = vrot.slane %v820_v23, 2 }
  0xf1   :  { %v822_v27 = vadd.f32 %v821_v24, %v820_v23 }
  0xf3   :  { %v823_v30 = vrot.slane %v822_v27, 1 }
  0xf5   :  { %v824_v28 = vadd.f32 %v823_v30, %v822_v27 }
  0xf7   :  { %v825_v33 = vmul.f32 %v824_v28, %v816_v31 }
  0xf9   :  { %v827_v34 = vsel %vm826_vm1, %v817_v32, %v825_v33 }
  0xfa   :  { %860 = vmatmul.f32.vlgmr.msra.gmra.mxu0 %v827_v34 }
 0x177   :  { %v861_v35 = vpop.f32.mrf.mxu0 }
 0x178   :  { %v864_v36 = vmax.f32 %v861_v35, 0.0 }
 0x17a   :  { %1243 = vmatmul.msk.f32.vlgmr.msra.gmra.mxu1 %vm866_vm2, %v864_v36 }
 0x1f7   :  { %v887_v37 = vpop.f32.mrf.mxu1 }
 0x1f8   :  { %v1244_v38 = vmul.f32 -1.442695, %v887_v37 }
 0x1fa   :  { %1330 = vpow2.f32 %v1244_v38 }
 0x200   :  { %v1331_v39 = vpop.eup %1330 }
 0x201   :  { %v893_v40 = vadd.f32 1.0, %v1331_v39 }
 0x203   :  { %1332 = vrcp.f32 %v893_v40  ;;  %v905_v44 = vand.u32 2147483648, %v893_v40  ;;  %v903_v46 = vand.u32 2147483647, %v893_v40  ;;  %vm899_vm4 = vweird.f32 %v893_v40 }
 0x205   :  { %v906_v50 = vor.u32 1.1754944e-38, %v905_v44  ;;  %vm904_vm6 = vcmp.eq.f32.partialorder %v903_v46, 8.507059e+37 }
 0x209   :  { %v1333_v41 = vpop.eup %1332 }
 0x20a   :  { %v895_v42 = vmul.f32 %v1333_v41, %v893_v40  ;;  %vm900_vm3 = vweird.f32 %v1333_v41 }
 0x20b   :  { %vm901_vm5 = vmor %vm899_vm4, %vm900_vm3 }
 0x20c   :  { %v896_v43 = vsub.f32 1.0, %v895_v42 }
 0x20e   :  { %v897_v45 = vmul.f32 %v1333_v41, %v896_v43 }
 0x210   :  { %v898_v47 = vadd.f32 %v1333_v41, %v897_v45 }
 0x212   :  { %v902_v51 = vsel %vm901_vm5, %v1333_v41, %v898_v47 }
 0x213   :  { %v907_v52 = vsel %vm904_vm6, %v906_v50, %v902_v51 }
 0x214   :  { %v909_v53 = vperm.slane %v907_v52, 0  ;;  %v914_v55 = vperm.slane %v907_v52, 1 }
 0x216   :  { %v910_v56 = vmul.f32 %v909_v53, %v799_v59  ;;  %v911_v57 = vmul.f32 %v909_v53, %v800_v54  ;;  %v915_v58 = vmul.f32 %v914_v55, %v801_v16  ;;  %v916_v60 = vmul.f32 %v914_v55, %v802_v17 }
 0x218   :  { %912 = vst [vmem:[%s1750_s6] sm:$0xff] %v910_v56 }
 0x219   :  { %913 = vst [vmem:[%s1750_s6 + $0x8] sm:$0xff] %v911_v57 }
 0x21a   :  { %917 = vst [vmem:[%s1750_s6 + $0x10] sm:$0xff] %v915_v58 }
 0x21b   :  { %918 = vst [vmem:[%s1750_s6 + $0x18] sm:$0xff] %v916_v60 }

// kernel: variational_se_encoder.11
= control target key start
LH: loop header
LB: loop body
LE: loop exit
PB: predicated region body
PF: predicated region fallthrough
CT: control target
= control target key end

     0   :  { %17 = vsyncpa [#allocation3], 0  ;;  %s6154_s0 = inlined_call_operand.vmem [shape: bf16[2,1024], index: 0, kind: input, shape index: {}]   ;;  %s6155_s1 = inlined_call_operand.vmem [shape: bf16[1024,512], index: 1, kind: input, shape index: {}]   ;;  %s6156_s2 = inlined_call_operand.vmem [shape: f32[1,512], index: 2, kind: input, shape index: {}]   ;;  %s6157_s3 = inlined_call_operand.vmem [shape: f32[1,512], index: 3, kind: input, shape index: {}]   ;;  %s6158_s4 = inlined_call_operand.vmem [shape: f32[512,32], index: 4, kind: input, shape index: {}]   ;;  %s6159_s5 = inlined_call_operand.vmem [shape: f32[32,512], index: 5, kind: input, shape index: {}]   ;;  %s6160_s6 = inlined_call_operand.vmem [shape: f32[512,20], index: 6, kind: input, shape index: {}]   ;;  %s6161_s7 = inlined_call_operand.vmem [shape: f32[1,10], index: 7, kind: input, shape index: {}]   ;;  %s6162_s8 = inlined_call_operand.vmem [shape: f32[2,10], index: 8, kind: input, shape index: {}]   ;;  %s6163_s9 = inlined_call_operand.hbm [shape: f32[2,10], index: 9, kind: output, shape index: {0}]   ;;  %s6164_s10 = inlined_call_operand.hbm [shape: f32[2,10], index: 10, kind: output, shape index: {1}]   ;;  %s6165_s11 = inlined_call_operand.hbm [shape: f32[2,10], index: 11, kind: output, shape index: {2}]  }
   0x1   :  { %v2696_v0 = vld [vmem:[%s6155_s1 + $0xe0] sm:$0xf]  ;;  %v3644_v1 = vld [vmem:[%s6155_s1 + $0xec] sm:$0xf0] }
   0x2   :  { %v2824_v2 = vld [vmem:[%s6155_s1 + $0x1e0] sm:$0xf]  ;;  %v2697_v3 = vor.u32 %v3644_v1, %v2696_v0  ;;  %v3676_v4 = vld [vmem:[%s6155_s1 + $0x1ec] sm:$0xf0] }
   0x3   :  { %v2952_v5 = vld [vmem:[%s6155_s1 + $0x2e0] sm:$0xf]  ;;  %v3708_v6 = vld [vmem:[%s6155_s1 + $0x2ec] sm:$0xf0]  ;;  %v2825_v7 = vor.u32 %v3676_v4, %v2824_v2 }
   0x4   :  { %v2953_v8 = vor.u32 %v3708_v6, %v2952_v5  ;;  %v3080_v9 = vld [vmem:[%s6155_s1 + $0x3e0] sm:$0xf]  ;;  %v3740_v10 = vld [vmem:[%s6155_s1 + $0x3ec] sm:$0xf0]  ;;  %1592 = vmatpush.bf16.msra.mxu0 %v2697_v3 }
   0x5   :  { %v2680_v11 = vld [vmem:[%s6155_s1 + $0xc0] sm:$0xf]  ;;  %v3081_v12 = vor.u32 %v3740_v10, %v3080_v9  ;;  %v3640_v13 = vld [vmem:[%s6155_s1 + $0xcc] sm:$0xf0]  ;;  %1605 = vmatpush.bf16.msra.mxu1 %v2825_v7 }
   0x6   :  { %v2808_v14 = vld [vmem:[%s6155_s1 + $0x1c0] sm:$0xf]  ;;  %v3672_v15 = vld [vmem:[%s6155_s1 + $0x1cc] sm:$0xf0]  ;;  %1618 = vmatpush.bf16.msra.mxu2 %v2953_v8  ;;  %v2681_v16 = vor.u32 %v3640_v13, %v2680_v11 }
   0x7   :  { %v2809_v17 = vor.u32 %v3672_v15, %v2808_v14  ;;  %v2936_v18 = vld [vmem:[%s6155_s1 + $0x2c0] sm:$0xf]  ;;  %v3704_v19 = vld [vmem:[%s6155_s1 + $0x2cc] sm:$0xf0]  ;;  %1631 = vmatpush.bf16.msra.mxu3 %v3081_v12 }
   0x8   :  { %v3064_v20 = vld [vmem:[%s6155_s1 + $0x3c0] sm:$0xf]  ;;  %v2937_v21 = vor.u32 %v3704_v19, %v2936_v18  ;;  %v3736_v22 = vld [vmem:[%s6155_s1 + $0x3cc] sm:$0xf0]  ;;  %1593 = vmatpush.bf16.msra.mxu0 %v2681_v16 }
   0x9   :  { %v2664_v23 = vld [vmem:[%s6155_s1 + $0xa0] sm:$0xf]  ;;  %v3636_v24 = vld [vmem:[%s6155_s1 + $0xac] sm:$0xf0]  ;;  %v3065_v25 = vor.u32 %v3736_v22, %v3064_v20  ;;  %1606 = vmatpush.bf16.msra.mxu1 %v2809_v17 }
   0xa   :  { %v2792_v26 = vld [vmem:[%s6155_s1 + $0x1a0] sm:$0xf]  ;;  %v3668_v27 = vld [vmem:[%s6155_s1 + $0x1ac] sm:$0xf0]  ;;  %v2665_v29 = vor.u32 %v3636_v24, %v2664_v23  ;;  %1619 = vmatpush.bf16.msra.mxu2 %v2937_v21 }
   0xb   :  { %v2920_v28 = vld [vmem:[%s6155_s1 + $0x2a0] sm:$0xf]  ;;  %v3700_v30 = vld [vmem:[%s6155_s1 + $0x2ac] sm:$0xf0]  ;;  %v2793_v33 = vor.u32 %v3668_v27, %v2792_v26  ;;  %1632 = vmatpush.bf16.msra.mxu3 %v3065_v25 }
   0xc   :  { %v3048_v31 = vld [vmem:[%s6155_s1 + $0x3a0] sm:$0xf]  ;;  %v3732_v32 = vld [vmem:[%s6155_s1 + $0x3ac] sm:$0xf0]  ;;  %v2921_v34 = vor.u32 %v3700_v30, %v2920_v28  ;;  %1594 = vmatpush.bf16.msra.mxu0 %v2665_v29 }
   0xd   :  { %v2648_v35 = vld [vmem:[%s6155_s1 + $0x80] sm:$0xf]  ;;  %v3632_v36 = vld [vmem:[%s6155_s1 + $0x8c] sm:$0xf0]  ;;  %v3049_v38 = vor.u32 %v3732_v32, %v3048_v31  ;;  %1607 = vmatpush.bf16.msra.mxu1 %v2793_v33 }
   0xe   :  { %v2776_v37 = vld [vmem:[%s6155_s1 + $0x180] sm:$0xf]  ;;  %v3664_v39 = vld [vmem:[%s6155_s1 + $0x18c] sm:$0xf0]  ;;  %v2649_v44 = vor.u32 %v3632_v36, %v2648_v35  ;;  %1620 = vmatpush.bf16.msra.mxu2 %v2921_v34 }
   0xf   :  { %v2904_v40 = vld [vmem:[%s6155_s1 + $0x280] sm:$0xf]  ;;  %v3696_v41 = vld [vmem:[%s6155_s1 + $0x28c] sm:$0xf0]  ;;  %v2777_v45 = vor.u32 %v3664_v39, %v2776_v37  ;;  %1633 = vmatpush.bf16.msra.mxu3 %v3049_v38 }
  0x10   :  { %v3032_v42 = vld [vmem:[%s6155_s1 + $0x380] sm:$0xf]  ;;  %v3728_v43 = vld [vmem:[%s6155_s1 + $0x38c] sm:$0xf0]  ;;  %v2905_v46 = vor.u32 %v3696_v41, %v2904_v40  ;;  %1595 = vmatpush.bf16.msra.mxu0 %v2649_v44 }
  0x11   :  { %v2632_v47 = vld [vmem:[%s6155_s1 + $0x60] sm:$0xf]  ;;  %v3628_v48 = vld [vmem:[%s6155_s1 + $0x6c] sm:$0xf0]  ;;  %v3033_v50 = vor.u32 %v3728_v43, %v3032_v42  ;;  %1608 = vmatpush.bf16.msra.mxu1 %v2777_v45 }
  0x12   :  { %v2760_v49 = vld [vmem:[%s6155_s1 + $0x160] sm:$0xf]  ;;  %v3660_v51 = vld [vmem:[%s6155_s1 + $0x16c] sm:$0xf0]  ;;  %v2633_v56 = vor.u32 %v3628_v48, %v2632_v47  ;;  %1621 = vmatpush.bf16.msra.mxu2 %v2905_v46 }
  0x13   :  { %v2888_v52 = vld [vmem:[%s6155_s1 + $0x260] sm:$0xf]  ;;  %v3692_v53 = vld [vmem:[%s6155_s1 + $0x26c] sm:$0xf0]  ;;  %v2761_v57 = vor.u32 %v3660_v51, %v2760_v49  ;;  %1634 = vmatpush.bf16.msra.mxu3 %v3033_v50 }
  0x14   :  { %v3016_v54 = vld [vmem:[%s6155_s1 + $0x360] sm:$0xf]  ;;  %v3724_v55 = vld [vmem:[%s6155_s1 + $0x36c] sm:$0xf0]  ;;  %v2889_v58 = vor.u32 %v3692_v53, %v2888_v52  ;;  %1596 = vmatpush.bf16.msra.mxu0 %v2633_v56 }
  0x15   :  { %v2616_v59 = vld [vmem:[%s6155_s1 + $0x40] sm:$0xf]  ;;  %v3624_v60 = vld [vmem:[%s6155_s1 + $0x4c] sm:$0xf0]  ;;  %v3017_v62 = vor.u32 %v3724_v55, %v3016_v54  ;;  %1609 = vmatpush.bf16.msra.mxu1 %v2761_v57 }
  0x16   :  { %v2744_v61 = vld [vmem:[%s6155_s1 + $0x140] sm:$0xf]  ;;  %v3656_v63 = vld [vmem:[%s6155_s1 + $0x14c] sm:$0xf0]  ;;  %v2617_v4 = vor.u32 %v3624_v60, %v2616_v59  ;;  %1622 = vmatpush.bf16.msra.mxu2 %v2889_v58 }
  0x17   :  { %v2872_v0 = vld [vmem:[%s6155_s1 + $0x240] sm:$0xf]  ;;  %v3688_v1 = vld [vmem:[%s6155_s1 + $0x24c] sm:$0xf0]  ;;  %v2745_v5 = vor.u32 %v3656_v63, %v2744_v61  ;;  %1635 = vmatpush.bf16.msra.mxu3 %v3017_v62 }
  0x18   :  { %v3000_v2 = vld [vmem:[%s6155_s1 + $0x340] sm:$0xf]  ;;  %v3720_v3 = vld [vmem:[%s6155_s1 + $0x34c] sm:$0xf0]  ;;  %v2873_v6 = vor.u32 %v3688_v1, %v2872_v0  ;;  %1597 = vmatpush.bf16.msra.mxu0 %v2617_v4 }
  0x19   :  { %v2600_v7 = vld [vmem:[%s6155_s1 + $0x20] sm:$0xf]  ;;  %v3620_v8 = vld [vmem:[%s6155_s1 + $0x2c] sm:$0xf0]  ;;  %v3001_v10 = vor.u32 %v3720_v3, %v3000_v2  ;;  %1610 = vmatpush.bf16.msra.mxu1 %v2745_v5 }
  0x1a   :  { %v2728_v9 = vld [vmem:[%s6155_s1 + $0x120] sm:$0xf]  ;;  %v3652_v11 = vld [vmem:[%s6155_s1 + $0x12c] sm:$0xf0]  ;;  %v2601_v16 = vor.u32 %v3620_v8, %v2600_v7  ;;  %1623 = vmatpush.bf16.msra.mxu2 %v2873_v6 }
  0x1b   :  { %v2856_v12 = vld [vmem:[%s6155_s1 + $0x220] sm:$0xf]  ;;  %v3684_v13 = vld [vmem:[%s6155_s1 + $0x22c] sm:$0xf0]  ;;  %v2729_v19 = vor.u32 %v3652_v11, %v2728_v9  ;;  %1636 = vmatpush.bf16.msra.mxu3 %v3001_v10 }
  0x1c   :  { %v2984_v14 = vld [vmem:[%s6155_s1 + $0x320] sm:$0xf]  ;;  %v3716_v15 = vld [vmem:[%s6155_s1 + $0x32c] sm:$0xf0]  ;;  %v2857_v20 = vor.u32 %v3684_v13, %v2856_v12  ;;  %1598 = vmatpush.bf16.msra.mxu0 %v2601_v16 }
  0x1d   :  { %v2584_v17 = vld [vmem:[%s6155_s1] sm:$0xf]  ;;  %v3616_v18 = vld [vmem:[%s6155_s1 + $0xc] sm:$0xf0]  ;;  %v2985_v24 = vor.u32 %v3716_v15, %v2984_v14  ;;  %1611 = vmatpush.bf16.msra.mxu1 %v2729_v19 }
  0x1e   :  { %v2712_v21 = vld [vmem:[%s6155_s1 + $0x100] sm:$0xf]  ;;  %v3648_v22 = vld [vmem:[%s6155_s1 + $0x10c] sm:$0xf0]  ;;  %v2585_v31 = vor.u32 %v3616_v18, %v2584_v17  ;;  %1624 = vmatpush.bf16.msra.mxu2 %v2857_v20 }
  0x1f   :  { %v2840_v23 = vld [vmem:[%s6155_s1 + $0x200] sm:$0xf]  ;;  %v3680_v25 = vld [vmem:[%s6155_s1 + $0x20c] sm:$0xf0]  ;;  %v2713_v35 = vor.u32 %v3648_v22, %v2712_v21  ;;  %1637 = vmatpush.bf16.msra.mxu3 %v2985_v24 }
  0x20   :  { %v2968_v26 = vld [vmem:[%s6155_s1 + $0x300] sm:$0xf]  ;;  %v3712_v27 = vld [vmem:[%s6155_s1 + $0x30c] sm:$0xf0]  ;;  %v2841_v36 = vor.u32 %v3680_v25, %v2840_v23  ;;  %1599 = vmatpush.bf16.msra.mxu0 %v2585_v31 }
  0x21   :  { %v3208_v28 = vld [vmem:[%s6155_s1 + $0x4e0] sm:$0xf]  ;;  %v3772_v29 = vld [vmem:[%s6155_s1 + $0x4ec] sm:$0xf0]  ;;  %v2969_v39 = vor.u32 %v3712_v27, %v2968_v26  ;;  %1612 = vmatpush.bf16.msra.mxu1 %v2713_v35 }
  0x22   :  { %v3336_v30 = vld [vmem:[%s6155_s1 + $0x5e0] sm:$0xf]  ;;  %v3804_v32 = vld [vmem:[%s6155_s1 + $0x5ec] sm:$0xf0]  ;;  %v3209_v40 = vor.u32 %v3772_v29, %v3208_v28  ;;  %1625 = vmatpush.bf16.msra.mxu2 %v2841_v36 }
  0x23   :  { %v3464_v33 = vld [vmem:[%s6155_s1 + $0x6e0] sm:$0xf]  ;;  %v3836_v34 = vld [vmem:[%s6155_s1 + $0x6ec] sm:$0xf0]  ;;  %v3337_v41 = vor.u32 %v3804_v32, %v3336_v30  ;;  %1638 = vmatpush.bf16.msra.mxu3 %v2969_v39 }
  0x24   :  { %v3592_v37 = vld [vmem:[%s6155_s1 + $0x7e0] sm:$0xf]  ;;  %v3868_v38 = vld [vmem:[%s6155_s1 + $0x7ec] sm:$0xf0]  ;;  %v3465_v42 = vor.u32 %v3836_v34, %v3464_v33  ;;  %1644 = vmatpush.bf16.msrb.mxu0 %v3209_v40 }
  0x25   :  { %v3192_v43 = vld [vmem:[%s6155_s1 + $0x4c0] sm:$0xf]  ;;  %v3768_v44 = vld [vmem:[%s6155_s1 + $0x4cc] sm:$0xf0]  ;;  %v3593_v46 = vor.u32 %v3868_v38, %v3592_v37  ;;  %1657 = vmatpush.bf16.msrb.mxu1 %v3337_v41 }
  0x26   :  { %v3320_v45 = vld [vmem:[%s6155_s1 + $0x5c0] sm:$0xf]  ;;  %v3800_v47 = vld [vmem:[%s6155_s1 + $0x5cc] sm:$0xf0]  ;;  %v3193_v52 = vor.u32 %v3768_v44, %v3192_v43  ;;  %1670 = vmatpush.bf16.msrb.mxu2 %v3465_v42 }
  0x27   :  { %v3448_v48 = vld [vmem:[%s6155_s1 + $0x6c0] sm:$0xf]  ;;  %v3832_v49 = vld [vmem:[%s6155_s1 + $0x6cc] sm:$0xf0]  ;;  %v3321_v55 = vor.u32 %v3800_v47, %v3320_v45  ;;  %1683 = vmatpush.bf16.msrb.mxu3 %v3593_v46 }
  0x28   :  { %v3576_v50 = vld [vmem:[%s6155_s1 + $0x7c0] sm:$0xf]  ;;  %v3864_v51 = vld [vmem:[%s6155_s1 + $0x7cc] sm:$0xf0]  ;;  %v3449_v56 = vor.u32 %v3832_v49, %v3448_v48  ;;  %1645 = vmatpush.bf16.msrb.mxu0 %v3193_v52 }
  0x29   :  { %v3176_v53 = vld [vmem:[%s6155_s1 + $0x4a0] sm:$0xf]  ;;  %v3764_v54 = vld [vmem:[%s6155_s1 + $0x4ac] sm:$0xf0]  ;;  %v3577_v60 = vor.u32 %v3864_v51, %v3576_v50  ;;  %1658 = vmatpush.bf16.msrb.mxu1 %v3321_v55 }
  0x2a   :  { %v3304_v57 = vld [vmem:[%s6155_s1 + $0x5a0] sm:$0xf]  ;;  %v3796_v58 = vld [vmem:[%s6155_s1 + $0x5ac] sm:$0xf0]  ;;  %v3177_v1 = vor.u32 %v3764_v54, %v3176_v53  ;;  %1671 = vmatpush.bf16.msrb.mxu2 %v3449_v56 }
  0x2b   :  { %v37_v59 = vld [vmem:[%s6154_s0] sm:$0xff]  ;;  %v3828_v62 = vld [vmem:[%s6155_s1 + $0x6ac] sm:$0xf0]  ;;  %v3305_v2 = vor.u32 %v3796_v58, %v3304_v57  ;;  %1684 = vmatpush.bf16.msrb.mxu3 %v3577_v60 }
  0x2c   :  { %v3432_v61 = vld [vmem:[%s6155_s1 + $0x6a0] sm:$0xf]  ;;  %295 = vst [vmem:[#allocation1] ss:$9 sm:$0xff] %v37_v59  ;;  %v3860_v0 = vld [vmem:[%s6155_s1 + $0x7ac] sm:$0xf0]  ;;  %1646 = vmatpush.bf16.msrb.mxu0 %v3177_v1 }
  0x2d   :  { %v3560_v63 = vld [vmem:[%s6155_s1 + $0x7a0] sm:$0xf]  ;;  %v3433_v3 = vor.u32 %v3828_v62, %v3432_v61  ;;  %v3760_v5 = vld [vmem:[%s6155_s1 + $0x48c] sm:$0xf0]  ;;  %1659 = vmatpush.bf16.msrb.mxu1 %v3305_v2  ;;  %v3642_v1 = vld [vmem:[%s6155_s1 + $0xe4] sm:$0xf] }
  0x2e   :  { %v3160_v4 = vld [vmem:[%s6155_s1 + $0x480] sm:$0xf]  ;;  %v3561_v7 = vor.u32 %v3860_v0, %v3560_v63  ;;  %v3792_v8 = vld [vmem:[%s6155_s1 + $0x58c] sm:$0xf0]  ;;  %v2698_v2 = vld [vmem:[%s6155_s1 + $0xf0] sm:$0xf0] }
  0x2f   :  { %v3288_v6 = vld [vmem:[%s6155_s1 + $0x580] sm:$0xf]  ;;  %v3824_v10 = vld [vmem:[%s6155_s1 + $0x68c] sm:$0xf0]  ;;  %v3161_v14 = vor.u32 %v3760_v5, %v3160_v4  ;;  %1672 = vmatpush.bf16.msrb.mxu2 %v3433_v3  ;;  %v3674_v3 = vld [vmem:[%s6155_s1 + $0x1e4] sm:$0xf] }
  0x30   :  { %v3416_v9 = vld [vmem:[%s6155_s1 + $0x680] sm:$0xf]  ;;  %v3856_v12 = vld [vmem:[%s6155_s1 + $0x78c] sm:$0xf0]  ;;  %v3289_v18 = vor.u32 %v3792_v8, %v3288_v6  ;;  %1685 = vmatpush.bf16.msrb.mxu3 %v3561_v7  ;;  %v2826_v5 = vld [vmem:[%s6155_s1 + $0x1f0] sm:$0xf0] }
  0x31   :  { %v3544_v11 = vld [vmem:[%s6155_s1 + $0x780] sm:$0xf]  ;;  %v3756_v15 = vld [vmem:[%s6155_s1 + $0x46c] sm:$0xf0]  ;;  %v3417_v19 = vor.u32 %v3824_v10, %v3416_v9  ;;  %1647 = vmatpush.bf16.msrb.mxu0 %v3161_v14  ;;  %v3706_v6 = vld [vmem:[%s6155_s1 + $0x2e4] sm:$0xf]  ;;  %v2829_v14 = vor.u32 %v3674_v3, %v2826_v5 }
  0x32   :  { %v3144_v13 = vld [vmem:[%s6155_s1 + $0x460] sm:$0xf]  ;;  %v3788_v17 = vld [vmem:[%s6155_s1 + $0x56c] sm:$0xf0]  ;;  %v3545_v23 = vor.u32 %v3856_v12, %v3544_v11  ;;  %1660 = vmatpush.bf16.msrb.mxu1 %v3289_v18  ;;  %v2954_v7 = vld [vmem:[%s6155_s1 + $0x2f0] sm:$0xf0] }
  0x33   :  { %v3272_v16 = vld [vmem:[%s6155_s1 + $0x560] sm:$0xf]  ;;  %v4346_v20 = vld [vmem:[#allocation1 + $0x12] sm:$0xff]  ;;  %v4359_v26 = vld [vmem:[#allocation1 + $0x9] sm:$0xff]  ;;  %v3145_v29 = vor.u32 %v3756_v15, %v3144_v13  ;;  %1673 = vmatpush.bf16.msrb.mxu2 %v3417_v19  ;;  %v2701_v13 = vor.u32 %v3642_v1, %v2698_v2  ;;  %v2957_v15 = vor.u32 %v3706_v6, %v2954_v7 }
  0x34   :  { %v4348_v21 = vld [vmem:[#allocation1] sm:$0xff]  ;;  %v3820_v25 = vld [vmem:[%s6155_s1 + $0x66c] sm:$0xf0]  ;;  %1626 = vmatmul.bf16.vlgmr.msra.gmra.mxu2 %v4346_v20  ;;  %1613 = vmatmul.bf16.vlgmr.msra.gmra.mxu1 %v4359_v26  ;;  %v3273_v30 = vor.u32 %v3788_v17, %v3272_v16  ;;  %v3082_v11 = vld [vmem:[%s6155_s1 + $0x3f0] sm:$0xf0] }
  0x35   :  { %v4350_v22 = vld [vmem:[#allocation1 + $0x1b] sm:$0xff]  ;;  %v3852_v28 = vld [vmem:[%s6155_s1 + $0x76c] sm:$0xf0]  ;;  %1600 = vmatmul.bf16.vlgmr.msra.gmra.mxu0 %v4348_v21  ;;  %1686 = vmatpush.bf16.msrb.mxu3 %v3545_v23  ;;  %v3738_v10 = vld [vmem:[%s6155_s1 + $0x3e4] sm:$0xf] }
  0x36   :  { %v3400_v24 = vld [vmem:[%s6155_s1 + $0x660] sm:$0xf]  ;;  %1639 = vmatmul.bf16.vlgmr.msra.gmra.mxu3 %v4350_v22  ;;  %v3752_v33 = vld [vmem:[%s6155_s1 + $0x44c] sm:$0xf0]  ;;  %1648 = vmatpush.bf16.msrb.mxu0 %v3145_v29  ;;  %v3638_v16 = vld [vmem:[%s6155_s1 + $0xc4] sm:$0xf]  ;;  %v3085_v19 = vor.u32 %v3738_v10, %v3082_v11 }
  0x37   :  { %v3528_v27 = vld [vmem:[%s6155_s1 + $0x760] sm:$0xf]  ;;  %v3401_v31 = vor.u32 %v3820_v25, %v3400_v24  ;;  %v3784_v36 = vld [vmem:[%s6155_s1 + $0x54c] sm:$0xf0]  ;;  %1661 = vmatpush.bf16.msrb.mxu1 %v3273_v30  ;;  %v2682_v17 = vld [vmem:[%s6155_s1 + $0xd0] sm:$0xf0] }
  0x38   :  { %v3128_v32 = vld [vmem:[%s6155_s1 + $0x440] sm:$0xf]  ;;  %v3529_v35 = vor.u32 %v3852_v28, %v3528_v27  ;;  %v3816_v38 = vld [vmem:[%s6155_s1 + $0x64c] sm:$0xf0]  ;;  %v3670_v18 = vld [vmem:[%s6155_s1 + $0x1c4] sm:$0xf]  ;;  %v2685_v30 = vor.u32 %v3638_v16, %v2682_v17 }
  0x39   :  { %v3256_v34 = vld [vmem:[%s6155_s1 + $0x540] sm:$0xf]  ;;  %v3848_v40 = vld [vmem:[%s6155_s1 + $0x74c] sm:$0xf0]  ;;  %v3129_v41 = vor.u32 %v3752_v33, %v3128_v32  ;;  %1674 = vmatpush.bf16.msrb.mxu2 %v3401_v31  ;;  %v2810_v23 = vld [vmem:[%s6155_s1 + $0x1d0] sm:$0xf0] }
  0x3a   :  { %v3384_v37 = vld [vmem:[%s6155_s1 + $0x640] sm:$0xf]  ;;  %v3257_v42 = vor.u32 %v3784_v36, %v3256_v34  ;;  %v3748_v45 = vld [vmem:[%s6155_s1 + $0x42c] sm:$0xf0]  ;;  %1687 = vmatpush.bf16.msrb.mxu3 %v3529_v35  ;;  %v3702_v24 = vld [vmem:[%s6155_s1 + $0x2c4] sm:$0xf]  ;;  %v2813_v34 = vor.u32 %v3670_v18, %v2810_v23 }
  0x3b   :  { %v3512_v39 = vld [vmem:[%s6155_s1 + $0x740] sm:$0xf]  ;;  %v3385_v43 = vor.u32 %v3816_v38, %v3384_v37  ;;  %v3780_v48 = vld [vmem:[%s6155_s1 + $0x52c] sm:$0xf0]  ;;  %1649 = vmatpush.bf16.msrb.mxu0 %v3129_v41  ;;  %v2938_v25 = vld [vmem:[%s6155_s1 + $0x2d0] sm:$0xf0] }
  0x3c   :  { %v3112_v44 = vld [vmem:[%s6155_s1 + $0x420] sm:$0xf]  ;;  %v3513_v47 = vor.u32 %v3848_v40, %v3512_v39  ;;  %v3812_v50 = vld [vmem:[%s6155_s1 + $0x62c] sm:$0xf0]  ;;  %1662 = vmatpush.bf16.msrb.mxu1 %v3257_v42  ;;  %v3734_v27 = vld [vmem:[%s6155_s1 + $0x3c4] sm:$0xf]  ;;  %v2941_v35 = vor.u32 %v3702_v24, %v2938_v25 }
  0x3d   :  { %v3240_v46 = vld [vmem:[%s6155_s1 + $0x520] sm:$0xf]  ;;  %v3844_v52 = vld [vmem:[%s6155_s1 + $0x72c] sm:$0xf0]  ;;  %v3113_v53 = vor.u32 %v3748_v45, %v3112_v44  ;;  %1675 = vmatpush.bf16.msrb.mxu2 %v3385_v43  ;;  %v3066_v28 = vld [vmem:[%s6155_s1 + $0x3d0] sm:$0xf0] }
  0x3e   :  { %v3368_v49 = vld [vmem:[%s6155_s1 + $0x620] sm:$0xf]  ;;  %v3744_v55 = vld [vmem:[%s6155_s1 + $0x40c] sm:$0xf0]  ;;  %v3241_v56 = vor.u32 %v3780_v48, %v3240_v46  ;;  %1688 = vmatpush.bf16.msrb.mxu3 %v3513_v47  ;;  %v4490_v29 = vld [vmem:[#allocation1 + $0x36] sm:$0xff]  ;;  %v3069_v39 = vor.u32 %v3734_v27, %v3066_v28 }
  0x3f   :  { %v3496_v51 = vld [vmem:[%s6155_s1 + $0x720] sm:$0xf]  ;;  %v3369_v57 = vor.u32 %v3812_v50, %v3368_v49  ;;  %v3776_v59 = vld [vmem:[%s6155_s1 + $0x50c] sm:$0xf0]  ;;  %1650 = vmatpush.bf16.msrb.mxu0 %v3113_v53  ;;  %v4492_v31 = vld [vmem:[#allocation1 + $0x24] sm:$0xff] }
  0x40   :  { %v3096_v54 = vld [vmem:[%s6155_s1 + $0x400] sm:$0xf]  ;;  %v3497_v61 = vor.u32 %v3844_v52, %v3496_v51  ;;  %v3808_v62 = vld [vmem:[%s6155_s1 + $0x60c] sm:$0xf0]  ;;  %1663 = vmatpush.bf16.msrb.mxu1 %v3241_v56  ;;  %v3634_v33 = vld [vmem:[%s6155_s1 + $0xa4] sm:$0xf] }
  0x41   :  { %v3224_v58 = vld [vmem:[%s6155_s1 + $0x500] sm:$0xf]  ;;  %v3840_v0 = vld [vmem:[%s6155_s1 + $0x70c] sm:$0xf0]  ;;  %v3097_v4 = vor.u32 %v3744_v55, %v3096_v54  ;;  %1676 = vmatpush.bf16.msrb.mxu2 %v3369_v57  ;;  %v2666_v36 = vld [vmem:[%s6155_s1 + $0xb0] sm:$0xf0] }
  0x42   :  { %v3352_v60 = vld [vmem:[%s6155_s1 + $0x600] sm:$0xf]  ;;  %v3225_v8 = vor.u32 %v3776_v59, %v3224_v58  ;;  %1689 = vmatpush.bf16.msrb.mxu3 %v3497_v61  ;;  %v3666_v37 = vld [vmem:[%s6155_s1 + $0x1a4] sm:$0xf]  ;;  %v4505_v38 = vld [vmem:[#allocation1 + $0x2d] sm:$0xff]  ;;  %v2669_v45 = vor.u32 %v3634_v33, %v2666_v36 }
  0x43   :  { %v3480_v63 = vld [vmem:[%s6155_s1 + $0x700] sm:$0xf]  ;;  %v3353_v9 = vor.u32 %v3808_v62, %v3352_v60  ;;  %1651 = vmatpush.bf16.msrb.mxu0 %v3097_v4  ;;  %v2794_v40 = vld [vmem:[%s6155_s1 + $0x1b0] sm:$0xf0]  ;;  %v3698_v41 = vld [vmem:[%s6155_s1 + $0x2a4] sm:$0xf] }
  0x44   :  { %v3481_v12 = vor.u32 %v3840_v0, %v3480_v63  ;;  %1664 = vmatpush.bf16.msrb.mxu1 %v3225_v8  ;;  %v4494_v32 = vld [vmem:[#allocation1 + $0x3f] sm:$0xff]  ;;  %v2922_v42 = vld [vmem:[%s6155_s1 + $0x2b0] sm:$0xf0]  ;;  %v2797_v46 = vor.u32 %v3666_v37, %v2794_v40 }
  0x45   :  { %1677 = vmatpush.bf16.msrb.mxu2 %v3353_v9  ;;  %v3730_v43 = vld [vmem:[%s6155_s1 + $0x3a4] sm:$0xf]  ;;  %v3050_v44 = vld [vmem:[%s6155_s1 + $0x3b0] sm:$0xf0]  ;;  %v2925_v47 = vor.u32 %v3698_v41, %v2922_v42 }
  0x46   :  { %1690 = vmatpush.bf16.msrb.mxu3 %v3481_v12  ;;  %1652 = vmatmul.bf16.vlgmr.msrb.gmra.mxu0 %v4492_v31  ;;  %v3630_v48 = vld [vmem:[%s6155_s1 + $0x84] sm:$0xf]  ;;  %v2650_v49 = vld [vmem:[%s6155_s1 + $0x90] sm:$0xf0]  ;;  %v3053_v51 = vor.u32 %v3730_v43, %v3050_v44 }
  0x47   :  { %1696 = vmatpush.bf16.msra.mxu0 %v2701_v13  ;;  %1665 = vmatmul.bf16.vlgmr.msrb.gmra.mxu1 %v4505_v38  ;;  %v3662_v50 = vld [vmem:[%s6155_s1 + $0x184] sm:$0xf]  ;;  %v2778_v52 = vld [vmem:[%s6155_s1 + $0x190] sm:$0xf0]  ;;  %v2653_v57 = vor.u32 %v3630_v48, %v2650_v49 }
  0x48   :  { %1709 = vmatpush.bf16.msra.mxu1 %v2829_v14  ;;  %1678 = vmatmul.bf16.vlgmr.msrb.gmra.mxu2 %v4490_v29  ;;  %v3694_v53 = vld [vmem:[%s6155_s1 + $0x284] sm:$0xf]  ;;  %v2906_v54 = vld [vmem:[%s6155_s1 + $0x290] sm:$0xf0]  ;;  %v2781_v58 = vor.u32 %v3662_v50, %v2778_v52 }
  0x49   :  { %1722 = vmatpush.bf16.msra.mxu2 %v2957_v15  ;;  %1691 = vmatmul.bf16.vlgmr.msrb.gmra.mxu3 %v4494_v32  ;;  %v3726_v55 = vld [vmem:[%s6155_s1 + $0x384] sm:$0xf]  ;;  %v3034_v56 = vld [vmem:[%s6155_s1 + $0x390] sm:$0xf0]  ;;  %v2909_v59 = vor.u32 %v3694_v53, %v2906_v54 }
  0x4a   :  { %1735 = vmatpush.bf16.msra.mxu3 %v3085_v19  ;;  %v3626_v60 = vld [vmem:[%s6155_s1 + $0x64] sm:$0xf]  ;;  %v2634_v61 = vld [vmem:[%s6155_s1 + $0x70] sm:$0xf0]  ;;  %v3037_v63 = vor.u32 %v3726_v55, %v3034_v56 }
  0x4b   :  { %1697 = vmatpush.bf16.msra.mxu0 %v2685_v30  ;;  %v3658_v62 = vld [vmem:[%s6155_s1 + $0x164] sm:$0xf]  ;;  %v2762_v0 = vld [vmem:[%s6155_s1 + $0x170] sm:$0xf0]  ;;  %v2637_v5 = vor.u32 %v3626_v60, %v2634_v61 }
  0x4c   :  { %1710 = vmatpush.bf16.msra.mxu1 %v2813_v34  ;;  %v3690_v1 = vld [vmem:[%s6155_s1 + $0x264] sm:$0xf]  ;;  %v2890_v2 = vld [vmem:[%s6155_s1 + $0x270] sm:$0xf0]  ;;  %v2765_v6 = vor.u32 %v3658_v62, %v2762_v0 }
  0x4d   :  { %1723 = vmatpush.bf16.msra.mxu2 %v2941_v35  ;;  %v3722_v3 = vld [vmem:[%s6155_s1 + $0x364] sm:$0xf]  ;;  %v3018_v4 = vld [vmem:[%s6155_s1 + $0x370] sm:$0xf0]  ;;  %v2893_v7 = vor.u32 %v3690_v1, %v2890_v2 }
  0x4e   :  { %1736 = vmatpush.bf16.msra.mxu3 %v3069_v39  ;;  %v3622_v8 = vld [vmem:[%s6155_s1 + $0x44] sm:$0xf]  ;;  %v2618_v9 = vld [vmem:[%s6155_s1 + $0x50] sm:$0xf0]  ;;  %v3021_v11 = vor.u32 %v3722_v3, %v3018_v4 }
  0x4f   :  { %1698 = vmatpush.bf16.msra.mxu0 %v2669_v45  ;;  %v3654_v10 = vld [vmem:[%s6155_s1 + $0x144] sm:$0xf]  ;;  %v2746_v12 = vld [vmem:[%s6155_s1 + $0x150] sm:$0xf0]  ;;  %v2621_v17 = vor.u32 %v3622_v8, %v2618_v9 }
  0x50   :  { %1711 = vmatpush.bf16.msra.mxu1 %v2797_v46  ;;  %v3686_v13 = vld [vmem:[%s6155_s1 + $0x244] sm:$0xf]  ;;  %v2874_v14 = vld [vmem:[%s6155_s1 + $0x250] sm:$0xf0]  ;;  %v2749_v18 = vor.u32 %v3654_v10, %v2746_v12 }
  0x51   :  { %1724 = vmatpush.bf16.msra.mxu2 %v2925_v47  ;;  %v3718_v15 = vld [vmem:[%s6155_s1 + $0x344] sm:$0xf]  ;;  %v3002_v16 = vld [vmem:[%s6155_s1 + $0x350] sm:$0xf0]  ;;  %v2877_v19 = vor.u32 %v3686_v13, %v2874_v14 }
  0x52   :  { %1737 = vmatpush.bf16.msra.mxu3 %v3053_v51  ;;  %v3618_v23 = vld [vmem:[%s6155_s1 + $0x24] sm:$0xf]  ;;  %v2602_v24 = vld [vmem:[%s6155_s1 + $0x30] sm:$0xf0]  ;;  %v3005_v27 = vor.u32 %v3718_v15, %v3002_v16 }
  0x53   :  { %1699 = vmatpush.bf16.msra.mxu0 %v2653_v57  ;;  %v3650_v25 = vld [vmem:[%s6155_s1 + $0x124] sm:$0xf]  ;;  %v2730_v28 = vld [vmem:[%s6155_s1 + $0x130] sm:$0xf0]  ;;  %v2605_v37 = vor.u32 %v3618_v23, %v2602_v24 }
  0x54   :  { %1712 = vmatpush.bf16.msra.mxu1 %v2781_v58  ;;  %v3682_v30 = vld [vmem:[%s6155_s1 + $0x224] sm:$0xf]  ;;  %v2858_v33 = vld [vmem:[%s6155_s1 + $0x230] sm:$0xf0]  ;;  %v2733_v42 = vor.u32 %v3650_v25, %v2730_v28 }
  0x55   :  { %1725 = vmatpush.bf16.msra.mxu2 %v2909_v59  ;;  %v3714_v34 = vld [vmem:[%s6155_s1 + $0x324] sm:$0xf]  ;;  %v2986_v35 = vld [vmem:[%s6155_s1 + $0x330] sm:$0xf0]  ;;  %v2861_v43 = vor.u32 %v3682_v30, %v2858_v33 }
  0x56   :  { %1738 = vmatpush.bf16.msra.mxu3 %v3037_v63  ;;  %v3614_v36 = vld [vmem:[%s6155_s1 + $0x4] sm:$0xf]  ;;  %v2586_v39 = vld [vmem:[%s6155_s1 + $0x10] sm:$0xf0]  ;;  %v2989_v47 = vor.u32 %v3714_v34, %v2986_v35 }
  0x57   :  { %1700 = vmatpush.bf16.msra.mxu0 %v2637_v5  ;;  %v3646_v40 = vld [vmem:[%s6155_s1 + $0x104] sm:$0xf]  ;;  %v2714_v41 = vld [vmem:[%s6155_s1 + $0x110] sm:$0xf0] }
  0x58   :  { %1713 = vmatpush.bf16.msra.mxu1 %v2765_v6  ;;  %v3678_v44 = vld [vmem:[%s6155_s1 + $0x204] sm:$0xf]  ;;  %v2842_v45 = vld [vmem:[%s6155_s1 + $0x210] sm:$0xf0] }
  0x59   :  { %1726 = vmatpush.bf16.msra.mxu2 %v2893_v7  ;;  %v3710_v46 = vld [vmem:[%s6155_s1 + $0x304] sm:$0xf]  ;;  %v2970_v48 = vld [vmem:[%s6155_s1 + $0x310] sm:$0xf0] }
  0x5a   :  { %1739 = vmatpush.bf16.msra.mxu3 %v3021_v11  ;;  %v3770_v49 = vld [vmem:[%s6155_s1 + $0x4e4] sm:$0xf]  ;;  %v3210_v50 = vld [vmem:[%s6155_s1 + $0x4f0] sm:$0xf0] }
  0x5b   :  { %1701 = vmatpush.bf16.msra.mxu0 %v2621_v17  ;;  %v3802_v51 = vld [vmem:[%s6155_s1 + $0x5e4] sm:$0xf] }
  0x5c   :  { %1714 = vmatpush.bf16.msra.mxu1 %v2749_v18 }
  0x5d   :  { %1727 = vmatpush.bf16.msra.mxu2 %v2877_v19 }
  0x5e   :  { %1740 = vmatpush.bf16.msra.mxu3 %v3005_v27 }
  0x5f   :  { %18 = vsyncpa [#allocation5], 0  ;;  %1702 = vmatpush.bf16.msra.mxu0 %v2605_v37  ;;  %v2589_v52 = vor.u32 %v3614_v36, %v2586_v39  ;;  %v3338_v53 = vld [vmem:[%s6155_s1 + $0x5f0] sm:$0xf0]  ;;  %v3834_v54 = vld [vmem:[%s6155_s1 + $0x6e4] sm:$0xf]  ;;  %v2717_v56 = vor.u32 %v3646_v40, %v2714_v41  ;;  %v2845_v57 = vor.u32 %v3678_v44, %v2842_v45  ;;  %v2973_v60 = vor.u32 %v3710_v46, %v2970_v48 }
  0x60   :  { %v3466_v55 = vld [vmem:[%s6155_s1 + $0x6f0] sm:$0xf0]  ;;  %1715 = vmatpush.bf16.msra.mxu1 %v2733_v42  ;;  %v3866_v58 = vld [vmem:[%s6155_s1 + $0x7e4] sm:$0xf]  ;;  %v3213_v61 = vor.u32 %v3770_v49, %v3210_v50  ;;  %v3341_v62 = vor.u32 %v3802_v51, %v3338_v53  ;;  %vm2201_vm0 = vcmask 261120   ;;  %s3978_s20 = smov 10  }
  0x61   :  { %1728 = vmatpush.bf16.msra.mxu2 %v2861_v43  ;;  %v3594_v59 = vld [vmem:[%s6155_s1 + $0x7f0] sm:$0xf0]  ;;  %v3469_v63 = vor.u32 %v3834_v54, %v3466_v55  ;;  %v3766_v0 = vld [vmem:[%s6155_s1 + $0x4c4] sm:$0xf]  ;;  %s3980_s22 = smov [#allocation4]   ;;  %s3981_s0 = smov [#allocation6]  }
  0x62   :  { %1741 = vmatpush.bf16.msra.mxu3 %v2989_v47  ;;  %v3194_v1 = vld [vmem:[%s6155_s1 + $0x4d0] sm:$0xf0]  ;;  %v3798_v2 = vld [vmem:[%s6155_s1 + $0x5c4] sm:$0xf]  ;;  %v3597_v3 = vor.u32 %v3866_v58, %v3594_v59  ;;  %s2551_s23 = sshll.u32 %s3980_s22, 4  ;;  %s2562_s24 = sshll.u32 %s3981_s0, 4  ;;  %s2552_s23 = int_to_ptr.vmem [resolvable:$true] %s2551_s23  ;;  %s2563_s24 = int_to_ptr.vmem [resolvable:$true] %s2562_s24 }
  0x63   :  { %1703 = vmatpush.bf16.msra.mxu0 %v2589_v52  ;;  %v3322_v4 = vld [vmem:[%s6155_s1 + $0x5d0] sm:$0xf0]  ;;  %v3830_v5 = vld [vmem:[%s6155_s1 + $0x6c4] sm:$0xf]  ;;  %v3197_v9 = vor.u32 %v3766_v0, %v3194_v1  ;;  %s2564_s27 = sshll.u32 %s6165_s11, 4  ;;  %s3982_s29 = smov [#allocation2]   ;;  %s2565_s27 = int_to_ptr.hbm [resolvable:$true] %s2564_s27 }
  0x64   :  { %v3450_v6 = vld [vmem:[%s6155_s1 + $0x6d0] sm:$0xf0]  ;;  %1716 = vmatpush.bf16.msra.mxu1 %v2717_v56  ;;  %v3862_v7 = vld [vmem:[%s6155_s1 + $0x7c4] sm:$0xf]  ;;  %v3325_v10 = vor.u32 %v3798_v2, %v3322_v4  ;;  %s2542_s13 = sshll.u32 %s6163_s9, 4  ;;  %s2543_s13 = int_to_ptr.hbm [resolvable:$true] %s2542_s13 }
  0x65   :  { %1729 = vmatpush.bf16.msra.mxu2 %v2845_v57  ;;  %v3578_v8 = vld [vmem:[%s6155_s1 + $0x7d0] sm:$0xf0]  ;;  %v3453_v11 = vor.u32 %v3830_v5, %v3450_v6  ;;  %v3762_v12 = vld [vmem:[%s6155_s1 + $0x4a4] sm:$0xf] }
  0x66   :  { %1742 = vmatpush.bf16.msra.mxu3 %v2973_v60  ;;  %v3178_v13 = vld [vmem:[%s6155_s1 + $0x4b0] sm:$0xf0]  ;;  %v3794_v14 = vld [vmem:[%s6155_s1 + $0x5a4] sm:$0xf]  ;;  %v3581_v15 = vor.u32 %v3862_v7, %v3578_v8  ;;  %1704 = vmatmul.bf16.vlgmr.msra.gmra.mxu0 %v4348_v21 }
  0x67   :  { %1748 = vmatpush.bf16.msrb.mxu0 %v3213_v61  ;;  %v3306_v16 = vld [vmem:[%s6155_s1 + $0x5b0] sm:$0xf0]  ;;  %v3826_v17 = vld [vmem:[%s6155_s1 + $0x6a4] sm:$0xf]  ;;  %v3181_v24 = vor.u32 %v3762_v12, %v3178_v13  ;;  %1717 = vmatmul.bf16.vlgmr.msra.gmra.mxu1 %v4359_v26 }
  0x68   :  { %1761 = vmatpush.bf16.msrb.mxu1 %v3341_v62  ;;  %v3434_v18 = vld [vmem:[%s6155_s1 + $0x6b0] sm:$0xf0]  ;;  %1730 = vmatmul.bf16.vlgmr.msra.gmra.mxu2 %v4346_v20  ;;  %v3858_v19 = vld [vmem:[%s6155_s1 + $0x7a4] sm:$0xf]  ;;  %v3309_v25 = vor.u32 %v3794_v14, %v3306_v16 }
  0x69   :  { %1774 = vmatpush.bf16.msrb.mxu2 %v3469_v63  ;;  %v3562_v23 = vld [vmem:[%s6155_s1 + $0x7b0] sm:$0xf0]  ;;  %1743 = vmatmul.bf16.vlgmr.msra.gmra.mxu3 %v4350_v22  ;;  %v3437_v27 = vor.u32 %v3826_v17, %v3434_v18  ;;  %v3758_v28 = vld [vmem:[%s6155_s1 + $0x484] sm:$0xf] }
  0x6a   :  { %1787 = vmatpush.bf16.msrb.mxu3 %v3597_v3  ;;  %v3162_v30 = vld [vmem:[%s6155_s1 + $0x490] sm:$0xf0]  ;;  %v3790_v21 = vld [vmem:[%s6155_s1 + $0x584] sm:$0xf]  ;;  %v3565_v22 = vor.u32 %v3858_v19, %v3562_v23 }
  0x6b   :  { %1749 = vmatpush.bf16.msrb.mxu0 %v3197_v9  ;;  %v3290_v33 = vld [vmem:[%s6155_s1 + $0x590] sm:$0xf0]  ;;  %v3822_v34 = vld [vmem:[%s6155_s1 + $0x684] sm:$0xf]  ;;  %v3165_v39 = vor.u32 %v3758_v28, %v3162_v30  ;;  %v3645_v28 = vld [vmem:[%s6155_s1 + $0xf4] sm:$0xf0] }
  0x6c   :  { %1762 = vmatpush.bf16.msrb.mxu1 %v3325_v10  ;;  %v3418_v35 = vld [vmem:[%s6155_s1 + $0x690] sm:$0xf0]  ;;  %v3854_v36 = vld [vmem:[%s6155_s1 + $0x784] sm:$0xf]  ;;  %v3293_v40 = vor.u32 %v3790_v21, %v3290_v33  ;;  %v2832_v30 = vld [vmem:[%s6155_s1 + $0x1e8] sm:$0xf] }
  0x6d   :  { %1775 = vmatpush.bf16.msrb.mxu2 %v3453_v11  ;;  %v3546_v37 = vld [vmem:[%s6155_s1 + $0x790] sm:$0xf0]  ;;  %v3421_v41 = vor.u32 %v3822_v34, %v3418_v35  ;;  %v3754_v42 = vld [vmem:[%s6155_s1 + $0x464] sm:$0xf]  ;;  %v2960_v33 = vld [vmem:[%s6155_s1 + $0x2e8] sm:$0xf] }
  0x6e   :  { %1788 = vmatpush.bf16.msrb.mxu3 %v3581_v15  ;;  %v3146_v43 = vld [vmem:[%s6155_s1 + $0x470] sm:$0xf0]  ;;  %v3786_v44 = vld [vmem:[%s6155_s1 + $0x564] sm:$0xf]  ;;  %v3549_v45 = vor.u32 %v3854_v36, %v3546_v37  ;;  %v3709_v34 = vld [vmem:[%s6155_s1 + $0x2f4] sm:$0xf0] }
  0x6f   :  { %1750 = vmatpush.bf16.msrb.mxu0 %v3181_v24  ;;  %v3274_v46 = vld [vmem:[%s6155_s1 + $0x570] sm:$0xf0]  ;;  %v3818_v47 = vld [vmem:[%s6155_s1 + $0x664] sm:$0xf]  ;;  %v3149_v51 = vor.u32 %v3754_v42, %v3146_v43  ;;  %v3088_v37 = vld [vmem:[%s6155_s1 + $0x3e8] sm:$0xf]  ;;  %v2961_v43 = vor.u32 %v3709_v34, %v2960_v33 }
  0x70   :  { %1763 = vmatpush.bf16.msrb.mxu1 %v3309_v25  ;;  %v3402_v48 = vld [vmem:[%s6155_s1 + $0x670] sm:$0xf0]  ;;  %v3850_v49 = vld [vmem:[%s6155_s1 + $0x764] sm:$0xf]  ;;  %v3277_v52 = vor.u32 %v3786_v44, %v3274_v46  ;;  %v2688_v44 = vld [vmem:[%s6155_s1 + $0xc8] sm:$0xf] }
  0x71   :  { %1776 = vmatpush.bf16.msrb.mxu2 %v3437_v27  ;;  %v3530_v50 = vld [vmem:[%s6155_s1 + $0x770] sm:$0xf0]  ;;  %v3405_v53 = vor.u32 %v3818_v47, %v3402_v48  ;;  %v3750_v54 = vld [vmem:[%s6155_s1 + $0x444] sm:$0xf]  ;;  %v2704_v27 = vld [vmem:[%s6155_s1 + $0xe8] sm:$0xf] }
  0x72   :  { %1789 = vmatpush.bf16.msrb.mxu3 %v3565_v22  ;;  %v3130_v55 = vld [vmem:[%s6155_s1 + $0x450] sm:$0xf0]  ;;  %v3782_v56 = vld [vmem:[%s6155_s1 + $0x544] sm:$0xf]  ;;  %v3533_v57 = vor.u32 %v3850_v49, %v3530_v50  ;;  %v3677_v22 = vld [vmem:[%s6155_s1 + $0x1f4] sm:$0xf0] }
  0x73   :  { %1751 = vmatpush.bf16.msrb.mxu0 %v3165_v39  ;;  %v3258_v58 = vld [vmem:[%s6155_s1 + $0x550] sm:$0xf0]  ;;  %v3814_v59 = vld [vmem:[%s6155_s1 + $0x644] sm:$0xf]  ;;  %v3133_v63 = vor.u32 %v3750_v54, %v3130_v55  ;;  %v3741_v39 = vld [vmem:[%s6155_s1 + $0x3f4] sm:$0xf0]  ;;  %v2833_v42 = vor.u32 %v3677_v22, %v2832_v30 }
  0x74   :  { %1764 = vmatpush.bf16.msrb.mxu1 %v3293_v40  ;;  %v3386_v60 = vld [vmem:[%s6155_s1 + $0x650] sm:$0xf0]  ;;  %v3846_v61 = vld [vmem:[%s6155_s1 + $0x744] sm:$0xf]  ;;  %v3261_v0 = vor.u32 %v3782_v56, %v3258_v58  ;;  %v2816_v46 = vld [vmem:[%s6155_s1 + $0x1c8] sm:$0xf]  ;;  %v3089_v47 = vor.u32 %v3741_v39, %v3088_v37 }
  0x75   :  { %1777 = vmatpush.bf16.msrb.mxu2 %v3421_v41  ;;  %v3514_v62 = vld [vmem:[%s6155_s1 + $0x750] sm:$0xf0]  ;;  %v3389_v1 = vor.u32 %v3814_v59, %v3386_v60  ;;  %v3746_v2 = vld [vmem:[%s6155_s1 + $0x424] sm:$0xf]  ;;  %v2705_v41 = vor.u32 %v3645_v28, %v2704_v27  ;;  %v3673_v48 = vld [vmem:[%s6155_s1 + $0x1d4] sm:$0xf0] }
  0x76   :  { %1790 = vmatpush.bf16.msrb.mxu3 %v3549_v45  ;;  %v3114_v3 = vld [vmem:[%s6155_s1 + $0x430] sm:$0xf0]  ;;  %v3778_v4 = vld [vmem:[%s6155_s1 + $0x524] sm:$0xf]  ;;  %v3517_v5 = vor.u32 %v3846_v61, %v3514_v62  ;;  %v3641_v45 = vld [vmem:[%s6155_s1 + $0xd4] sm:$0xf0]  ;;  %v2817_v54 = vor.u32 %v3673_v48, %v2816_v46 }
  0x77   :  { %1752 = vmatpush.bf16.msrb.mxu0 %v3149_v51  ;;  %v3242_v6 = vld [vmem:[%s6155_s1 + $0x530] sm:$0xf0]  ;;  %v3810_v7 = vld [vmem:[%s6155_s1 + $0x624] sm:$0xf]  ;;  %v3117_v11 = vor.u32 %v3746_v2, %v3114_v3  ;;  %v2944_v49 = vld [vmem:[%s6155_s1 + $0x2c8] sm:$0xf] }
  0x78   :  { %1765 = vmatpush.bf16.msrb.mxu1 %v3277_v52  ;;  %v3370_v8 = vld [vmem:[%s6155_s1 + $0x630] sm:$0xf0]  ;;  %v3842_v9 = vld [vmem:[%s6155_s1 + $0x724] sm:$0xf]  ;;  %v3245_v14 = vor.u32 %v3778_v4, %v3242_v6  ;;  %v3705_v50 = vld [vmem:[%s6155_s1 + $0x2d4] sm:$0xf0] }
  0x79   :  { %1778 = vmatpush.bf16.msrb.mxu2 %v3405_v53  ;;  %v3498_v10 = vld [vmem:[%s6155_s1 + $0x730] sm:$0xf0]  ;;  %v3742_v12 = vld [vmem:[%s6155_s1 + $0x404] sm:$0xf]  ;;  %v3373_v15 = vor.u32 %v3810_v7, %v3370_v8  ;;  %v3072_v51 = vld [vmem:[%s6155_s1 + $0x3c8] sm:$0xf]  ;;  %v2689_v53 = vor.u32 %v3641_v45, %v2688_v44  ;;  %v2945_v55 = vor.u32 %v3705_v50, %v2944_v49 }
  0x7a   :  { %1791 = vmatpush.bf16.msrb.mxu3 %v3533_v57  ;;  %v3098_v13 = vld [vmem:[%s6155_s1 + $0x410] sm:$0xf0]  ;;  %v3774_v16 = vld [vmem:[%s6155_s1 + $0x504] sm:$0xf]  ;;  %v3501_v19 = vor.u32 %v3842_v9, %v3498_v10  ;;  %v3737_v52 = vld [vmem:[%s6155_s1 + $0x3d4] sm:$0xf0] }
  0x7b   :  { %1753 = vmatpush.bf16.msrb.mxu0 %v3133_v63  ;;  %v3226_v17 = vld [vmem:[%s6155_s1 + $0x510] sm:$0xf0]  ;;  %v3806_v18 = vld [vmem:[%s6155_s1 + $0x604] sm:$0xf]  ;;  %v3101_v21 = vor.u32 %v3742_v12, %v3098_v13  ;;  %v2672_v56 = vld [vmem:[%s6155_s1 + $0xa8] sm:$0xf]  ;;  %v3073_v59 = vor.u32 %v3737_v52, %v3072_v51 }
  0x7c   :  { %1766 = vmatpush.bf16.msrb.mxu1 %v3261_v0  ;;  %v3354_v23 = vld [vmem:[%s6155_s1 + $0x610] sm:$0xf0]  ;;  %v3838_v24 = vld [vmem:[%s6155_s1 + $0x704] sm:$0xf]  ;;  %v3229_v35 = vor.u32 %v3774_v16, %v3226_v17  ;;  %v3637_v57 = vld [vmem:[%s6155_s1 + $0xb4] sm:$0xf0] }
  0x7d   :  { %1779 = vmatpush.bf16.msrb.mxu2 %v3389_v1  ;;  %v3482_v25 = vld [vmem:[%s6155_s1 + $0x710] sm:$0xf0]  ;;  %v3357_v36 = vor.u32 %v3806_v18, %v3354_v23  ;;  %v2800_v58 = vld [vmem:[%s6155_s1 + $0x1a8] sm:$0xf]  ;;  %v3669_v60 = vld [vmem:[%s6155_s1 + $0x1b4] sm:$0xf0]  ;;  %v2673_v0 = vor.u32 %v3637_v57, %v2672_v56 }
  0x7e   :  { %1792 = vmatpush.bf16.msrb.mxu3 %v3517_v5  ;;  %v3485_v40 = vor.u32 %v3838_v24, %v3482_v25  ;;  %v2928_v61 = vld [vmem:[%s6155_s1 + $0x2a8] sm:$0xf]  ;;  %v3701_v62 = vld [vmem:[%s6155_s1 + $0x2b4] sm:$0xf0]  ;;  %v2801_v1 = vor.u32 %v3669_v60, %v2800_v58 }
  0x7f   :  { %1754 = vmatpush.bf16.msrb.mxu0 %v3117_v11  ;;  %v3733_v63 = vld [vmem:[%s6155_s1 + $0x3b4] sm:$0xf0]  ;;  %v2929_v2 = vor.u32 %v3701_v62, %v2928_v61  ;;  %v2784_v3 = vld [vmem:[%s6155_s1 + $0x188] sm:$0xf] }
  0x80   :  { %1767 = vmatpush.bf16.msrb.mxu1 %v3245_v14  ;;  %v2912_v5 = vld [vmem:[%s6155_s1 + $0x288] sm:$0xf]  ;;  %v3697_v6 = vld [vmem:[%s6155_s1 + $0x294] sm:$0xf0] }
  0x81   :  { %1780 = vmatpush.bf16.msrb.mxu2 %v3373_v15  ;;  %v3040_v7 = vld [vmem:[%s6155_s1 + $0x388] sm:$0xf]  ;;  %v3729_v8 = vld [vmem:[%s6155_s1 + $0x394] sm:$0xf0]  ;;  %v2913_v11 = vor.u32 %v3697_v6, %v2912_v5 }
  0x82   :  { %1793 = vmatpush.bf16.msrb.mxu3 %v3501_v19  ;;  %v2640_v12 = vld [vmem:[%s6155_s1 + $0x68] sm:$0xf]  ;;  %v3629_v13 = vld [vmem:[%s6155_s1 + $0x74] sm:$0xf0]  ;;  %v3041_v15 = vor.u32 %v3729_v8, %v3040_v7 }
  0x83   :  { %1755 = vmatpush.bf16.msrb.mxu0 %v3101_v21  ;;  %v2768_v14 = vld [vmem:[%s6155_s1 + $0x168] sm:$0xf]  ;;  %v3661_v16 = vld [vmem:[%s6155_s1 + $0x174] sm:$0xf0]  ;;  %v2641_v24 = vor.u32 %v3629_v13, %v2640_v12 }
  0x84   :  { %1768 = vmatpush.bf16.msrb.mxu1 %v3229_v35  ;;  %v2896_v17 = vld [vmem:[%s6155_s1 + $0x268] sm:$0xf]  ;;  %v3693_v18 = vld [vmem:[%s6155_s1 + $0x274] sm:$0xf0]  ;;  %v2769_v25 = vor.u32 %v3661_v16, %v2768_v14 }
  0x85   :  { %1781 = vmatpush.bf16.msrb.mxu2 %v3357_v36  ;;  %v3024_v19 = vld [vmem:[%s6155_s1 + $0x368] sm:$0xf]  ;;  %v3725_v23 = vld [vmem:[%s6155_s1 + $0x374] sm:$0xf0]  ;;  %v2897_v27 = vor.u32 %v3693_v18, %v2896_v17 }
  0x86   :  { %1794 = vmatpush.bf16.msrb.mxu3 %v3485_v40  ;;  %1756 = vmatmul.bf16.vlgmr.msrb.gmra.mxu0 %v4492_v31  ;;  %v2656_v31 = vld [vmem:[%s6155_s1 + $0x88] sm:$0xf]  ;;  %v3625_v30 = vld [vmem:[%s6155_s1 + $0x54] sm:$0xf0]  ;;  %v3025_v22 = vor.u32 %v3725_v23, %v3024_v19 }
  0x87   :  { %1800 = vmatpush.bf16.msra.mxu0 %v2705_v41  ;;  %1769 = vmatmul.bf16.vlgmr.msrb.gmra.mxu1 %v4505_v38  ;;  %v3665_v38 = vld [vmem:[%s6155_s1 + $0x194] sm:$0xf0]  ;;  %v2624_v28 = vld [vmem:[%s6155_s1 + $0x48] sm:$0xf] }
  0x88   :  { %1813 = vmatpush.bf16.msra.mxu1 %v2833_v42  ;;  %1782 = vmatmul.bf16.vlgmr.msrb.gmra.mxu2 %v4490_v29  ;;  %v3056_v29 = vld [vmem:[%s6155_s1 + $0x3a8] sm:$0xf]  ;;  %v2785_v10 = vor.u32 %v3665_v38, %v2784_v3  ;;  %v3657_v33 = vld [vmem:[%s6155_s1 + $0x154] sm:$0xf0]  ;;  %v2625_v39 = vor.u32 %v3625_v30, %v2624_v28 }
  0x89   :  { %1826 = vmatpush.bf16.msra.mxu2 %v2961_v43  ;;  %1795 = vmatmul.bf16.vlgmr.msrb.gmra.mxu3 %v4494_v32  ;;  %v3633_v32 = vld [vmem:[%s6155_s1 + $0x94] sm:$0xf0]  ;;  %v3057_v4 = vor.u32 %v3733_v63, %v3056_v29  ;;  %v2752_v21 = vld [vmem:[%s6155_s1 + $0x148] sm:$0xf] }
  0x8a   :  { %1839 = vmatpush.bf16.msra.mxu3 %v3089_v47  ;;  %v2657_v9 = vor.u32 %v3633_v32, %v2656_v31  ;;  %v2880_v34 = vld [vmem:[%s6155_s1 + $0x248] sm:$0xf]  ;;  %v3689_v35 = vld [vmem:[%s6155_s1 + $0x254] sm:$0xf0]  ;;  %v2753_v40 = vor.u32 %v3657_v33, %v2752_v21 }
  0x8b   :  { %1801 = vmatpush.bf16.msra.mxu0 %v2689_v53  ;;  %v3008_v36 = vld [vmem:[%s6155_s1 + $0x348] sm:$0xf]  ;;  %v3721_v37 = vld [vmem:[%s6155_s1 + $0x354] sm:$0xf0]  ;;  %v2881_v41 = vor.u32 %v3689_v35, %v2880_v34 }
  0x8c   :  { %1814 = vmatpush.bf16.msra.mxu1 %v2817_v54  ;;  %v2608_v42 = vld [vmem:[%s6155_s1 + $0x28] sm:$0xf]  ;;  %v3621_v43 = vld [vmem:[%s6155_s1 + $0x34] sm:$0xf0]  ;;  %v3009_v45 = vor.u32 %v3721_v37, %v3008_v36  ;;  %v5111_v36 = vld [vmem:[#allocation1] sm:$0xff] }
  0x8d   :  { %1827 = vmatpush.bf16.msra.mxu2 %v2945_v55  ;;  %v2736_v44 = vld [vmem:[%s6155_s1 + $0x128] sm:$0xf]  ;;  %v3653_v46 = vld [vmem:[%s6155_s1 + $0x134] sm:$0xf0]  ;;  %v2609_v51 = vor.u32 %v3621_v43, %v2608_v42 }
  0x8e   :  { %1840 = vmatpush.bf16.msra.mxu3 %v3073_v59  ;;  %v2864_v47 = vld [vmem:[%s6155_s1 + $0x228] sm:$0xf]  ;;  %v3685_v48 = vld [vmem:[%s6155_s1 + $0x234] sm:$0xf0]  ;;  %v2737_v54 = vor.u32 %v3653_v46, %v2736_v44 }
  0x8f   :  { %1802 = vmatpush.bf16.msra.mxu0 %v2673_v0  ;;  %v2992_v49 = vld [vmem:[%s6155_s1 + $0x328] sm:$0xf]  ;;  %v3717_v50 = vld [vmem:[%s6155_s1 + $0x334] sm:$0xf0]  ;;  %v2865_v55 = vor.u32 %v3685_v48, %v2864_v47 }
  0x90   :  { %1815 = vmatpush.bf16.msra.mxu1 %v2801_v1  ;;  %v2592_v52 = vld [vmem:[%s6155_s1 + $0x8] sm:$0xf]  ;;  %v3617_v53 = vld [vmem:[%s6155_s1 + $0x14] sm:$0xf0]  ;;  %v2993_v59 = vor.u32 %v3717_v50, %v2992_v49 }
  0x91   :  { %1828 = vmatpush.bf16.msra.mxu2 %v2929_v2  ;;  %v2720_v56 = vld [vmem:[%s6155_s1 + $0x108] sm:$0xf]  ;;  %v3649_v57 = vld [vmem:[%s6155_s1 + $0x114] sm:$0xf0]  ;;  %v2593_v1 = vor.u32 %v3617_v53, %v2592_v52 }
  0x92   :  { %1841 = vmatpush.bf16.msra.mxu3 %v3057_v4  ;;  %v2848_v58 = vld [vmem:[%s6155_s1 + $0x208] sm:$0xf]  ;;  %v3681_v60 = vld [vmem:[%s6155_s1 + $0x214] sm:$0xf0]  ;;  %v2721_v3 = vor.u32 %v3649_v57, %v2720_v56 }
  0x93   :  { %1803 = vmatpush.bf16.msra.mxu0 %v2657_v9  ;;  %v2976_v61 = vld [vmem:[%s6155_s1 + $0x308] sm:$0xf]  ;;  %v3713_v62 = vld [vmem:[%s6155_s1 + $0x314] sm:$0xf0]  ;;  %v2849_v4 = vor.u32 %v3681_v60, %v2848_v58 }
  0x94   :  { %1816 = vmatpush.bf16.msra.mxu1 %v2785_v10  ;;  %v3216_v29 = vld [vmem:[%s6155_s1 + $0x4e8] sm:$0xf]  ;;  %v3773_v63 = vld [vmem:[%s6155_s1 + $0x4f4] sm:$0xf0]  ;;  %v2977_v6 = vor.u32 %v3713_v62, %v2976_v61 }
  0x95   :  { %1829 = vmatpush.bf16.msra.mxu2 %v2913_v11  ;;  %v3344_v0 = vld [vmem:[%s6155_s1 + $0x5e8] sm:$0xf]  ;;  %v3805_v2 = vld [vmem:[%s6155_s1 + $0x5f4] sm:$0xf0]  ;;  %v3217_v7 = vor.u32 %v3773_v63, %v3216_v29 }
  0x96   :  { %1842 = vmatpush.bf16.msra.mxu3 %v3041_v15  ;;  %v3472_v31 = vld [vmem:[%s6155_s1 + $0x6e8] sm:$0xf]  ;;  %v3837_v32 = vld [vmem:[%s6155_s1 + $0x6f4] sm:$0xf0]  ;;  %v3345_v8 = vor.u32 %v3805_v2, %v3344_v0 }
  0x97   :  { %1804 = vmatpush.bf16.msra.mxu0 %v2641_v24  ;;  %v3600_v38 = vld [vmem:[%s6155_s1 + $0x7e8] sm:$0xf]  ;;  %v3869_v5 = vld [vmem:[%s6155_s1 + $0x7f4] sm:$0xf0]  ;;  %v3473_v9 = vor.u32 %v3837_v32, %v3472_v31 }
  0x98   :  { %1817 = vmatpush.bf16.msra.mxu1 %v2769_v25  ;;  %v3200_v10 = vld [vmem:[%s6155_s1 + $0x4c8] sm:$0xf]  ;;  %v3769_v11 = vld [vmem:[%s6155_s1 + $0x4d4] sm:$0xf0]  ;;  %v3601_v13 = vor.u32 %v3869_v5, %v3600_v38 }
  0x99   :  { %1830 = vmatpush.bf16.msra.mxu2 %v2897_v27  ;;  %v3328_v12 = vld [vmem:[%s6155_s1 + $0x5c8] sm:$0xf]  ;;  %v3801_v14 = vld [vmem:[%s6155_s1 + $0x5d4] sm:$0xf0]  ;;  %v3201_v19 = vor.u32 %v3769_v11, %v3200_v10 }
  0x9a   :  { %1843 = vmatpush.bf16.msra.mxu3 %v3025_v22  ;;  %v3456_v15 = vld [vmem:[%s6155_s1 + $0x6c8] sm:$0xf]  ;;  %v3833_v16 = vld [vmem:[%s6155_s1 + $0x6d4] sm:$0xf0]  ;;  %v3329_v23 = vor.u32 %v3801_v14, %v3328_v12 }
  0x9b   :  { %1805 = vmatpush.bf16.msra.mxu0 %v2625_v39  ;;  %v3584_v17 = vld [vmem:[%s6155_s1 + $0x7c8] sm:$0xf]  ;;  %v3865_v18 = vld [vmem:[%s6155_s1 + $0x7d4] sm:$0xf0]  ;;  %v3457_v24 = vor.u32 %v3833_v16, %v3456_v15 }
  0x9c   :  { %1818 = vmatpush.bf16.msra.mxu1 %v2753_v40  ;;  %v3184_v25 = vld [vmem:[%s6155_s1 + $0x4a8] sm:$0xf]  ;;  %v3765_v27 = vld [vmem:[%s6155_s1 + $0x4b4] sm:$0xf0]  ;;  %v3585_v30 = vor.u32 %v3865_v18, %v3584_v17 }
  0x9d   :  { %1831 = vmatpush.bf16.msra.mxu2 %v2881_v41  ;;  %v3312_v28 = vld [vmem:[%s6155_s1 + $0x5a8] sm:$0xf]  ;;  %v3797_v21 = vld [vmem:[%s6155_s1 + $0x5b4] sm:$0xf0]  ;;  %v3185_v39 = vor.u32 %v3765_v27, %v3184_v25 }
  0x9e   :  { %1844 = vmatpush.bf16.msra.mxu3 %v3009_v45  ;;  %v3440_v22 = vld [vmem:[%s6155_s1 + $0x6a8] sm:$0xf]  ;;  %v3829_v33 = vld [vmem:[%s6155_s1 + $0x6b4] sm:$0xf0] }
  0x9f   :  { %1806 = vmatpush.bf16.msra.mxu0 %v2609_v51  ;;  %v3568_v34 = vld [vmem:[%s6155_s1 + $0x7a8] sm:$0xf]  ;;  %v3861_v35 = vld [vmem:[%s6155_s1 + $0x7b4] sm:$0xf0]  ;;  %v3441_v40 = vor.u32 %v3829_v33, %v3440_v22 }
  0xa0   :  { %1819 = vmatpush.bf16.msra.mxu1 %v2737_v54  ;;  %v5114_v37 = vld [vmem:[#allocation1 + $0x1b] sm:$0xff]  ;;  %v3168_v41 = vld [vmem:[%s6155_s1 + $0x488] sm:$0xf]  ;;  %v3569_v44 = vor.u32 %v3861_v35, %v3568_v34 }
  0xa1   :  { %1832 = vmatpush.bf16.msra.mxu2 %v2865_v55  ;;  %v3761_v42 = vld [vmem:[%s6155_s1 + $0x494] sm:$0xf0]  ;;  %v3296_v43 = vld [vmem:[%s6155_s1 + $0x588] sm:$0xf] }
  0xa2   :  { %1845 = vmatpush.bf16.msra.mxu3 %v2993_v59  ;;  %v3424_v45 = vld [vmem:[%s6155_s1 + $0x688] sm:$0xf]  ;;  %v3825_v46 = vld [vmem:[%s6155_s1 + $0x694] sm:$0xf0]  ;;  %v3169_v49 = vor.u32 %v3761_v42, %v3168_v41  ;;  %v3643_v42 = vld [vmem:[%s6155_s1 + $0xec] sm:$0xf] }
  0xa3   :  { %1807 = vmatpush.bf16.msra.mxu0 %v2593_v1  ;;  %v3552_v47 = vld [vmem:[%s6155_s1 + $0x788] sm:$0xf]  ;;  %v3857_v48 = vld [vmem:[%s6155_s1 + $0x794] sm:$0xf0]  ;;  %v3425_v51 = vor.u32 %v3825_v46, %v3424_v45  ;;  %v2834_v45 = vld [vmem:[%s6155_s1 + $0x1f8] sm:$0xf0] }
  0xa4   :  { %1820 = vmatpush.bf16.msra.mxu1 %v2721_v3  ;;  %v3152_v52 = vld [vmem:[%s6155_s1 + $0x468] sm:$0xf]  ;;  %v3757_v53 = vld [vmem:[%s6155_s1 + $0x474] sm:$0xf0]  ;;  %v3553_v55 = vor.u32 %v3857_v48, %v3552_v47  ;;  %v3707_v46 = vld [vmem:[%s6155_s1 + $0x2ec] sm:$0xf] }
  0xa5   :  { %1833 = vmatpush.bf16.msra.mxu2 %v2849_v4  ;;  %v3280_v54 = vld [vmem:[%s6155_s1 + $0x568] sm:$0xf]  ;;  %v3789_v56 = vld [vmem:[%s6155_s1 + $0x574] sm:$0xf0]  ;;  %v3153_v61 = vor.u32 %v3757_v53, %v3152_v52  ;;  %v2962_v47 = vld [vmem:[%s6155_s1 + $0x2f8] sm:$0xf0] }
  0xa6   :  { %1846 = vmatpush.bf16.msra.mxu3 %v2977_v6  ;;  %1808 = vmatmul.bf16.vlgmr.msra.gmra.mxu0 %v5111_v36  ;;  %v3408_v57 = vld [vmem:[%s6155_s1 + $0x668] sm:$0xf]  ;;  %v3821_v58 = vld [vmem:[%s6155_s1 + $0x674] sm:$0xf0]  ;;  %v3281_v62 = vor.u32 %v3789_v56, %v3280_v54  ;;  %v3739_v52 = vld [vmem:[%s6155_s1 + $0x3ec] sm:$0xf] }
  0xa7   :  { %1852 = vmatpush.bf16.msrb.mxu0 %v3217_v7  ;;  %1821 = vmatmul.bf16.vlgmr.msra.gmra.mxu1 %v4359_v26  ;;  %v3793_v26 = vld [vmem:[%s6155_s1 + $0x594] sm:$0xf0]  ;;  %v3536_v59 = vld [vmem:[%s6155_s1 + $0x768] sm:$0xf]  ;;  %v3409_v29 = vor.u32 %v3821_v58, %v3408_v57  ;;  %v3090_v53 = vld [vmem:[%s6155_s1 + $0x3f8] sm:$0xf0]  ;;  %v2965_v58 = vor.u32 %v3707_v46, %v2962_v47 }
  0xa8   :  { %1865 = vmatpush.bf16.msrb.mxu1 %v3345_v8  ;;  %1834 = vmatmul.bf16.vlgmr.msra.gmra.mxu2 %v4346_v20  ;;  %v3313_v20 = vor.u32 %v3797_v21, %v3312_v28  ;;  %v3297_v50 = vor.u32 %v3793_v26, %v3296_v43  ;;  %v3853_v60 = vld [vmem:[%s6155_s1 + $0x774] sm:$0xf0]  ;;  %v3136_v63 = vld [vmem:[%s6155_s1 + $0x448] sm:$0xf]  ;;  %v2706_v43 = vld [vmem:[%s6155_s1 + $0xf8] sm:$0xf0] }
  0xa9   :  { %1878 = vmatpush.bf16.msrb.mxu2 %v3473_v9  ;;  %1847 = vmatmul.bf16.vlgmr.msra.gmra.mxu3 %v5114_v37  ;;  %v3753_v0 = vld [vmem:[%s6155_s1 + $0x454] sm:$0xf0]  ;;  %v3264_v1 = vld [vmem:[%s6155_s1 + $0x548] sm:$0xf]  ;;  %v3537_v2 = vor.u32 %v3853_v60, %v3536_v59  ;;  %v2709_v56 = vor.u32 %v3643_v42, %v2706_v43  ;;  %v3639_v59 = vld [vmem:[%s6155_s1 + $0xcc] sm:$0xf] }
  0xaa   :  { %1891 = vmatpush.bf16.msrb.mxu3 %v3601_v13  ;;  %v3785_v31 = vld [vmem:[%s6155_s1 + $0x554] sm:$0xf0]  ;;  %v3392_v32 = vld [vmem:[%s6155_s1 + $0x648] sm:$0xf]  ;;  %v3137_v5 = vor.u32 %v3753_v0, %v3136_v63  ;;  %v2690_v60 = vld [vmem:[%s6155_s1 + $0xd8] sm:$0xf0] }
  0xab   :  { %1853 = vmatpush.bf16.msrb.mxu0 %v3201_v19  ;;  %v3817_v3 = vld [vmem:[%s6155_s1 + $0x654] sm:$0xf0]  ;;  %v3520_v4 = vld [vmem:[%s6155_s1 + $0x748] sm:$0xf]  ;;  %v3265_v7 = vor.u32 %v3785_v31, %v3264_v1  ;;  %v3703_v63 = vld [vmem:[%s6155_s1 + $0x2cc] sm:$0xf] }
  0xac   :  { %1866 = vmatpush.bf16.msrb.mxu1 %v3329_v23  ;;  %v3849_v38 = vld [vmem:[%s6155_s1 + $0x754] sm:$0xf0]  ;;  %v3393_v8 = vor.u32 %v3817_v3, %v3392_v32  ;;  %v3120_v9 = vld [vmem:[%s6155_s1 + $0x428] sm:$0xf]  ;;  %v2946_v0 = vld [vmem:[%s6155_s1 + $0x2d8] sm:$0xf0]  ;;  %v2693_v32 = vor.u32 %v3639_v59, %v2690_v60 }
  0xad   :  { %1879 = vmatpush.bf16.msrb.mxu2 %v3457_v24  ;;  %v3749_v10 = vld [vmem:[%s6155_s1 + $0x434] sm:$0xf0]  ;;  %v3248_v11 = vld [vmem:[%s6155_s1 + $0x528] sm:$0xf]  ;;  %v3521_v13 = vor.u32 %v3849_v38, %v3520_v4  ;;  %v3735_v1 = vld [vmem:[%s6155_s1 + $0x3cc] sm:$0xf]  ;;  %v2949_v38 = vor.u32 %v3703_v63, %v2946_v0 }
  0xae   :  { %1892 = vmatpush.bf16.msrb.mxu3 %v3585_v30  ;;  %v3781_v14 = vld [vmem:[%s6155_s1 + $0x534] sm:$0xf0]  ;;  %v3376_v15 = vld [vmem:[%s6155_s1 + $0x628] sm:$0xf]  ;;  %v3121_v23 = vor.u32 %v3749_v10, %v3120_v9  ;;  %v2802_v10 = vld [vmem:[%s6155_s1 + $0x1b8] sm:$0xf0] }
  0xaf   :  { %1854 = vmatpush.bf16.msrb.mxu0 %v3185_v39  ;;  %v3813_v16 = vld [vmem:[%s6155_s1 + $0x634] sm:$0xf0]  ;;  %v3504_v18 = vld [vmem:[%s6155_s1 + $0x728] sm:$0xf]  ;;  %v3249_v27 = vor.u32 %v3781_v14, %v3248_v11  ;;  %v3699_v11 = vld [vmem:[%s6155_s1 + $0x2ac] sm:$0xf] }
  0xb0   :  { %1867 = vmatpush.bf16.msrb.mxu1 %v3313_v20  ;;  %v3845_v19 = vld [vmem:[%s6155_s1 + $0x734] sm:$0xf0]  ;;  %v3104_v24 = vld [vmem:[%s6155_s1 + $0x408] sm:$0xf]  ;;  %v3377_v28 = vor.u32 %v3813_v16, %v3376_v15  ;;  %v5312_v14 = vld [vmem:[#allocation1 + $0x3f] sm:$0xff] }
  0xb1   :  { %1880 = vmatpush.bf16.msrb.mxu2 %v3441_v40  ;;  %v1614_v12 = vpop.f32.mrf.mxu1  ;;  %v3745_v25 = vld [vmem:[%s6155_s1 + $0x414] sm:$0xf0]  ;;  %v3232_v30 = vld [vmem:[%s6155_s1 + $0x508] sm:$0xf]  ;;  %v3505_v34 = vor.u32 %v3845_v19, %v3504_v18  ;;  %v3731_v15 = vld [vmem:[%s6155_s1 + $0x3ac] sm:$0xf] }
  0xb2   :  { %1893 = vmatpush.bf16.msrb.mxu3 %v3569_v44  ;;  %v1601_v6 = vpop.f32.mrf.mxu0  ;;  %v3777_v21 = vld [vmem:[%s6155_s1 + $0x514] sm:$0xf0]  ;;  %v3360_v22 = vld [vmem:[%s6155_s1 + $0x608] sm:$0xf]  ;;  %v3675_v44 = vld [vmem:[%s6155_s1 + $0x1ec] sm:$0xf]  ;;  %v3105_v26 = vor.u32 %v3745_v25, %v3104_v24 }
  0xb3   :  { %1855 = vmatpush.bf16.msrb.mxu0 %v3169_v49  ;;  %v1615_v17 = vadd.f32 %v1614_v12, %v1601_v6  ;;  %v3809_v35 = vld [vmem:[%s6155_s1 + $0x614] sm:$0xf0]  ;;  %v3488_v39 = vld [vmem:[%s6155_s1 + $0x708] sm:$0xf]  ;;  %v2837_v57 = vor.u32 %v3675_v44, %v2834_v45  ;;  %v2674_v6 = vld [vmem:[%s6155_s1 + $0xb8] sm:$0xf0] }
  0xb4   :  { %1868 = vmatpush.bf16.msrb.mxu1 %v3297_v50  ;;  %v3841_v20 = vld [vmem:[%s6155_s1 + $0x714] sm:$0xf0]  ;;  %v3233_v50 = vor.u32 %v3777_v21, %v3232_v30  ;;  %v2930_v12 = vld [vmem:[%s6155_s1 + $0x2b8] sm:$0xf0]  ;;  %v3631_v24 = vld [vmem:[%s6155_s1 + $0x8c] sm:$0xf] }
  0xb5   :  { %1881 = vmatpush.bf16.msrb.mxu2 %v3425_v51  ;;  %v3361_v51 = vor.u32 %v3809_v35, %v3360_v22  ;;  %v3058_v16 = vld [vmem:[%s6155_s1 + $0x3b8] sm:$0xf0]  ;;  %v3695_v21 = vld [vmem:[%s6155_s1 + $0x28c] sm:$0xf] }
  0xb6   :  { %1894 = vmatpush.bf16.msrb.mxu3 %v3553_v55  ;;  %v3489_v55 = vor.u32 %v3841_v20, %v3488_v39  ;;  %v2658_v25 = vld [vmem:[%s6155_s1 + $0x98] sm:$0xf0]  ;;  %v3659_v43 = vld [vmem:[%s6155_s1 + $0x16c] sm:$0xf] }
  0xb7   :  { %1856 = vmatpush.bf16.msrb.mxu0 %v3153_v61  ;;  %v1627_v33 = vpop.f32.mrf.mxu2  ;;  %v3671_v61 = vld [vmem:[%s6155_s1 + $0x1cc] sm:$0xf]  ;;  %v2786_v30 = vld [vmem:[%s6155_s1 + $0x198] sm:$0xf0]  ;;  %v2661_v35 = vor.u32 %v3631_v24, %v2658_v25 }
  0xb8   :  { %1869 = vmatpush.bf16.msrb.mxu1 %v3281_v62  ;;  %v1628_v40 = vadd.f32 %v1627_v33, %v1615_v17  ;;  %v3093_v62 = vor.u32 %v3739_v52, %v3090_v53  ;;  %v5321_v17 = vld [vmem:[#allocation1 + $0x2d] sm:$0xff]  ;;  %v2914_v22 = vld [vmem:[%s6155_s1 + $0x298] sm:$0xf0] }
  0xb9   :  { %1882 = vmatpush.bf16.msrb.mxu2 %v3409_v29  ;;  %v1640_v41 = vpop.f32.mrf.mxu3  ;;  %v1616_v54 = vpop.f32.mrf.mxu1  ;;  %v2818_v29 = vld [vmem:[%s6155_s1 + $0x1d8] sm:$0xf0]  ;;  %v3727_v33 = vld [vmem:[%s6155_s1 + $0x38c] sm:$0xf] }
  0xba   :  { %1895 = vmatpush.bf16.msrb.mxu3 %v3537_v2  ;;  %v5256_v48 = vadd.f32 %v1640_v41, %v1628_v40  ;;  %v1603_v49 = vpop.f32.mrf.mxu0  ;;  %v3074_v2 = vld [vmem:[%s6155_s1 + $0x3d8] sm:$0xf0]  ;;  %v2821_v4 = vor.u32 %v3671_v61, %v2818_v29  ;;  %v2917_v40 = vor.u32 %v3695_v21, %v2914_v22  ;;  %v3627_v41 = vld [vmem:[%s6155_s1 + $0x6c] sm:$0xf] }
  0xbb   :  { %1857 = vmatpush.bf16.msrb.mxu0 %v3137_v5  ;;  %v3635_v5 = vld [vmem:[%s6155_s1 + $0xac] sm:$0xf]  ;;  %v3077_v9 = vor.u32 %v3735_v1, %v3074_v2  ;;  %v2642_v42 = vld [vmem:[%s6155_s1 + $0x78] sm:$0xf0] }
  0xbc   :  { %1870 = vmatpush.bf16.msrb.mxu1 %v3265_v7  ;;  %v3667_v7 = vld [vmem:[%s6155_s1 + $0x1ac] sm:$0xf]  ;;  %v2677_v18 = vor.u32 %v3635_v5, %v2674_v6  ;;  %v2770_v46 = vld [vmem:[%s6155_s1 + $0x178] sm:$0xf0]  ;;  %v2645_v52 = vor.u32 %v3627_v41, %v2642_v42 }
  0xbd   :  { %1883 = vmatpush.bf16.msrb.mxu2 %v3393_v8  ;;  %v5297_v8 = vld [vmem:[#allocation1 + $0x36] sm:$0xff]  ;;  %v2805_v19 = vor.u32 %v3667_v7, %v2802_v10  ;;  %v3691_v47 = vld [vmem:[%s6155_s1 + $0x26c] sm:$0xf]  ;;  %v2773_v53 = vor.u32 %v3659_v43, %v2770_v46 }
  0xbe   :  { %1896 = vmatpush.bf16.msrb.mxu3 %v3521_v13  ;;  %v5309_v13 = vld [vmem:[#allocation1 + $0x24] sm:$0xff]  ;;  %v2898_v49 = vld [vmem:[%s6155_s1 + $0x278] sm:$0xf0]  ;;  %v3687_v61 = vld [vmem:[%s6155_s1 + $0x24c] sm:$0xf] }
  0xbf   :  { %1858 = vmatpush.bf16.msrb.mxu0 %v3121_v23  ;;  %v1629_v31 = vpop.f32.mrf.mxu2  ;;  %v2933_v23 = vor.u32 %v3699_v11, %v2930_v12  ;;  %v2901_v54 = vor.u32 %v3691_v47, %v2898_v49  ;;  %v2754_v60 = vld [vmem:[%s6155_s1 + $0x158] sm:$0xf0]  ;;  %v3719_v0 = vld [vmem:[%s6155_s1 + $0x34c] sm:$0xf] }
  0xc0   :  { %1871 = vmatpush.bf16.msrb.mxu1 %v3249_v27  ;;  %v3663_v27 = vld [vmem:[%s6155_s1 + $0x18c] sm:$0xf]  ;;  %v3010_v1 = vld [vmem:[%s6155_s1 + $0x358] sm:$0xf0] }
  0xc1   :  { %1884 = vmatpush.bf16.msrb.mxu2 %v3377_v28  ;;  %v1642_v3 = vpop.f32.mrf.mxu3  ;;  %v3061_v28 = vor.u32 %v3731_v15, %v3058_v16  ;;  %v2789_v20 = vor.u32 %v3663_v27, %v2786_v30  ;;  %v2610_v5 = vld [vmem:[%s6155_s1 + $0x38] sm:$0xf0]  ;;  %v3651_v6 = vld [vmem:[%s6155_s1 + $0x12c] sm:$0xf] }
  0xc2   :  { %1897 = vmatpush.bf16.msrb.mxu3 %v3505_v34  ;;  %v3042_v34 = vld [vmem:[%s6155_s1 + $0x398] sm:$0xf0]  ;;  %v3683_v11 = vld [vmem:[%s6155_s1 + $0x22c] sm:$0xf] }
  0xc3   :  { %1859 = vmatpush.bf16.msrb.mxu0 %v3105_v26  ;;  %v1653_v39 = vpop.f32.mrf.mxu0  ;;  %v3045_v45 = vor.u32 %v3727_v33, %v3042_v34  ;;  %v2738_v10 = vld [vmem:[%s6155_s1 + $0x138] sm:$0xf0]  ;;  %v3715_v15 = vld [vmem:[%s6155_s1 + $0x32c] sm:$0xf] }
  0xc4   :  { %1872 = vmatpush.bf16.msrb.mxu1 %v3233_v50  ;;  %v1654_v44 = vadd.f32 %v1653_v39, %v5256_v48  ;;  %v1666_v26 = vpop.f32.mrf.mxu1  ;;  %v3723_v50 = vld [vmem:[%s6155_s1 + $0x36c] sm:$0xf]  ;;  %v3026_v48 = vld [vmem:[%s6155_s1 + $0x378] sm:$0xf0]  ;;  %v2741_v24 = vor.u32 %v3651_v6, %v2738_v10 }
  0xc5   :  { %1885 = vmatpush.bf16.msrb.mxu2 %v3361_v51  ;;  %v3029_v59 = vor.u32 %v3723_v50, %v3026_v48  ;;  %v2866_v12 = vld [vmem:[%s6155_s1 + $0x238] sm:$0xf0]  ;;  %v3647_v27 = vld [vmem:[%s6155_s1 + $0x10c] sm:$0xf] }
  0xc6   :  { %1898 = vmatpush.bf16.msrb.mxu3 %v3489_v55  ;;  %1860 = vmatmul.bf16.vlgmr.msrb.gmra.mxu0 %v5309_v13  ;;  %v1667_v51 = vadd.f32 %v1666_v26, %v1654_v44  ;;  %v3623_v55 = vld [vmem:[%s6155_s1 + $0x4c] sm:$0xf]  ;;  %v2994_v16 = vld [vmem:[%s6155_s1 + $0x338] sm:$0xf0]  ;;  %v2869_v25 = vor.u32 %v3683_v11, %v2866_v12 }
  0xc7   :  { %1904 = vmatpush.bf16.msra.mxu0 %v2709_v56  ;;  %1873 = vmatmul.bf16.vlgmr.msrb.gmra.mxu1 %v5321_v17  ;;  %v2626_v56 = vld [vmem:[%s6155_s1 + $0x58] sm:$0xf0]  ;;  %v3679_v30 = vld [vmem:[%s6155_s1 + $0x20c] sm:$0xf]  ;;  %v2997_v22 = vor.u32 %v3715_v15, %v2994_v16 }
  0xc8   :  { %1917 = vmatpush.bf16.msra.mxu1 %v2837_v57  ;;  %1886 = vmatmul.bf16.vlgmr.msrb.gmra.mxu2 %v5297_v8  ;;  %v3655_v57 = vld [vmem:[%s6155_s1 + $0x14c] sm:$0xf]  ;;  %v2629_v2 = vor.u32 %v3623_v55, %v2626_v56  ;;  %v2850_v33 = vld [vmem:[%s6155_s1 + $0x218] sm:$0xf0] }
  0xc9   :  { %1930 = vmatpush.bf16.msra.mxu2 %v2965_v58  ;;  %1899 = vmatmul.bf16.vlgmr.msrb.gmra.mxu3 %v5312_v14  ;;  %v2757_v3 = vor.u32 %v3655_v57, %v2754_v60  ;;  %v3711_v34 = vld [vmem:[%s6155_s1 + $0x30c] sm:$0xf]  ;;  %v3346_v43 = vld [vmem:[%s6155_s1 + $0x5f8] sm:$0xf0]  ;;  %v2853_v46 = vor.u32 %v3679_v30, %v2850_v33 }
  0xca   :  { %1943 = vmatpush.bf16.msra.mxu3 %v3093_v62  ;;  %v2882_v62 = vld [vmem:[%s6155_s1 + $0x258] sm:$0xf0]  ;;  %v3803_v41 = vld [vmem:[%s6155_s1 + $0x5ec] sm:$0xf] }
  0xcb   :  { %1905 = vmatpush.bf16.msra.mxu0 %v2693_v32  ;;  %v1679_v58 = vpop.f32.mrf.mxu2  ;;  %v1655_v32 = vpop.f32.mrf.mxu0  ;;  %v3835_v44 = vld [vmem:[%s6155_s1 + $0x6ec] sm:$0xf]  ;;  %v3474_v26 = vld [vmem:[%s6155_s1 + $0x6f8] sm:$0xf0] }
  0xcc   :  { %1918 = vmatpush.bf16.msra.mxu1 %v2821_v4  ;;  %v1680_v29 = vadd.f32 %v1679_v58, %v1667_v51  ;;  %v1692_v63 = vpop.f32.mrf.mxu3  ;;  %v2885_v4 = vor.u32 %v3687_v61, %v2882_v62  ;;  %v1668_v7 = vpop.f32.mrf.mxu1  ;;  %v3867_v47 = vld [vmem:[%s6155_s1 + $0x7ec] sm:$0xf]  ;;  %v3602_v49 = vld [vmem:[%s6155_s1 + $0x7f8] sm:$0xf0]  ;;  %v3349_v51 = vor.u32 %v3803_v41, %v3346_v43 }
  0xcd   :  { %1931 = vmatpush.bf16.msra.mxu2 %v2949_v38  ;;  %v3619_v38 = vld [vmem:[%s6155_s1 + $0x2c] sm:$0xf]  ;;  %v3605_v56 = vor.u32 %v3867_v47, %v3602_v49  ;;  %v3330_v57 = vld [vmem:[%s6155_s1 + $0x5d8] sm:$0xf0] }
  0xce   :  { %1944 = vmatpush.bf16.msra.mxu3 %v3077_v9  ;;  %v5397_v31 = vadd.f32 %v1692_v63, %v1680_v29  ;;  %v3013_v9 = vor.u32 %v3719_v0, %v3010_v1  ;;  %v3799_v55 = vld [vmem:[%s6155_s1 + $0x5cc] sm:$0xf]  ;;  %v3586_v61 = vld [vmem:[%s6155_s1 + $0x7d8] sm:$0xf0] }
  0xcf   :  { %1906 = vmatpush.bf16.msra.mxu0 %v2677_v18  ;;  %v2613_v18 = vor.u32 %v3619_v38, %v2610_v5  ;;  %v3831_v58 = vld [vmem:[%s6155_s1 + $0x6cc] sm:$0xf]  ;;  %v3333_v29 = vor.u32 %v3799_v55, %v3330_v57  ;;  %v3186_v1 = vld [vmem:[%s6155_s1 + $0x4b8] sm:$0xf0] }
  0xd0   :  { %1919 = vmatpush.bf16.msra.mxu1 %v2805_v19  ;;  %v3615_v19 = vld [vmem:[%s6155_s1 + $0xc] sm:$0xf]  ;;  %v3442_v5 = vld [vmem:[%s6155_s1 + $0x6b8] sm:$0xf0] }
  0xd1   :  { %1932 = vmatpush.bf16.msra.mxu2 %v2933_v23  ;;  %v2594_v23 = vld [vmem:[%s6155_s1 + $0x18] sm:$0xf0]  ;;  %v3863_v60 = vld [vmem:[%s6155_s1 + $0x7cc] sm:$0xf] }
  0xd2   :  { %1945 = vmatpush.bf16.msra.mxu3 %v3061_v28  ;;  %v2722_v28 = vld [vmem:[%s6155_s1 + $0x118] sm:$0xf0]  ;;  %v2597_v42 = vor.u32 %v3615_v19, %v2594_v23  ;;  %v3763_v0 = vld [vmem:[%s6155_s1 + $0x4ac] sm:$0xf]  ;;  %v3589_v32 = vor.u32 %v3863_v60, %v3586_v61 }
  0xd3   :  { %1907 = vmatpush.bf16.msra.mxu0 %v2661_v35  ;;  %v1681_v21 = vpop.f32.mrf.mxu2  ;;  %v2978_v35 = vld [vmem:[%s6155_s1 + $0x318] sm:$0xf0]  ;;  %v3827_v38 = vld [vmem:[%s6155_s1 + $0x6ac] sm:$0xf] }
  0xd4   :  { %1920 = vmatpush.bf16.msra.mxu1 %v2789_v20  ;;  %v1694_v39 = vpop.f32.mrf.mxu3  ;;  %v3771_v20 = vld [vmem:[%s6155_s1 + $0x4ec] sm:$0xf]  ;;  %v2981_v50 = vor.u32 %v3711_v34, %v2978_v35  ;;  %v3570_v7 = vld [vmem:[%s6155_s1 + $0x7b8] sm:$0xf0]  ;;  %v3445_v12 = vor.u32 %v3827_v38, %v3442_v5 }
  0xd5   :  { %1933 = vmatpush.bf16.msra.mxu2 %v2917_v40  ;;  %v3218_v40 = vld [vmem:[%s6155_s1 + $0x4f8] sm:$0xf0]  ;;  %v3859_v6 = vld [vmem:[%s6155_s1 + $0x7ac] sm:$0xf] }
  0xd6   :  { %1946 = vmatpush.bf16.msra.mxu3 %v3045_v45  ;;  %v2725_v45 = vor.u32 %v3647_v27, %v2722_v28  ;;  %v3221_v48 = vor.u32 %v3771_v20, %v3218_v40  ;;  %v3901_v10 = vld [vmem:[#allocation1 + $0x9] sm:$0xff]  ;;  %v3170_v16 = vld [vmem:[%s6155_s1 + $0x498] sm:$0xf0] }
  0xd7   :  { %1908 = vmatpush.bf16.msra.mxu0 %v2645_v52  ;;  %v3477_v52 = vor.u32 %v3835_v44, %v3474_v26  ;;  %v3759_v15 = vld [vmem:[%s6155_s1 + $0x48c] sm:$0xf]  ;;  %v3426_v23 = vld [vmem:[%s6155_s1 + $0x698] sm:$0xf0] }
  0xd8   :  { %1921 = vmatpush.bf16.msra.mxu1 %v2773_v53  ;;  %v3767_v53 = vld [vmem:[%s6155_s1 + $0x4cc] sm:$0xf]  ;;  %v3173_v27 = vor.u32 %v3759_v15, %v3170_v16  ;;  %v3154_v33 = vld [vmem:[%s6155_s1 + $0x478] sm:$0xf0] }
  0xd9   :  { %1934 = vmatpush.bf16.msra.mxu2 %v2901_v54  ;;  %v3202_v54 = vld [vmem:[%s6155_s1 + $0x4d8] sm:$0xf0]  ;;  %v3823_v19 = vld [vmem:[%s6155_s1 + $0x68c] sm:$0xf] }
  0xda   :  { %1947 = vmatpush.bf16.msra.mxu3 %v3029_v59  ;;  %v3458_v59 = vld [vmem:[%s6155_s1 + $0x6d8] sm:$0xf0]  ;;  %v3205_v62 = vor.u32 %v3767_v53, %v3202_v54  ;;  %v3429_v21 = vor.u32 %v3823_v19, %v3426_v23  ;;  %v3787_v34 = vld [vmem:[%s6155_s1 + $0x56c] sm:$0xf] }
  0xdb   :  { %1909 = vmatpush.bf16.msra.mxu0 %v2629_v2  ;;  %v3461_v63 = vor.u32 %v3831_v58, %v3458_v59  ;;  %v3795_v2 = vld [vmem:[%s6155_s1 + $0x5ac] sm:$0xf]  ;;  %v3282_v20 = vld [vmem:[%s6155_s1 + $0x578] sm:$0xf0] }
  0xdc   :  { %1922 = vmatpush.bf16.msra.mxu1 %v2757_v3  ;;  %v3900_v3 = vld [vmem:[#allocation1 + $0x12] sm:$0xff]  ;;  %v3819_v40 = vld [vmem:[%s6155_s1 + $0x66c] sm:$0xf]  ;;  %v3410_v41 = vld [vmem:[%s6155_s1 + $0x678] sm:$0xf0]  ;;  %v3285_v26 = vor.u32 %v3787_v34, %v3282_v20 }
  0xdd   :  { %1935 = vmatpush.bf16.msra.mxu2 %v2885_v4  ;;  %v3314_v4 = vld [vmem:[%s6155_s1 + $0x5b8] sm:$0xf0]  ;;  %v3783_v49 = vld [vmem:[%s6155_s1 + $0x54c] sm:$0xf] }
  0xde   :  { %1948 = vmatpush.bf16.msra.mxu3 %v3013_v9  ;;  %v3189_v9 = vor.u32 %v3763_v0, %v3186_v1  ;;  %v3317_v11 = vor.u32 %v3795_v2, %v3314_v4  ;;  %v3538_v43 = vld [vmem:[%s6155_s1 + $0x778] sm:$0xf0]  ;;  %v3847_v55 = vld [vmem:[%s6155_s1 + $0x74c] sm:$0xf] }
  0xdf   :  { %1910 = vmatpush.bf16.msra.mxu0 %v2613_v18  ;;  %v3298_v18 = vld [vmem:[%s6155_s1 + $0x598] sm:$0xf0]  ;;  %v3747_v61 = vld [vmem:[%s6155_s1 + $0x42c] sm:$0xf] }
  0xe0   :  { %1923 = vmatpush.bf16.msra.mxu1 %v2741_v24  ;;  %v3855_v24 = vld [vmem:[%s6155_s1 + $0x78c] sm:$0xf]  ;;  %v3138_v47 = vld [vmem:[%s6155_s1 + $0x458] sm:$0xf0] }
  0xe1   :  { %1936 = vmatpush.bf16.msra.mxu2 %v2869_v25  ;;  %v3554_v25 = vld [vmem:[%s6155_s1 + $0x798] sm:$0xf0]  ;;  %v3811_v2 = vld [vmem:[%s6155_s1 + $0x62c] sm:$0xf] }
  0xe2   :  { %1949 = vmatpush.bf16.msra.mxu3 %v2997_v22  ;;  %v3755_v22 = vld [vmem:[%s6155_s1 + $0x46c] sm:$0xf]  ;;  %v3557_v39 = vor.u32 %v3855_v24, %v3554_v25  ;;  %v3394_v53 = vld [vmem:[%s6155_s1 + $0x658] sm:$0xf0] }
  0xe3   :  { %1911 = vmatpush.bf16.msra.mxu0 %v2597_v42  ;;  %v5545_v28 = vpop.f32.mrf.mxu0  ;;  %v3851_v42 = vld [vmem:[%s6155_s1 + $0x76c] sm:$0xf]  ;;  %v3157_v44 = vor.u32 %v3755_v22, %v3154_v33  ;;  %v3250_v1 = vld [vmem:[%s6155_s1 + $0x538] sm:$0xf0]  ;;  %v2054_v33 = vld [vmem:[%s6158_s4 + $0x70] sm:$0xff] }
  0xe4   :  { %1924 = vmatpush.bf16.msra.mxu1 %v2725_v45  ;;  %v5556_v35 = vpop.f32.mrf.mxu1  ;;  %v3413_v45 = vor.u32 %v3819_v40, %v3410_v41  ;;  %v3506_v4 = vld [vmem:[%s6155_s1 + $0x738] sm:$0xf0]  ;;  %v3807_v16 = vld [vmem:[%s6155_s1 + $0x60c] sm:$0xf]  ;;  %v2050_v41 = vld [vmem:[%s6158_s4 + $0x50] sm:$0xff] }
  0xe5   :  { %1937 = vmatpush.bf16.msra.mxu2 %v2853_v46  ;;  %v3751_v46 = vld [vmem:[%s6155_s1 + $0x44c] sm:$0xf]  ;;  %v3234_v15 = vld [vmem:[%s6155_s1 + $0x518] sm:$0xf0] }
  0xe6   :  { %1950 = vmatpush.bf16.msra.mxu3 %v2981_v50  ;;  %1912 = vmatmul.bf16.vlgmr.msra.gmra.mxu0 %v5111_v36  ;;  %v3791_v36 = vld [vmem:[%s6155_s1 + $0x58c] sm:$0xf]  ;;  %v3141_v57 = vor.u32 %v3751_v46, %v3138_v47  ;;  %v3490_v19 = vld [vmem:[%s6155_s1 + $0x718] sm:$0xf0] }
  0xe7   :  { %1956 = vmatpush.bf16.msrb.mxu0 %v3221_v48  ;;  %1925 = vmatmul.bf16.vlgmr.msra.gmra.mxu1 %v3901_v10  ;;  %v3301_v30 = vor.u32 %v3791_v36, %v3298_v18  ;;  %v3541_v48 = vor.u32 %v3851_v42, %v3538_v43  ;;  %v3775_v10 = vld [vmem:[%s6155_s1 + $0x50c] sm:$0xf]  ;;  %v3362_v36 = vld [vmem:[%s6155_s1 + $0x618] sm:$0xf0]  ;;  %v2086_v43 = vld [vmem:[%s6158_s4 + $0x170] sm:$0xff] }
  0xe8   :  { %1969 = vmatpush.bf16.msrb.mxu1 %v3349_v51  ;;  %1938 = vmatmul.bf16.vlgmr.msra.gmra.mxu2 %v3900_v3  ;;  %v3266_v51 = vld [vmem:[%s6155_s1 + $0x558] sm:$0xf0]  ;;  %v3843_v3 = vld [vmem:[%s6155_s1 + $0x72c] sm:$0xf]  ;;  %v3237_v24 = vor.u32 %v3775_v10, %v3234_v15  ;;  %v3365_v25 = vor.u32 %v3807_v16, %v3362_v36  ;;  %v2060_v10 = vld [vmem:[%s6158_s4 + $0xa0] sm:$0xff] }
  0xe9   :  { %1982 = vmatpush.bf16.msrb.mxu2 %v3477_v52  ;;  %1951 = vmatmul.bf16.vlgmr.msra.gmra.mxu3 %v5114_v37  ;;  %v3573_v37 = vor.u32 %v3859_v6, %v3570_v7  ;;  %v3815_v52 = vld [vmem:[%s6155_s1 + $0x64c] sm:$0xf]  ;;  %v3269_v59 = vor.u32 %v3783_v49, %v3266_v51  ;;  %v2071_v22 = vld [vmem:[%s6158_s4 + $0xf8] sm:$0xff]  ;;  %v2064_v51 = vld [vmem:[%s6158_s4 + $0xc0] sm:$0xff] }
  0xea   :  { %1995 = vmatpush.bf16.msrb.mxu3 %v3605_v56  ;;  %v3522_v56 = vld [vmem:[%s6155_s1 + $0x758] sm:$0xf0]  ;;  %v3397_v60 = vor.u32 %v3815_v52, %v3394_v53  ;;  %v3743_v7 = vld [vmem:[%s6155_s1 + $0x40c] sm:$0xf] }
  0xeb   :  { %1957 = vmatpush.bf16.msrb.mxu0 %v3205_v62  ;;  %v5582_v50 = vpop.f32.mrf.mxu2  ;;  %v1707_v58 = vpop.f32.mrf.mxu0  ;;  %v3122_v62 = vld [vmem:[%s6155_s1 + $0x438] sm:$0xf0]  ;;  %v3525_v0 = vor.u32 %v3847_v55, %v3522_v56  ;;  %v3839_v18 = vld [vmem:[%s6155_s1 + $0x70c] sm:$0xf]  ;;  %v2084_v56 = vld [vmem:[%s6158_s4 + $0x160] sm:$0xff] }
  0xec   :  { %1970 = vmatpush.bf16.msrb.mxu1 %v3333_v29  ;;  %v5593_v54 = vpop.f32.mrf.mxu3  ;;  %v3779_v29 = vld [vmem:[%s6155_s1 + $0x52c] sm:$0xf]  ;;  %v3125_v38 = vor.u32 %v3747_v61, %v3122_v62  ;;  %v2087_v20 = vld [vmem:[%s6158_s4 + $0x178] sm:$0xff]  ;;  %v5726_v58 = vld [vmem:[%s6156_s2] sm:$0xf]  ;;  %s2553_s2 = sshll.u32 %s6164_s10, 4  ;;  %s2554_s2 = int_to_ptr.hbm [resolvable:$true] %s2553_s2 }
  0xed   :  { %1983 = vmatpush.bf16.msrb.mxu2 %v3461_v63  ;;  %v1720_v63 = vpop.f32.mrf.mxu1  ;;  %v3253_v5 = vor.u32 %v3779_v29, %v3250_v1  ;;  %v2067_v40 = vld [vmem:[%s6158_s4 + $0xd8] sm:$0xff]  ;;  %v2049_v46 = vld [vmem:[%s6158_s4 + $0x48] sm:$0xff]  ;;  %v2082_v62 = vld [vmem:[%s6158_s4 + $0x150] sm:$0xff] }
  0xee   :  { %1996 = vmatpush.bf16.msrb.mxu3 %v3589_v32  ;;  %v3378_v32 = vld [vmem:[%s6155_s1 + $0x638] sm:$0xf0]  ;;  %v2065_v47 = vld [vmem:[%s6158_s4 + $0xc8] sm:$0xff]  ;;  %v2062_v29 = vld [vmem:[%s6158_s4 + $0xb0] sm:$0xff] }
  0xef   :  { %1958 = vmatpush.bf16.msrb.mxu0 %v3189_v9  ;;  %v3381_v6 = vor.u32 %v3811_v2, %v3378_v32  ;;  %v3106_v9 = vld [vmem:[%s6155_s1 + $0x418] sm:$0xf0]  ;;  %v2010_v2 = vperm.slane %v5726_v58, 0  ;;  %v2045_v32 = vld [vmem:[%s6158_s4 + $0x28] sm:$0xff] }
  0xf0   :  { %1971 = vmatpush.bf16.msrb.mxu1 %v3317_v11  ;;  %v3109_v23 = vor.u32 %v3743_v7, %v3106_v9  ;;  %v2047_v53 = vld [vmem:[%s6158_s4 + $0x38] sm:$0xff] }
  0xf1   :  { %1984 = vmatpush.bf16.msrb.mxu2 %v3445_v12  ;;  %v3509_v12 = vor.u32 %v3843_v3, %v3506_v4  ;;  %v5748_v3 = vld [vmem:[%s6157_s3] sm:$0xf]  ;;  %v2061_v4 = vld [vmem:[%s6158_s4 + $0xa8] sm:$0xff]  ;;  %v2043_v16 = vld [vmem:[%s6158_s4 + $0x18] sm:$0xff] }
  0xf2   :  { %1997 = vmatpush.bf16.msrb.mxu3 %v3573_v37  ;;  %v2025_v9 = vperm.slane %v5748_v3, 1  ;;  %v2024_v15 = vperm.slane %v5748_v3, 0 }
  0xf3   :  { %1959 = vmatpush.bf16.msrb.mxu0 %v3173_v27  ;;  %v1733_v11 = vpop.f32.mrf.mxu2  ;;  %v3493_v27 = vor.u32 %v3839_v18, %v3490_v19  ;;  %v2042_v18 = vld [vmem:[%s6158_s4 + $0x10] sm:$0xff] }
  0xf4   :  { %1972 = vmatpush.bf16.msrb.mxu1 %v3301_v30  ;;  %v1746_v37 = vpop.f32.mrf.mxu3  ;;  %v2055_v30 = vld [vmem:[%s6158_s4 + $0x78] sm:$0xff]  ;;  %v2058_v19 = vld [vmem:[%s6158_s4 + $0x90] sm:$0xff] }
  0xf5   :  { %1985 = vmatpush.bf16.msrb.mxu2 %v3429_v21  ;;  %v1719_v21 = vadd.f32 %v5556_v35, %v5545_v28  ;;  %v2070_v28 = vld [vmem:[%s6158_s4 + $0xf0] sm:$0xff]  ;;  %v2053_v35 = vld [vmem:[%s6158_s4 + $0x68] sm:$0xff]  ;;  %v2059_v37 = vld [vmem:[%s6158_s4 + $0x98] sm:$0xff] }
  0xf6   :  { %1998 = vmatpush.bf16.msrb.mxu3 %v3557_v39  ;;  %v2052_v39 = vld [vmem:[%s6158_s4 + $0x60] sm:$0xff] }
  0xf7   :  { %1960 = vmatpush.bf16.msrb.mxu0 %v3157_v44  ;;  %v1732_v34 = vadd.f32 %v5582_v50, %v1719_v21  ;;  %v2066_v44 = vld [vmem:[%s6158_s4 + $0xd0] sm:$0xff]  ;;  %v2048_v50 = vld [vmem:[%s6158_s4 + $0x40] sm:$0xff] }
  0xf8   :  { %1973 = vmatpush.bf16.msrb.mxu1 %v3285_v26  ;;  %v2056_v21 = vld [vmem:[%s6158_s4 + $0x80] sm:$0xff] }
  0xf9   :  { %1986 = vmatpush.bf16.msrb.mxu2 %v3413_v45 }
  0xfa   :  { %1999 = vmatpush.bf16.msrb.mxu3 %v3541_v48  ;;  %v2085_v48 = vld [vmem:[%s6158_s4 + $0x168] sm:$0xff] }
  0xfb   :  { %1961 = vmatpush.bf16.msrb.mxu0 %v3141_v57  ;;  %v2083_v57 = vld [vmem:[%s6158_s4 + $0x158] sm:$0xff] }
  0xfc   :  { %1974 = vmatpush.bf16.msrb.mxu1 %v3269_v59  ;;  %v2063_v59 = vld [vmem:[%s6158_s4 + $0xb8] sm:$0xff] }
  0xfd   :  { %1987 = vmatpush.bf16.msrb.mxu2 %v3397_v60  ;;  %v2046_v60 = vld [vmem:[%s6158_s4 + $0x30] sm:$0xff] }
  0xfe   :  { %2000 = vmatpush.bf16.msrb.mxu3 %v3525_v0  ;;  %v2011_v0 = vperm.slane %v5726_v58, 1 }
  0xff   :  { %1962 = vmatpush.bf16.msrb.mxu0 %v3125_v38  ;;  %v2081_v38 = vld [vmem:[%s6158_s4 + $0x148] sm:$0xff] }
 0x100   :  { %1975 = vmatpush.bf16.msrb.mxu1 %v3253_v5  ;;  %v2044_v5 = vld [vmem:[%s6158_s4 + $0x20] sm:$0xff] }
 0x101   :  { %1988 = vmatpush.bf16.msrb.mxu2 %v3381_v6  ;;  %v2080_v6 = vld [vmem:[%s6158_s4 + $0x140] sm:$0xff] }
 0x102   :  { %2001 = vmatpush.bf16.msrb.mxu3 %v3509_v12  ;;  %v2018_v12 = vmul.f32 %v2010_v2, %v5397_v31 }
 0x103   :  { %1963 = vmatpush.bf16.msrb.mxu0 %v3109_v23  ;;  %v1757_v42 = vpop.f32.mrf.mxu0 }
 0x104   :  { %1976 = vmatpush.bf16.msrb.mxu1 %v3237_v24  ;;  %v1770_v45 = vpop.f32.mrf.mxu1  ;;  %v5782_v23 = vadd.f32 %v2024_v15, %v2018_v12  ;;  %v2041_v24 = vld [vmem:[%s6158_s4 + $0x8] sm:$0xff] }
 0x105   :  { %1989 = vmatpush.bf16.msrb.mxu2 %v3365_v25  ;;  %v2057_v25 = vld [vmem:[%s6158_s4 + $0x88] sm:$0xff] }
 0x106   :  { %2002 = vmatpush.bf16.msrb.mxu3 %v3493_v27  ;;  %1964 = vmatmul.bf16.vlgmr.msrb.gmra.mxu0 %v5309_v13  ;;  %v2069_v13 = vld [vmem:[%s6158_s4 + $0xe8] sm:$0xff]  ;;  %v2040_v27 = vld [vmem:[%s6158_s4] sm:$0xff] }
 0x107   :  { %2104 = vmatpush.msra.mxu0 %v2055_v30  ;;  %1977 = vmatmul.bf16.vlgmr.msrb.gmra.mxu1 %v5321_v17  ;;  %v1745_v17 = vadd.f32 %v5593_v54, %v1732_v34  ;;  %v2093_v15 = vld [vmem:[%s6158_s4 + $0x1a8] sm:$0xff] }
 0x108   :  { %2124 = vmatpush.msra.mxu1 %v2071_v22  ;;  %1990 = vmatmul.bf16.vlgmr.msrb.gmra.mxu2 %v5297_v8  ;;  %v2068_v8 = vld [vmem:[%s6158_s4 + $0xe0] sm:$0xff]  ;;  %v2036_v22 = vmax.f32 %v5782_v23, 0.0 }
 0x109   :  { %2003 = vmatmul.bf16.vlgmr.msrb.gmra.mxu3 %v5312_v14  ;;  %2105 = vmatpush.msra.mxu0 %v2054_v33  ;;  %v2051_v14 = vld [vmem:[%s6158_s4 + $0x58] sm:$0xff]  ;;  %v1758_v26 = vadd.f32 %v1757_v42, %v1745_v17  ;;  %v2073_v42 = vld [vmem:[%s6158_s4 + $0x108] sm:$0xff] }
 0x10a   :  { %2125 = vmatpush.msra.mxu1 %v2070_v28  ;;  %2144 = vmatpush.msra.mxu2 %v2087_v20  ;;  %v2079_v33 = vld [vmem:[%s6158_s4 + $0x138] sm:$0xff] }
 0x10b   :  { %2106 = vmatpush.msra.mxu0 %v2053_v35  ;;  %v1771_v49 = vadd.f32 %v1770_v45, %v1758_v26  ;;  %v1783_v52 = vpop.f32.mrf.mxu2  ;;  %v1759_v61 = vpop.f32.mrf.mxu0  ;;  %v2078_v35 = vld [vmem:[%s6158_s4 + $0x130] sm:$0xff]  ;;  %v2072_v26 = vld [vmem:[%s6158_s4 + $0x100] sm:$0xff] }
 0x10c   :  { %2126 = vmatpush.msra.mxu1 %v2069_v13  ;;  %2145 = vmatpush.msra.mxu2 %v2086_v43  ;;  %v1796_v55 = vpop.f32.mrf.mxu3  ;;  %v1772_v1 = vpop.f32.mrf.mxu1  ;;  %v2077_v13 = vld [vmem:[%s6158_s4 + $0x128] sm:$0xff] }
 0x10d   :  { %2107 = vmatpush.msra.mxu0 %v2052_v39  ;;  %v1784_v54 = vadd.f32 %v1783_v52, %v1771_v49  ;;  %v2100_v1 = vld [vmem:[%s6158_s4 + $0x1e0] sm:$0xff] }
 0x10e   :  { %2127 = vmatpush.msra.mxu1 %v2068_v8  ;;  %2146 = vmatpush.msra.mxu2 %v2085_v48 }
 0x10f   :  { %2108 = vmatpush.msra.mxu0 %v2051_v14  ;;  %v1797_v63 = vadd.f32 %v1796_v55, %v1784_v54  ;;  %v2076_v14 = vld [vmem:[%s6158_s4 + $0x120] sm:$0xff]  ;;  %v2012_v55 = vperm.slane %v5726_v58, 2 }
 0x110   :  { %2128 = vmatpush.msra.mxu1 %v2067_v40  ;;  %2147 = vmatpush.msra.mxu2 %v2084_v56  ;;  %v2075_v40 = vld [vmem:[%s6158_s4 + $0x118] sm:$0xff] }
 0x111   :  { %2109 = vmatpush.msra.mxu0 %v2050_v41  ;;  %v2019_v7 = vmul.f32 %v2011_v0, %v1797_v63  ;;  %v2074_v41 = vld [vmem:[%s6158_s4 + $0x110] sm:$0xff]  ;;  %v2103_v56 = vld [vmem:[%s6158_s4 + $0x1f8] sm:$0xff]  ;;  %v2101_v63 = vld [vmem:[%s6158_s4 + $0x1e8] sm:$0xff] }
 0x112   :  { %2129 = vmatpush.msra.mxu1 %v2066_v44  ;;  %2148 = vmatpush.msra.mxu2 %v2083_v57  ;;  %v2102_v57 = vld [vmem:[%s6158_s4 + $0x1f0] sm:$0xff] }
 0x113   :  { %2110 = vmatpush.msra.mxu0 %v2049_v46  ;;  %v1785_v11 = vpop.f32.mrf.mxu2  ;;  %v5777_v31 = vadd.f32 %v2025_v9, %v2019_v7  ;;  %2164 = vmatpush.msra.mxu3 %v2103_v56  ;;  %v2096_v7 = vld [vmem:[%s6158_s4 + $0x1c0] sm:$0xff]  ;;  %v2095_v9 = vld [vmem:[%s6158_s4 + $0x1b8] sm:$0xff] }
 0x114   :  { %2130 = vmatpush.msra.mxu1 %v2065_v47  ;;  %2149 = vmatpush.msra.mxu2 %v2082_v62  ;;  %v1798_v36 = vpop.f32.mrf.mxu3  ;;  %v2094_v11 = vld [vmem:[%s6158_s4 + $0x1b0] sm:$0xff]  ;;  %v2196_v56 = vld [vmem:[%s6159_s5 + $0x58] sm:$0xff] }
 0x115   :  { %2111 = vmatpush.msra.mxu0 %v2048_v50  ;;  %v2037_v30 = vmax.f32 %v5777_v31, 0.0  ;;  %2165 = vmatpush.msra.mxu3 %v2102_v57  ;;  %v2191_v57 = vld [vmem:[%s6159_s5 + $0x30] sm:$0xff] }
 0x116   :  { %2131 = vmatpush.msra.mxu1 %v2064_v51  ;;  %2150 = vmatpush.msra.mxu2 %v2081_v38 }
 0x117   :  { %2112 = vmatpush.msra.mxu0 %v2047_v53  ;;  %2166 = vmatpush.msra.mxu3 %v2101_v63  ;;  %v2186_v63 = vld [vmem:[%s6159_s5 + $0x8] sm:$0xff] }
 0x118   :  { %2132 = vmatpush.msra.mxu1 %v2063_v59  ;;  %2151 = vmatpush.msra.mxu2 %v2080_v6  ;;  %v2097_v6 = vld [vmem:[%s6158_s4 + $0x1c8] sm:$0xff] }
 0x119   :  { %2113 = vmatpush.msra.mxu0 %v2046_v60  ;;  %v2026_v60 = vperm.slane %v5748_v3, 2  ;;  %2167 = vmatpush.msra.mxu3 %v2100_v1  ;;  %v2188_v1 = vld [vmem:[%s6159_s5 + $0x18] sm:$0xff] }
 0x11a   :  { %2133 = vmatpush.msra.mxu1 %v2062_v29  ;;  %2152 = vmatpush.msra.mxu2 %v2079_v33 }
 0x11b   :  { %2114 = vmatpush.msra.mxu0 %v2045_v32  ;;  %v2099_v32 = vld [vmem:[%s6158_s4 + $0x1d8] sm:$0xff] }
 0x11c   :  { %2134 = vmatpush.msra.mxu1 %v2061_v4  ;;  %2153 = vmatpush.msra.mxu2 %v2078_v35 }
 0x11d   :  { %2115 = vmatpush.msra.mxu0 %v2044_v5  ;;  %v2098_v5 = vld [vmem:[%s6158_s4 + $0x1d0] sm:$0xff]  ;;  %2168 = vmatpush.msra.mxu3 %v2099_v32 }
 0x11e   :  { %2135 = vmatpush.msra.mxu1 %v2060_v10  ;;  %2154 = vmatpush.msra.mxu2 %v2077_v13 }
 0x11f   :  { %2116 = vmatpush.msra.mxu0 %v2043_v16  ;;  %2169 = vmatpush.msra.mxu3 %v2098_v5 }
 0x120   :  { %2136 = vmatpush.msra.mxu1 %v2059_v37  ;;  %2155 = vmatpush.msra.mxu2 %v2076_v14  ;;  %v2092_v37 = vld [vmem:[%s6158_s4 + $0x1a0] sm:$0xff] }
 0x121   :  { %2117 = vmatpush.msra.mxu0 %v2042_v18  ;;  %2170 = vmatpush.msra.mxu3 %v2097_v6 }
 0x122   :  { %2137 = vmatpush.msra.mxu1 %v2058_v19  ;;  %2156 = vmatpush.msra.mxu2 %v2075_v40  ;;  %v2091_v19 = vld [vmem:[%s6158_s4 + $0x198] sm:$0xff] }
 0x123   :  { %2118 = vmatpush.msra.mxu0 %v2041_v24  ;;  %v1809_v28 = vpop.f32.mrf.mxu0  ;;  %2171 = vmatpush.msra.mxu3 %v2096_v7 }
 0x124   :  { %2138 = vmatpush.msra.mxu1 %v2057_v25  ;;  %v1822_v34 = vpop.f32.mrf.mxu1  ;;  %2157 = vmatpush.msra.mxu2 %v2074_v41  ;;  %v2090_v25 = vld [vmem:[%s6158_s4 + $0x190] sm:$0xff] }
 0x125   :  { %2119 = vmatpush.msra.mxu0 %v2040_v27  ;;  %v1823_v45 = vadd.f32 %v1822_v34, %v1809_v28  ;;  %2172 = vmatpush.msra.mxu3 %v2095_v9  ;;  %v2089_v27 = vld [vmem:[%s6158_s4 + $0x188] sm:$0xff] }
 0x126   :  { %2139 = vmatpush.msra.mxu1 %v2056_v21  ;;  %2120 = vmatmul.f32.vlgmr.msra.gmra.mxu0 %v2036_v22  ;;  %v2088_v21 = vld [vmem:[%s6158_s4 + $0x180] sm:$0xff]  ;;  %s2540_s4 = sshll.u32 %s3982_s29, 4  ;;  %s2541_s4 = int_to_ptr.vmem [resolvable:$true] %s2540_s4 }
 0x127   :  { %2140 = vmatmul.f32.vlgmr.msra.gmra.mxu1 %v2037_v30  ;;  %2158 = vmatpush.msra.mxu2 %v2073_v42  ;;  %v2013_v42 = vperm.slane %v5726_v58, 3  ;;  %v2197_v58 = vld [vmem:[%s6159_s5 + $0x60] sm:$0xff] }
 0x128   :  { %2173 = vmatpush.msra.mxu3 %v2094_v11  ;;  %2217 = vmatpush.msrb.mxu0 %v2197_v58  ;;  %v2380_v11 = vld [vmem:[%s6160_s6 + $0x78] sm:$0xff]  ;;  %v2422_v58 = vld [vmem:[%s6160_s6 + $0x1c8] sm:$0xff] }
 0x129   :  { %2159 = vmatpush.msra.mxu2 %v2072_v26 }
 0x12a   :  { %2174 = vmatpush.msra.mxu3 %v2093_v15  ;;  %v2379_v15 = vld [vmem:[%s6160_s6 + $0x70] sm:$0xff] }
 0x12b   :  { %v1835_v39 = vpop.f32.mrf.mxu2  ;;  %v1811_v8 = vpop.f32.mrf.mxu0 }
 0x12c   :  { %v1848_v17 = vpop.f32.mrf.mxu3  ;;  %v1824_v20 = vpop.f32.mrf.mxu1  ;;  %v1836_v46 = vadd.f32 %v1835_v39, %v1823_v45  ;;  %2175 = vmatpush.msra.mxu3 %v2092_v37  ;;  %v2027_v45 = vperm.slane %v5748_v3, 3  ;;  %v2198_v3 = vld [vmem:[%s6159_s5 + $0x68] sm:$0xff] }
 0x12d   :  { %2237 = vmatpush.msrb.mxu1 %v2198_v3  ;;  %v2394_v37 = vld [vmem:[%s6160_s6 + $0xe8] sm:$0xff] }
 0x12e   :  { %v1849_v47 = vadd.f32 %v1848_v17, %v1836_v46  ;;  %2176 = vmatpush.msra.mxu3 %v2091_v19  ;;  %v2393_v19 = vld [vmem:[%s6160_s6 + $0xe0] sm:$0xff]  ;;  %v2370_v3 = vld [vmem:[%s6160_s6 + $0x28] sm:$0xff] }
 0x130   :  { %2177 = vmatpush.msra.mxu3 %v2090_v25  ;;  %v2428_v25 = vld [vmem:[%s6160_s6 + $0x1f8] sm:$0xff] }
 0x132   :  { %2178 = vmatpush.msra.mxu3 %v2089_v27  ;;  %v2376_v27 = vld [vmem:[%s6160_s6 + $0x58] sm:$0xff] }
 0x133   :  { %v1837_v43 = vpop.f32.mrf.mxu2 }
 0x134   :  { %v1850_v44 = vpop.f32.mrf.mxu3  ;;  %2179 = vmatpush.msra.mxu3 %v2088_v21  ;;  %v2392_v21 = vld [vmem:[%s6160_s6 + $0xd8] sm:$0xff] }
 0x143   :  { %v1861_v49 = vpop.f32.mrf.mxu0 }
 0x144   :  { %v1862_v50 = vadd.f32 %v1861_v49, %v1849_v47  ;;  %v1874_v48 = vpop.f32.mrf.mxu1 }
 0x146   :  { %v1875_v51 = vadd.f32 %v1874_v48, %v1862_v50 }
 0x14b   :  { %v1887_v52 = vpop.f32.mrf.mxu2  ;;  %v1863_v61 = vpop.f32.mrf.mxu0 }
 0x14c   :  { %v1888_v53 = vadd.f32 %v1887_v52, %v1875_v51  ;;  %v1900_v54 = vpop.f32.mrf.mxu3  ;;  %v1876_v62 = vpop.f32.mrf.mxu1  ;;  %v2199_v51 = vld [vmem:[%s6159_s5 + $0x70] sm:$0xff]  ;;  %v2200_v52 = vld [vmem:[%s6159_s5 + $0x78] sm:$0xff] }
 0x14d   :  { %2257 = vmatpush.msrb.mxu2 %v2199_v51  ;;  %2277 = vmatpush.msrb.mxu3 %v2200_v52  ;;  %v2192_v61 = vld [vmem:[%s6159_s5 + $0x38] sm:$0xff]  ;;  %v2187_v62 = vld [vmem:[%s6159_s5 + $0x10] sm:$0xff]  ;;  %v2406_v51 = vld [vmem:[%s6160_s6 + $0x148] sm:$0xff] }
 0x14e   :  { %v1901_v59 = vadd.f32 %v1900_v54, %v1888_v53  ;;  %v2195_v53 = vld [vmem:[%s6159_s5 + $0x50] sm:$0xff]  ;;  %v2193_v54 = vld [vmem:[%s6159_s5 + $0x40] sm:$0xff]  ;;  %v2386_v52 = vld [vmem:[%s6160_s6 + $0xa8] sm:$0xff] }
 0x14f   :  { %2258 = vmatpush.msrb.mxu2 %v2195_v53  ;;  %2218 = vmatpush.msrb.mxu0 %v2193_v54  ;;  %v2405_v53 = vld [vmem:[%s6160_s6 + $0x140] sm:$0xff] }
 0x150   :  { %v2020_v29 = vmul.f32 %v2012_v55, %v1901_v59  ;;  %v2194_v55 = vld [vmem:[%s6159_s5 + $0x48] sm:$0xff]  ;;  %2278 = vmatpush.msrb.mxu3 %v2196_v56  ;;  %v2189_v59 = vld [vmem:[%s6159_s5 + $0x20] sm:$0xff] }
 0x151   :  { %2238 = vmatpush.msrb.mxu1 %v2194_v55  ;;  %2259 = vmatpush.msrb.mxu2 %v2191_v57  ;;  %v2421_v54 = vld [vmem:[%s6160_s6 + $0x1c0] sm:$0xff]  ;;  %v2404_v57 = vld [vmem:[%s6160_s6 + $0x138] sm:$0xff] }
 0x152   :  { %v5837_v0 = vadd.f32 %v2026_v60, %v2020_v29  ;;  %v2190_v60 = vld [vmem:[%s6159_s5 + $0x28] sm:$0xff]  ;;  %2219 = vmatpush.msrb.mxu0 %v2189_v59  ;;  %v2185_v29 = vld [vmem:[%s6159_s5] sm:$0xff]  ;;  %2279 = vmatpush.msrb.mxu3 %v2192_v61  ;;  %v2420_v59 = vld [vmem:[%s6160_s6 + $0x1b8] sm:$0xff] }
 0x153   :  { %v1889_v2 = vpop.f32.mrf.mxu2  ;;  %2239 = vmatpush.msrb.mxu1 %v2190_v60  ;;  %2260 = vmatpush.msrb.mxu2 %v2187_v62  ;;  %v2369_v55 = vld [vmem:[%s6160_s6 + $0x20] sm:$0xff]  ;;  %v2368_v60 = vld [vmem:[%s6160_s6 + $0x18] sm:$0xff]  ;;  %v2403_v62 = vld [vmem:[%s6160_s6 + $0x130] sm:$0xff] }
 0x154   :  { %v2038_v4 = vmax.f32 %v5837_v0, 0.0  ;;  %v1902_v38 = vpop.f32.mrf.mxu3  ;;  %2220 = vmatpush.msrb.mxu0 %v2185_v29  ;;  %2280 = vmatpush.msrb.mxu3 %v2188_v1  ;;  %v2385_v56 = vld [vmem:[%s6160_s6 + $0xa0] sm:$0xff]  ;;  %v2384_v61 = vld [vmem:[%s6160_s6 + $0x98] sm:$0xff]  ;;  %v2419_v29 = vld [vmem:[%s6160_s6 + $0x1b0] sm:$0xff] }
 0x155   :  { %2240 = vmatpush.msrb.mxu1 %v2186_v63  ;;  %v2367_v63 = vld [vmem:[%s6160_s6 + $0x10] sm:$0xff] }
 0x156   :  { %2160 = vmatmul.f32.vlgmr.msra.gmra.mxu2 %v2038_v4  ;;  %2429 = vmatpush.msra.mxu0 %v2380_v11  ;;  %v2383_v1 = vld [vmem:[%s6160_s6 + $0x90] sm:$0xff]  ;;  %v2400_v11 = vld [vmem:[%s6160_s6 + $0x118] sm:$0xff] }
 0x158   :  { %2430 = vmatpush.msra.mxu0 %v2379_v15 }
 0x163   :  { %v1913_v10 = vpop.f32.mrf.mxu0 }
 0x164   :  { %v1926_v12 = vpop.f32.mrf.mxu1 }
 0x165   :  { %v1927_v34 = vadd.f32 %v1926_v12, %v1913_v10  ;;  %v2396_v12 = vld [vmem:[%s6160_s6 + $0xf8] sm:$0xff] }
 0x166   :  { %2449 = vmatpush.msra.mxu1 %v2396_v12  ;;  %v2416_v12 = vld [vmem:[%s6160_s6 + $0x198] sm:$0xff] }
 0x16b   :  { %v1939_v16 = vpop.f32.mrf.mxu2  ;;  %v1915_v18 = vpop.f32.mrf.mxu0 }
 0x16c   :  { %v1952_v36 = vpop.f32.mrf.mxu3  ;;  %v1928_v24 = vpop.f32.mrf.mxu1  ;;  %v1940_v35 = vadd.f32 %v1939_v16, %v1927_v34  ;;  %v2395_v16 = vld [vmem:[%s6160_s6 + $0xf0] sm:$0xff]  ;;  %v2377_v18 = vld [vmem:[%s6160_s6 + $0x60] sm:$0xff] }
 0x16d   :  { %2450 = vmatpush.msra.mxu1 %v2395_v16  ;;  %v2412_v24 = vld [vmem:[%s6160_s6 + $0x178] sm:$0xff]  ;;  %v2375_v34 = vld [vmem:[%s6160_s6 + $0x50] sm:$0xff] }
 0x16e   :  { %v1953_v13 = vadd.f32 %v1952_v36, %v1940_v35  ;;  %v2378_v36 = vld [vmem:[%s6160_s6 + $0x68] sm:$0xff]  ;;  %2469 = vmatpush.msra.mxu2 %v2412_v24  ;;  %v2391_v35 = vld [vmem:[%s6160_s6 + $0xd0] sm:$0xff] }
 0x16f   :  { %2431 = vmatpush.msra.mxu0 %v2378_v36  ;;  %2451 = vmatpush.msra.mxu1 %v2394_v37  ;;  %v2399_v36 = vld [vmem:[%s6160_s6 + $0x110] sm:$0xff]  ;;  %v2398_v24 = vld [vmem:[%s6160_s6 + $0x108] sm:$0xff] }
 0x170   :  { %v2415_v37 = vld [vmem:[%s6160_s6 + $0x190] sm:$0xff] }
 0x171   :  { %2432 = vmatpush.msra.mxu0 %v2377_v18  ;;  %2452 = vmatpush.msra.mxu1 %v2393_v19 }
 0x173   :  { %v1941_v33 = vpop.f32.mrf.mxu2  ;;  %2433 = vmatpush.msra.mxu0 %v2376_v27  ;;  %2453 = vmatpush.msra.mxu1 %v2392_v21  ;;  %v2397_v27 = vld [vmem:[%s6160_s6 + $0x100] sm:$0xff] }
 0x174   :  { %v1954_v28 = vpop.f32.mrf.mxu3  ;;  %v2411_v33 = vld [vmem:[%s6160_s6 + $0x170] sm:$0xff]  ;;  %v2413_v21 = vld [vmem:[%s6160_s6 + $0x180] sm:$0xff] }
 0x175   :  { %v2427_v28 = vld [vmem:[%s6160_s6 + $0x1f0] sm:$0xff]  ;;  %2470 = vmatpush.msra.mxu2 %v2411_v33  ;;  %2434 = vmatpush.msra.mxu0 %v2375_v34  ;;  %v3875_v34 = vld [vmem:[%s6161_s7] ss:$0 sm:$0xff] }
 0x176   :  { %2454 = vmatpush.msra.mxu1 %v2391_v35  ;;  %2513 = vrot.lane.b32.xlu0 %v3875_v34, %s3978_s20 }
 0x183   :  { %v1965_v39 = vpop.f32.mrf.mxu0 }
 0x184   :  { %v1978_v17 = vpop.f32.mrf.mxu1  ;;  %v1966_v8 = vadd.f32 %v1965_v39, %v1953_v13  ;;  %v2410_v13 = vld [vmem:[%s6160_s6 + $0x168] sm:$0xff] }
 0x185   :  { %v2426_v39 = vld [vmem:[%s6160_s6 + $0x1e8] sm:$0xff]  ;;  %2471 = vmatpush.msra.mxu2 %v2410_v13 }
 0x186   :  { %v1979_v14 = vadd.f32 %v1978_v17, %v1966_v8  ;;  %v2374_v17 = vld [vmem:[%s6160_s6 + $0x48] sm:$0xff] }
 0x187   :  { %v2390_v8 = vld [vmem:[%s6160_s6 + $0xc8] sm:$0xff]  ;;  %2435 = vmatpush.msra.mxu0 %v2374_v17 }
 0x188   :  { %2455 = vmatpush.msra.mxu1 %v2390_v8 }
 0x18b   :  { %v1991_v20 = vpop.f32.mrf.mxu2  ;;  %v1967_v43 = vpop.f32.mrf.mxu0 }
 0x18c   :  { %v1992_v40 = vadd.f32 %v1991_v20, %v1979_v14  ;;  %v2004_v41 = vpop.f32.mrf.mxu3  ;;  %v1980_v44 = vpop.f32.mrf.mxu1  ;;  %v2409_v14 = vld [vmem:[%s6160_s6 + $0x160] sm:$0xff]  ;;  %v2424_v43 = vld [vmem:[%s6160_s6 + $0x1d8] sm:$0xff] }
 0x18d   :  { %v2425_v20 = vld [vmem:[%s6160_s6 + $0x1e0] sm:$0xff]  ;;  %2472 = vmatpush.msra.mxu2 %v2409_v14  ;;  %v2372_v44 = vld [vmem:[%s6160_s6 + $0x38] sm:$0xff] }
 0x18e   :  { %v2005_v26 = vadd.f32 %v2004_v41, %v1992_v40  ;;  %v2373_v40 = vld [vmem:[%s6160_s6 + $0x40] sm:$0xff] }
 0x18f   :  { %v2389_v41 = vld [vmem:[%s6160_s6 + $0xc0] sm:$0xff]  ;;  %2436 = vmatpush.msra.mxu0 %v2373_v40 }
 0x190   :  { %v2021_v46 = vmul.f32 %v2013_v42, %v2005_v26  ;;  %v2408_v42 = vld [vmem:[%s6160_s6 + $0x158] sm:$0xff]  ;;  %2456 = vmatpush.msra.mxu1 %v2389_v41 }
 0x191   :  { %2473 = vmatpush.msra.mxu2 %v2408_v42  ;;  %v2388_v26 = vld [vmem:[%s6160_s6 + $0xb8] sm:$0xff]  ;;  %2437 = vmatpush.msra.mxu0 %v2372_v44 }
 0x192   :  { %v5883_v47 = vadd.f32 %v2027_v45, %v2021_v46  ;;  %v2407_v45 = vld [vmem:[%s6160_s6 + $0x150] sm:$0xff]  ;;  %2457 = vmatpush.msra.mxu1 %v2388_v26 }
 0x193   :  { %v1993_v49 = vpop.f32.mrf.mxu2  ;;  %v2423_v46 = vld [vmem:[%s6160_s6 + $0x1d0] sm:$0xff]  ;;  %2474 = vmatpush.msra.mxu2 %v2407_v45 }
 0x194   :  { %v2039_v50 = vmax.f32 %v5883_v47, 0.0  ;;  %v2006_v48 = vpop.f32.mrf.mxu3  ;;  %v2371_v49 = vld [vmem:[%s6160_s6 + $0x30] sm:$0xff] }
 0x195   :  { %v2387_v48 = vld [vmem:[%s6160_s6 + $0xb0] sm:$0xff]  ;;  %2438 = vmatpush.msra.mxu0 %v2371_v49  ;;  %2475 = vmatpush.msra.mxu2 %v2406_v51 }
 0x196   :  { %2180 = vmatmul.f32.vlgmr.msra.gmra.mxu3 %v2039_v50  ;;  %2458 = vmatpush.msra.mxu1 %v2387_v48 }
 0x197   :  { %2489 = vmatpush.msra.mxu3 %v2428_v25  ;;  %2439 = vmatpush.msra.mxu0 %v2370_v3  ;;  %v2414_v25 = vld [vmem:[%s6160_s6 + $0x188] sm:$0xff] }
 0x198   :  { %2459 = vmatpush.msra.mxu1 %v2386_v52  ;;  %2476 = vmatpush.msra.mxu2 %v2405_v53 }
 0x199   :  { %2490 = vmatpush.msra.mxu3 %v2427_v28  ;;  %2440 = vmatpush.msra.mxu0 %v2369_v55 }
 0x19a   :  { %2460 = vmatpush.msra.mxu1 %v2385_v56  ;;  %2477 = vmatpush.msra.mxu2 %v2404_v57 }
 0x19b   :  { %2491 = vmatpush.msra.mxu3 %v2426_v39  ;;  %2441 = vmatpush.msra.mxu0 %v2368_v60 }
 0x19c   :  { %2461 = vmatpush.msra.mxu1 %v2384_v61  ;;  %2478 = vmatpush.msra.mxu2 %v2403_v62 }
 0x19d   :  { %2492 = vmatpush.msra.mxu3 %v2425_v20  ;;  %2442 = vmatpush.msra.mxu0 %v2367_v63 }
 0x19e   :  { %2462 = vmatpush.msra.mxu1 %v2383_v1 }
 0x19f   :  { %2493 = vmatpush.msra.mxu3 %v2424_v43 }
 0x1a1   :  { %2494 = vmatpush.msra.mxu3 %v2423_v46 }
 0x1a3   :  { %v2121_v2 = vpop.f32.mrf.mxu0  ;;  %2495 = vmatpush.msra.mxu3 %v2422_v58 }
 0x1a4   :  { %v2141_v32 = vpop.f32.mrf.mxu1 }
 0x1a5   :  { %v2142_v5 = vadd.f32 %v2141_v32, %v2121_v2  ;;  %2496 = vmatpush.msra.mxu3 %v2421_v54  ;;  %v2402_v2 = vld [vmem:[%s6160_s6 + $0x128] sm:$0xff] }
 0x1a6   :  { %v2418_v32 = vld [vmem:[%s6160_s6 + $0x1a8] sm:$0xff]  ;;  %2479 = vmatpush.msra.mxu2 %v2402_v2 }
 0x1a7   :  { %2497 = vmatpush.msra.mxu3 %v2420_v59 }
 0x1a9   :  { %2498 = vmatpush.msra.mxu3 %v2419_v29 }
 0x1ab   :  { %2499 = vmatpush.msra.mxu3 %v2418_v32 }
 0x1d9   :  { %v2161_v38 = vpop.f32.mrf.mxu2 }
 0x1da   :  { %v2162_v6 = vadd.f32 %v2161_v38, %v2142_v5  ;;  %v2366_v38 = vld [vmem:[%s6160_s6 + $0x8] sm:$0xff] }
 0x1db   :  { %v2382_v5 = vld [vmem:[%s6160_s6 + $0x88] sm:$0xff]  ;;  %2443 = vmatpush.msra.mxu0 %v2366_v38 }
 0x1dc   :  { %2463 = vmatpush.msra.mxu1 %v2382_v5 }
 0x219   :  { %v2181_v7 = vpop.f32.mrf.mxu3 }
 0x21a   :  { %v2182_v9 = vadd.f32 %v2181_v7, %v2162_v6  ;;  %v2401_v6 = vld [vmem:[%s6160_s6 + $0x120] sm:$0xff] }
 0x21b   :  { %v2417_v7 = vld [vmem:[%s6160_s6 + $0x1a0] sm:$0xff]  ;;  %2480 = vmatpush.msra.mxu2 %v2401_v6 }
 0x21c   :  { %v2184_v10 = vmax.f32 %v2182_v9, 0.0  ;;  %v2365_v9 = vld [vmem:[%s6160_s6] sm:$0xff]  ;;  %2500 = vmatpush.msra.mxu3 %v2417_v7 }
 0x21d   :  { %2444 = vmatpush.msra.mxu0 %v2365_v9  ;;  %2481 = vmatpush.msra.mxu2 %v2400_v11 }
 0x21e   :  { %3606 = vmatmul.msk.f32.vlgmr.msrb.gmra.mxu0 %vm2201_vm0, %v2184_v10  ;;  %3607 = vmatmul.msk.f32.vlgmr.msrb.gmra.mxu1 %vm2201_vm0, %v2184_v10 }
 0x21f   :  { %3608 = vmatmul.msk.f32.vlgmr.msrb.gmra.mxu2 %vm2201_vm0, %v2184_v10  ;;  %3609 = vmatmul.msk.f32.vlgmr.msrb.gmra.mxu3 %vm2201_vm0, %v2184_v10  ;;  %v2381_v10 = vld [vmem:[%s6160_s6 + $0x80] sm:$0xff]  ;;  %s3979_s6 = smov 118  }
 0x220   :  { %2464 = vmatpush.msra.mxu1 %v2381_v10  ;;  %2501 = vmatpush.msra.mxu3 %v2416_v12 }
 0x221   :  { %2482 = vmatpush.msra.mxu2 %v2399_v36 }
 0x222   :  { %2502 = vmatpush.msra.mxu3 %v2415_v37 }
 0x223   :  { %2483 = vmatpush.msra.mxu2 %v2398_v24 }
 0x224   :  { %2503 = vmatpush.msra.mxu3 %v2414_v25 }
 0x225   :  { %2484 = vmatpush.msra.mxu2 %v2397_v27 }
 0x226   :  { %2504 = vmatpush.msra.mxu3 %v2413_v21 }
 0x29b   :  { %v2222_v15 = vpop.f32.mrf.mxu0  ;;  %v2242_v16 = vpop.f32.mrf.mxu1 }
 0x29c   :  { %v3610_v18 = vmul.f32 -1.442695, %v2222_v15  ;;  %v3611_v19 = vmul.f32 -1.442695, %v2242_v16 }
 0x29e   :  { %3876 = vpow2.f32 %v3610_v18 }
 0x29f   :  { %3878 = vpow2.f32 %v3611_v19 }
 0x2a2   :  { %v2262_v33 = vpop.f32.mrf.mxu2  ;;  %v2282_v28 = vpop.f32.mrf.mxu3 }
 0x2a3   :  { %v3612_v35 = vmul.f32 -1.442695, %v2262_v33  ;;  %v3613_v13 = vmul.f32 -1.442695, %v2282_v28 }
 0x2a4   :  { %v3877_v39 = vpop.eup %3876 }
 0x2a5   :  { %v3879_v17 = vpop.eup %3878  ;;  %v2297_v8 = vadd.f32 1.0, %v3877_v39  ;;  %3880 = vpow2.f32 %v3612_v35  ;;  %v2514_v35 = vpop.permute.xlu0 %2513 }
 0x2a6   :  { %v2298_v14 = vadd.f32 1.0, %v3879_v17  ;;  %3882 = vpow2.f32 %v3613_v13 }
 0x2a7   :  { %3884 = vrcp.f32 %v2297_v8  ;;  %v2310_v48 = vand.u32 2147483647, %v2297_v8  ;;  %v2312_v51 = vand.u32 2147483648, %v2297_v8  ;;  %vm2306_vm3 = vweird.f32 %v2297_v8 }
 0x2a8   :  { %3886 = vrcp.f32 %v2298_v14  ;;  %v2325_v3 = vand.u32 2147483647, %v2298_v14  ;;  %v2327_v52 = vand.u32 2147483648, %v2298_v14  ;;  %vm2321_vm4 = vweird.f32 %v2298_v14 }
 0x2a9   :  { %vm2311_vm6 = vcmp.eq.f32.partialorder %v2310_v48, 8.507059e+37  ;;  %v2313_v59 = vor.u32 1.1754944e-38, %v2312_v51 }
 0x2aa   :  { %vm2326_vm8 = vcmp.eq.f32.partialorder %v2325_v3, 8.507059e+37  ;;  %v2328_v29 = vor.u32 1.1754944e-38, %v2327_v52 }
 0x2ab   :  { %v3881_v20 = vpop.eup %3880 }
 0x2ac   :  { %v3883_v40 = vpop.eup %3882  ;;  %v2299_v41 = vadd.f32 1.0, %v3881_v20 }
 0x2ad   :  { %v3885_v42 = vpop.eup %3884  ;;  %v2300_v43 = vadd.f32 1.0, %v3883_v40 }
 0x2ae   :  { %v3887_v44 = vpop.eup %3886  ;;  %v2302_v26 = vmul.f32 %v3885_v42, %v2297_v8  ;;  %3888 = vrcp.f32 %v2299_v41  ;;  %vm2307_vm1 = vweird.f32 %v3885_v42  ;;  %v2340_v32 = vand.u32 2147483647, %v2299_v41 }
 0x2af   :  { %v2317_v45 = vmul.f32 %v3887_v44, %v2298_v14  ;;  %3890 = vrcp.f32 %v2300_v43  ;;  %vm2322_vm2 = vweird.f32 %v3887_v44  ;;  %vm2308_vm5 = vmor %vm2306_vm3, %vm2307_vm1  ;;  %v2342_v7 = vand.u32 2147483648, %v2299_v41 }
 0x2b0   :  { %v2303_v46 = vsub.f32 1.0, %v2302_v26  ;;  %vm2323_vm7 = vmor %vm2321_vm4, %vm2322_vm2  ;;  %v2357_v11 = vand.u32 2147483648, %v2300_v43  ;;  %v2355_v15 = vand.u32 2147483647, %v2300_v43  ;;  %vm2336_vm11 = vweird.f32 %v2299_v41 }
 0x2b1   :  { %v2318_v49 = vsub.f32 1.0, %v2317_v45  ;;  %v2343_v36 = vor.u32 1.1754944e-38, %v2342_v7  ;;  %vm2351_vm13 = vweird.f32 %v2300_v43  ;;  %vm2341_vm14 = vcmp.eq.f32.partialorder %v2340_v32, 8.507059e+37 }
 0x2b2   :  { %v2304_v58 = vmul.f32 %v3885_v42, %v2303_v46  ;;  %vm2356_vm0 = vcmp.eq.f32.partialorder %v2355_v15, 8.507059e+37  ;;  %vm2527_vm1 = vcmask 74752  }
 0x2b3   :  { %v2319_v53 = vmul.f32 %v3887_v44, %v2318_v49 }
 0x2b4   :  { %v3889_v54 = vpop.eup %3888  ;;  %v2305_v55 = vadd.f32 %v3885_v42, %v2304_v58 }
 0x2b5   :  { %v3891_v56 = vpop.eup %3890  ;;  %v2332_v57 = vmul.f32 %v3889_v54, %v2299_v41  ;;  %v2320_v60 = vadd.f32 %v3887_v44, %v2319_v53  ;;  %vm2337_vm9 = vweird.f32 %v3889_v54 }
 0x2b6   :  { %v2347_v61 = vmul.f32 %v3891_v56, %v2300_v43  ;;  %v2309_v62 = vsel %vm2308_vm5, %v3885_v42, %v2305_v55  ;;  %vm2352_vm10 = vweird.f32 %v3891_v56  ;;  %vm2338_vm12 = vmor %vm2336_vm11, %vm2337_vm9 }
 0x2b7   :  { %v2333_v63 = vsub.f32 1.0, %v2332_v57  ;;  %v2314_v1 = vsel %vm2311_vm6, %v2313_v59, %v2309_v62  ;;  %v2324_v2 = vsel %vm2323_vm7, %v3887_v44, %v2320_v60  ;;  %vm2353_vm15 = vmor %vm2351_vm13, %vm2352_vm10 }
 0x2b8   :  { %v2348_v38 = vsub.f32 1.0, %v2347_v61  ;;  %v2361_v5 = vmul.f32 %v2314_v1, %v2036_v22  ;;  %v2329_v6 = vsel %vm2326_vm8, %v2328_v29, %v2324_v2  ;;  %v2358_v22 = vor.u32 1.1754944e-38, %v2357_v11 }
 0x2b9   :  { %v2362_v9 = vmul.f32 %v2329_v6, %v2037_v30  ;;  %v2334_v10 = vmul.f32 %v3889_v54, %v2333_v63 }
 0x2ba   :  { %2445 = vmatmul.f32.vlgmr.msra.gmra.mxu0 %v2361_v5  ;;  %v2349_v12 = vmul.f32 %v3891_v56, %v2348_v38 }
 0x2bb   :  { %2465 = vmatmul.f32.vlgmr.msra.gmra.mxu1 %v2362_v9  ;;  %v2335_v16 = vadd.f32 %v3889_v54, %v2334_v10 }
 0x2bc   :  { %v2350_v37 = vadd.f32 %v3891_v56, %v2349_v12 }
 0x2bd   :  { %v2339_v23 = vsel %vm2338_vm12, %v3889_v54, %v2335_v16 }
 0x2be   :  { %v2344_v31 = vsel %vm2341_vm14, %v2343_v36, %v2339_v23  ;;  %v2354_v30 = vsel %vm2353_vm15, %v3891_v56, %v2350_v37 }
 0x2bf   :  { %v2363_v18 = vmul.f32 %v2344_v31, %v2038_v4  ;;  %v2359_v19 = vsel %vm2356_vm0, %v2358_v22, %v2354_v30 }
 0x2c0   :  { %v2364_v24 = vmul.f32 %v2359_v19, %v2039_v50  ;;  %v2517_v50 = vld [vmem:[%s6162_s8] sm:$0x3] }
 0x2c1   :  { %2485 = vmatmul.f32.vlgmr.msra.gmra.mxu2 %v2363_v18 }
 0x2c2   :  { %2505 = vmatmul.f32.vlgmr.msra.gmra.mxu3 %v2364_v24 }
 0x337   :  { %v2446_v25 = vpop.f32.mrf.mxu0 }
 0x338   :  { %v2466_v27 = vpop.f32.mrf.mxu1 }
 0x339   :  { %v2467_v21 = vadd.f32 %v2466_v27, %v2446_v25 }
 0x344   :  { %v2486_v33 = vpop.f32.mrf.mxu2 }
 0x345   :  { %v2487_v28 = vadd.f32 %v2486_v33, %v2467_v21  ;;  %v2506_v34 = vpop.f32.mrf.mxu3 }
 0x347   :  { %v2507_v13 = vadd.f32 %v2506_v34, %v2487_v28 }
 0x349   :  { %v2509_v39 = vmax.f32 %v2507_v13, 0.0  ;;  %v2516_v17 = vadd.f32 %v2514_v35, %v2507_v13 }
 0x34b   :  { %v2518_v8 = vmul.f32 0.5, %v2516_v17  ;;  %2531 = vrot.lane.b32.xlu1 %v2516_v17, %s3979_s6  ;;  %2529 = vst.msk [vmem:[#allocation4] sm:$0x3] %vm2527_vm1, %v2509_v39 }
 0x34c   :  { %2556 = dma.vmem_to_hbm [thread:$0]  %s2552_s23, 32, %s2554_s2, [#allocation5]  }
 0x34d   :  { %v2519_v0 = vmul.f32 1.442695, %v2518_v8 }
 0x34f   :  { %3892 = vpow2.f32 %v2519_v0 }
 0x355   :  { %v3893_v4 = vpop.eup %3892 }
 0x356   :  { %2522 = vrot.lane.b32.xlu0 %v3893_v4, %s3979_s6 }
 0x3bd   :  { %v2532_v47 = vpop.permute.xlu1 %2531 }
 0x3be   :  { %2534 = vst.msk [vmem:[#allocation6] sm:$0x3] %vm2527_vm1, %v2532_v47 }
 0x3bf   :  { %2567 = dma.vmem_to_hbm [thread:$0]  %s2563_s24, 32, %s2565_s27, [#allocation5]  }
 0x3c8   :  { %v2523_v14 = vpop.permute.xlu0 %2522 }
 0x3c9   :  { %v2525_v20 = vmul.f32 %v2523_v14, %v2517_v50 }
 0x3cb   :  { %v2526_v40 = vadd.f32 %v2525_v20, %v2509_v39 }
 0x3cd   :  { %2528 = vst.msk [vmem:[#allocation2] sm:$0x3] %vm2527_vm1, %v2526_v40 }
 0x3ce   :  { %2545 = dma.vmem_to_hbm [thread:$0]  %s2541_s4, 32, %s2543_s13, [#allocation3]  }
 0x3cf   :  { %3974 = dma.done.wait [#allocation3], 32  }
 0x3d0   :  { %3975 = vsyncadd [#allocation3], 4294967264 }
 0x3d1   :  { %3976 = dma.done.wait [#allocation5], 64  }
 0x3d2   :  { %3977 = vsyncadd [#allocation5], 4294967232 }
 0x3d3   :  { %2580 = vsyncpa [#allocation3], 1 }
 0x3d4   :  { %2581 = vsyncpa [#allocation5], 1 }

// kernel: variational_se_encoder.10
= control target key start
LH: loop header
LB: loop body
LE: loop exit
PB: predicated region body
PF: predicated region fallthrough
CT: control target
= control target key end

     0   :  { %vm2057_vm0 = vcmask 1043456   ;;  %vm2103_vm2 = vcmask 1040384   ;;  %vm2183_vm3 = vcmask 130048   ;;  %s5430_s1 = inlined_call_operand.vmem [shape: bf16[2048,256], index: 1, kind: input, shape index: {}]   ;;  %s5431_s0 = inlined_call_operand.vmem [shape: bf16[8,2048], index: 0, kind: input, shape index: {}]   ;;  %s5432_s4 = inlined_call_operand.vmem [shape: f32[256,16], index: 4, kind: input, shape index: {}]   ;;  %s5433_s2 = inlined_call_operand.vmem [shape: f32[1,256], index: 2, kind: input, shape index: {}]   ;;  %s5434_s3 = inlined_call_operand.vmem [shape: f32[1,256], index: 3, kind: input, shape index: {}]   ;;  %s5435_s5 = inlined_call_operand.vmem [shape: f32[16,256], index: 5, kind: input, shape index: {}]   ;;  %s5436_s6 = inlined_call_operand.vmem [shape: f32[8,256], index: 6, kind: output, shape index: {}]  }
   0x1   :  { %v2339_v0 = vld [vmem:[%s5430_s1 + $0x70] sm:$0xf]  ;;  %v3324_v1 = vld [vmem:[%s5430_s1 + $0x74] sm:$0xf0]  ;;  %v2331_v11 = vld [vmem:[%s5430_s1 + $0x60] sm:$0xf] }
   0x2   :  { %v2403_v2 = vld [vmem:[%s5430_s1 + $0xf0] sm:$0xf]  ;;  %v2340_v3 = vor.u32 %v3324_v1, %v2339_v0  ;;  %v3340_v4 = vld [vmem:[%s5430_s1 + $0xf4] sm:$0xf0]  ;;  %v3322_v13 = vld [vmem:[%s5430_s1 + $0x64] sm:$0xf0] }
   0x3   :  { %v2467_v5 = vld [vmem:[%s5430_s1 + $0x170] sm:$0xf]  ;;  %v3356_v6 = vld [vmem:[%s5430_s1 + $0x174] sm:$0xf0]  ;;  %v2404_v7 = vor.u32 %v3340_v4, %v2403_v2  ;;  %v2395_v14 = vld [vmem:[%s5430_s1 + $0xe0] sm:$0xf]  ;;  %v2332_v16 = vor.u32 %v3322_v13, %v2331_v11 }
   0x4   :  { %v2468_v8 = vor.u32 %v3356_v6, %v2467_v5  ;;  %v2531_v9 = vld [vmem:[%s5430_s1 + $0x1f0] sm:$0xf]  ;;  %v3372_v10 = vld [vmem:[%s5430_s1 + $0x1f4] sm:$0xf0]  ;;  %1623 = vmatpush.bf16.msra.mxu0 %v2340_v3  ;;  %v3338_v15 = vld [vmem:[%s5430_s1 + $0xe4] sm:$0xf0] }
   0x5   :  { %v2532_v12 = vor.u32 %v3372_v10, %v2531_v9  ;;  %1636 = vmatpush.bf16.msra.mxu1 %v2404_v7  ;;  %v2396_v17 = vor.u32 %v3338_v15, %v2395_v14  ;;  %v2459_v18 = vld [vmem:[%s5430_s1 + $0x160] sm:$0xf]  ;;  %v3354_v19 = vld [vmem:[%s5430_s1 + $0x164] sm:$0xf0]  ;;  %v2323_v23 = vld [vmem:[%s5430_s1 + $0x50] sm:$0xf] }
   0x6   :  { %1649 = vmatpush.bf16.msra.mxu2 %v2468_v8  ;;  %v2523_v20 = vld [vmem:[%s5430_s1 + $0x1e0] sm:$0xf]  ;;  %v2460_v21 = vor.u32 %v3354_v19, %v2459_v18  ;;  %v3370_v22 = vld [vmem:[%s5430_s1 + $0x1e4] sm:$0xf0]  ;;  %v3320_v24 = vld [vmem:[%s5430_s1 + $0x54] sm:$0xf0] }
   0x7   :  { %1662 = vmatpush.bf16.msra.mxu3 %v2532_v12  ;;  %v2524_v25 = vor.u32 %v3370_v22, %v2523_v20  ;;  %v2387_v26 = vld [vmem:[%s5430_s1 + $0xd0] sm:$0xf]  ;;  %v3336_v27 = vld [vmem:[%s5430_s1 + $0xd4] sm:$0xf0]  ;;  %v2324_v29 = vor.u32 %v3320_v24, %v2323_v23  ;;  %v2315_v35 = vld [vmem:[%s5430_s1 + $0x40] sm:$0xf] }
   0x8   :  { %v2451_v28 = vld [vmem:[%s5430_s1 + $0x150] sm:$0xf]  ;;  %1624 = vmatpush.bf16.msra.mxu0 %v2332_v16  ;;  %v3352_v30 = vld [vmem:[%s5430_s1 + $0x154] sm:$0xf0]  ;;  %v2388_v33 = vor.u32 %v3336_v27, %v2387_v26  ;;  %v3318_v36 = vld [vmem:[%s5430_s1 + $0x44] sm:$0xf0] }
   0x9   :  { %v2515_v31 = vld [vmem:[%s5430_s1 + $0x1d0] sm:$0xf]  ;;  %v3368_v32 = vld [vmem:[%s5430_s1 + $0x1d4] sm:$0xf0]  ;;  %1637 = vmatpush.bf16.msra.mxu1 %v2396_v17  ;;  %v2452_v34 = vor.u32 %v3352_v30, %v2451_v28  ;;  %v2379_v37 = vld [vmem:[%s5430_s1 + $0xc0] sm:$0xf]  ;;  %v2316_v44 = vor.u32 %v3318_v36, %v2315_v35 }
   0xa   :  { %1650 = vmatpush.bf16.msra.mxu2 %v2460_v21  ;;  %v2516_v38 = vor.u32 %v3368_v32, %v2515_v31  ;;  %v3334_v39 = vld [vmem:[%s5430_s1 + $0xc4] sm:$0xf0]  ;;  %v2443_v40 = vld [vmem:[%s5430_s1 + $0x140] sm:$0xf]  ;;  %v2307_v47 = vld [vmem:[%s5430_s1 + $0x30] sm:$0xf] }
   0xb   :  { %1663 = vmatpush.bf16.msra.mxu3 %v2524_v25  ;;  %v3350_v41 = vld [vmem:[%s5430_s1 + $0x144] sm:$0xf0]  ;;  %v2507_v42 = vld [vmem:[%s5430_s1 + $0x1c0] sm:$0xf]  ;;  %v2380_v45 = vor.u32 %v3334_v39, %v2379_v37  ;;  %v3316_v48 = vld [vmem:[%s5430_s1 + $0x34] sm:$0xf0] }
   0xc   :  { %v3366_v43 = vld [vmem:[%s5430_s1 + $0x1c4] sm:$0xf0]  ;;  %1625 = vmatpush.bf16.msra.mxu0 %v2324_v29  ;;  %v2444_v46 = vor.u32 %v3350_v41, %v2443_v40  ;;  %v2371_v49 = vld [vmem:[%s5430_s1 + $0xb0] sm:$0xf]  ;;  %v3332_v51 = vld [vmem:[%s5430_s1 + $0xb4] sm:$0xf0]  ;;  %v2308_v56 = vor.u32 %v3316_v48, %v2307_v47 }
   0xd   :  { %1638 = vmatpush.bf16.msra.mxu1 %v2388_v33  ;;  %v2508_v50 = vor.u32 %v3366_v43, %v2507_v42  ;;  %v2435_v52 = vld [vmem:[%s5430_s1 + $0x130] sm:$0xf]  ;;  %v3348_v53 = vld [vmem:[%s5430_s1 + $0x134] sm:$0xf0]  ;;  %v2372_v57 = vor.u32 %v3332_v51, %v2371_v49  ;;  %v2299_v59 = vld [vmem:[%s5430_s1 + $0x20] sm:$0xf] }
   0xe   :  { %1651 = vmatpush.bf16.msra.mxu2 %v2452_v34  ;;  %v2499_v54 = vld [vmem:[%s5430_s1 + $0x1b0] sm:$0xf]  ;;  %v3364_v55 = vld [vmem:[%s5430_s1 + $0x1b4] sm:$0xf0]  ;;  %v2436_v58 = vor.u32 %v3348_v53, %v2435_v52  ;;  %v3314_v60 = vld [vmem:[%s5430_s1 + $0x24] sm:$0xf0] }
   0xf   :  { %1664 = vmatpush.bf16.msra.mxu3 %v2516_v38  ;;  %v2363_v61 = vld [vmem:[%s5430_s1 + $0xa0] sm:$0xf]  ;;  %v2500_v62 = vor.u32 %v3364_v55, %v2499_v54  ;;  %v3330_v63 = vld [vmem:[%s5430_s1 + $0xa4] sm:$0xf0]  ;;  %v2300_v4 = vor.u32 %v3314_v60, %v2299_v59  ;;  %v2291_v7 = vld [vmem:[%s5430_s1 + $0x10] sm:$0xf] }
  0x10   :  { %1626 = vmatpush.bf16.msra.mxu0 %v2316_v44  ;;  %v2427_v0 = vld [vmem:[%s5430_s1 + $0x120] sm:$0xf]  ;;  %v3346_v1 = vld [vmem:[%s5430_s1 + $0x124] sm:$0xf0]  ;;  %v2364_v5 = vor.u32 %v3330_v63, %v2363_v61  ;;  %v3312_v8 = vld [vmem:[%s5430_s1 + $0x14] sm:$0xf0] }
  0x11   :  { %1639 = vmatpush.bf16.msra.mxu1 %v2380_v45  ;;  %v2491_v2 = vld [vmem:[%s5430_s1 + $0x1a0] sm:$0xf]  ;;  %v3362_v3 = vld [vmem:[%s5430_s1 + $0x1a4] sm:$0xf0]  ;;  %v2428_v6 = vor.u32 %v3346_v1, %v2427_v0  ;;  %v2355_v9 = vld [vmem:[%s5430_s1 + $0x90] sm:$0xf]  ;;  %v2292_v16 = vor.u32 %v3312_v8, %v2291_v7 }
  0x12   :  { %1652 = vmatpush.bf16.msra.mxu2 %v2444_v46  ;;  %v2492_v10 = vor.u32 %v3362_v3, %v2491_v2  ;;  %v3328_v11 = vld [vmem:[%s5430_s1 + $0x94] sm:$0xf0]  ;;  %v2419_v12 = vld [vmem:[%s5430_s1 + $0x110] sm:$0xf]  ;;  %v2283_v17 = vld [vmem:[%s5430_s1] sm:$0xf] }
  0x13   :  { %1665 = vmatpush.bf16.msra.mxu3 %v2508_v50  ;;  %v3344_v13 = vld [vmem:[%s5430_s1 + $0x114] sm:$0xf0]  ;;  %v2483_v14 = vld [vmem:[%s5430_s1 + $0x190] sm:$0xf]  ;;  %v3310_v18 = vld [vmem:[%s5430_s1 + $0x4] sm:$0xf0]  ;;  %v2356_v19 = vor.u32 %v3328_v11, %v2355_v9 }
  0x14   :  { %1627 = vmatpush.bf16.msra.mxu0 %v2308_v56  ;;  %v3360_v15 = vld [vmem:[%s5430_s1 + $0x194] sm:$0xf0]  ;;  %v2420_v20 = vor.u32 %v3344_v13, %v2419_v12  ;;  %v2347_v21 = vld [vmem:[%s5430_s1 + $0x80] sm:$0xf]  ;;  %v3326_v22 = vld [vmem:[%s5430_s1 + $0x84] sm:$0xf0]  ;;  %v2284_v31 = vor.u32 %v3310_v18, %v2283_v17 }
  0x15   :  { %1640 = vmatpush.bf16.msra.mxu1 %v2372_v57  ;;  %v2411_v23 = vld [vmem:[%s5430_s1 + $0x100] sm:$0xf]  ;;  %v2484_v24 = vor.u32 %v3360_v15, %v2483_v14  ;;  %v3342_v25 = vld [vmem:[%s5430_s1 + $0x104] sm:$0xf0]  ;;  %v2595_v28 = vld [vmem:[%s5430_s1 + $0x270] sm:$0xf]  ;;  %v2348_v35 = vor.u32 %v3326_v22, %v2347_v21 }
  0x16   :  { %1653 = vmatpush.bf16.msra.mxu2 %v2436_v58  ;;  %v2475_v26 = vld [vmem:[%s5430_s1 + $0x180] sm:$0xf]  ;;  %v3358_v27 = vld [vmem:[%s5430_s1 + $0x184] sm:$0xf0]  ;;  %v3388_v29 = vld [vmem:[%s5430_s1 + $0x274] sm:$0xf0]  ;;  %v2412_v36 = vor.u32 %v3342_v25, %v2411_v23 }
  0x17   :  { %1666 = vmatpush.bf16.msra.mxu3 %v2500_v62  ;;  %v2659_v30 = vld [vmem:[%s5430_s1 + $0x2f0] sm:$0xf]  ;;  %v3404_v32 = vld [vmem:[%s5430_s1 + $0x2f4] sm:$0xf0]  ;;  %v2476_v39 = vor.u32 %v3358_v27, %v2475_v26  ;;  %v2596_v40 = vor.u32 %v3388_v29, %v2595_v28  ;;  %v2587_v43 = vld [vmem:[%s5430_s1 + $0x260] sm:$0xf] }
  0x18   :  { %1628 = vmatpush.bf16.msra.mxu0 %v2300_v4  ;;  %v2723_v33 = vld [vmem:[%s5430_s1 + $0x370] sm:$0xf]  ;;  %v3420_v34 = vld [vmem:[%s5430_s1 + $0x374] sm:$0xf0]  ;;  %v2660_v41 = vor.u32 %v3404_v32, %v2659_v30  ;;  %v3386_v44 = vld [vmem:[%s5430_s1 + $0x264] sm:$0xf0] }
  0x19   :  { %1641 = vmatpush.bf16.msra.mxu1 %v2364_v5  ;;  %v2787_v37 = vld [vmem:[%s5430_s1 + $0x3f0] sm:$0xf]  ;;  %v3436_v38 = vld [vmem:[%s5430_s1 + $0x3f4] sm:$0xf0]  ;;  %v2724_v42 = vor.u32 %v3420_v34, %v2723_v33  ;;  %v2651_v45 = vld [vmem:[%s5430_s1 + $0x2e0] sm:$0xf]  ;;  %v2588_v52 = vor.u32 %v3386_v44, %v2587_v43 }
  0x1a   :  { %1654 = vmatpush.bf16.msra.mxu2 %v2428_v6  ;;  %v2788_v46 = vor.u32 %v3436_v38, %v2787_v37  ;;  %v3402_v47 = vld [vmem:[%s5430_s1 + $0x2e4] sm:$0xf0]  ;;  %v2715_v48 = vld [vmem:[%s5430_s1 + $0x360] sm:$0xf]  ;;  %v2579_v53 = vld [vmem:[%s5430_s1 + $0x250] sm:$0xf] }
  0x1b   :  { %1667 = vmatpush.bf16.msra.mxu3 %v2492_v10  ;;  %v3418_v49 = vld [vmem:[%s5430_s1 + $0x364] sm:$0xf0]  ;;  %v2779_v50 = vld [vmem:[%s5430_s1 + $0x3e0] sm:$0xf]  ;;  %v2652_v54 = vor.u32 %v3402_v47, %v2651_v45  ;;  %v3384_v56 = vld [vmem:[%s5430_s1 + $0x254] sm:$0xf0] }
  0x1c   :  { %1629 = vmatpush.bf16.msra.mxu0 %v2292_v16  ;;  %v3434_v51 = vld [vmem:[%s5430_s1 + $0x3e4] sm:$0xf0]  ;;  %v2716_v55 = vor.u32 %v3418_v49, %v2715_v48  ;;  %v2643_v57 = vld [vmem:[%s5430_s1 + $0x2d0] sm:$0xf]  ;;  %v3400_v60 = vld [vmem:[%s5430_s1 + $0x2d4] sm:$0xf0]  ;;  %v2580_v3 = vor.u32 %v3384_v56, %v2579_v53 }
  0x1d   :  { %1642 = vmatpush.bf16.msra.mxu1 %v2356_v19  ;;  %v24_v58 = vld [vmem:[%s5431_s0 + $0x8] sm:$0xff]  ;;  %v2780_v59 = vor.u32 %v3434_v51, %v2779_v50  ;;  %v2707_v61 = vld [vmem:[%s5430_s1 + $0x350] sm:$0xf]  ;;  %v3416_v62 = vld [vmem:[%s5430_s1 + $0x354] sm:$0xf0]  ;;  %v2644_v7 = vor.u32 %v3400_v60, %v2643_v57 }
  0x1e   :  { %1655 = vmatpush.bf16.msra.mxu2 %v2420_v20  ;;  %v297_v63 = vunpack.c.l.b16 %v24_v58  ;;  %v298_v0 = vunpack.c.h.b16 %v24_v58  ;;  %v2771_v1 = vld [vmem:[%s5430_s1 + $0x3d0] sm:$0xf]  ;;  %v3432_v2 = vld [vmem:[%s5430_s1 + $0x3d4] sm:$0xf0]  ;;  %v23_v5 = vld [vmem:[%s5431_s0] sm:$0xff]  ;;  %v2708_v8 = vor.u32 %v3416_v62, %v2707_v61 }
  0x1f   :  { %1668 = vmatpush.bf16.msra.mxu3 %v2484_v24  ;;  %v2571_v9 = vld [vmem:[%s5430_s1 + $0x240] sm:$0xf]  ;;  %v3382_v10 = vld [vmem:[%s5430_s1 + $0x244] sm:$0xf0]  ;;  %v295_v12 = vunpack.c.l.b16 %v23_v5  ;;  %v296_v13 = vunpack.c.h.b16 %v23_v5  ;;  %v2772_v14 = vor.u32 %v3432_v2, %v2771_v1  ;;  %v2563_v25 = vld [vmem:[%s5430_s1 + $0x230] sm:$0xf] }
  0x20   :  { %1630 = vmatpush.bf16.msra.mxu0 %v2284_v31  ;;  %v3879_v4 = vpack.c.b16 %v297_v63, %v297_v63  ;;  %v3884_v6 = vpack.c.b16 %v298_v0, %v298_v0  ;;  %v2635_v11 = vld [vmem:[%s5430_s1 + $0x2c0] sm:$0xf]  ;;  %v3398_v15 = vld [vmem:[%s5430_s1 + $0x2c4] sm:$0xf0]  ;;  %v2572_v22 = vor.u32 %v3382_v10, %v2571_v9  ;;  %v3380_v26 = vld [vmem:[%s5430_s1 + $0x234] sm:$0xf0] }
  0x21   :  { %1643 = vmatpush.bf16.msra.mxu1 %v2348_v35  ;;  %v2699_v16 = vld [vmem:[%s5430_s1 + $0x340] sm:$0xf]  ;;  %v3414_v17 = vld [vmem:[%s5430_s1 + $0x344] sm:$0xf0]  ;;  %v3911_v20 = vpack.c.b16 %v295_v12, %v295_v12  ;;  %v3914_v21 = vpack.c.b16 %v296_v13, %v296_v13  ;;  %v2636_v23 = vor.u32 %v3398_v15, %v2635_v11  ;;  %v2627_v27 = vld [vmem:[%s5430_s1 + $0x2b0] sm:$0xf]  ;;  %v2564_v34 = vor.u32 %v3380_v26, %v2563_v25 }
  0x22   :  { %1656 = vmatpush.bf16.msra.mxu2 %v2412_v36  ;;  %v2763_v18 = vld [vmem:[%s5430_s1 + $0x3c0] sm:$0xf]  ;;  %v3430_v19 = vld [vmem:[%s5430_s1 + $0x3c4] sm:$0xf0]  ;;  %v2700_v24 = vor.u32 %v3414_v17, %v2699_v16  ;;  %v3396_v29 = vld [vmem:[%s5430_s1 + $0x2b4] sm:$0xf0] }
  0x23   :  { %1669 = vmatpush.bf16.msra.mxu3 %v2476_v39  ;;  %v2764_v28 = vor.u32 %v3430_v19, %v2763_v18  ;;  %v2691_v30 = vld [vmem:[%s5430_s1 + $0x330] sm:$0xf]  ;;  %v3412_v31 = vld [vmem:[%s5430_s1 + $0x334] sm:$0xf0]  ;;  %1631 = vmatmul.bf16.vlgmr.msra.gmra.mxu0 %v3911_v20  ;;  %v2628_v35 = vor.u32 %v3396_v29, %v2627_v27  ;;  %v2555_v37 = vld [vmem:[%s5430_s1 + $0x220] sm:$0xf] }
  0x24   :  { %1675 = vmatpush.bf16.msrb.mxu0 %v2596_v40  ;;  %v2755_v32 = vld [vmem:[%s5430_s1 + $0x3b0] sm:$0xf]  ;;  %v3428_v33 = vld [vmem:[%s5430_s1 + $0x3b4] sm:$0xf0]  ;;  %1644 = vmatmul.bf16.vlgmr.msra.gmra.mxu1 %v3914_v21  ;;  %v2692_v36 = vor.u32 %v3412_v31, %v2691_v30  ;;  %v3378_v38 = vld [vmem:[%s5430_s1 + $0x224] sm:$0xf0] }
  0x25   :  { %1688 = vmatpush.bf16.msrb.mxu1 %v2660_v41  ;;  %1657 = vmatmul.bf16.vlgmr.msra.gmra.mxu2 %v3879_v4  ;;  %v2619_v39 = vld [vmem:[%s5430_s1 + $0x2a0] sm:$0xf]  ;;  %v2756_v40 = vor.u32 %v3428_v33, %v2755_v32  ;;  %v3394_v41 = vld [vmem:[%s5430_s1 + $0x2a4] sm:$0xf0]  ;;  %v2547_v49 = vld [vmem:[%s5430_s1 + $0x210] sm:$0xf] }
  0x26   :  { %1701 = vmatpush.bf16.msrb.mxu2 %v2724_v42  ;;  %1670 = vmatmul.bf16.vlgmr.msra.gmra.mxu3 %v3884_v6  ;;  %v2683_v42 = vld [vmem:[%s5430_s1 + $0x320] sm:$0xf]  ;;  %v3410_v43 = vld [vmem:[%s5430_s1 + $0x324] sm:$0xf0]  ;;  %v2620_v47 = vor.u32 %v3394_v41, %v2619_v39  ;;  %v3376_v50 = vld [vmem:[%s5430_s1 + $0x214] sm:$0xf0] }
  0x27   :  { %1714 = vmatpush.bf16.msrb.mxu3 %v2788_v46  ;;  %v2747_v44 = vld [vmem:[%s5430_s1 + $0x3a0] sm:$0xf]  ;;  %v3426_v45 = vld [vmem:[%s5430_s1 + $0x3a4] sm:$0xf0]  ;;  %v2556_v46 = vor.u32 %v3378_v38, %v2555_v37  ;;  %v2684_v48 = vor.u32 %v3410_v43, %v2683_v42  ;;  %v2611_v51 = vld [vmem:[%s5430_s1 + $0x290] sm:$0xf] }
  0x28   :  { %1676 = vmatpush.bf16.msrb.mxu0 %v2588_v52  ;;  %v2748_v52 = vor.u32 %v3426_v45, %v2747_v44  ;;  %v3392_v53 = vld [vmem:[%s5430_s1 + $0x294] sm:$0xf0]  ;;  %v2739_v56 = vld [vmem:[%s5430_s1 + $0x390] sm:$0xf]  ;;  %v2539_v58 = vld [vmem:[%s5430_s1 + $0x200] sm:$0xf] }
  0x29   :  { %1689 = vmatpush.bf16.msrb.mxu1 %v2652_v54  ;;  %v2675_v54 = vld [vmem:[%s5430_s1 + $0x310] sm:$0xf]  ;;  %v3424_v57 = vld [vmem:[%s5430_s1 + $0x394] sm:$0xf0]  ;;  %v3374_v60 = vld [vmem:[%s5430_s1 + $0x204] sm:$0xf0]  ;;  %v2612_v63 = vor.u32 %v3392_v53, %v2611_v51 }
  0x2a   :  { %1702 = vmatpush.bf16.msrb.mxu2 %v2716_v55  ;;  %v3408_v55 = vld [vmem:[%s5430_s1 + $0x314] sm:$0xf0]  ;;  %v2603_v61 = vld [vmem:[%s5430_s1 + $0x280] sm:$0xf]  ;;  %v3390_v62 = vld [vmem:[%s5430_s1 + $0x284] sm:$0xf0]  ;;  %v2740_v5 = vor.u32 %v3424_v57, %v2739_v56  ;;  %v2540_v13 = vor.u32 %v3374_v60, %v2539_v58 }
  0x2b   :  { %1715 = vmatpush.bf16.msrb.mxu3 %v2780_v59  ;;  %v2548_v59 = vor.u32 %v3376_v50, %v2547_v49  ;;  %v2676_v0 = vor.u32 %v3408_v55, %v2675_v54  ;;  %v2667_v1 = vld [vmem:[%s5430_s1 + $0x300] sm:$0xf]  ;;  %v3406_v2 = vld [vmem:[%s5430_s1 + $0x304] sm:$0xf0]  ;;  %v25_v9 = vld [vmem:[%s5431_s0 + $0x10] sm:$0xff]  ;;  %v2604_v18 = vor.u32 %v3390_v62, %v2603_v61 }
  0x2c   :  { %1677 = vmatpush.bf16.msrb.mxu0 %v2580_v3  ;;  %v26_v3 = vld [vmem:[%s5431_s0 + $0x18] sm:$0xff]  ;;  %v2851_v10 = vld [vmem:[%s5430_s1 + $0x470] sm:$0xf]  ;;  %v2668_v19 = vor.u32 %v3406_v2, %v2667_v1  ;;  %v2843_v31 = vld [vmem:[%s5430_s1 + $0x460] sm:$0xf] }
  0x2d   :  { %1690 = vmatpush.bf16.msrb.mxu1 %v2644_v7  ;;  %v2731_v7 = vld [vmem:[%s5430_s1 + $0x380] sm:$0xf]  ;;  %v3452_v11 = vld [vmem:[%s5430_s1 + $0x474] sm:$0xf0]  ;;  %v2915_v12 = vld [vmem:[%s5430_s1 + $0x4f0] sm:$0xf]  ;;  %v301_v17 = vunpack.c.l.b16 %v26_v3  ;;  %v302_v25 = vunpack.c.h.b16 %v26_v3 }
  0x2e   :  { %1703 = vmatpush.bf16.msrb.mxu2 %v2708_v8  ;;  %v3422_v8 = vld [vmem:[%s5430_s1 + $0x384] sm:$0xf0]  ;;  %v2979_v15 = vld [vmem:[%s5430_s1 + $0x570] sm:$0xf]  ;;  %v3484_v16 = vld [vmem:[%s5430_s1 + $0x574] sm:$0xf0]  ;;  %v2852_v27 = vor.u32 %v3452_v11, %v2851_v10 }
  0x2f   :  { %1716 = vmatpush.bf16.msrb.mxu3 %v2772_v14  ;;  %v3468_v14 = vld [vmem:[%s5430_s1 + $0x4f4] sm:$0xf0]  ;;  %v2732_v26 = vor.u32 %v3422_v8, %v2731_v7  ;;  %v2980_v30 = vor.u32 %v3484_v16, %v2979_v15  ;;  %v3450_v32 = vld [vmem:[%s5430_s1 + $0x464] sm:$0xf0]  ;;  %v2907_v33 = vld [vmem:[%s5430_s1 + $0x4e0] sm:$0xf]  ;;  %v4062_v38 = vpack.c.b16 %v301_v17, %v301_v17  ;;  %v4072_v42 = vpack.c.b16 %v302_v25, %v302_v25 }
  0x30   :  { %1678 = vmatpush.bf16.msrb.mxu0 %v2572_v22  ;;  %v3043_v22 = vld [vmem:[%s5430_s1 + $0x5f0] sm:$0xf]  ;;  %v2916_v29 = vor.u32 %v3468_v14, %v2915_v12  ;;  %v3482_v37 = vld [vmem:[%s5430_s1 + $0x564] sm:$0xf0]  ;;  %v3035_v39 = vld [vmem:[%s5430_s1 + $0x5e0] sm:$0xf]  ;;  %v2844_v43 = vor.u32 %v3450_v32, %v2843_v31 }
  0x31   :  { %1691 = vmatpush.bf16.msrb.mxu1 %v2636_v23  ;;  %v3500_v23 = vld [vmem:[%s5430_s1 + $0x5f4] sm:$0xf0]  ;;  %v2899_v49 = vld [vmem:[%s5430_s1 + $0x4d0] sm:$0xf]  ;;  %v3446_v60 = vld [vmem:[%s5430_s1 + $0x444] sm:$0xf0] }
  0x32   :  { %1704 = vmatpush.bf16.msrb.mxu2 %v2700_v24  ;;  %v299_v24 = vunpack.c.l.b16 %v25_v9  ;;  %v3464_v51 = vld [vmem:[%s5430_s1 + $0x4d4] sm:$0xf0]  ;;  %v3027_v54 = vld [vmem:[%s5430_s1 + $0x5d0] sm:$0xf]  ;;  %v2891_v61 = vld [vmem:[%s5430_s1 + $0x4c0] sm:$0xf] }
  0x33   :  { %1717 = vmatpush.bf16.msrb.mxu3 %v2764_v28  ;;  %v300_v28 = vunpack.c.h.b16 %v25_v9  ;;  %v3480_v53 = vld [vmem:[%s5430_s1 + $0x554] sm:$0xf0]  ;;  %v2900_v57 = vor.u32 %v3464_v51, %v2899_v49  ;;  %v3478_v1 = vld [vmem:[%s5430_s1 + $0x544] sm:$0xf0]  ;;  %v3019_v2 = vld [vmem:[%s5430_s1 + $0x5c0] sm:$0xf] }
  0x34   :  { %1679 = vmatpush.bf16.msrb.mxu0 %v2564_v34  ;;  %v3044_v34 = vor.u32 %v3500_v23, %v3043_v22  ;;  %v4070_v41 = vpack.c.b16 %v299_v24, %v299_v24  ;;  %v3496_v55 = vld [vmem:[%s5430_s1 + $0x5d4] sm:$0xf0]  ;;  %v3494_v3 = vld [vmem:[%s5430_s1 + $0x5c4] sm:$0xf0]  ;;  %v2819_v9 = vld [vmem:[%s5430_s1 + $0x430] sm:$0xf] }
  0x35   :  { %1692 = vmatpush.bf16.msrb.mxu1 %v2628_v35  ;;  %v3466_v35 = vld [vmem:[%s5430_s1 + $0x4e4] sm:$0xf0]  ;;  %v4074_v44 = vpack.c.b16 %v300_v28, %v300_v28  ;;  %v3028_v62 = vor.u32 %v3496_v55, %v3027_v54  ;;  %v3444_v10 = vld [vmem:[%s5430_s1 + $0x434] sm:$0xf0]  ;;  %v2883_v11 = vld [vmem:[%s5430_s1 + $0x4b0] sm:$0xf]  ;;  %v3020_v12 = vor.u32 %v3494_v3, %v3019_v2 }
  0x36   :  { %1705 = vmatpush.bf16.msrb.mxu2 %v2692_v36  ;;  %v2971_v36 = vld [vmem:[%s5430_s1 + $0x560] sm:$0xf]  ;;  %v2908_v45 = vor.u32 %v3466_v35, %v2907_v33  ;;  %v2947_v14 = vld [vmem:[%s5430_s1 + $0x530] sm:$0xf]  ;;  %v3476_v15 = vld [vmem:[%s5430_s1 + $0x534] sm:$0xf0] }
  0x37   :  { %1718 = vmatpush.bf16.msrb.mxu3 %v2756_v40  ;;  %v3498_v40 = vld [vmem:[%s5430_s1 + $0x5e4] sm:$0xf0]  ;;  %v3011_v16 = vld [vmem:[%s5430_s1 + $0x5b0] sm:$0xf]  ;;  %v3492_v17 = vld [vmem:[%s5430_s1 + $0x5b4] sm:$0xf0]  ;;  %v2948_v22 = vor.u32 %v3476_v15, %v2947_v14 }
  0x38   :  { %1680 = vmatpush.bf16.msrb.mxu0 %v2556_v46  ;;  %v2972_v46 = vor.u32 %v3482_v37, %v2971_v36  ;;  %v3036_v50 = vor.u32 %v3498_v40, %v3035_v39  ;;  %v2811_v23 = vld [vmem:[%s5430_s1 + $0x420] sm:$0xf]  ;;  %v3442_v24 = vld [vmem:[%s5430_s1 + $0x424] sm:$0xf0]  ;;  %v2803_v35 = vld [vmem:[%s5430_s1 + $0x410] sm:$0xf] }
  0x39   :  { %1693 = vmatpush.bf16.msrb.mxu1 %v2620_v47  ;;  %v2835_v47 = vld [vmem:[%s5430_s1 + $0x450] sm:$0xf]  ;;  %v2875_v25 = vld [vmem:[%s5430_s1 + $0x4a0] sm:$0xf]  ;;  %v3490_v31 = vld [vmem:[%s5430_s1 + $0x5a4] sm:$0xf0]  ;;  %v2812_v32 = vor.u32 %v3442_v24, %v2811_v23 }
  0x3a   :  { %1706 = vmatpush.bf16.msrb.mxu2 %v2684_v48  ;;  %v3448_v48 = vld [vmem:[%s5430_s1 + $0x454] sm:$0xf0]  ;;  %v2939_v28 = vld [vmem:[%s5430_s1 + $0x520] sm:$0xf]  ;;  %v2867_v37 = vld [vmem:[%s5430_s1 + $0x490] sm:$0xf] }
  0x3b   :  { %1719 = vmatpush.bf16.msrb.mxu3 %v2748_v52  ;;  %v2963_v52 = vld [vmem:[%s5430_s1 + $0x550] sm:$0xf]  ;;  %v2836_v56 = vor.u32 %v3448_v48, %v2835_v47  ;;  %v3440_v36 = vld [vmem:[%s5430_s1 + $0x414] sm:$0xf0]  ;;  %v2795_v48 = vld [vmem:[%s5430_s1 + $0x400] sm:$0xf] }
  0x3c   :  { %1681 = vmatpush.bf16.msrb.mxu0 %v2548_v59  ;;  %v2964_v58 = vor.u32 %v3480_v53, %v2963_v52  ;;  %v2827_v59 = vld [vmem:[%s5430_s1 + $0x440] sm:$0xf]  ;;  %v3456_v40 = vld [vmem:[%s5430_s1 + $0x494] sm:$0xf0]  ;;  %v2804_v49 = vor.u32 %v3440_v36, %v2803_v35  ;;  %v3454_v52 = vld [vmem:[%s5430_s1 + $0x484] sm:$0xf0] }
  0x3d   :  { %1694 = vmatpush.bf16.msrb.mxu1 %v2612_v63  ;;  %v3462_v63 = vld [vmem:[%s5430_s1 + $0x4c4] sm:$0xf0]  ;;  %v3488_v47 = vld [vmem:[%s5430_s1 + $0x594] sm:$0xf0]  ;;  %v2859_v51 = vld [vmem:[%s5430_s1 + $0x480] sm:$0xf]  ;;  %v2868_v53 = vor.u32 %v3456_v40, %v2867_v37 }
  0x3e   :  { %1707 = vmatpush.bf16.msrb.mxu2 %v2676_v0  ;;  %v2955_v0 = vld [vmem:[%s5430_s1 + $0x540] sm:$0xf]  ;;  %v2892_v7 = vor.u32 %v3462_v63, %v2891_v61  ;;  %v28_v61 = vld [vmem:[%s5431_s0 + $0x28] sm:$0xff]  ;;  %v3516_v63 = vld [vmem:[%s5430_s1 + $0x674] sm:$0xf0] }
  0x3f   :  { %1720 = vmatpush.bf16.msrb.mxu3 %v2740_v5  ;;  %v2828_v5 = vor.u32 %v3446_v60, %v2827_v59  ;;  %v2956_v8 = vor.u32 %v3478_v1, %v2955_v0  ;;  %v2923_v55 = vld [vmem:[%s5430_s1 + $0x500] sm:$0xf]  ;;  %v3486_v60 = vld [vmem:[%s5430_s1 + $0x584] sm:$0xf0]  ;;  %v3171_v0 = vld [vmem:[%s5430_s1 + $0x6f0] sm:$0xf] }
  0x40   :  { %1682 = vmatpush.bf16.msrb.mxu0 %v2540_v13  ;;  %v3460_v13 = vld [vmem:[%s5430_s1 + $0x4b4] sm:$0xf0]  ;;  %v2987_v59 = vld [vmem:[%s5430_s1 + $0x580] sm:$0xf]  ;;  %v3235_v3 = vld [vmem:[%s5430_s1 + $0x770] sm:$0xf] }
  0x41   :  { %1695 = vmatpush.bf16.msrb.mxu1 %v2604_v18  ;;  %v2820_v18 = vor.u32 %v3444_v10, %v2819_v9  ;;  %v3532_v2 = vld [vmem:[%s5430_s1 + $0x6f4] sm:$0xf0]  ;;  %v3299_v10 = vld [vmem:[%s5430_s1 + $0x7f0] sm:$0xf]  ;;  %v2988_v14 = vor.u32 %v3486_v60, %v2987_v59  ;;  %v3163_v23 = vld [vmem:[%s5430_s1 + $0x6e0] sm:$0xf] }
  0x42   :  { %1708 = vmatpush.bf16.msrb.mxu2 %v2668_v19  ;;  %v2884_v19 = vor.u32 %v3460_v13, %v2883_v11  ;;  %v3564_v11 = vld [vmem:[%s5430_s1 + $0x7f4] sm:$0xf0]  ;;  %v3091_v37 = vld [vmem:[%s5430_s1 + $0x650] sm:$0xf]  ;;  %v3542_v59 = vld [vmem:[%s5430_s1 + $0x744] sm:$0xf0] }
  0x43   :  { %1721 = vmatpush.bf16.msrb.mxu3 %v2732_v26  ;;  %1683 = vmatmul.bf16.vlgmr.msrb.gmra.mxu0 %v4070_v41  ;;  %v3012_v26 = vor.u32 %v3492_v17, %v3011_v16  ;;  %v306_v16 = vunpack.c.h.b16 %v28_v61  ;;  %v3172_v17 = vor.u32 %v3532_v2, %v3171_v0  ;;  %v3300_v24 = vor.u32 %v3564_v11, %v3299_v10  ;;  %v3155_v40 = vld [vmem:[%s5430_s1 + $0x6d0] sm:$0xf]  ;;  %v3275_v60 = vld [vmem:[%s5430_s1 + $0x7c0] sm:$0xf]  ;;  %v3508_v2 = vld [vmem:[%s5430_s1 + $0x634] sm:$0xf0] }
  0x44   :  { %1727 = vmatpush.bf16.msra.mxu0 %v2852_v27  ;;  %1696 = vmatmul.bf16.vlgmr.msrb.gmra.mxu1 %v4074_v44  ;;  %v3458_v27 = vld [vmem:[%s5430_s1 + $0x4a4] sm:$0xf0]  ;;  %v3267_v10 = vld [vmem:[%s5430_s1 + $0x7b0] sm:$0xf]  ;;  %v3556_v11 = vld [vmem:[%s5430_s1 + $0x7b4] sm:$0xf0] }
  0x45   :  { %1740 = vmatpush.bf16.msra.mxu1 %v2916_v29  ;;  %1709 = vmatmul.bf16.vlgmr.msrb.gmra.mxu2 %v4062_v38  ;;  %v3474_v29 = vld [vmem:[%s5430_s1 + $0x524] sm:$0xf0]  ;;  %v2876_v33 = vor.u32 %v3458_v27, %v2875_v25  ;;  %v3227_v27 = vld [vmem:[%s5430_s1 + $0x760] sm:$0xf] }
  0x46   :  { %1753 = vmatpush.bf16.msra.mxu2 %v2980_v30  ;;  %1722 = vmatmul.bf16.vlgmr.msrb.gmra.mxu3 %v4072_v42  ;;  %v3003_v30 = vld [vmem:[%s5430_s1 + $0x5a0] sm:$0xf] }
  0x47   :  { %1766 = vmatpush.bf16.msra.mxu3 %v3044_v34  ;;  %v2940_v34 = vor.u32 %v3474_v29, %v2939_v28  ;;  %v3004_v39 = vor.u32 %v3490_v31, %v3003_v30  ;;  %v3546_v28 = vld [vmem:[%s5430_s1 + $0x764] sm:$0xf0]  ;;  %v3291_v31 = vld [vmem:[%s5430_s1 + $0x7e0] sm:$0xf] }
  0x48   :  { %1728 = vmatpush.bf16.msra.mxu0 %v2844_v43  ;;  %v2931_v43 = vld [vmem:[%s5430_s1 + $0x510] sm:$0xf]  ;;  %v3228_v36 = vor.u32 %v3546_v28, %v3227_v27 }
  0x49   :  { %1741 = vmatpush.bf16.msra.mxu1 %v2908_v45  ;;  %v3472_v45 = vld [vmem:[%s5430_s1 + $0x514] sm:$0xf0] }
  0x4a   :  { %1754 = vmatpush.bf16.msra.mxu2 %v2972_v46  ;;  %v2995_v46 = vld [vmem:[%s5430_s1 + $0x590] sm:$0xf]  ;;  %v2932_v54 = vor.u32 %v3472_v45, %v2931_v43  ;;  %v3528_v45 = vld [vmem:[%s5430_s1 + $0x6d4] sm:$0xf0] }
  0x4b   :  { %1767 = vmatpush.bf16.msra.mxu3 %v3036_v50  ;;  %v3438_v50 = vld [vmem:[%s5430_s1 + $0x404] sm:$0xf0] }
  0x4c   :  { %1729 = vmatpush.bf16.msra.mxu0 %v2836_v56  ;;  %v3470_v56 = vld [vmem:[%s5430_s1 + $0x504] sm:$0xf0]  ;;  %v2796_v1 = vor.u32 %v3438_v50, %v2795_v48  ;;  %v3283_v48 = vld [vmem:[%s5430_s1 + $0x7d0] sm:$0xf] }
  0x4d   :  { %1742 = vmatpush.bf16.msra.mxu1 %v2900_v57  ;;  %v27_v57 = vld [vmem:[%s5431_s0 + $0x20] sm:$0xff]  ;;  %v2924_v9 = vor.u32 %v3470_v56, %v2923_v55 }
  0x4e   :  { %1755 = vmatpush.bf16.msra.mxu2 %v2964_v58  ;;  %v2996_v58 = vor.u32 %v3488_v47, %v2995_v46  ;;  %v304_v13 = vunpack.c.h.b16 %v27_v57  ;;  %v3219_v46 = vld [vmem:[%s5430_s1 + $0x750] sm:$0xf]  ;;  %v3544_v47 = vld [vmem:[%s5430_s1 + $0x754] sm:$0xf0]  ;;  %v3147_v55 = vld [vmem:[%s5430_s1 + $0x6c0] sm:$0xf] }
  0x4f   :  { %1768 = vmatpush.bf16.msra.mxu3 %v3028_v62  ;;  %v3107_v62 = vld [vmem:[%s5430_s1 + $0x670] sm:$0xf] }
  0x50   :  { %1730 = vmatpush.bf16.msra.mxu0 %v2828_v5  ;;  %v3548_v5 = vld [vmem:[%s5430_s1 + $0x774] sm:$0xf0]  ;;  %v3108_v15 = vor.u32 %v3516_v63, %v3107_v62  ;;  %v4276_v30 = vpack.c.b16 %v304_v13, %v304_v13 }
  0x51   :  { %1743 = vmatpush.bf16.msra.mxu1 %v2892_v7  ;;  %v303_v7 = vunpack.c.l.b16 %v27_v57  ;;  %v3526_v57 = vld [vmem:[%s5430_s1 + $0x6c4] sm:$0xf0] }
  0x52   :  { %1756 = vmatpush.bf16.msra.mxu2 %v2956_v8  ;;  %v2860_v8 = vor.u32 %v3454_v52, %v2859_v51  ;;  %v3156_v51 = vor.u32 %v3528_v45, %v3155_v40  ;;  %v3220_v52 = vor.u32 %v3544_v47, %v3219_v46  ;;  %v3148_v63 = vor.u32 %v3526_v57, %v3147_v55  ;;  %v3536_v40 = vld [vmem:[%s5430_s1 + $0x714] sm:$0xf0]  ;;  %v3051_v46 = vld [vmem:[%s5430_s1 + $0x600] sm:$0xf]  ;;  %v29_v55 = vld [vmem:[%s5431_s0 + $0x30] sm:$0xff] }
  0x53   :  { %1769 = vmatpush.bf16.msra.mxu3 %v3020_v12  ;;  %v305_v12 = vunpack.c.l.b16 %v28_v61  ;;  %v4263_v25 = vpack.c.b16 %v303_v7, %v303_v7  ;;  %v3558_v61 = vld [vmem:[%s5430_s1 + $0x7c4] sm:$0xf0]  ;;  %v3524_v7 = vld [vmem:[%s5430_s1 + $0x6b4] sm:$0xf0]  ;;  %v3243_v57 = vld [vmem:[%s5430_s1 + $0x780] sm:$0xf] }
  0x54   :  { %1731 = vmatpush.bf16.msra.mxu0 %v2820_v18  ;;  %v3236_v18 = vor.u32 %v3548_v5, %v3235_v3  ;;  %v3139_v3 = vld [vmem:[%s5430_s1 + $0x6b0] sm:$0xf]  ;;  %v3276_v5 = vor.u32 %v3558_v61, %v3275_v60  ;;  %v3552_v45 = vld [vmem:[%s5430_s1 + $0x794] sm:$0xf0]  ;;  %v3323_v60 = vld [vmem:[%s5430_s1 + $0x74] sm:$0xf] }
  0x55   :  { %1744 = vmatpush.bf16.msra.mxu1 %v2884_v19  ;;  %v3099_v19 = vld [vmem:[%s5430_s1 + $0x660] sm:$0xf]  ;;  %v4274_v29 = vpack.c.b16 %v305_v12, %v305_v12  ;;  %v3140_v13 = vor.u32 %v3524_v7, %v3139_v3  ;;  %v2341_v61 = vld [vmem:[%s5430_s1 + $0x78] sm:$0xf0]  ;;  %v307_v3 = vunpack.c.l.b16 %v29_v55 }
  0x56   :  { %1757 = vmatpush.bf16.msra.mxu2 %v2948_v22  ;;  %v3514_v22 = vld [vmem:[%s5430_s1 + $0x664] sm:$0xf0] }
  0x57   :  { %1770 = vmatpush.bf16.msra.mxu3 %v3012_v26  ;;  %v3530_v26 = vld [vmem:[%s5430_s1 + $0x6e4] sm:$0xf0] }
  0x58   :  { %1732 = vmatpush.bf16.msra.mxu0 %v2812_v32  ;;  %v3562_v32 = vld [vmem:[%s5430_s1 + $0x7e4] sm:$0xf0]  ;;  %v3164_v35 = vor.u32 %v3530_v26, %v3163_v23 }
  0x59   :  { %1745 = vmatpush.bf16.msra.mxu1 %v2876_v33  ;;  %v4284_v33 = vpack.c.b16 %v306_v16, %v306_v16  ;;  %v3292_v43 = vor.u32 %v3562_v32, %v3291_v31  ;;  %v3506_v16 = vld [vmem:[%s5430_s1 + $0x624] sm:$0xf0]  ;;  %v3059_v32 = vld [vmem:[%s5430_s1 + $0x610] sm:$0xf] }
  0x5a   :  { %1758 = vmatpush.bf16.msra.mxu2 %v2940_v34  ;;  %v3100_v34 = vor.u32 %v3514_v22, %v3099_v19  ;;  %v3522_v19 = vld [vmem:[%s5430_s1 + $0x6a4] sm:$0xf0]  ;;  %v3195_v22 = vld [vmem:[%s5430_s1 + $0x720] sm:$0xf] }
  0x5b   :  { %1771 = vmatpush.bf16.msra.mxu3 %v3004_v39  ;;  %v3512_v39 = vld [vmem:[%s5430_s1 + $0x654] sm:$0xf0]  ;;  %v3538_v23 = vld [vmem:[%s5430_s1 + $0x724] sm:$0xf0] }
  0x5c   :  { %1733 = vmatpush.bf16.msra.mxu0 %v2804_v49  ;;  %v3560_v49 = vld [vmem:[%s5430_s1 + $0x7d4] sm:$0xf0]  ;;  %v3092_v50 = vor.u32 %v3512_v39, %v3091_v37  ;;  %v3554_v26 = vld [vmem:[%s5430_s1 + $0x7a4] sm:$0xf0]  ;;  %v3196_v31 = vor.u32 %v3538_v23, %v3195_v22  ;;  %v3187_v39 = vld [vmem:[%s5430_s1 + $0x710] sm:$0xf]  ;;  %v4473_v23 = vpack.c.b16 %v307_v3, %v307_v3 }
  0x5d   :  { %1746 = vmatpush.bf16.msra.mxu1 %v2868_v53  ;;  %v3083_v53 = vld [vmem:[%s5430_s1 + $0x640] sm:$0xf]  ;;  %v3284_v56 = vor.u32 %v3560_v49, %v3283_v48  ;;  %v3520_v37 = vld [vmem:[%s5430_s1 + $0x694] sm:$0xf0]  ;;  %v3502_v48 = vld [vmem:[%s5430_s1 + $0x604] sm:$0xf0] }
  0x5e   :  { %1759 = vmatpush.bf16.msra.mxu2 %v2932_v54  ;;  %v3510_v54 = vld [vmem:[%s5430_s1 + $0x644] sm:$0xf0]  ;;  %v3115_v49 = vld [vmem:[%s5430_s1 + $0x680] sm:$0xf]  ;;  %v3315_v3 = vld [vmem:[%s5430_s1 + $0x34] sm:$0xf] }
  0x5f   :  { %1772 = vmatpush.bf16.msra.mxu3 %v2996_v58  ;;  %v3211_v58 = vld [vmem:[%s5430_s1 + $0x740] sm:$0xf]  ;;  %v3084_v62 = vor.u32 %v3510_v54, %v3083_v53  ;;  %v3534_v54 = vld [vmem:[%s5430_s1 + $0x704] sm:$0xf0] }
  0x60   :  { %1734 = vmatpush.bf16.msra.mxu0 %v2796_v1  ;;  %v3212_v0 = vor.u32 %v3542_v59, %v3211_v58  ;;  %v3075_v1 = vld [vmem:[%s5430_s1 + $0x630] sm:$0xf]  ;;  %v3179_v53 = vld [vmem:[%s5430_s1 + $0x700] sm:$0xf]  ;;  %v3550_v58 = vld [vmem:[%s5430_s1 + $0x784] sm:$0xf0] }
  0x61   :  { %1747 = vmatpush.bf16.msra.mxu1 %v2860_v8  ;;  %v3203_v8 = vld [vmem:[%s5430_s1 + $0x730] sm:$0xf]  ;;  %v3076_v12 = vor.u32 %v3508_v2, %v3075_v1  ;;  %v30_v59 = vld [vmem:[%s5431_s0 + $0x38] sm:$0xff]  ;;  %v3355_v1 = vld [vmem:[%s5430_s1 + $0x174] sm:$0xf]  ;;  %v3180_v7 = vor.u32 %v3534_v54, %v3179_v53 }
  0x62   :  { %1760 = vmatpush.bf16.msra.mxu2 %v2924_v9  ;;  %v3540_v9 = vld [vmem:[%s5430_s1 + $0x734] sm:$0xf0]  ;;  %v2469_v2 = vld [vmem:[%s5430_s1 + $0x178] sm:$0xf0] }
  0x63   :  { %1773 = vmatpush.bf16.msra.mxu3 %v2988_v14  ;;  %1735 = vmatmul.bf16.vlgmr.msra.gmra.mxu0 %v4263_v25  ;;  %v3204_v14 = vor.u32 %v3540_v9, %v3203_v8  ;;  %v3371_v8 = vld [vmem:[%s5430_s1 + $0x1f4] sm:$0xf]  ;;  %v2533_v9 = vld [vmem:[%s5430_s1 + $0x1f8] sm:$0xf0] }
  0x64   :  { %1779 = vmatpush.bf16.msrb.mxu0 %v3108_v15  ;;  %1748 = vmatmul.bf16.vlgmr.msra.gmra.mxu1 %v4276_v30  ;;  %v3067_v15 = vld [vmem:[%s5430_s1 + $0x620] sm:$0xf]  ;;  %v2536_v22 = vor.u32 %v3371_v8, %v2533_v9  ;;  %v2373_v9 = vld [vmem:[%s5430_s1 + $0xb8] sm:$0xf0] }
  0x65   :  { %1792 = vmatpush.bf16.msrb.mxu1 %v3172_v17  ;;  %1761 = vmatmul.bf16.vlgmr.msra.gmra.mxu2 %v4274_v29  ;;  %v3131_v17 = vld [vmem:[%s5430_s1 + $0x6a0] sm:$0xf]  ;;  %v3068_v27 = vor.u32 %v3506_v16, %v3067_v15  ;;  %v2472_v16 = vor.u32 %v3355_v1, %v2469_v2 }
  0x66   :  { %1805 = vmatpush.bf16.msrb.mxu2 %v3236_v18  ;;  %1774 = vmatmul.bf16.vlgmr.msra.gmra.mxu3 %v4284_v33  ;;  %v3268_v18 = vor.u32 %v3556_v11, %v3267_v10  ;;  %v3132_v28 = vor.u32 %v3522_v19, %v3131_v17  ;;  %v309_v10 = vunpack.c.l.b16 %v30_v59  ;;  %v308_v11 = vunpack.c.h.b16 %v29_v55  ;;  %v3321_v17 = vld [vmem:[%s5430_s1 + $0x64] sm:$0xf] }
  0x67   :  { %1818 = vmatpush.bf16.msrb.mxu3 %v3300_v24  ;;  %v3259_v24 = vld [vmem:[%s5430_s1 + $0x7a0] sm:$0xf]  ;;  %v3337_v19 = vld [vmem:[%s5430_s1 + $0xe4] sm:$0xf] }
  0x68   :  { %1780 = vmatpush.bf16.msrb.mxu0 %v3100_v34  ;;  %v3504_v34 = vld [vmem:[%s5430_s1 + $0x614] sm:$0xf0]  ;;  %v3317_v55 = vld [vmem:[%s5430_s1 + $0x44] sm:$0xf] }
  0x69   :  { %1793 = vmatpush.bf16.msrb.mxu1 %v3164_v35  ;;  %v3123_v35 = vld [vmem:[%s5430_s1 + $0x690] sm:$0xf]  ;;  %v3060_v47 = vor.u32 %v3504_v34, %v3059_v32  ;;  %v3369_v32 = vld [vmem:[%s5430_s1 + $0x1e4] sm:$0xf]  ;;  %v2525_v34 = vld [vmem:[%s5430_s1 + $0x1e8] sm:$0xf0] }
  0x6a   :  { %1806 = vmatpush.bf16.msrb.mxu2 %v3228_v36  ;;  %v3260_v36 = vor.u32 %v3554_v26, %v3259_v24  ;;  %v2397_v24 = vld [vmem:[%s5430_s1 + $0xe8] sm:$0xf0]  ;;  %v3353_v26 = vld [vmem:[%s5430_s1 + $0x164] sm:$0xf] }
  0x6b   :  { %1819 = vmatpush.bf16.msrb.mxu3 %v3292_v43  ;;  %v3251_v43 = vld [vmem:[%s5430_s1 + $0x790] sm:$0xf] }
  0x6c   :  { %1781 = vmatpush.bf16.msrb.mxu0 %v3092_v50  ;;  %v3518_v50 = vld [vmem:[%s5430_s1 + $0x684] sm:$0xf0] }
  0x6d   :  { %1794 = vmatpush.bf16.msrb.mxu1 %v3156_v51  ;;  %v3124_v51 = vor.u32 %v3520_v37, %v3123_v35  ;;  %v2400_v37 = vor.u32 %v3337_v19, %v2397_v24  ;;  %v3329_v19 = vld [vmem:[%s5430_s1 + $0xa4] sm:$0xf]  ;;  %v2365_v24 = vld [vmem:[%s5430_s1 + $0xa8] sm:$0xf0] }
  0x6e   :  { %1807 = vmatpush.bf16.msrb.mxu2 %v3220_v52  ;;  %v3188_v52 = vor.u32 %v3536_v40, %v3187_v39  ;;  %v3319_v40 = vld [vmem:[%s5430_s1 + $0x54] sm:$0xf] }
  0x6f   :  { %1820 = vmatpush.bf16.msrb.mxu3 %v3284_v56  ;;  %v3252_v56 = vor.u32 %v3552_v45, %v3251_v43  ;;  %v2325_v43 = vld [vmem:[%s5430_s1 + $0x58] sm:$0xf0]  ;;  %v3335_v45 = vld [vmem:[%s5430_s1 + $0xd4] sm:$0xf] }
  0x70   :  { %1782 = vmatpush.bf16.msrb.mxu0 %v3084_v62  ;;  %v3339_v62 = vld [vmem:[%s5430_s1 + $0xf4] sm:$0xf] }
  0x71   :  { %1795 = vmatpush.bf16.msrb.mxu1 %v3148_v63  ;;  %v3052_v63 = vor.u32 %v3502_v48, %v3051_v46  ;;  %v2528_v46 = vor.u32 %v3369_v32, %v2525_v34  ;;  %v3351_v48 = vld [vmem:[%s5430_s1 + $0x154] sm:$0xf]  ;;  %v3361_v32 = vld [vmem:[%s5430_s1 + $0x1a4] sm:$0xf]  ;;  %v2493_v34 = vld [vmem:[%s5430_s1 + $0x1a8] sm:$0xf0] }
  0x72   :  { %1808 = vmatpush.bf16.msrb.mxu2 %v3212_v0  ;;  %v2405_v0 = vld [vmem:[%s5430_s1 + $0xf8] sm:$0xf0] }
  0x73   :  { %1821 = vmatpush.bf16.msrb.mxu3 %v3276_v5  ;;  %v3116_v5 = vor.u32 %v3518_v50, %v3115_v49  ;;  %v2408_v15 = vor.u32 %v3339_v62, %v2405_v0  ;;  %v2453_v49 = vld [vmem:[%s5430_s1 + $0x158] sm:$0xf0]  ;;  %v3367_v50 = vld [vmem:[%s5430_s1 + $0x1d4] sm:$0xf]  ;;  %v3365_v62 = vld [vmem:[%s5430_s1 + $0x1c4] sm:$0xf] }
  0x74   :  { %1783 = vmatpush.bf16.msrb.mxu0 %v3076_v12  ;;  %v3244_v12 = vor.u32 %v3550_v58, %v3243_v57  ;;  %v2456_v54 = vor.u32 %v3351_v48, %v2453_v49  ;;  %v3333_v57 = vld [vmem:[%s5430_s1 + $0xc4] sm:$0xf]  ;;  %v3343_v48 = vld [vmem:[%s5430_s1 + $0x114] sm:$0xf]  ;;  %v2421_v49 = vld [vmem:[%s5430_s1 + $0x118] sm:$0xf0] }
  0x75   :  { %1796 = vmatpush.bf16.msrb.mxu1 %v3140_v13  ;;  %v2344_v13 = vor.u32 %v3323_v60, %v2341_v61  ;;  %v3349_v60 = vld [vmem:[%s5430_s1 + $0x144] sm:$0xf]  ;;  %v2445_v61 = vld [vmem:[%s5430_s1 + $0x148] sm:$0xf0] }
  0x76   :  { %1809 = vmatpush.bf16.msrb.mxu2 %v3204_v14  ;;  %v310_v14 = vunpack.c.h.b16 %v30_v59  ;;  %v2381_v59 = vld [vmem:[%s5430_s1 + $0xc8] sm:$0xf0]  ;;  %v2448_v2 = vor.u32 %v3349_v60, %v2445_v61 }
  0x77   :  { %1822 = vmatpush.bf16.msrb.mxu3 %v3268_v18  ;;  %v2333_v18 = vld [vmem:[%s5430_s1 + $0x68] sm:$0xf0]  ;;  %v2384_v1 = vor.u32 %v3333_v57, %v2381_v59  ;;  %v3325_v57 = vld [vmem:[%s5430_s1 + $0x84] sm:$0xf] }
  0x78   :  { %1784 = vmatpush.bf16.msrb.mxu0 %v3068_v27  ;;  %v2461_v27 = vld [vmem:[%s5430_s1 + $0x168] sm:$0xf0]  ;;  %v4494_v35 = vpack.c.b16 %v310_v14, %v310_v14  ;;  %v3341_v59 = vld [vmem:[%s5430_s1 + $0x104] sm:$0xf] }
  0x79   :  { %1797 = vmatpush.bf16.msrb.mxu1 %v3132_v28  ;;  %v4484_v28 = vpack.c.b16 %v309_v10, %v309_v10  ;;  %v2464_v39 = vor.u32 %v3353_v26, %v2461_v27  ;;  %v3347_v10 = vld [vmem:[%s5430_s1 + $0x134] sm:$0xf]  ;;  %v3345_v26 = vld [vmem:[%s5430_s1 + $0x124] sm:$0xf]  ;;  %v2429_v27 = vld [vmem:[%s5430_s1 + $0x128] sm:$0xf0] }
  0x7a   :  { %1810 = vmatpush.bf16.msrb.mxu2 %v3196_v31  ;;  %v4486_v31 = vpack.c.b16 %v308_v11, %v308_v11  ;;  %v2437_v11 = vld [vmem:[%s5430_s1 + $0x138] sm:$0xf0]  ;;  %v2413_v61 = vld [vmem:[%s5430_s1 + $0x108] sm:$0xf0] }
  0x7b   :  { %1823 = vmatpush.bf16.msrb.mxu3 %v3260_v36  ;;  %v2336_v36 = vor.u32 %v3321_v17, %v2333_v18  ;;  %v3313_v17 = vld [vmem:[%s5430_s1 + $0x24] sm:$0xf]  ;;  %v2301_v18 = vld [vmem:[%s5430_s1 + $0x28] sm:$0xf0] }
  0x7c   :  { %1785 = vmatpush.bf16.msrb.mxu0 %v3060_v47  ;;  %v2389_v47 = vld [vmem:[%s5430_s1 + $0xd8] sm:$0xf0] }
  0x7d   :  { %1798 = vmatpush.bf16.msrb.mxu1 %v3124_v51  ;;  %v2517_v51 = vld [vmem:[%s5430_s1 + $0x1d8] sm:$0xf0]  ;;  %v2392_v53 = vor.u32 %v3335_v45, %v2389_v47  ;;  %v3327_v45 = vld [vmem:[%s5430_s1 + $0x94] sm:$0xf] }
  0x7e   :  { %1811 = vmatpush.bf16.msrb.mxu2 %v3188_v52  ;;  %v2328_v52 = vor.u32 %v3319_v40, %v2325_v43  ;;  %v2520_v58 = vor.u32 %v3367_v50, %v2517_v51  ;;  %v3311_v40 = vld [vmem:[%s5430_s1 + $0x14] sm:$0xf]  ;;  %v2293_v43 = vld [vmem:[%s5430_s1 + $0x18] sm:$0xf0] }
  0x7f   :  { %1824 = vmatpush.bf16.msrb.mxu3 %v3252_v56  ;;  %v2317_v56 = vld [vmem:[%s5430_s1 + $0x48] sm:$0xf0]  ;;  %v2357_v47 = vld [vmem:[%s5430_s1 + $0x98] sm:$0xf0]  ;;  %v3359_v50 = vld [vmem:[%s5430_s1 + $0x194] sm:$0xf] }
  0x80   :  { %1786 = vmatpush.bf16.msrb.mxu0 %v3052_v63  ;;  %v2509_v63 = vld [vmem:[%s5430_s1 + $0x1c8] sm:$0xf0]  ;;  %v2320_v0 = vor.u32 %v3317_v55, %v2317_v56  ;;  %v2485_v51 = vld [vmem:[%s5430_s1 + $0x198] sm:$0xf0]  ;;  %v2360_v55 = vor.u32 %v3327_v45, %v2357_v47  ;;  %v2424_v56 = vor.u32 %v3343_v48, %v2421_v49  ;;  %v3399_v45 = vld [vmem:[%s5430_s1 + $0x2d4] sm:$0xf] }
  0x81   :  { %1799 = vmatpush.bf16.msrb.mxu1 %v3116_v5  ;;  %v2309_v5 = vld [vmem:[%s5430_s1 + $0x38] sm:$0xf0]  ;;  %v2512_v8 = vor.u32 %v3365_v62, %v2509_v63  ;;  %v2488_v60 = vor.u32 %v3359_v50, %v2485_v51  ;;  %v3357_v62 = vld [vmem:[%s5430_s1 + $0x184] sm:$0xf]  ;;  %v2477_v63 = vld [vmem:[%s5430_s1 + $0x188] sm:$0xf0] }
  0x82   :  { %1812 = vmatpush.bf16.msrb.mxu2 %v3180_v7  ;;  %v3331_v7 = vld [vmem:[%s5430_s1 + $0xb4] sm:$0xf]  ;;  %v2312_v14 = vor.u32 %v3315_v3, %v2309_v5  ;;  %v2661_v5 = vld [vmem:[%s5430_s1 + $0x2f8] sm:$0xf0] }
  0x83   :  { %1825 = vmatpush.bf16.msrb.mxu3 %v3244_v12  ;;  %1787 = vmatmul.bf16.vlgmr.msrb.gmra.mxu0 %v4473_v23  ;;  %v3363_v12 = vld [vmem:[%s5430_s1 + $0x1b4] sm:$0xf]  ;;  %v2645_v47 = vld [vmem:[%s5430_s1 + $0x2d8] sm:$0xf0] }
  0x84   :  { %1831 = vmatpush.bf16.msra.mxu0 %v2344_v13  ;;  %1800 = vmatmul.bf16.vlgmr.msrb.gmra.mxu1 %v4486_v31  ;;  %v2501_v13 = vld [vmem:[%s5430_s1 + $0x1b8] sm:$0xf0]  ;;  %v3415_v48 = vld [vmem:[%s5430_s1 + $0x354] sm:$0xf] }
  0x85   :  { %1844 = vmatpush.bf16.msra.mxu1 %v2408_v15  ;;  %1813 = vmatmul.bf16.vlgmr.msrb.gmra.mxu2 %v4484_v28  ;;  %v2376_v15 = vor.u32 %v3331_v7, %v2373_v9  ;;  %v3419_v7 = vld [vmem:[%s5430_s1 + $0x374] sm:$0xf]  ;;  %v2709_v49 = vld [vmem:[%s5430_s1 + $0x358] sm:$0xf0] }
  0x86   :  { %1857 = vmatpush.bf16.msra.mxu2 %v2472_v16  ;;  %1826 = vmatmul.bf16.vlgmr.msrb.gmra.mxu3 %v4494_v35  ;;  %v2440_v16 = vor.u32 %v3347_v10, %v2437_v11  ;;  %v2416_v10 = vor.u32 %v3341_v59, %v2413_v61  ;;  %v3435_v11 = vld [vmem:[%s5430_s1 + $0x3f4] sm:$0xf]  ;;  %v2773_v51 = vld [vmem:[%s5430_s1 + $0x3d8] sm:$0xf0]  ;;  %v2765_v59 = vld [vmem:[%s5430_s1 + $0x3c8] sm:$0xf0] }
  0x87   :  { %1870 = vmatpush.bf16.msra.mxu3 %v2536_v22  ;;  %v2504_v22 = vor.u32 %v3363_v12, %v2501_v13  ;;  %v2789_v12 = vld [vmem:[%s5430_s1 + $0x3f8] sm:$0xf0]  ;;  %v2480_v13 = vor.u32 %v3357_v62, %v2477_v63  ;;  %v3431_v50 = vld [vmem:[%s5430_s1 + $0x3d4] sm:$0xf] }
  0x88   :  { %1832 = vmatpush.bf16.msra.mxu0 %v2336_v36  ;;  %v2304_v36 = vor.u32 %v3313_v17, %v2301_v18  ;;  %v3385_v17 = vld [vmem:[%s5430_s1 + $0x264] sm:$0xf]  ;;  %v2589_v18 = vld [vmem:[%s5430_s1 + $0x268] sm:$0xf0]  ;;  %v3379_v63 = vld [vmem:[%s5430_s1 + $0x234] sm:$0xf] }
  0x89   :  { %1845 = vmatpush.bf16.msra.mxu1 %v2400_v37  ;;  %v2368_v37 = vor.u32 %v3329_v19, %v2365_v24  ;;  %v3401_v19 = vld [vmem:[%s5430_s1 + $0x2e4] sm:$0xf]  ;;  %v2653_v24 = vld [vmem:[%s5430_s1 + $0x2e8] sm:$0xf0] }
  0x8a   :  { %1858 = vmatpush.bf16.msra.mxu2 %v2464_v39  ;;  %v2432_v39 = vor.u32 %v3345_v26, %v2429_v27  ;;  %v3417_v26 = vld [vmem:[%s5430_s1 + $0x364] sm:$0xf]  ;;  %v2717_v27 = vld [vmem:[%s5430_s1 + $0x368] sm:$0xf0] }
  0x8b   :  { %1871 = vmatpush.bf16.msra.mxu3 %v2528_v46  ;;  %v2496_v46 = vor.u32 %v3361_v32, %v2493_v34  ;;  %v3433_v32 = vld [vmem:[%s5430_s1 + $0x3e4] sm:$0xf]  ;;  %v2781_v34 = vld [vmem:[%s5430_s1 + $0x3e8] sm:$0xf0] }
  0x8c   :  { %1833 = vmatpush.bf16.msra.mxu0 %v2328_v52  ;;  %v2296_v52 = vor.u32 %v3311_v40, %v2293_v43  ;;  %v3383_v40 = vld [vmem:[%s5430_s1 + $0x254] sm:$0xf]  ;;  %v2581_v43 = vld [vmem:[%s5430_s1 + $0x258] sm:$0xf0] }
  0x8d   :  { %1846 = vmatpush.bf16.msra.mxu1 %v2392_v53  ;;  %v3309_v53 = vld [vmem:[%s5430_s1 + $0x4] sm:$0xf] }
  0x8e   :  { %1859 = vmatpush.bf16.msra.mxu2 %v2456_v54  ;;  %v2285_v54 = vld [vmem:[%s5430_s1 + $0x8] sm:$0xf0] }
  0x8f   :  { %1872 = vmatpush.bf16.msra.mxu3 %v2520_v58  ;;  %v2349_v58 = vld [vmem:[%s5430_s1 + $0x88] sm:$0xf0]  ;;  %v2288_v3 = vor.u32 %v3309_v53, %v2285_v54  ;;  %v2648_v53 = vor.u32 %v3399_v45, %v2645_v47  ;;  %v3381_v54 = vld [vmem:[%s5430_s1 + $0x244] sm:$0xf]  ;;  %v3407_v47 = vld [vmem:[%s5430_s1 + $0x314] sm:$0xf] }
  0x90   :  { %1834 = vmatpush.bf16.msra.mxu0 %v2320_v0  ;;  %v3387_v0 = vld [vmem:[%s5430_s1 + $0x274] sm:$0xf]  ;;  %v2352_v9 = vor.u32 %v3325_v57, %v2349_v58  ;;  %v2701_v57 = vld [vmem:[%s5430_s1 + $0x348] sm:$0xf0]  ;;  %v3429_v58 = vld [vmem:[%s5430_s1 + $0x3c4] sm:$0xf] }
  0x91   :  { %1847 = vmatpush.bf16.msra.mxu1 %v2384_v1  ;;  %v2597_v1 = vld [vmem:[%s5430_s1 + $0x278] sm:$0xf0] }
  0x92   :  { %1860 = vmatpush.bf16.msra.mxu2 %v2448_v2  ;;  %v3403_v2 = vld [vmem:[%s5430_s1 + $0x2f4] sm:$0xf] }
  0x93   :  { %1873 = vmatpush.bf16.msra.mxu3 %v2512_v8  ;;  %v2725_v8 = vld [vmem:[%s5430_s1 + $0x378] sm:$0xf0] }
  0x94   :  { %1835 = vmatpush.bf16.msra.mxu0 %v2312_v14  ;;  %v2600_v14 = vor.u32 %v3387_v0, %v2597_v1  ;;  %v2565_v0 = vld [vmem:[%s5430_s1 + $0x238] sm:$0xf0]  ;;  %v3395_v1 = vld [vmem:[%s5430_s1 + $0x2b4] sm:$0xf] }
  0x95   :  { %1848 = vmatpush.bf16.msra.mxu1 %v2376_v15  ;;  %v2664_v15 = vor.u32 %v3403_v2, %v2661_v5  ;;  %v2768_v2 = vor.u32 %v3429_v58, %v2765_v59  ;;  %v3411_v5 = vld [vmem:[%s5430_s1 + $0x334] sm:$0xf]  ;;  %v3421_v58 = vld [vmem:[%s5430_s1 + $0x384] sm:$0xf]  ;;  %v2733_v59 = vld [vmem:[%s5430_s1 + $0x388] sm:$0xf0] }
  0x96   :  { %1861 = vmatpush.bf16.msra.mxu2 %v2440_v16  ;;  %v2728_v16 = vor.u32 %v3419_v7, %v2725_v8  ;;  %v2693_v7 = vld [vmem:[%s5430_s1 + $0x338] sm:$0xf0]  ;;  %v3427_v8 = vld [vmem:[%s5430_s1 + $0x3b4] sm:$0xf] }
  0x97   :  { %1874 = vmatpush.bf16.msra.mxu3 %v2504_v22  ;;  %v2792_v22 = vor.u32 %v3435_v11, %v2789_v12  ;;  %v2696_v12 = vor.u32 %v3411_v5, %v2693_v7 }
  0x98   :  { %1836 = vmatpush.bf16.msra.mxu0 %v2304_v36  ;;  %v2592_v36 = vor.u32 %v3385_v17, %v2589_v18  ;;  %v2621_v17 = vld [vmem:[%s5430_s1 + $0x2a8] sm:$0xf0]  ;;  %v3409_v18 = vld [vmem:[%s5430_s1 + $0x324] sm:$0xf] }
  0x99   :  { %1849 = vmatpush.bf16.msra.mxu1 %v2368_v37  ;;  %v2656_v37 = vor.u32 %v3401_v19, %v2653_v24  ;;  %v2685_v19 = vld [vmem:[%s5430_s1 + $0x328] sm:$0xf0] }
  0x9a   :  { %1862 = vmatpush.bf16.msra.mxu2 %v2432_v39  ;;  %v2720_v39 = vor.u32 %v3417_v26, %v2717_v27  ;;  %v2749_v24 = vld [vmem:[%s5430_s1 + $0x3a8] sm:$0xf0] }
  0x9b   :  { %1875 = vmatpush.bf16.msra.mxu3 %v2496_v46  ;;  %v2784_v46 = vor.u32 %v3433_v32, %v2781_v34 }
  0x9c   :  { %1837 = vmatpush.bf16.msra.mxu0 %v2296_v52  ;;  %v2584_v52 = vor.u32 %v3383_v40, %v2581_v43  ;;  %v3391_v40 = vld [vmem:[%s5430_s1 + $0x294] sm:$0xf] }
  0x9d   :  { %1850 = vmatpush.bf16.msra.mxu1 %v2360_v55  ;;  %v2573_v55 = vld [vmem:[%s5430_s1 + $0x248] sm:$0xf0] }
  0x9e   :  { %1863 = vmatpush.bf16.msra.mxu2 %v2424_v56  ;;  %v3413_v56 = vld [vmem:[%s5430_s1 + $0x344] sm:$0xf] }
  0x9f   :  { %1876 = vmatpush.bf16.msra.mxu3 %v2488_v60  ;;  %v2576_v60 = vor.u32 %v3381_v54, %v2573_v55  ;;  %v2704_v62 = vor.u32 %v3413_v56, %v2701_v57  ;;  %v2669_v57 = vld [vmem:[%s5430_s1 + $0x308] sm:$0xf0] }
  0xa0   :  { %1838 = vmatpush.bf16.msra.mxu0 %v2288_v3  ;;  %v2629_v3 = vld [vmem:[%s5430_s1 + $0x2b8] sm:$0xf0]  ;;  %v4792_v26 = vpop.f32.mrf.mxu0 }
  0xa1   :  { %1851 = vmatpush.bf16.msra.mxu1 %v2352_v9  ;;  %v2757_v9 = vld [vmem:[%s5430_s1 + $0x3b8] sm:$0xf0]  ;;  %v2632_v11 = vor.u32 %v3395_v1, %v2629_v3  ;;  %v4794_v32 = vpop.f32.mrf.mxu1 }
  0xa2   :  { %1864 = vmatpush.bf16.msra.mxu2 %v2416_v10  ;;  %v2568_v10 = vor.u32 %v3379_v63, %v2565_v0  ;;  %v2917_v1 = vld [vmem:[%s5430_s1 + $0x4f8] sm:$0xf0] }
  0xa3   :  { %1877 = vmatpush.bf16.msra.mxu3 %v2480_v13  ;;  %1839 = vmatmul.bf16.vlgmr.msra.gmra.mxu0 %v3911_v20  ;;  %v2776_v20 = vor.u32 %v3431_v50, %v2773_v51  ;;  %v3377_v13 = vld [vmem:[%s5430_s1 + $0x224] sm:$0xf]  ;;  %v3423_v50 = vld [vmem:[%s5430_s1 + $0x394] sm:$0xf]  ;;  %v2741_v51 = vld [vmem:[%s5430_s1 + $0x398] sm:$0xf0] }
  0xa4   :  { %1883 = vmatpush.bf16.msrb.mxu0 %v2600_v14  ;;  %1852 = vmatmul.bf16.vlgmr.msra.gmra.mxu1 %v3914_v21  ;;  %v2637_v21 = vld [vmem:[%s5430_s1 + $0x2c8] sm:$0xf0]  ;;  %v2744_v56 = vor.u32 %v3423_v50, %v2741_v51  ;;  %v2981_v3 = vld [vmem:[%s5430_s1 + $0x578] sm:$0xf0] }
  0xa5   :  { %1896 = vmatpush.bf16.msrb.mxu1 %v2664_v15  ;;  %1865 = vmatmul.bf16.vlgmr.msra.gmra.mxu2 %v3879_v4  ;;  %v2712_v4 = vor.u32 %v3415_v48, %v2709_v49  ;;  %v2557_v14 = vld [vmem:[%s5430_s1 + $0x228] sm:$0xf0]  ;;  %v3393_v15 = vld [vmem:[%s5430_s1 + $0x2a4] sm:$0xf]  ;;  %v2677_v48 = vld [vmem:[%s5430_s1 + $0x318] sm:$0xf0] }
  0xa6   :  { %1909 = vmatpush.bf16.msrb.mxu2 %v2728_v16  ;;  %1878 = vmatmul.bf16.vlgmr.msra.gmra.mxu3 %v3884_v6  ;;  %v3397_v6 = vld [vmem:[%s5430_s1 + $0x2c4] sm:$0xf]  ;;  %v2760_v16 = vor.u32 %v3427_v8, %v2757_v9  ;;  %v2560_v27 = vor.u32 %v3377_v13, %v2557_v14  ;;  %v2624_v34 = vor.u32 %v3393_v15, %v2621_v17  ;;  %v3499_v9 = vld [vmem:[%s5430_s1 + $0x5f4] sm:$0xf]  ;;  %v2901_v51 = vld [vmem:[%s5430_s1 + $0x4d8] sm:$0xf0] }
  0xa7   :  { %1922 = vmatpush.bf16.msrb.mxu3 %v2792_v22  ;;  %v2640_v61 = vor.u32 %v3397_v6, %v2637_v21  ;;  %v3425_v22 = vld [vmem:[%s5430_s1 + $0x3a4] sm:$0xf]  ;;  %v2680_v55 = vor.u32 %v3407_v47, %v2677_v48  ;;  %v2837_v47 = vld [vmem:[%s5430_s1 + $0x458] sm:$0xf0]  ;;  %v3463_v48 = vld [vmem:[%s5430_s1 + $0x4d4] sm:$0xf] }
  0xa8   :  { %1884 = vmatpush.bf16.msrb.mxu0 %v2592_v36  ;;  %v2688_v36 = vor.u32 %v3409_v18, %v2685_v19  ;;  %v4805_v43 = vpop.f32.mrf.mxu2  ;;  %v2752_v45 = vor.u32 %v3425_v22, %v2749_v24  ;;  %v3389_v6 = vld [vmem:[%s5430_s1 + $0x284] sm:$0xf]  ;;  %v1634_v63 = vpop.f32.mrf.mxu0  ;;  %v2845_v18 = vld [vmem:[%s5430_s1 + $0x468] sm:$0xf0] }
  0xa9   :  { %1897 = vmatpush.bf16.msrb.mxu1 %v2656_v37  ;;  %v3375_v37 = vld [vmem:[%s5430_s1 + $0x214] sm:$0xf]  ;;  %v4816_v49 = vpop.f32.mrf.mxu3  ;;  %v3405_v21 = vld [vmem:[%s5430_s1 + $0x304] sm:$0xf]  ;;  %v1647_v5 = vpop.f32.mrf.mxu1  ;;  %v2909_v24 = vld [vmem:[%s5430_s1 + $0x4e8] sm:$0xf0] }
  0xaa   :  { %1910 = vmatpush.bf16.msrb.mxu2 %v2720_v39  ;;  %v2549_v39 = vld [vmem:[%s5430_s1 + $0x218] sm:$0xf0]  ;;  %v2672_v8 = vor.u32 %v3405_v21, %v2669_v57  ;;  %v3449_v17 = vld [vmem:[%s5430_s1 + $0x464] sm:$0xf]  ;;  %v2957_v57 = vld [vmem:[%s5430_s1 + $0x548] sm:$0xf0] }
  0xab   :  { %1923 = vmatpush.bf16.msrb.mxu3 %v2784_v46  ;;  %v2613_v46 = vld [vmem:[%s5430_s1 + $0x298] sm:$0xf0]  ;;  %v3465_v19 = vld [vmem:[%s5430_s1 + $0x4e4] sm:$0xf] }
  0xac   :  { %1885 = vmatpush.bf16.msrb.mxu0 %v2584_v52  ;;  %v2552_v52 = vor.u32 %v3375_v37, %v2549_v39  ;;  %v2616_v54 = vor.u32 %v3391_v40, %v2613_v46  ;;  %v3037_v37 = vld [vmem:[%s5430_s1 + $0x5e8] sm:$0xf0]  ;;  %v2848_v39 = vor.u32 %v3449_v17, %v2845_v18  ;;  %v2912_v40 = vor.u32 %v3465_v19, %v2909_v24  ;;  %v3447_v46 = vld [vmem:[%s5430_s1 + $0x454] sm:$0xf]  ;;  %v3457_v17 = vld [vmem:[%s5430_s1 + $0x4a4] sm:$0xf] }
  0xad   :  { %1898 = vmatpush.bf16.msrb.mxu1 %v2648_v53  ;;  %v3373_v53 = vld [vmem:[%s5430_s1 + $0x204] sm:$0xf] }
  0xae   :  { %1911 = vmatpush.bf16.msrb.mxu2 %v2712_v4  ;;  %v2541_v4 = vld [vmem:[%s5430_s1 + $0x208] sm:$0xf0]  ;;  %v3473_v24 = vld [vmem:[%s5430_s1 + $0x524] sm:$0xf] }
  0xaf   :  { %1924 = vmatpush.bf16.msrb.mxu3 %v2776_v20  ;;  %v2605_v20 = vld [vmem:[%s5430_s1 + $0x288] sm:$0xf0]  ;;  %v2544_v0 = vor.u32 %v3373_v53, %v2541_v4  ;;  %v2965_v53 = vld [vmem:[%s5430_s1 + $0x558] sm:$0xf0] }
  0xb0   :  { %1886 = vmatpush.bf16.msrb.mxu0 %v2576_v60  ;;  %v3451_v60 = vld [vmem:[%s5430_s1 + $0x474] sm:$0xf]  ;;  %v2608_v7 = vor.u32 %v3389_v6, %v2605_v20  ;;  %v3029_v4 = vld [vmem:[%s5430_s1 + $0x5d8] sm:$0xf0]  ;;  %v3461_v20 = vld [vmem:[%s5430_s1 + $0x4c4] sm:$0xf] }
  0xb1   :  { %1899 = vmatpush.bf16.msrb.mxu1 %v2640_v61  ;;  %v2853_v61 = vld [vmem:[%s5430_s1 + $0x478] sm:$0xf0]  ;;  %v1673_v14 = vpop.f32.mrf.mxu3 }
  0xb2   :  { %1912 = vmatpush.bf16.msrb.mxu2 %v2704_v62  ;;  %v3467_v62 = vld [vmem:[%s5430_s1 + $0x4f4] sm:$0xf]  ;;  %v2856_v13 = vor.u32 %v3451_v60, %v2853_v61 }
  0xb3   :  { %1925 = vmatpush.bf16.msrb.mxu3 %v2768_v2  ;;  %v3483_v2 = vld [vmem:[%s5430_s1 + $0x574] sm:$0xf]  ;;  %v2920_v15 = vor.u32 %v3467_v62, %v2917_v1  ;;  %v2821_v1 = vld [vmem:[%s5430_s1 + $0x438] sm:$0xf0] }
  0xb4   :  { %1887 = vmatpush.bf16.msrb.mxu0 %v2568_v10  ;;  %v3045_v10 = vld [vmem:[%s5430_s1 + $0x5f8] sm:$0xf0] }
  0xb5   :  { %1900 = vmatpush.bf16.msrb.mxu1 %v2632_v11  ;;  %v1660_v11 = vpop.f32.mrf.mxu2  ;;  %v3048_v22 = vor.u32 %v3499_v9, %v3045_v10  ;;  %v2949_v9 = vld [vmem:[%s5430_s1 + $0x538] sm:$0xf0]  ;;  %v3491_v10 = vld [vmem:[%s5430_s1 + $0x5b4] sm:$0xf] }
  0xb6   :  { %1913 = vmatpush.bf16.msrb.mxu2 %v2696_v12  ;;  %v2736_v12 = vor.u32 %v3421_v58, %v2733_v59  ;;  %v3493_v58 = vld [vmem:[%s5430_s1 + $0x5c4] sm:$0xf]  ;;  %v3021_v59 = vld [vmem:[%s5430_s1 + $0x5c8] sm:$0xf0]  ;;  %v3013_v11 = vld [vmem:[%s5430_s1 + $0x5b8] sm:$0xf0] }
  0xb7   :  { %1926 = vmatpush.bf16.msrb.mxu3 %v2760_v16  ;;  %v2984_v16 = vor.u32 %v3483_v2, %v2981_v3  ;;  %v3459_v2 = vld [vmem:[%s5430_s1 + $0x4b4] sm:$0xf]  ;;  %v3024_v5 = vor.u32 %v3493_v58, %v3021_v59  ;;  %v3016_v19 = vor.u32 %v3491_v10, %v3013_v11  ;;  %v3237_v10 = vld [vmem:[%s5430_s1 + $0x778] sm:$0xf0] }
  0xb8   :  { %1888 = vmatpush.bf16.msrb.mxu0 %v2560_v27  ;;  %v3481_v27 = vld [vmem:[%s5430_s1 + $0x564] sm:$0xf] }
  0xb9   :  { %1901 = vmatpush.bf16.msrb.mxu1 %v2624_v34  ;;  %v2973_v34 = vld [vmem:[%s5430_s1 + $0x568] sm:$0xf0] }
  0xba   :  { %1914 = vmatpush.bf16.msrb.mxu2 %v2688_v36  ;;  %v3497_v36 = vld [vmem:[%s5430_s1 + $0x5e4] sm:$0xf] }
  0xbb   :  { %1927 = vmatpush.bf16.msrb.mxu3 %v2752_v45  ;;  %v2976_v45 = vor.u32 %v3481_v27, %v2973_v34  ;;  %v3040_v50 = vor.u32 %v3497_v36, %v3037_v37  ;;  %v2941_v27 = vld [vmem:[%s5430_s1 + $0x528] sm:$0xf0]  ;;  %v3489_v36 = vld [vmem:[%s5430_s1 + $0x5a4] sm:$0xf] }
  0xbc   :  { %1889 = vmatpush.bf16.msrb.mxu0 %v2552_v52  ;;  %v3479_v52 = vld [vmem:[%s5430_s1 + $0x554] sm:$0xf]  ;;  %v3005_v37 = vld [vmem:[%s5430_s1 + $0x5a8] sm:$0xf0] }
  0xbd   :  { %1902 = vmatpush.bf16.msrb.mxu1 %v2616_v54  ;;  %v2840_v54 = vor.u32 %v3447_v46, %v2837_v47  ;;  %v2968_v6 = vor.u32 %v3479_v52, %v2965_v53  ;;  %v2944_v46 = vor.u32 %v3473_v24, %v2941_v27  ;;  %v3439_v47 = vld [vmem:[%s5430_s1 + $0x414] sm:$0xf]  ;;  %v3008_v52 = vor.u32 %v3489_v36, %v3005_v37  ;;  %v2869_v53 = vld [vmem:[%s5430_s1 + $0x498] sm:$0xf0]  ;;  %v3101_v24 = vld [vmem:[%s5430_s1 + $0x668] sm:$0xf0] }
  0xbe   :  { %1915 = vmatpush.bf16.msrb.mxu2 %v2680_v55  ;;  %v2904_v55 = vor.u32 %v3463_v48, %v2901_v51  ;;  %v2805_v48 = vld [vmem:[%s5430_s1 + $0x418] sm:$0xf0]  ;;  %v3529_v27 = vld [vmem:[%s5430_s1 + $0x6e4] sm:$0xf]  ;;  %v3165_v37 = vld [vmem:[%s5430_s1 + $0x6e8] sm:$0xf0] }
  0xbf   :  { %1928 = vmatpush.bf16.msrb.mxu3 %v2744_v56  ;;  %v3477_v56 = vld [vmem:[%s5430_s1 + $0x544] sm:$0xf] }
  0xc0   :  { %1890 = vmatpush.bf16.msrb.mxu0 %v2544_v0  ;;  %v4948_v61 = vpop.f32.mrf.mxu0  ;;  %v2960_v63 = vor.u32 %v3477_v56, %v2957_v57  ;;  %v3443_v0 = vld [vmem:[%s5430_s1 + $0x434] sm:$0xf]  ;;  %v2861_v56 = vld [vmem:[%s5430_s1 + $0x488] sm:$0xf0]  ;;  %v3469_v57 = vld [vmem:[%s5430_s1 + $0x504] sm:$0xf] }
  0xc1   :  { %1903 = vmatpush.bf16.msrb.mxu1 %v2608_v7  ;;  %v4959_v3 = vpop.f32.mrf.mxu1  ;;  %v2885_v7 = vld [vmem:[%s5430_s1 + $0x4b8] sm:$0xf0] }
  0xc2   :  { %1916 = vmatpush.bf16.msrb.mxu2 %v2672_v8  ;;  %v3475_v8 = vld [vmem:[%s5430_s1 + $0x534] sm:$0xf] }
  0xc3   :  { %1929 = vmatpush.bf16.msrb.mxu3 %v2736_v12  ;;  %1891 = vmatmul.bf16.vlgmr.msrb.gmra.mxu0 %v4070_v41  ;;  %v3445_v41 = vld [vmem:[%s5430_s1 + $0x444] sm:$0xf]  ;;  %v2824_v12 = vor.u32 %v3443_v0, %v2821_v1  ;;  %v2952_v14 = vor.u32 %v3475_v8, %v2949_v9  ;;  %v3515_v1 = vld [vmem:[%s5430_s1 + $0x674] sm:$0xf]  ;;  %v3173_v8 = vld [vmem:[%s5430_s1 + $0x6f8] sm:$0xf0] }
  0xc4   :  { %1935 = vmatpush.bf16.msra.mxu0 %v2856_v13  ;;  %1904 = vmatmul.bf16.vlgmr.msrb.gmra.mxu1 %v4074_v44  ;;  %v2893_v44 = vld [vmem:[%s5430_s1 + $0x4c8] sm:$0xf0]  ;;  %v2888_v13 = vor.u32 %v3459_v2, %v2885_v7  ;;  %v3109_v2 = vld [vmem:[%s5430_s1 + $0x678] sm:$0xf0]  ;;  %v3547_v9 = vld [vmem:[%s5430_s1 + $0x774] sm:$0xf] }
  0xc5   :  { %1948 = vmatpush.bf16.msra.mxu1 %v2920_v15  ;;  %1917 = vmatmul.bf16.vlgmr.msrb.gmra.mxu2 %v4062_v38  ;;  %v3495_v38 = vld [vmem:[%s5430_s1 + $0x5d4] sm:$0xf]  ;;  %v2896_v62 = vor.u32 %v3461_v20, %v2893_v44  ;;  %v3441_v15 = vld [vmem:[%s5430_s1 + $0x424] sm:$0xf] }
  0xc6   :  { %1961 = vmatpush.bf16.msra.mxu2 %v2984_v16  ;;  %1930 = vmatmul.bf16.vlgmr.msrb.gmra.mxu3 %v4072_v42  ;;  %v2829_v42 = vld [vmem:[%s5430_s1 + $0x448] sm:$0xf0]  ;;  %v3032_v21 = vor.u32 %v3495_v38, %v3029_v4  ;;  %v3471_v38 = vld [vmem:[%s5430_s1 + $0x514] sm:$0xf]  ;;  %v2933_v4 = vld [vmem:[%s5430_s1 + $0x518] sm:$0xf0] }
  0xc7   :  { %1974 = vmatpush.bf16.msra.mxu3 %v3048_v22  ;;  %v2832_v60 = vor.u32 %v3445_v41, %v2829_v42  ;;  %v2813_v16 = vld [vmem:[%s5430_s1 + $0x428] sm:$0xf0]  ;;  %v3437_v41 = vld [vmem:[%s5430_s1 + $0x404] sm:$0xf] }
  0xc8   :  { %1936 = vmatpush.bf16.msra.mxu0 %v2848_v39  ;;  %v4985_v18 = vpop.f32.mrf.mxu2  ;;  %v2877_v22 = vld [vmem:[%s5430_s1 + $0x4a8] sm:$0xf0]  ;;  %v2816_v39 = vor.u32 %v3441_v15, %v2813_v16  ;;  %v3453_v44 = vld [vmem:[%s5430_s1 + $0x484] sm:$0xf]  ;;  %v3112_v16 = vor.u32 %v3515_v1, %v3109_v2  ;;  %v3507_v2 = vld [vmem:[%s5430_s1 + $0x634] sm:$0xf] }
  0xc9   :  { %1949 = vmatpush.bf16.msra.mxu1 %v2912_v40  ;;  %v4996_v34 = vpop.f32.mrf.mxu3  ;;  %v1686_v40 = vpop.f32.mrf.mxu0  ;;  %v2797_v42 = vld [vmem:[%s5430_s1 + $0x408] sm:$0xf0]  ;;  %v2864_v11 = vor.u32 %v3453_v44, %v2861_v56  ;;  %v3541_v44 = vld [vmem:[%s5430_s1 + $0x744] sm:$0xf] }
  0xca   :  { %1962 = vmatpush.bf16.msra.mxu2 %v2976_v45  ;;  %v2880_v45 = vor.u32 %v3457_v17, %v2877_v22  ;;  %v1699_v51 = vpop.f32.mrf.mxu1  ;;  %v2800_v7 = vor.u32 %v3437_v41, %v2797_v42  ;;  %v3513_v22 = vld [vmem:[%s5430_s1 + $0x664] sm:$0xf]  ;;  %v3229_v40 = vld [vmem:[%s5430_s1 + $0x768] sm:$0xf0] }
  0xcb   :  { %1975 = vmatpush.bf16.msra.mxu3 %v3040_v50  ;;  %v3455_v50 = vld [vmem:[%s5430_s1 + $0x494] sm:$0xf]  ;;  %v3213_v56 = vld [vmem:[%s5430_s1 + $0x748] sm:$0xf0] }
  0xcc   :  { %1937 = vmatpush.bf16.msra.mxu0 %v2840_v54  ;;  %v3487_v54 = vld [vmem:[%s5430_s1 + $0x594] sm:$0xf]  ;;  %v2872_v20 = vor.u32 %v3455_v50, %v2869_v53  ;;  %v3168_v50 = vor.u32 %v3529_v27, %v3165_v37  ;;  %v3093_v53 = vld [vmem:[%s5430_s1 + $0x658] sm:$0xf0]  ;;  %v3216_v1 = vor.u32 %v3541_v44, %v3213_v56  ;;  %v3197_v37 = vld [vmem:[%s5430_s1 + $0x728] sm:$0xf0] }
  0xcd   :  { %1950 = vmatpush.bf16.msra.mxu1 %v2904_v55  ;;  %v2997_v55 = vld [vmem:[%s5430_s1 + $0x598] sm:$0xf0]  ;;  %v3181_v44 = vld [vmem:[%s5430_s1 + $0x708] sm:$0xf0] }
  0xce   :  { %1963 = vmatpush.bf16.msra.mxu2 %v2968_v6  ;;  %v2808_v6 = vor.u32 %v3439_v47, %v2805_v48  ;;  %v3000_v59 = vor.u32 %v3487_v54, %v2997_v55  ;;  %v3104_v47 = vor.u32 %v3513_v22, %v3101_v24  ;;  %v1646_v48 = vadd.f32 %v4794_v32, %v4792_v26  ;;  %v3157_v32 = vld [vmem:[%s5430_s1 + $0x6d8] sm:$0xf0]  ;;  %v3521_v22 = vld [vmem:[%s5430_s1 + $0x6a4] sm:$0xf] }
  0xcf   :  { %1976 = vmatpush.bf16.msra.mxu3 %v3032_v21  ;;  %v2936_v21 = vor.u32 %v3471_v38, %v2933_v4  ;;  %v3527_v38 = vld [vmem:[%s5430_s1 + $0x6d4] sm:$0xf]  ;;  %v3221_v54 = vld [vmem:[%s5430_s1 + $0x758] sm:$0xf0] }
  0xd0   :  { %1938 = vmatpush.bf16.msra.mxu0 %v2832_v60  ;;  %v1712_v58 = vpop.f32.mrf.mxu2  ;;  %v2925_v60 = vld [vmem:[%s5430_s1 + $0x508] sm:$0xf0]  ;;  %v3543_v4 = vld [vmem:[%s5430_s1 + $0x754] sm:$0xf]  ;;  %v3285_v55 = vld [vmem:[%s5430_s1 + $0x7d8] sm:$0xf0]  ;;  %v1659_v41 = vadd.f32 %v4805_v43, %v1646_v48  ;;  %v3160_v42 = vor.u32 %v3527_v38, %v3157_v32 }
  0xd1   :  { %1951 = vmatpush.bf16.msra.mxu1 %v2896_v62  ;;  %v3485_v62 = vld [vmem:[%s5430_s1 + $0x584] sm:$0xf]  ;;  %v1725_v0 = vpop.f32.mrf.mxu3  ;;  %v3149_v43 = vld [vmem:[%s5430_s1 + $0x6c8] sm:$0xf0]  ;;  %v3061_v38 = vld [vmem:[%s5430_s1 + $0x618] sm:$0xf0] }
  0xd2   :  { %1964 = vmatpush.bf16.msra.mxu2 %v2960_v63  ;;  %v2989_v63 = vld [vmem:[%s5430_s1 + $0x588] sm:$0xf0]  ;;  %v3557_v58 = vld [vmem:[%s5430_s1 + $0x7c4] sm:$0xf] }
  0xd3   :  { %1977 = vmatpush.bf16.msra.mxu3 %v3024_v5  ;;  %v3531_v5 = vld [vmem:[%s5430_s1 + $0x6f4] sm:$0xf]  ;;  %v2992_v15 = vor.u32 %v3485_v62, %v2989_v63  ;;  %v1672_v63 = vadd.f32 %v4816_v49, %v1659_v41  ;;  %v3141_v49 = vld [vmem:[%s5430_s1 + $0x6b8] sm:$0xf0] }
  0xd4   :  { %1939 = vmatpush.bf16.msra.mxu0 %v2824_v12  ;;  %v2928_v12 = vor.u32 %v3469_v57, %v2925_v60  ;;  %v3176_v17 = vor.u32 %v3531_v5, %v3173_v8  ;;  %v3077_v5 = vld [vmem:[%s5430_s1 + $0x638] sm:$0xf0] }
  0xd5   :  { %1952 = vmatpush.bf16.msra.mxu1 %v2888_v13  ;;  %v3563_v13 = vld [vmem:[%s5430_s1 + $0x7f4] sm:$0xf] }
  0xd6   :  { %1965 = vmatpush.bf16.msra.mxu2 %v2952_v14  ;;  %v3301_v14 = vld [vmem:[%s5430_s1 + $0x7f8] sm:$0xf0] }
  0xd7   :  { %1978 = vmatpush.bf16.msra.mxu3 %v3016_v19  ;;  %v3240_v19 = vor.u32 %v3547_v9, %v3237_v10  ;;  %v3304_v36 = vor.u32 %v3563_v13, %v3301_v14  ;;  %v3539_v9 = vld [vmem:[%s5430_s1 + $0x734] sm:$0xf]  ;;  %v3205_v10 = vld [vmem:[%s5430_s1 + $0x738] sm:$0xf0]  ;;  %v3080_v13 = vor.u32 %v3507_v2, %v3077_v5  ;;  %v1685_v14 = vadd.f32 %v4948_v61, %v1672_v63  ;;  %v3133_v61 = vld [vmem:[%s5430_s1 + $0x6a8] sm:$0xf0] }
  0xd8   :  { %1940 = vmatpush.bf16.msra.mxu0 %v2816_v39  ;;  %v3545_v39 = vld [vmem:[%s5430_s1 + $0x764] sm:$0xf] }
  0xd9   :  { %1953 = vmatpush.bf16.msra.mxu1 %v2880_v45  ;;  %v3561_v45 = vld [vmem:[%s5430_s1 + $0x7e4] sm:$0xf]  ;;  %v3232_v51 = vor.u32 %v3545_v39, %v3229_v40 }
  0xda   :  { %1966 = vmatpush.bf16.msra.mxu2 %v2944_v46  ;;  %v3293_v46 = vld [vmem:[%s5430_s1 + $0x7e8] sm:$0xf0]  ;;  %v3553_v40 = vld [vmem:[%s5430_s1 + $0x7a4] sm:$0xf] }
  0xdb   :  { %1979 = vmatpush.bf16.msra.mxu3 %v3008_v52  ;;  %v3511_v52 = vld [vmem:[%s5430_s1 + $0x654] sm:$0xf]  ;;  %v3296_v26 = vor.u32 %v3561_v45, %v3293_v46  ;;  %v3261_v45 = vld [vmem:[%s5430_s1 + $0x7a8] sm:$0xf0] }
  0xdc   :  { %1941 = vmatpush.bf16.msra.mxu0 %v2808_v6  ;;  %v3096_v6 = vor.u32 %v3511_v52, %v3093_v53  ;;  %v3503_v53 = vld [vmem:[%s5430_s1 + $0x614] sm:$0xf]  ;;  %v3264_v32 = vor.u32 %v3553_v40, %v3261_v45 }
  0xdd   :  { %1954 = vmatpush.bf16.msra.mxu1 %v2872_v20  ;;  %v3085_v20 = vld [vmem:[%s5430_s1 + $0x648] sm:$0xf0] }
  0xde   :  { %1967 = vmatpush.bf16.msra.mxu2 %v2936_v21 }
  0xdf   :  { %1980 = vmatpush.bf16.msra.mxu3 %v3000_v59  ;;  %v3277_v59 = vld [vmem:[%s5430_s1 + $0x7c8] sm:$0xf0] }
  0xe0   :  { %1942 = vmatpush.bf16.msra.mxu0 %v2800_v7  ;;  %v5149_v57 = vpop.f32.mrf.mxu0  ;;  %v3523_v7 = vld [vmem:[%s5430_s1 + $0x6b4] sm:$0xf]  ;;  %v3280_v8 = vor.u32 %v3557_v58, %v3277_v59  ;;  %v3549_v58 = vld [vmem:[%s5430_s1 + $0x784] sm:$0xf]  ;;  %v3245_v59 = vld [vmem:[%s5430_s1 + $0x788] sm:$0xf0] }
  0xe1   :  { %1955 = vmatpush.bf16.msra.mxu1 %v2864_v11  ;;  %v5157_v62 = vpop.f32.mrf.mxu1  ;;  %v3555_v11 = vld [vmem:[%s5430_s1 + $0x7b4] sm:$0xf]  ;;  %v3248_v5 = vor.u32 %v3549_v58, %v3245_v59 }
  0xe2   :  { %1968 = vmatpush.bf16.msra.mxu2 %v2928_v12  ;;  %v3269_v12 = vld [vmem:[%s5430_s1 + $0x7b8] sm:$0xf0] }
  0xe3   :  { %1981 = vmatpush.bf16.msra.mxu3 %v2992_v15  ;;  %1943 = vmatmul.bf16.vlgmr.msra.gmra.mxu0 %v4263_v25  ;;  %v3559_v25 = vld [vmem:[%s5430_s1 + $0x7d4] sm:$0xf]  ;;  %v3144_v15 = vor.u32 %v3523_v7, %v3141_v49  ;;  %v3272_v24 = vor.u32 %v3555_v11, %v3269_v12  ;;  %v2115_v12 = vld [vmem:[%s5432_s4 + $0x48] sm:$0xff] }
  0xe4   :  { %1987 = vmatpush.bf16.msrb.mxu0 %v3112_v16  ;;  %1956 = vmatmul.bf16.vlgmr.msra.gmra.mxu1 %v4276_v30  ;;  %v3509_v30 = vld [vmem:[%s5430_s1 + $0x644] sm:$0xf]  ;;  %v3288_v21 = vor.u32 %v3559_v25, %v3285_v55  ;;  %v3208_v16 = vor.u32 %v3539_v9, %v3205_v10  ;;  %v3551_v25 = vld [vmem:[%s5430_s1 + $0x794] sm:$0xf]  ;;  %v3253_v55 = vld [vmem:[%s5430_s1 + $0x798] sm:$0xf0] }
  0xe5   :  { %2000 = vmatpush.bf16.msrb.mxu1 %v3176_v17  ;;  %1969 = vmatmul.bf16.vlgmr.msra.gmra.mxu2 %v4274_v29  ;;  %v3224_v29 = vor.u32 %v3543_v4, %v3221_v54  ;;  %v3088_v60 = vor.u32 %v3509_v30, %v3085_v20  ;;  %v3505_v17 = vld [vmem:[%s5430_s1 + $0x624] sm:$0xf]  ;;  %v3535_v4 = vld [vmem:[%s5430_s1 + $0x714] sm:$0xf]  ;;  %v3189_v54 = vld [vmem:[%s5430_s1 + $0x718] sm:$0xf0] }
  0xe6   :  { %2013 = vmatpush.bf16.msrb.mxu2 %v3240_v19  ;;  %1982 = vmatmul.bf16.vlgmr.msra.gmra.mxu3 %v4284_v33  ;;  %v3525_v33 = vld [vmem:[%s5430_s1 + $0x6c4] sm:$0xf]  ;;  %v3069_v19 = vld [vmem:[%s5430_s1 + $0x628] sm:$0xf0]  ;;  %v2116_v11 = vld [vmem:[%s5432_s4 + $0x50] sm:$0xff] }
  0xe7   :  { %2026 = vmatpush.bf16.msrb.mxu3 %v3304_v36  ;;  %v3152_v0 = vor.u32 %v3525_v33, %v3149_v43  ;;  %v3537_v36 = vld [vmem:[%s5430_s1 + $0x724] sm:$0xf]  ;;  %v3053_v20 = vld [vmem:[%s5430_s1 + $0x608] sm:$0xf0] }
  0xe8   :  { %1988 = vmatpush.bf16.msrb.mxu0 %v3104_v47  ;;  %v5194_v27 = vpop.f32.mrf.mxu2  ;;  %v1738_v46 = vpop.f32.mrf.mxu0  ;;  %v3072_v47 = vor.u32 %v3505_v17, %v3069_v19  ;;  %v3200_v52 = vor.u32 %v3537_v36, %v3197_v37  ;;  %v3501_v30 = vld [vmem:[%s5430_s1 + $0x604] sm:$0xf]  ;;  %v5304_v19 = vld [vmem:[%s5434_s3] sm:$0x3]  ;;  %v2112_v37 = vld [vmem:[%s5432_s4 + $0x30] sm:$0xff] }
  0xe9   :  { %2001 = vmatpush.bf16.msrb.mxu1 %v3168_v50  ;;  %v5205_v39 = vpop.f32.mrf.mxu3  ;;  %v1751_v48 = vpop.f32.mrf.mxu1  ;;  %v1698_v50 = vadd.f32 %v4959_v3, %v1685_v14  ;;  %v3125_v3 = vld [vmem:[%s5430_s1 + $0x698] sm:$0xf0]  ;;  %v3517_v33 = vld [vmem:[%s5430_s1 + $0x684] sm:$0xf]  ;;  %v3056_v63 = vor.u32 %v3501_v30, %v3053_v20  ;;  %v2049_v45 = vperm.slane %v5304_v19, 0 }
  0xea   :  { %2014 = vmatpush.bf16.msrb.mxu2 %v3232_v51  ;;  %v3136_v51 = vor.u32 %v3521_v22, %v3133_v61  ;;  %v3533_v43 = vld [vmem:[%s5430_s1 + $0x704] sm:$0xf]  ;;  %v2113_v22 = vld [vmem:[%s5432_s4 + $0x38] sm:$0xff] }
  0xeb   :  { %2027 = vmatpush.bf16.msrb.mxu3 %v3296_v26  ;;  %v3519_v26 = vld [vmem:[%s5430_s1 + $0x694] sm:$0xf]  ;;  %v1711_v41 = vadd.f32 %v4985_v18, %v1698_v50  ;;  %v3117_v18 = vld [vmem:[%s5430_s1 + $0x688] sm:$0xf0]  ;;  %v3184_v2 = vor.u32 %v3533_v43, %v3181_v44  ;;  %v2118_v10 = vld [vmem:[%s5432_s4 + $0x60] sm:$0xff] }
  0xec   :  { %1989 = vmatpush.bf16.msrb.mxu0 %v3096_v6  ;;  %v3064_v6 = vor.u32 %v3503_v53, %v3061_v38  ;;  %v2114_v14 = vld [vmem:[%s5432_s4 + $0x40] sm:$0xff]  ;;  %v2109_v53 = vld [vmem:[%s5432_s4 + $0x18] sm:$0xff] }
  0xed   :  { %2002 = vmatpush.bf16.msrb.mxu1 %v3160_v42  ;;  %v3128_v42 = vor.u32 %v3519_v26, %v3125_v3  ;;  %v2110_v50 = vld [vmem:[%s5432_s4 + $0x20] sm:$0xff]  ;;  %v2108_v3 = vld [vmem:[%s5432_s4 + $0x10] sm:$0xff] }
  0xee   :  { %2015 = vmatpush.bf16.msrb.mxu2 %v3224_v29  ;;  %v3192_v29 = vor.u32 %v3535_v4, %v3189_v54 }
  0xef   :  { %2028 = vmatpush.bf16.msrb.mxu3 %v3288_v21  ;;  %v3256_v21 = vor.u32 %v3551_v25, %v3253_v55 }
  0xf0   :  { %1990 = vmatpush.bf16.msrb.mxu0 %v3088_v60  ;;  %v1764_v56 = vpop.f32.mrf.mxu2 }
  0xf1   :  { %2003 = vmatpush.bf16.msrb.mxu1 %v3152_v0  ;;  %v1777_v60 = vpop.f32.mrf.mxu3  ;;  %v1724_v0 = vadd.f32 %v4996_v34, %v1711_v41  ;;  %v2120_v34 = vld [vmem:[%s5432_s4 + $0x70] sm:$0xff] }
  0xf2   :  { %2016 = vmatpush.bf16.msrb.mxu2 %v3216_v1  ;;  %v3120_v1 = vor.u32 %v3517_v33, %v3117_v18 }
  0xf3   :  { %2029 = vmatpush.bf16.msrb.mxu3 %v3280_v8  ;;  %v1737_v7 = vadd.f32 %v5149_v57, %v1724_v0  ;;  %v2121_v8 = vld [vmem:[%s5432_s4 + $0x78] sm:$0xff]  ;;  %v2119_v57 = vld [vmem:[%s5432_s4 + $0x68] sm:$0xff] }
  0xf4   :  { %1991 = vmatpush.bf16.msrb.mxu0 %v3080_v13  ;;  %v5296_v13 = vld [vmem:[%s5433_s2] sm:$0x3] }
  0xf5   :  { %2004 = vmatpush.bf16.msrb.mxu1 %v3144_v15  ;;  %v1750_v49 = vadd.f32 %v5157_v62, %v1737_v7  ;;  %v3576_v15 = vmov 4.0   ;;  %v2041_v61 = vperm.slane %v5296_v13, 0 }
  0xf6   :  { %2017 = vmatpush.bf16.msrb.mxu2 %v3208_v16  ;;  %3566 = vrcp.f32 %v3576_v15 }
  0xf7   :  { %2030 = vmatpush.bf16.msrb.mxu3 %v3272_v24  ;;  %v1763_v9 = vadd.f32 %v5194_v27, %v1750_v49 }
  0xf8   :  { %1992 = vmatpush.bf16.msrb.mxu0 %v3072_v47  ;;  %v2111_v47 = vld [vmem:[%s5432_s4 + $0x28] sm:$0xff] }
  0xf9   :  { %2005 = vmatpush.bf16.msrb.mxu1 %v3136_v51 }
  0xfa   :  { %2018 = vmatpush.bf16.msrb.mxu2 %v3200_v52 }
  0xfb   :  { %2031 = vmatpush.bf16.msrb.mxu3 %v3264_v32 }
  0xfc   :  { %1993 = vmatpush.bf16.msrb.mxu0 %v3064_v6  ;;  %v3567_v46 = vpop.eup %3566  ;;  %v2107_v6 = vld [vmem:[%s5432_s4 + $0x8] sm:$0xff] }
  0xfd   :  { %2006 = vmatpush.bf16.msrb.mxu1 %v3128_v42  ;;  %v2073_v52 = vmul.f32 4.0, %v3567_v46  ;;  %v2106_v42 = vld [vmem:[%s5432_s4] sm:$0xff]  ;;  %vm2077_vm1 = vweird.f32 %v3567_v46 }
  0xfe   :  { %2019 = vmatpush.bf16.msrb.mxu2 %v3192_v29 }
  0xff   :  { %2032 = vmatpush.bf16.msrb.mxu3 %v3256_v21  ;;  %v2074_v25 = vsub.f32 1.0, %v2073_v52  ;;  %v2132_v52 = vld [vmem:[%s5432_s4 + $0xd0] sm:$0xff] }
 0x100   :  { %1994 = vmatpush.bf16.msrb.mxu0 %v3056_v63 }
 0x101   :  { %2007 = vmatpush.bf16.msrb.mxu1 %v3120_v1  ;;  %v1801_v62 = vpop.f32.mrf.mxu1  ;;  %v2075_v20 = vmul.f32 %v3567_v46, %v2074_v25 }
 0x102   :  { %2020 = vmatpush.bf16.msrb.mxu2 %v3184_v2 }
 0x103   :  { %2033 = vmatpush.bf16.msrb.mxu3 %v3248_v5  ;;  %1995 = vmatmul.bf16.vlgmr.msrb.gmra.mxu0 %v4473_v23  ;;  %v2117_v23 = vld [vmem:[%s5432_s4 + $0x58] sm:$0xff]  ;;  %v2076_v44 = vadd.f32 %v3567_v46, %v2075_v20 }
 0x104   :  { %2138 = vmatpush.msra.mxu0 %v2121_v8  ;;  %2008 = vmatmul.bf16.vlgmr.msrb.gmra.mxu1 %v4486_v31  ;;  %v1788_v31 = vpop.f32.mrf.mxu0 }
 0x105   :  { %2021 = vmatmul.bf16.vlgmr.msrb.gmra.mxu2 %v4484_v28  ;;  %v1776_v28 = vadd.f32 %v5205_v39, %v1763_v9  ;;  %v5338_v63 = vsel %vm2077_vm1, %v3567_v46, %v2076_v44 }
 0x106   :  { %2034 = vmatmul.bf16.vlgmr.msrb.gmra.mxu3 %v4494_v35  ;;  %2139 = vmatpush.msra.mxu0 %v2120_v34 }
 0x107   :  { %v1789_v35 = vadd.f32 %v1788_v31, %v1776_v28 }
 0x108   :  { %2140 = vmatpush.msra.mxu0 %v2119_v57  ;;  %v1814_v17 = vpop.f32.mrf.mxu2 }
 0x109   :  { %v1802_v16 = vadd.f32 %v1801_v62, %v1789_v35  ;;  %v1827_v27 = vpop.f32.mrf.mxu3  ;;  %v1803_v39 = vpop.f32.mrf.mxu1 }
 0x10a   :  { %2141 = vmatpush.msra.mxu0 %v2118_v10  ;;  %v2135_v39 = vld [vmem:[%s5432_s4 + $0xe8] sm:$0xff] }
 0x10b   :  { %v1815_v24 = vadd.f32 %v1814_v17, %v1802_v16 }
 0x10c   :  { %2142 = vmatpush.msra.mxu0 %v2117_v23  ;;  %v1790_v36 = vpop.f32.mrf.mxu0 }
 0x10d   :  { %v1828_v40 = vadd.f32 %v1827_v27, %v1815_v24  ;;  %v2137_v27 = vld [vmem:[%s5432_s4 + $0xf8] sm:$0xff]  ;;  %v2136_v36 = vld [vmem:[%s5432_s4 + $0xf0] sm:$0xff] }
 0x10e   :  { %2143 = vmatpush.msra.mxu0 %v2116_v11  ;;  %2158 = vmatpush.msra.mxu1 %v2137_v27 }
 0x10f   :  { %v2045_v48 = vmul.f32 %v2041_v61, %v1828_v40 }
 0x110   :  { %2144 = vmatpush.msra.mxu0 %v2115_v12  ;;  %v1816_v38 = vpop.f32.mrf.mxu2  ;;  %2159 = vmatpush.msra.mxu1 %v2136_v36 }
 0x111   :  { %v2053_v51 = vadd.f32 %v2049_v45, %v2045_v48  ;;  %v1829_v32 = vpop.f32.mrf.mxu3  ;;  %v2131_v38 = vld [vmem:[%s5432_s4 + $0xc8] sm:$0xff] }
 0x112   :  { %2145 = vmatpush.msra.mxu0 %v2114_v14  ;;  %2160 = vmatpush.msra.mxu1 %v2135_v39 }
 0x113   :  { %v5323_v26 = vmax.f32 %v2053_v51, 0.0  ;;  %v2133_v51 = vld [vmem:[%s5432_s4 + $0xd8] sm:$0xff] }
 0x114   :  { %2146 = vmatpush.msra.mxu0 %v2113_v22 }
 0x115   :  { %v2058_v4 = vsel %vm2057_vm0, %v5323_v26, 0.0  ;;  %v2083_v54 = vrot.slane %v5323_v26, 4 }
 0x116   :  { %2147 = vmatpush.msra.mxu0 %v2112_v37  ;;  %v2059_v55 = vrot.slane %v2058_v4, 4 }
 0x117   :  { %v2087_v41 = vsel %vm2057_vm0, %v2083_v54, 0.0  ;;  %v2129_v54 = vld [vmem:[%s5432_s4 + $0xb8] sm:$0xff] }
 0x118   :  { %2148 = vmatpush.msra.mxu0 %v2111_v47  ;;  %v2060_v29 = vadd.f32 %v2059_v55, %v2058_v4  ;;  %v2088_v30 = vrot.slane %v2087_v41, 4  ;;  %v2134_v47 = vld [vmem:[%s5432_s4 + $0xe0] sm:$0xff]  ;;  %v2128_v55 = vld [vmem:[%s5432_s4 + $0xb0] sm:$0xff] }
 0x119   :  { %2161 = vmatpush.msra.mxu1 %v2134_v47  ;;  %v2130_v4 = vld [vmem:[%s5432_s4 + $0xc0] sm:$0xff] }
 0x11a   :  { %2149 = vmatpush.msra.mxu0 %v2110_v50  ;;  %v2061_v33 = vrot.slane %v2060_v29, 2  ;;  %v2089_v21 = vadd.f32 %v2088_v30, %v2087_v41  ;;  %v2127_v41 = vld [vmem:[%s5432_s4 + $0xa8] sm:$0xff]  ;;  %v2125_v30 = vld [vmem:[%s5432_s4 + $0x98] sm:$0xff] }
 0x11b   :  { %2162 = vmatpush.msra.mxu1 %v2133_v51 }
 0x11c   :  { %2150 = vmatpush.msra.mxu0 %v2109_v53  ;;  %v2062_v18 = vadd.f32 %v2061_v33, %v2060_v29  ;;  %v2090_v43 = vrot.slane %v2089_v21, 2  ;;  %v2124_v33 = vld [vmem:[%s5432_s4 + $0x90] sm:$0xff] }
 0x11d   :  { %2163 = vmatpush.msra.mxu1 %v2132_v52 }
 0x11e   :  { %2151 = vmatpush.msra.mxu0 %v2108_v3  ;;  %v2063_v56 = vrot.slane %v2062_v18, 1  ;;  %v2091_v58 = vadd.f32 %v2090_v43, %v2089_v21  ;;  %v2123_v21 = vld [vmem:[%s5432_s4 + $0x88] sm:$0xff] }
 0x11f   :  { %2164 = vmatpush.msra.mxu1 %v2131_v38 }
 0x120   :  { %2152 = vmatpush.msra.mxu0 %v2107_v6  ;;  %v2064_v59 = vadd.f32 %v2063_v56, %v2062_v18  ;;  %v2092_v60 = vrot.slane %v2091_v58, 1  ;;  %v1840_v1 = vpop.f32.mrf.mxu0  ;;  %v2122_v56 = vld [vmem:[%s5432_s4 + $0x80] sm:$0xff] }
 0x121   :  { %v1853_v2 = vpop.f32.mrf.mxu1  ;;  %2165 = vmatpush.msra.mxu1 %v2130_v4 }
 0x122   :  { %2153 = vmatpush.msra.mxu0 %v2106_v42  ;;  %v2093_v0 = vadd.f32 %v2092_v60, %v2091_v58  ;;  %v2079_v5 = vmul.f32 %v5338_v63, %v2064_v59  ;;  %v1854_v8 = vadd.f32 %v1853_v2, %v1840_v1  ;;  %v2126_v42 = vld [vmem:[%s5432_s4 + $0xa0] sm:$0xff]  ;;  %v2042_v2 = vperm.slane %v5296_v13, 1  ;;  %v2180_v13 = vld [vmem:[%s5435_s5 + $0x8] sm:$0xff] }
 0x123   :  { %2166 = vmatpush.msra.mxu1 %v2129_v54 }
 0x124   :  { %v2101_v7 = vmul.f32 %v2093_v0, %v5338_v63 }
 0x125   :  { %2167 = vmatpush.msra.mxu1 %v2128_v55 }
 0x126   :  { %v2104_v34 = vsel %vm2103_vm2, %v2079_v5, %v2101_v7 }
 0x127   :  { %2154 = vmatmul.f32.vlgmr.msra.gmra.mxu0 %v2104_v34  ;;  %2168 = vmatpush.msra.mxu1 %v2127_v41  ;;  %v2050_v34 = vperm.slane %v5304_v19, 1 }
 0x128   :  { %v1866_v49 = vpop.f32.mrf.mxu2  ;;  %v1842_v23 = vpop.f32.mrf.mxu0 }
 0x129   :  { %v1867_v57 = vadd.f32 %v1866_v49, %v1854_v8  ;;  %v1879_v9 = vpop.f32.mrf.mxu3  ;;  %v1855_v28 = vpop.f32.mrf.mxu1  ;;  %2169 = vmatpush.msra.mxu1 %v2126_v42  ;;  %v2181_v49 = vld [vmem:[%s5435_s5 + $0x10] sm:$0xff] }
 0x12a   :  { %2201 = vmatpush.msra.mxu2 %v2181_v49 }
 0x12b   :  { %v1880_v10 = vadd.f32 %v1879_v9, %v1867_v57  ;;  %2170 = vmatpush.msra.mxu1 %v2125_v30  ;;  %v2182_v57 = vld [vmem:[%s5435_s5 + $0x18] sm:$0xff]  ;;  %v2179_v9 = vld [vmem:[%s5435_s5] sm:$0xff] }
 0x12c   :  { %2221 = vmatpush.msra.mxu3 %v2182_v57  ;;  %2202 = vmatpush.msra.mxu2 %v2179_v9 }
 0x12d   :  { %2171 = vmatpush.msra.mxu1 %v2124_v33 }
 0x12e   :  { %2222 = vmatpush.msra.mxu3 %v2180_v13 }
 0x12f   :  { %2172 = vmatpush.msra.mxu1 %v2123_v21 }
 0x130   :  { %v1868_v31 = vpop.f32.mrf.mxu2 }
 0x131   :  { %v1881_v62 = vpop.f32.mrf.mxu3  ;;  %2173 = vmatpush.msra.mxu1 %v2122_v56 }
 0x140   :  { %v1892_v11 = vpop.f32.mrf.mxu0 }
 0x141   :  { %v1905_v35 = vpop.f32.mrf.mxu1  ;;  %v1893_v37 = vadd.f32 %v1892_v11, %v1880_v10 }
 0x143   :  { %v1906_v48 = vadd.f32 %v1905_v35, %v1893_v37 }
 0x148   :  { %v1918_v12 = vpop.f32.mrf.mxu2  ;;  %v1894_v15 = vpop.f32.mrf.mxu0 }
 0x149   :  { %v1931_v14 = vpop.f32.mrf.mxu3  ;;  %v1907_v16 = vpop.f32.mrf.mxu1  ;;  %v1919_v53 = vadd.f32 %v1918_v12, %v1906_v48 }
 0x14b   :  { %v1932_v25 = vadd.f32 %v1931_v14, %v1919_v53 }
 0x150   :  { %v1920_v17 = vpop.f32.mrf.mxu2 }
 0x151   :  { %v1933_v22 = vpop.f32.mrf.mxu3 }
 0x160   :  { %v1944_v24 = vpop.f32.mrf.mxu0 }
 0x161   :  { %v1957_v61 = vpop.f32.mrf.mxu1  ;;  %v1945_v6 = vadd.f32 %v1944_v24, %v1932_v25 }
 0x163   :  { %v1958_v29 = vadd.f32 %v1957_v61, %v1945_v6 }
 0x168   :  { %v1970_v40 = vpop.f32.mrf.mxu2  ;;  %v1946_v46 = vpop.f32.mrf.mxu0 }
 0x169   :  { %v1983_v45 = vpop.f32.mrf.mxu3  ;;  %v1959_v50 = vpop.f32.mrf.mxu1  ;;  %v1971_v20 = vadd.f32 %v1970_v40, %v1958_v29 }
 0x16b   :  { %v1984_v18 = vadd.f32 %v1983_v45, %v1971_v20 }
 0x170   :  { %v1972_v32 = vpop.f32.mrf.mxu2 }
 0x171   :  { %v1985_v3 = vpop.f32.mrf.mxu3 }
 0x180   :  { %v1996_v43 = vpop.f32.mrf.mxu0 }
 0x181   :  { %v2009_v44 = vpop.f32.mrf.mxu1  ;;  %v1997_v58 = vadd.f32 %v1996_v43, %v1984_v18 }
 0x183   :  { %v2010_v59 = vadd.f32 %v2009_v44, %v1997_v58 }
 0x188   :  { %v2022_v60 = vpop.f32.mrf.mxu2  ;;  %v1998_v5 = vpop.f32.mrf.mxu0 }
 0x189   :  { %v2023_v0 = vadd.f32 %v2022_v60, %v2010_v59  ;;  %v2035_v1 = vpop.f32.mrf.mxu3  ;;  %v2011_v7 = vpop.f32.mrf.mxu1 }
 0x18b   :  { %v2036_v8 = vadd.f32 %v2035_v1, %v2023_v0 }
 0x18d   :  { %v2046_v10 = vmul.f32 %v2042_v2, %v2036_v8 }
 0x18f   :  { %v2054_v19 = vadd.f32 %v2050_v34, %v2046_v10 }
 0x190   :  { %v2024_v23 = vpop.f32.mrf.mxu2 }
 0x191   :  { %v5405_v28 = vmax.f32 %v2054_v19, 0.0  ;;  %v2037_v31 = vpop.f32.mrf.mxu3 }
 0x193   :  { %v2065_v62 = vsel %vm2057_vm0, %v5405_v28, 0.0  ;;  %v2084_v11 = vrot.slane %v5405_v28, 4 }
 0x194   :  { %v2066_v35 = vrot.slane %v2065_v62, 4 }
 0x195   :  { %v2094_v12 = vsel %vm2057_vm0, %v2084_v11, 0.0 }
 0x196   :  { %v2067_v14 = vadd.f32 %v2066_v35, %v2065_v62  ;;  %v2095_v15 = vrot.slane %v2094_v12, 4 }
 0x198   :  { %v2068_v16 = vrot.slane %v2067_v14, 2  ;;  %v2096_v17 = vadd.f32 %v2095_v15, %v2094_v12 }
 0x19a   :  { %v2069_v22 = vadd.f32 %v2068_v16, %v2067_v14  ;;  %v2097_v24 = vrot.slane %v2096_v17, 2 }
 0x19c   :  { %v2070_v27 = vrot.slane %v2069_v22, 1  ;;  %v2098_v61 = vadd.f32 %v2097_v24, %v2096_v17 }
 0x19e   :  { %v2071_v36 = vadd.f32 %v2070_v27, %v2069_v22  ;;  %v2099_v37 = vrot.slane %v2098_v61, 1 }
 0x1a0   :  { %v2100_v39 = vadd.f32 %v2099_v37, %v2098_v61  ;;  %v2080_v40 = vmul.f32 %v5338_v63, %v2071_v36 }
 0x1a2   :  { %v2102_v45 = vmul.f32 %v2100_v39, %v5338_v63 }
 0x1a4   :  { %v2105_v46 = vsel %vm2103_vm2, %v2080_v40, %v2102_v45  ;;  %v2155_v47 = vpop.f32.mrf.mxu0 }
 0x1a5   :  { %2174 = vmatmul.f32.vlgmr.msra.gmra.mxu1 %v2105_v46 }
 0x222   :  { %v2175_v48 = vpop.f32.mrf.mxu1 }
 0x223   :  { %v2176_v50 = vadd.f32 %v2175_v48, %v2155_v47 }
 0x225   :  { %v2178_v51 = vmax.f32 %v2176_v50, 0.0 }
 0x227   :  { %3305 = vmatmul.msk.f32.vlgmr.msra.gmra.mxu2 %vm2183_vm3, %v2178_v51  ;;  %3306 = vmatmul.msk.f32.vlgmr.msra.gmra.mxu3 %vm2183_vm3, %v2178_v51 }
 0x2aa   :  { %v2204_v52 = vpop.f32.mrf.mxu2  ;;  %v2224_v53 = vpop.f32.mrf.mxu3 }
 0x2ab   :  { %v3307_v38 = vmul.f32 -1.442695, %v2204_v52  ;;  %v3308_v32 = vmul.f32 -1.442695, %v2224_v53 }
 0x2ad   :  { %3568 = vpow2.f32 %v3307_v38 }
 0x2ae   :  { %3570 = vpow2.f32 %v3308_v32 }
 0x2b3   :  { %v3569_v3 = vpop.eup %3568 }
 0x2b4   :  { %v3571_v4 = vpop.eup %3570  ;;  %v2233_v54 = vadd.f32 1.0, %v3569_v3 }
 0x2b5   :  { %v2234_v63 = vadd.f32 1.0, %v3571_v4 }
 0x2b6   :  { %3572 = vrcp.f32 %v2233_v54  ;;  %v2246_v29 = vand.u32 2147483648, %v2233_v54  ;;  %v2244_v33 = vand.u32 2147483647, %v2233_v54  ;;  %vm2240_vm6 = vweird.f32 %v2233_v54 }
 0x2b7   :  { %3574 = vrcp.f32 %v2234_v63  ;;  %v2261_v21 = vand.u32 2147483648, %v2234_v63  ;;  %v2259_v43 = vand.u32 2147483647, %v2234_v63  ;;  %vm2255_vm8 = vweird.f32 %v2234_v63 }
 0x2b8   :  { %v2247_v56 = vor.u32 1.1754944e-38, %v2246_v29  ;;  %vm2245_vm9 = vcmp.eq.f32.partialorder %v2244_v33, 8.507059e+37 }
 0x2b9   :  { %v2262_v60 = vor.u32 1.1754944e-38, %v2261_v21  ;;  %vm2260_vm11 = vcmp.eq.f32.partialorder %v2259_v43, 8.507059e+37 }
 0x2bc   :  { %v3573_v25 = vpop.eup %3572 }
 0x2bd   :  { %v3575_v55 = vpop.eup %3574  ;;  %v2236_v6 = vmul.f32 %v3573_v25, %v2233_v54  ;;  %vm2241_vm4 = vweird.f32 %v3573_v25 }
 0x2be   :  { %v2251_v41 = vmul.f32 %v3575_v55, %v2234_v63  ;;  %vm2256_vm5 = vweird.f32 %v3575_v55  ;;  %vm2242_vm7 = vmor %vm2240_vm6, %vm2241_vm4 }
 0x2bf   :  { %v2237_v42 = vsub.f32 1.0, %v2236_v6  ;;  %vm2257_vm10 = vmor %vm2255_vm8, %vm2256_vm5 }
 0x2c0   :  { %v2252_v30 = vsub.f32 1.0, %v2251_v41 }
 0x2c1   :  { %v2238_v20 = vmul.f32 %v3573_v25, %v2237_v42 }
 0x2c2   :  { %v2253_v18 = vmul.f32 %v3575_v55, %v2252_v30 }
 0x2c3   :  { %v2239_v44 = vadd.f32 %v3573_v25, %v2238_v20 }
 0x2c4   :  { %v2254_v58 = vadd.f32 %v3575_v55, %v2253_v18 }
 0x2c5   :  { %v2243_v59 = vsel %vm2242_vm7, %v3573_v25, %v2239_v44 }
 0x2c6   :  { %v2248_v0 = vsel %vm2245_vm9, %v2247_v56, %v2243_v59  ;;  %v2258_v1 = vsel %vm2257_vm10, %v3575_v55, %v2254_v58 }
 0x2c7   :  { %v2265_v2 = vperm.slane %v2248_v0, 0  ;;  %v2271_v5 = vperm.slane %v2248_v0, 1  ;;  %v2263_v7 = vsel %vm2260_vm11, %v2262_v60, %v2258_v1 }
 0x2c8   :  { %v2266_v8 = vperm.slane %v2263_v7, 0  ;;  %v2272_v34 = vperm.slane %v2263_v7, 1 }
 0x2c9   :  { %v2267_v49 = vmul.f32 %v2265_v2, %v5323_v26  ;;  %v2273_v57 = vmul.f32 %v2271_v5, %v5323_v26 }
 0x2ca   :  { %v2268_v9 = vmul.f32 %v2266_v8, %v5405_v28  ;;  %v2274_v13 = vmul.f32 %v2272_v34, %v5405_v28 }
 0x2cb   :  { %2269 = vst [vmem:[%s5436_s6] sm:$0xf] %v2267_v49 }
 0x2cc   :  { %2275 = vst [vmem:[%s5436_s6] sm:$0xf0] %v2273_v57 }
 0x2cd   :  { %2270 = vst [vmem:[%s5436_s6 + $0x8] sm:$0xf] %v2268_v9 }
 0x2ce   :  { %2276 = vst [vmem:[%s5436_s6 + $0x8] sm:$0xf0] %v2274_v13 }

</bundles_post_ra>
